<compile_context>
chip_gen: v7x
topology: tpu7x:2x2x1
jax: 0.10.0
libtpu: 0.0.40
codegen_flags: <defaults>
</compile_context>

<pallas_src>
import jax
import jax.numpy as jnp
from jax import lax
from jax.experimental import pallas as pl
from jax.experimental.pallas import tpu as pltpu


def _round_up(x, m):
    return ((x + m - 1) // m) * m


# -----------------------------------------------------------------------------
# Kernel A: fused merge + layer-0 LSTM input projection
# -----------------------------------------------------------------------------
def merge_proj_kernel(feat_ref, wm_ref, bm_ref, wih_ref, b0_ref, out_ref):
    rnn_in = jnp.tanh(
        jnp.dot(feat_ref[...].astype(jnp.bfloat16), wm_ref[...],
                preferred_element_type=jnp.float32) + bm_ref[...])
    out_ref[...] = (
        jnp.dot(rnn_in.astype(jnp.bfloat16), wih_ref[...],
                preferred_element_type=jnp.float32) + b0_ref[...])


def merge_and_input_proj(feat, wm, bm, wih0p, b0p):
    R, F = feat.shape
    E = wm.shape[-1]
    G = wih0p.shape[-1]
    # big row tiles (per-grid-step overhead ~0.35us); pad rows so no tail is dropped
    row_block = min(256, _round_up(R, 8))
    Rp = _round_up(R, row_block)
    if Rp != R:
        feat = jnp.pad(feat, ((0, Rp - R), (0, 0)))
    out = pl.pallas_call(
        merge_proj_kernel,
        out_shape=jax.ShapeDtypeStruct((Rp, G), jnp.float32),
        grid=(Rp // row_block,),
        in_specs=[
            pl.BlockSpec((row_block, F), lambda i: (i, 0)),
            pl.BlockSpec((F, E), lambda i: (0, 0)),
            pl.BlockSpec((1, E), lambda i: (0, 0)),
            pl.BlockSpec((E, G), lambda i: (0, 0)),
            pl.BlockSpec((1, G), lambda i: (0, 0)),
        ],
        out_specs=pl.BlockSpec((row_block, G), lambda i: (i, 0)),
        compiler_params=pltpu.CompilerParams(dimension_semantics=("parallel",)),
    )(feat, wm, bm, wih0p, b0p)
    return out[:R]


# -----------------------------------------------------------------------------
# Kernel B: 2-layer LSTM (PyTorch gate order i,f,g,o; c'=f*c+i*g; h'=o*tanh(c'))
# Hidden padded to Hp (multiple of 128) so gate slices are lane-aligned.
# -----------------------------------------------------------------------------
def lstm2_kernel(xg0_ref, whh0_ref, w1_ref, b1_ref, h0_ref, c0_ref,
                 y_ref, hn_ref, cn_ref, h_s, c1_s, c2_s):
    T = xg0_ref.shape[1]
    Hp = c1_s.shape[-1]

    h_s[:, :Hp] = h0_ref[0]        # layer-1 hidden lives in h_s[:, :Hp]
    h_s[:, Hp:] = h0_ref[1]        # layer-2 hidden lives in h_s[:, Hp:]
    c1_s[...] = c0_ref[0]
    c2_s[...] = c0_ref[1]

    def gates_to_hc(g, c_prev):
        i = jax.nn.sigmoid(g[:, 0 * Hp:1 * Hp])
        f = jax.nn.sigmoid(g[:, 1 * Hp:2 * Hp])
        gg = jnp.tanh(g[:, 2 * Hp:3 * Hp])
        o = jax.nn.sigmoid(g[:, 3 * Hp:4 * Hp])
        c_new = f * c_prev + i * gg
        return o * jnp.tanh(c_new), c_new

    # T is small and static here -> full unroll with static (lane-aligned) indices.
    # TODO(synk): for long sequences switch to lax.fori_loop over a time-major layout.
    for t in range(T):
        # layer 0: x-projection + both biases precomputed in kernel A (xg0)
        g0 = xg0_ref[:, t, :] + jnp.dot(
            h_s[:, :Hp].astype(jnp.bfloat16), whh0_ref[...],
            preferred_element_type=jnp.float32)
        h1, c1 = gates_to_hc(g0, c1_s[...])
        c1_s[...] = c1
        h_s[:, :Hp] = h1
        # layer 1: fused [h1 | h2_prev] @ [Wih1 ; Whh1]
        # TODO(synk): nn.LSTM inter-layer dropout (p=0.2) is train-only; eval semantics.
        g1 = jnp.dot(h_s[...].astype(jnp.bfloat16), w1_ref[...],
                     preferred_element_type=jnp.float32) + b1_ref[...]
        h2, c2 = gates_to_hc(g1, c2_s[...])
        c2_s[...] = c2
        h_s[:, Hp:] = h2
        y_ref[:, t, :] = h2

    hn_ref[0] = h_s[:, :Hp]
    hn_ref[1] = h_s[:, Hp:]
    cn_ref[0] = c1_s[...]
    cn_ref[1] = c2_s[...]


def lstm2_pallas(xg0, whh0p, w1stack, b1p, h0p, c0p):
    B, T, G = xg0.shape
    Hp = h0p.shape[-1]
    b_block = B if B <= 8 else 8
    assert B % b_block == 0
    out_shape = (
        jax.ShapeDtypeStruct((B, T, Hp), jnp.float32),   # y (batch-major, no transpose)
        jax.ShapeDtypeStruct((2, B, Hp), jnp.float32),   # hn
        jax.ShapeDtypeStruct((2, B, Hp), jnp.float32),   # cn
    )
    return pl.pallas_call(
        lstm2_kernel,
        out_shape=out_shape,
        grid=(B // b_block,),
        in_specs=[
            pl.BlockSpec((b_block, T, G), lambda i: (i, 0, 0)),
            pl.BlockSpec((Hp, G), lambda i: (0, 0)),
            pl.BlockSpec((2 * Hp, G), lambda i: (0, 0)),
            pl.BlockSpec((1, G), lambda i: (0, 0)),
            pl.BlockSpec((2, b_block, Hp), lambda i: (0, i, 0)),
            pl.BlockSpec((2, b_block, Hp), lambda i: (0, i, 0)),
        ],
        out_specs=(
            pl.BlockSpec((b_block, T, Hp), lambda i: (i, 0, 0)),
            pl.BlockSpec((2, b_block, Hp), lambda i: (0, i, 0)),
            pl.BlockSpec((2, b_block, Hp), lambda i: (0, i, 0)),
        ),
        scratch_shapes=[
            pltpu.VMEM((b_block, 2 * Hp), jnp.float32),   # [h1 | h2]
            pltpu.VMEM((b_block, Hp), jnp.float32),       # c1
            pltpu.VMEM((b_block, Hp), jnp.float32),       # c2
        ],
        compiler_params=pltpu.CompilerParams(dimension_semantics=("parallel",)),
    )(xg0, whh0p, w1stack, b1p, h0p, c0p)


# -----------------------------------------------------------------------------
# Kernel C: global ("general") attention + linear_out + readout (vocab-tiled)
# -----------------------------------------------------------------------------
def attn_readout_kernel(lens_ref, q_ref, mem_ref, wa_ref, woc_ref, woq_ref,
                        wr_ref, br_ref, dec_ref, attn_ref, logits_ref, dec_s):
    b = pl.program_id(0)
    vt = pl.program_id(1)

    @pl.when(vt == 0)
    def _():
        q = q_ref[0].astype(jnp.bfloat16)                  # [T, Hp] (padded lanes are 0)
        mem = mem_ref[0]                                   # [S, H]
        mem16 = mem.astype(jnp.bfloat16)
        # "general" attention score: (q @ Wa) . mem
        qw = jnp.dot(q, wa_ref[...], preferred_element_type=jnp.float32)
        scores = lax.dot_general(
            qw.astype(jnp.bfloat16), mem16,
            dimension_numbers=(((1,), (1,)), ((), ())),
            preferred_element_type=jnp.float32)            # [T, S]
        valid = (jax.lax.broadcasted_iota(jnp.int32, scores.shape, 1)
                 < lens_ref[b])
        scores = jnp.where(valid, scores, jnp.float32(-1e9))
        scores = scores - jnp.max(scores, axis=-1, keepdims=True)
        e = jnp.exp(scores)
        attn = e * pl.reciprocal(jnp.sum(e, axis=-1, keepdims=True), approx=True)
        ctx = jnp.dot(attn.astype(jnp.bfloat16), mem16,
                      preferred_element_type=jnp.float32)  # [T, H]
        dec = jnp.tanh(
            jnp.dot(ctx.astype(jnp.bfloat16), woc_ref[...],
                    preferred_element_type=jnp.float32)
            + jnp.dot(q, woq_ref[...], preferred_element_type=jnp.float32))
        dec_s[...] = dec
        dec_ref[0] = dec
        attn_ref[0] = attn

    # readout tile (runs for every vocab tile; dec cached in VMEM scratch)
    logits_ref[0] = (
        jnp.dot(dec_s[...].astype(jnp.bfloat16), wr_ref[...],
                preferred_element_type=jnp.float32) + br_ref[...])


def attn_readout_pallas(q, mem, lens, wa_p, wo_c, wo_q_p, wr, br):
    B, T, Hp = q.shape
    _, S, H = mem.shape
    V = wr.shape[-1]
    v_block = V if V <= 512 else 512      # stream Wr in vocab tiles (v7x VMEM-friendly)
    assert V % v_block == 0, "pad the vocab to a multiple of the vocab tile"
    out_shape = (
        jax.ShapeDtypeStruct((B, T, H), jnp.float32),
        jax.ShapeDtypeStruct((B, T, S), jnp.float32),
        jax.ShapeDtypeStruct((B, T, V), jnp.float32),
    )
    return pl.pallas_call(
        attn_readout_kernel,
        out_shape=out_shape,
        grid=(B, V // v_block),
        in_specs=[
            pl.BlockSpec(memory_space=pltpu.MemorySpace.SMEM),        # lens (B,)
            pl.BlockSpec((1, T, Hp), lambda b, v: (b, 0, 0)),         # q (padded H)
            pl.BlockSpec((1, S, H), lambda b, v: (b, 0, 0)),          # memory bank
            pl.BlockSpec((Hp, H), lambda b, v: (0, 0)),               # Wa (rows padded)
            pl.BlockSpec((H, H), lambda b, v: (0, 0)),                # Wo_ctx
            pl.BlockSpec((Hp, H), lambda b, v: (0, 0)),               # Wo_query (rows padded)
            pl.BlockSpec((H, v_block), lambda b, v: (0, v)),          # readout weight tile
            pl.BlockSpec((1, v_block), lambda b, v: (0, v)),          # readout bias tile
        ],
        out_specs=(
            pl.BlockSpec((1, T, H), lambda b, v: (b, 0, 0)),
            pl.BlockSpec((1, T, S), lambda b, v: (b, 0, 0)),
            pl.BlockSpec((1, T, v_block), lambda b, v: (b, 0, v)),
        ),
        scratch_shapes=[pltpu.VMEM((T, H), jnp.float32)],
        compiler_params=pltpu.CompilerParams(
            dimension_semantics=("parallel", "arbitrary")),
    )(lens, q, mem, wa_p, wo_c, wo_q_p, wr, br)


# -----------------------------------------------------------------------------
# WordDecoder.forward wrapper (glue: gathers, weight fusion/padding, reshapes)
# -----------------------------------------------------------------------------
def word_decoder_forward(params, dec_inputs, enc_memory_bank, enc_memory_len,
                         sent_planner_output, sent_id_template, sent_mask_template,
                         h0, c0):
    B, T = dec_inputs.shape
    H = enc_memory_bank.shape[-1]
    E = params["emb"].shape[-1]
    Hp = _round_up(H, 128)
    bf16 = jnp.bfloat16

    def pad_gate_cols(w):                    # (K, 4H) -> (K, 4Hp), i/f/g/o kept per-gate
        K = w.shape[0]
        w4 = w.reshape(K, 4, H)
        return jnp.pad(w4, ((0, 0), (0, 0), (0, Hp - H))).reshape(K, 4 * Hp)

    def pad_rows(w):                         # (H, X) -> (Hp, X)
        return jnp.pad(w, ((0, Hp - H), (0, 0)))

    # fused / padded parameter prep (tiny, runs under jit)
    wm = jnp.concatenate([params["wt"], params["wp"]], axis=0).astype(bf16)  # (E+H, E)
    bm = params["bt"] + params["bp"]                                         # (1, E)
    wih0p = pad_gate_cols(params["wih0"]).astype(bf16)                       # (E, 4Hp)
    b0p = pad_gate_cols(params["b0"])                                        # (1, 4Hp)
    whh0p = pad_gate_cols(pad_rows(params["whh0"])).astype(bf16)             # (Hp, 4Hp)
    w1stack = jnp.concatenate(
        [pad_gate_cols(pad_rows(params["wih1"])),
         pad_gate_cols(pad_rows(params["whh1"]))], axis=0).astype(bf16)      # (2Hp, 4Hp)
    b1p = pad_gate_cols(params["b1"])                                        # (1, 4Hp)
    wa_p = pad_rows(params["wa"]).astype(bf16)                               # (Hp, H)
    woq_p = pad_rows(params["wo_q"]).astype(bf16)                            # (Hp, H)
    wo_c = params["wo_c"].astype(bf16)                                       # (H, H)
    wr = params["wr"].astype(bf16)                                           # (H, V)
    br = params["br"]                                                        # (1, V)
    h0p = jnp.pad(h0, ((0, 0), (0, 0), (0, Hp - H)))                         # (2, B, Hp)
    c0p = jnp.pad(c0, ((0, 0), (0, 0), (0, Hp - H)))

    # glue gathers (XLA); mask is pre-multiplied here (fuses into the gather)
    gathered = jnp.take_along_axis(
        sent_planner_output, sent_id_template[:, :, None], axis=1)           # [B,T,H]
    masked = sent_mask_template.astype(jnp.float32)[:, :, None] * gathered
    word_emb = jnp.take(params["emb"], dec_inputs, axis=0)                   # [B,T,E]
    feat = jnp.concatenate([word_emb, masked], axis=-1).reshape(B * T, E + H)

    # Kernel A: rnn_in + hoisted layer-0 input projection
    xg0 = merge_and_input_proj(feat, wm, bm, wih0p, b0p).reshape(B, T, 4 * Hp)

    # Kernel B: 2-layer LSTM recurrence
    y, hn_p, cn_p = lstm2_pallas(xg0, whh0p, w1stack, b1p, h0p, c0p)         # y: [B,T,Hp]

    # Kernel C: attention + readout
    lens = enc_memory_len.astype(jnp.int32).reshape(B)
    dec_outs, enc_attn, token_logits = attn_readout_pallas(
        y, enc_memory_bank, lens, wa_p, wo_c, woq_p, wr, br)

    dec_state = (hn_p[:, :, :H], cn_p[:, :, :H])
    return dec_state, dec_outs, enc_attn, token_logits


# -----------------------------------------------------------------------------
# Deterministic parameter construction + demo
# -----------------------------------------------------------------------------
def make_params(key, V, E, H):
    ks = jax.random.split(key, 16)

    def init(k, shape, scale=0.1):
        return (scale * jax.random.normal(k, shape)).astype(jnp.float32)

    return {
        "emb": init(ks[0], (V, E)),
        # word_transformation: Linear(E, E); planner_transformation: Linear(H, E)
        "wt": init(ks[1], (E, E)), "bt": init(ks[2], (1, E)),
        "wp": init(ks[3], (H, E)), "bp": init(ks[4], (1, E)),
        # 2-layer LSTM (weights stored transposed for x@W; biases are b_ih + b_hh)
        "wih0": init(ks[5], (E, 4 * H)), "whh0": init(ks[6], (H, 4 * H)),
        "b0": init(ks[7], (1, 4 * H)),
        "wih1": init(ks[8], (H, 4 * H)), "whh1": init(ks[9], (H, 4 * H)),
        "b1": init(ks[10], (1, 4 * H)),
        # GlobalAttention (general): linear_in [H,H], linear_out split into ctx/query halves
        "wa": init(ks[11], (H, H)),
        "wo_c": init(ks[12], (H, H)), "wo_q": init(ks[13], (H, H)),
        # readout: Linear(H, V)
        "wr": init(ks[14], (H, V)), "br": init(ks[15], (1, V)),
    }


if __name__ == "__main__":
    B, T, E, H, V, S, P = 2, 8, 32, 32, 64, 8, 4

    key = jax.random.PRNGKey(0)
    k_par, k_in, k_mem, k_spo, k_sid, k_h, k_c = jax.random.split(key, 7)

    params = make_params(k_par, V, E, H)

    dec_inputs = jax.random.randint(k_in, (B, T), 0, V, dtype=jnp.int32)
    enc_memory_bank = (0.1 * jax.random.normal(k_mem, (B, S, H))).astype(jnp.float32)
    enc_memory_len = jnp.array([S, S - 3], dtype=jnp.int32)
    sent_planner_output = (0.1 * jax.random.normal(k_spo, (B, P, H))).astype(jnp.float32)
    sent_id_template = jax.random.randint(k_sid, (B, T), 0, P, dtype=jnp.int32)
    tgt_word_len = jnp.array([T, T - 2], dtype=jnp.int32)
    sent_mask_template = (jnp.arange(T)[None, :] < tgt_word_len[:, None]).astype(jnp.float32)
    # decoder init state (would come from init_state(encoder_final) in the original code)
    h0 = (0.1 * jax.random.normal(k_h, (2, B, H))).astype(jnp.float32)
    c0 = (0.1 * jax.random.normal(k_c, (2, B, H))).astype(jnp.float32)

    fwd = jax.jit(word_decoder_forward)
    (hn, cn), dec_outs, enc_attn, token_logits = fwd(
        params, dec_inputs, enc_memory_bank, enc_memory_len,
        sent_planner_output, sent_id_template, sent_mask_template, h0, c0)
    jax.block_until_ready((hn, cn, dec_outs, enc_attn, token_logits))

    assert hn.shape == (2, B, H) and cn.shape == (2, B, H)
    assert dec_outs.shape == (B, T, H)
    assert enc_attn.shape == (B, T, S)
    assert token_logits.shape == (B, T, V)
    assert bool(jnp.all(jnp.isfinite(dec_outs)))
    assert bool(jnp.all(jnp.isfinite(token_logits)))
    # attention rows sum to ~1 (approx EUP reciprocal + bf16 MXU operands)
    assert bool(jnp.allclose(enc_attn.sum(-1), 1.0, atol=5e-3))

    print("KERNEL_OK")
</pallas_src>

<mosaic_0001>
module attributes {stable_mosaic.version = 11 : i64} {
  func.func @merge_proj_kernel(%arg0: i32, %arg1: memref<16x64xf32, #tpu.memory_space<vmem>>, %arg2: memref<64x32xbf16, #tpu.memory_space<vmem>>, %arg3: memref<1x32xf32, #tpu.memory_space<vmem>>, %arg4: memref<32x512xbf16, #tpu.memory_space<vmem>>, %arg5: memref<1x512xf32, #tpu.memory_space<vmem>>, %arg6: memref<16x512xf32, #tpu.memory_space<vmem>>) attributes {dimension_semantics = [#tpu.dimension_semantics<parallel>], iteration_bounds = array<i64: 1>, scalar_prefetch = 0 : i64, scratch_operands = 0 : i64, tpu.core_type = #tpu.core_type<tc>, window_params = [{transform_indices = @transform_0, window_bounds = array<i64: 16, 64>}, {pipeline_mode = #tpu.pipeline_mode<synchronous>, transform_indices = @transform_1, window_bounds = array<i64: 64, 32>}, {pipeline_mode = #tpu.pipeline_mode<synchronous>, transform_indices = @transform_2, window_bounds = array<i64: 1, 32>}, {pipeline_mode = #tpu.pipeline_mode<synchronous>, transform_indices = @transform_3, window_bounds = array<i64: 32, 512>}, {pipeline_mode = #tpu.pipeline_mode<synchronous>, transform_indices = @transform_4, window_bounds = array<i64: 1, 512>}, {transform_indices = @transform_5, window_bounds = array<i64: 16, 512>}]} {
    %c0 = arith.constant 0 : index
    %c0_0 = arith.constant 0 : index
    %0 = vector.load %arg1[%c0, %c0_0] : memref<16x64xf32, #tpu.memory_space<vmem>>, vector<16x64xf32>
    %1 = arith.truncf %0 : vector<16x64xf32> to vector<16x64xbf16>
    %c0_1 = arith.constant 0 : index
    %c0_2 = arith.constant 0 : index
    %2 = vector.load %arg2[%c0_1, %c0_2] : memref<64x32xbf16, #tpu.memory_space<vmem>>, vector<64x32xbf16>
    %cst = arith.constant dense<0.000000e+00> : vector<16x32xf32>
    %3 = tpu.matmul %1, %2, %cst {dimension_numbers = #tpu.dot_dimension_numbers<[1], [0], [0], [1], [0, 0, 1, 1], [], []>} : vector<16x64xbf16>, vector<64x32xbf16>, vector<16x32xf32> -> vector<16x32xf32>
    %c0_3 = arith.constant 0 : index
    %c0_4 = arith.constant 0 : index
    %4 = vector.load %arg3[%c0_3, %c0_4] : memref<1x32xf32, #tpu.memory_space<vmem>>, vector<1x32xf32>
    %5 = vector.broadcast %4 : vector<1x32xf32> to vector<16x32xf32>
    %6 = arith.addf %3, %5 : vector<16x32xf32>
    %7 = math.tanh %6 : vector<16x32xf32>
    %8 = arith.truncf %7 : vector<16x32xf32> to vector<16x32xbf16>
    %c0_5 = arith.constant 0 : index
    %c0_6 = arith.constant 0 : index
    %9 = vector.load %arg4[%c0_5, %c0_6] : memref<32x512xbf16, #tpu.memory_space<vmem>>, vector<32x512xbf16>
    %cst_7 = arith.constant dense<0.000000e+00> : vector<16x512xf32>
    %10 = tpu.matmul %8, %9, %cst_7 {dimension_numbers = #tpu.dot_dimension_numbers<[1], [0], [0], [1], [0, 0, 1, 1], [], []>} : vector<16x32xbf16>, vector<32x512xbf16>, vector<16x512xf32> -> vector<16x512xf32>
    %c0_8 = arith.constant 0 : index
    %c0_9 = arith.constant 0 : index
    %11 = vector.load %arg5[%c0_8, %c0_9] : memref<1x512xf32, #tpu.memory_space<vmem>>, vector<1x512xf32>
    %12 = vector.broadcast %11 : vector<1x512xf32> to vector<16x512xf32>
    %13 = arith.addf %10, %12 : vector<16x512xf32>
    %c0_10 = arith.constant 0 : index
    %c0_11 = arith.constant 0 : index
    %14 = vector.load %arg6[%c0_10, %c0_11] : memref<16x512xf32, #tpu.memory_space<vmem>>, vector<16x512xf32>
    tpu.vector_store %arg6[%c0_10, %c0_11], %13 {strides = array<i32>} : memref<16x512xf32, #tpu.memory_space<vmem>>, vector<16x512xf32>,
    return
  }
  func.func @transform_0(%arg0: i32) -> (i32, i32) {
    %c0_i32 = arith.constant 0 : i32
    %c0_i32_0 = arith.constant 0 : i32
    return %arg0, %c0_i32 : i32, i32
  }
  func.func @transform_1(%arg0: i32) -> (i32, i32) {
    %c0_i32 = arith.constant 0 : i32
    %c0_i32_0 = arith.constant 0 : i32
    %c0_i32_1 = arith.constant 0 : i32
    return %c0_i32, %c0_i32_0 : i32, i32
  }
  func.func @transform_2(%arg0: i32) -> (i32, i32) {
    %c0_i32 = arith.constant 0 : i32
    %c0_i32_0 = arith.constant 0 : i32
    %c0_i32_1 = arith.constant 0 : i32
    return %c0_i32, %c0_i32_0 : i32, i32
  }
  func.func @transform_3(%arg0: i32) -> (i32, i32) {
    %c0_i32 = arith.constant 0 : i32
    %c0_i32_0 = arith.constant 0 : i32
    %c0_i32_1 = arith.constant 0 : i32
    return %c0_i32, %c0_i32_0 : i32, i32
  }
  func.func @transform_4(%arg0: i32) -> (i32, i32) {
    %c0_i32 = arith.constant 0 : i32
    %c0_i32_0 = arith.constant 0 : i32
    %c0_i32_1 = arith.constant 0 : i32
    return %c0_i32, %c0_i32_0 : i32, i32
  }
  func.func @transform_5(%arg0: i32) -> (i32, i32) {
    %c0_i32 = arith.constant 0 : i32
    %c0_i32_0 = arith.constant 0 : i32
    return %arg0, %c0_i32 : i32, i32
  }
}

module attributes {stable_mosaic.version = 11 : i64} {
  func.func @lstm2_kernel(%arg0: i32, %arg1: memref<2x8x512xf32, #tpu.memory_space<vmem>>, %arg2: memref<128x512xbf16, #tpu.memory_space<vmem>>, %arg3: memref<256x512xbf16, #tpu.memory_space<vmem>>, %arg4: memref<1x512xf32, #tpu.memory_space<vmem>>, %arg5: memref<2x2x128xf32, #tpu.memory_space<vmem>>, %arg6: memref<2x2x128xf32, #tpu.memory_space<vmem>>, %arg7: memref<2x8x128xf32, #tpu.memory_space<vmem>>, %arg8: memref<2x2x128xf32, #tpu.memory_space<vmem>>, %arg9: memref<2x2x128xf32, #tpu.memory_space<vmem>>, %arg10: memref<2x256xf32, #tpu.memory_space<vmem>>, %arg11: memref<2x128xf32, #tpu.memory_space<vmem>>, %arg12: memref<2x128xf32, #tpu.memory_space<vmem>>) attributes {dimension_semantics = [#tpu.dimension_semantics<parallel>], iteration_bounds = array<i64: 1>, scalar_prefetch = 0 : i64, scratch_operands = 3 : i64, tpu.core_type = #tpu.core_type<tc>, window_params = [{transform_indices = @transform_0, window_bounds = array<i64: 2, 8, 512>}, {pipeline_mode = #tpu.pipeline_mode<synchronous>, transform_indices = @transform_1, window_bounds = array<i64: 128, 512>}, {pipeline_mode = #tpu.pipeline_mode<synchronous>, transform_indices = @transform_2, window_bounds = array<i64: 256, 512>}, {pipeline_mode = #tpu.pipeline_mode<synchronous>, transform_indices = @transform_3, window_bounds = array<i64: 1, 512>}, {transform_indices = @transform_4, window_bounds = array<i64: 2, 2, 128>}, {transform_indices = @transform_5, window_bounds = array<i64: 2, 2, 128>}, {transform_indices = @transform_6, window_bounds = array<i64: 2, 8, 128>}, {transform_indices = @transform_7, window_bounds = array<i64: 2, 2, 128>}, {transform_indices = @transform_8, window_bounds = array<i64: 2, 2, 128>}]} {
    %c0 = arith.constant 0 : index
    %c0_0 = arith.constant 0 : index
    %c0_1 = arith.constant 0 : index
    %0 = vector.load %arg5[%c0, %c0_0, %c0_1] : memref<2x2x128xf32, #tpu.memory_space<vmem>>, vector<1x2x128xf32>
    %1 = vector.shape_cast %0 : vector<1x2x128xf32> to vector<2x128xf32>
    %c0_2 = arith.constant 0 : index
    %c0_3 = arith.constant 0 : index
    %2 = vector.load %arg10[%c0_2, %c0_3] : memref<2x256xf32, #tpu.memory_space<vmem>>, vector<2x128xf32>
    tpu.vector_store %arg10[%c0_2, %c0_3], %1 {strides = array<i32>} : memref<2x256xf32, #tpu.memory_space<vmem>>, vector<2x128xf32>,
    %c1 = arith.constant 1 : index
    %c0_4 = arith.constant 0 : index
    %c0_5 = arith.constant 0 : index
    %3 = vector.load %arg5[%c1, %c0_4, %c0_5] : memref<2x2x128xf32, #tpu.memory_space<vmem>>, vector<1x2x128xf32>
    %4 = vector.shape_cast %3 : vector<1x2x128xf32> to vector<2x128xf32>
    %c0_6 = arith.constant 0 : index
    %c128 = arith.constant 128 : index
    %5 = vector.load %arg10[%c0_6, %c128] : memref<2x256xf32, #tpu.memory_space<vmem>>, vector<2x128xf32>
    tpu.vector_store %arg10[%c0_6, %c128], %4 {strides = array<i32>} : memref<2x256xf32, #tpu.memory_space<vmem>>, vector<2x128xf32>,
    %c0_7 = arith.constant 0 : index
    %c0_8 = arith.constant 0 : index
    %c0_9 = arith.constant 0 : index
    %6 = vector.load %arg6[%c0_7, %c0_8, %c0_9] : memref<2x2x128xf32, #tpu.memory_space<vmem>>, vector<1x2x128xf32>
    %7 = vector.shape_cast %6 : vector<1x2x128xf32> to vector<2x128xf32>
    %c0_10 = arith.constant 0 : index
    %c0_11 = arith.constant 0 : index
    %8 = vector.load %arg11[%c0_10, %c0_11] : memref<2x128xf32, #tpu.memory_space<vmem>>, vector<2x128xf32>
    tpu.vector_store %arg11[%c0_10, %c0_11], %7 {strides = array<i32>} : memref<2x128xf32, #tpu.memory_space<vmem>>, vector<2x128xf32>,
    %c1_12 = arith.constant 1 : index
    %c0_13 = arith.constant 0 : index
    %c0_14 = arith.constant 0 : index
    %9 = vector.load %arg6[%c1_12, %c0_13, %c0_14] : memref<2x2x128xf32, #tpu.memory_space<vmem>>, vector<1x2x128xf32>
    %10 = vector.shape_cast %9 : vector<1x2x128xf32> to vector<2x128xf32>
    %c0_15 = arith.constant 0 : index
    %c0_16 = arith.constant 0 : index
    %11 = vector.load %arg12[%c0_15, %c0_16] : memref<2x128xf32, #tpu.memory_space<vmem>>, vector<2x128xf32>
    tpu.vector_store %arg12[%c0_15, %c0_16], %10 {strides = array<i32>} : memref<2x128xf32, #tpu.memory_space<vmem>>, vector<2x128xf32>,
    %c0_17 = arith.constant 0 : index
    %c0_18 = arith.constant 0 : index
    %c0_19 = arith.constant 0 : index
    %12 = vector.load %arg1[%c0_17, %c0_18, %c0_19] : memref<2x8x512xf32, #tpu.memory_space<vmem>>, vector<2x1x512xf32>
    %13 = vector.shape_cast %12 : vector<2x1x512xf32> to vector<2x512xf32>
    %c0_20 = arith.constant 0 : index
    %c0_21 = arith.constant 0 : index
    %14 = vector.load %arg10[%c0_20, %c0_21] : memref<2x256xf32, #tpu.memory_space<vmem>>, vector<2x128xf32>
    %15 = arith.truncf %14 : vector<2x128xf32> to vector<2x128xbf16>
    %c0_22 = arith.constant 0 : index
    %c0_23 = arith.constant 0 : index
    %16 = vector.load %arg2[%c0_22, %c0_23] : memref<128x512xbf16, #tpu.memory_space<vmem>>, vector<128x512xbf16>
    %cst = arith.constant dense<0.000000e+00> : vector<2x512xf32>
    %17 = tpu.matmul %15, %16, %cst {dimension_numbers = #tpu.dot_dimension_numbers<[1], [0], [0], [1], [0, 0, 1, 1], [], []>} : vector<2x128xbf16>, vector<128x512xbf16>, vector<2x512xf32> -> vector<2x512xf32>
    %18 = arith.addf %13, %17 : vector<2x512xf32>
    %c0_24 = arith.constant 0 : index
    %c0_25 = arith.constant 0 : index
    %19 = vector.load %arg11[%c0_24, %c0_25] : memref<2x128xf32, #tpu.memory_space<vmem>>, vector<2x128xf32>
    %20 = vector.extract_strided_slice %18 {offsets = [0, 0], sizes = [2, 128], strides = [1, 1]} : vector<2x512xf32> to vector<2x128xf32>
    %21 = arith.negf %20 : vector<2x128xf32>
    %22 = math.exp %21 : vector<2x128xf32>
    %cst_26 = arith.constant 1.000000e+00 : f32
    %23 = vector.broadcast %cst_26 : f32 to vector<2x128xf32>
    %24 = arith.addf %23, %22 : vector<2x128xf32>
    %25 = arith.divf %23, %24 : vector<2x128xf32>
    %26 = vector.extract_strided_slice %18 {offsets = [0, 128], sizes = [2, 128], strides = [1, 1]} : vector<2x512xf32> to vector<2x128xf32>
    %27 = arith.negf %26 : vector<2x128xf32>
    %28 = math.exp %27 : vector<2x128xf32>
    %cst_27 = arith.constant 1.000000e+00 : f32
    %29 = vector.broadcast %cst_27 : f32 to vector<2x128xf32>
    %30 = arith.addf %29, %28 : vector<2x128xf32>
    %31 = arith.divf %29, %30 : vector<2x128xf32>
    %32 = vector.extract_strided_slice %18 {offsets = [0, 256], sizes = [2, 128], strides = [1, 1]} : vector<2x512xf32> to vector<2x128xf32>
    %33 = math.tanh %32 : vector<2x128xf32>
    %34 = vector.extract_strided_slice %18 {offsets = [0, 384], sizes = [2, 128], strides = [1, 1]} : vector<2x512xf32> to vector<2x128xf32>
    %35 = arith.negf %34 : vector<2x128xf32>
    %36 = math.exp %35 : vector<2x128xf32>
    %cst_28 = arith.constant 1.000000e+00 : f32
    %37 = vector.broadcast %cst_28 : f32 to vector<2x128xf32>
    %38 = arith.addf %37, %36 : vector<2x128xf32>
    %39 = arith.divf %37, %38 : vector<2x128xf32>
    %40 = arith.mulf %31, %19 : vector<2x128xf32>
    %41 = arith.mulf %25, %33 : vector<2x128xf32>
    %42 = arith.addf %40, %41 : vector<2x128xf32>
    %43 = math.tanh %42 : vector<2x128xf32>
    %44 = arith.mulf %39, %43 : vector<2x128xf32>
    %c0_29 = arith.constant 0 : index
    %c0_30 = arith.constant 0 : index
    %45 = vector.load %arg11[%c0_29, %c0_30] : memref<2x128xf32, #tpu.memory_space<vmem>>, vector<2x128xf32>
    tpu.vector_store %arg11[%c0_29, %c0_30], %42 {strides = array<i32>} : memref<2x128xf32, #tpu.memory_space<vmem>>, vector<2x128xf32>,
    %c0_31 = arith.constant 0 : index
    %c0_32 = arith.constant 0 : index
    %46 = vector.load %arg10[%c0_31, %c0_32] : memref<2x256xf32, #tpu.memory_space<vmem>>, vector<2x128xf32>
    tpu.vector_store %arg10[%c0_31, %c0_32], %44 {strides = array<i32>} : memref<2x256xf32, #tpu.memory_space<vmem>>, vector<2x128xf32>,
    %c0_33 = arith.constant 0 : index
    %c0_34 = arith.constant 0 : index
    %47 = vector.load %arg10[%c0_33, %c0_34] : memref<2x256xf32, #tpu.memory_space<vmem>>, vector<2x256xf32>
    %48 = arith.truncf %47 : vector<2x256xf32> to vector<2x256xbf16>
    %c0_35 = arith.constant 0 : index
    %c0_36 = arith.constant 0 : index
    %49 = vector.load %arg3[%c0_35, %c0_36] : memref<256x512xbf16, #tpu.memory_space<vmem>>, vector<256x512xbf16>
    %cst_37 = arith.constant dense<0.000000e+00> : vector<2x512xf32>
    %50 = tpu.matmul %48, %49, %cst_37 {dimension_numbers = #tpu.dot_dimension_numbers<[1], [0], [0], [1], [0, 0, 1, 1], [], []>} : vector<2x256xbf16>, vector<256x512xbf16>, vector<2x512xf32> -> vector<2x512xf32>
    %c0_38 = arith.constant 0 : index
    %c0_39 = arith.constant 0 : index
    %51 = vector.load %arg4[%c0_38, %c0_39] : memref<1x512xf32, #tpu.memory_space<vmem>>, vector<1x512xf32>
    %52 = vector.broadcast %51 : vector<1x512xf32> to vector<2x512xf32>
    %53 = arith.addf %50, %52 : vector<2x512xf32>
    %c0_40 = arith.constant 0 : index
    %c0_41 = arith.constant 0 : index
    %54 = vector.load %arg12[%c0_40, %c0_41] : memref<2x128xf32, #tpu.memory_space<vmem>>, vector<2x128xf32>
    %55 = vector.extract_strided_slice %53 {offsets = [0, 0], sizes = [2, 128], strides = [1, 1]} : vector<2x512xf32> to vector<2x128xf32>
    %56 = arith.negf %55 : vector<2x128xf32>
    %57 = math.exp %56 : vector<2x128xf32>
    %cst_42 = arith.constant 1.000000e+00 : f32
    %58 = vector.broadcast %cst_42 : f32 to vector<2x128xf32>
    %59 = arith.addf %58, %57 : vector<2x128xf32>
    %60 = arith.divf %58, %59 : vector<2x128xf32>
    %61 = vector.extract_strided_slice %53 {offsets = [0, 128], sizes = [2, 128], strides = [1, 1]} : vector<2x512xf32> to vector<2x128xf32>
    %62 = arith.negf %61 : vector<2x128xf32>
    %63 = math.exp %62 : vector<2x128xf32>
    %cst_43 = arith.constant 1.000000e+00 : f32
    %64 = vector.broadcast %cst_43 : f32 to vector<2x128xf32>
    %65 = arith.addf %64, %63 : vector<2x128xf32>
    %66 = arith.divf %64, %65 : vector<2x128xf32>
    %67 = vector.extract_strided_slice %53 {offsets = [0, 256], sizes = [2, 128], strides = [1, 1]} : vector<2x512xf32> to vector<2x128xf32>
    %68 = math.tanh %67 : vector<2x128xf32>
    %69 = vector.extract_strided_slice %53 {offsets = [0, 384], sizes = [2, 128], strides = [1, 1]} : vector<2x512xf32> to vector<2x128xf32>
    %70 = arith.negf %69 : vector<2x128xf32>
    %71 = math.exp %70 : vector<2x128xf32>
    %cst_44 = arith.constant 1.000000e+00 : f32
    %72 = vector.broadcast %cst_44 : f32 to vector<2x128xf32>
    %73 = arith.addf %72, %71 : vector<2x128xf32>
    %74 = arith.divf %72, %73 : vector<2x128xf32>
    %75 = arith.mulf %66, %54 : vector<2x128xf32>
    %76 = arith.mulf %60, %68 : vector<2x128xf32>
    %77 = arith.addf %75, %76 : vector<2x128xf32>
    %78 = math.tanh %77 : vector<2x128xf32>
    %79 = arith.mulf %74, %78 : vector<2x128xf32>
    %c0_45 = arith.constant 0 : index
    %c0_46 = arith.constant 0 : index
    %80 = vector.load %arg12[%c0_45, %c0_46] : memref<2x128xf32, #tpu.memory_space<vmem>>, vector<2x128xf32>
    tpu.vector_store %arg12[%c0_45, %c0_46], %77 {strides = array<i32>} : memref<2x128xf32, #tpu.memory_space<vmem>>, vector<2x128xf32>,
    %c0_47 = arith.constant 0 : index
    %c128_48 = arith.constant 128 : index
    %81 = vector.load %arg10[%c0_47, %c128_48] : memref<2x256xf32, #tpu.memory_space<vmem>>, vector<2x128xf32>
    tpu.vector_store %arg10[%c0_47, %c128_48], %79 {strides = array<i32>} : memref<2x256xf32, #tpu.memory_space<vmem>>, vector<2x128xf32>,
    %c0_49 = arith.constant 0 : index
    %c0_50 = arith.constant 0 : index
    %c0_51 = arith.constant 0 : index
    %82 = vector.load %arg7[%c0_49, %c0_50, %c0_51] : memref<2x8x128xf32, #tpu.memory_space<vmem>>, vector<2x1x128xf32>
    %83 = vector.shape_cast %82 : vector<2x1x128xf32> to vector<2x128xf32>
    %84 = vector.shape_cast %79 : vector<2x128xf32> to vector<2x1x128xf32>
    tpu.vector_store %arg7[%c0_49, %c0_50, %c0_51], %84 {strides = array<i32>} : memref<2x8x128xf32, #tpu.memory_space<vmem>>, vector<2x1x128xf32>,
    %c0_52 = arith.constant 0 : index
    %c1_53 = arith.constant 1 : index
    %c0_54 = arith.constant 0 : index
    %85 = vector.load %arg1[%c0_52, %c1_53, %c0_54] : memref<2x8x512xf32, #tpu.memory_space<vmem>>, vector<2x1x512xf32>
    %86 = vector.shape_cast %85 : vector<2x1x512xf32> to vector<2x512xf32>
    %c0_55 = arith.constant 0 : index
    %c0_56 = arith.constant 0 : index
    %87 = vector.load %arg10[%c0_55, %c0_56] : memref<2x256xf32, #tpu.memory_space<vmem>>, vector<2x128xf32>
    %88 = arith.truncf %87 : vector<2x128xf32> to vector<2x128xbf16>
    %c0_57 = arith.constant 0 : index
    %c0_58 = arith.constant 0 : index
    %89 = vector.load %arg2[%c0_57, %c0_58] : memref<128x512xbf16, #tpu.memory_space<vmem>>, vector<128x512xbf16>
    %cst_59 = arith.constant dense<0.000000e+00> : vector<2x512xf32>
    %90 = tpu.matmul %88, %89, %cst_59 {dimension_numbers = #tpu.dot_dimension_numbers<[1], [0], [0], [1], [0, 0, 1, 1], [], []>} : vector<2x128xbf16>, vector<128x512xbf16>, vector<2x512xf32> -> vector<2x512xf32>
    %91 = arith.addf %86, %90 : vector<2x512xf32>
    %c0_60 = arith.constant 0 : index
    %c0_61 = arith.constant 0 : index
    %92 = vector.load %arg11[%c0_60, %c0_61] : memref<2x128xf32, #tpu.memory_space<vmem>>, vector<2x128xf32>
    %93 = vector.extract_strided_slice %91 {offsets = [0, 0], sizes = [2, 128], strides = [1, 1]} : vector<2x512xf32> to vector<2x128xf32>
    %94 = arith.negf %93 : vector<2x128xf32>
    %95 = math.exp %94 : vector<2x128xf32>
    %cst_62 = arith.constant 1.000000e+00 : f32
    %96 = vector.broadcast %cst_62 : f32 to vector<2x128xf32>
    %97 = arith.addf %96, %95 : vector<2x128xf32>
    %98 = arith.divf %96, %97 : vector<2x128xf32>
    %99 = vector.extract_strided_slice %91 {offsets = [0, 128], sizes = [2, 128], strides = [1, 1]} : vector<2x512xf32> to vector<2x128xf32>
    %100 = arith.negf %99 : vector<2x128xf32>
    %101 = math.exp %100 : vector<2x128xf32>
    %cst_63 = arith.constant 1.000000e+00 : f32
    %102 = vector.broadcast %cst_63 : f32 to vector<2x128xf32>
    %103 = arith.addf %102, %101 : vector<2x128xf32>
    %104 = arith.divf %102, %103 : vector<2x128xf32>
    %105 = vector.extract_strided_slice %91 {offsets = [0, 256], sizes = [2, 128], strides = [1, 1]} : vector<2x512xf32> to vector<2x128xf32>
    %106 = math.tanh %105 : vector<2x128xf32>
    %107 = vector.extract_strided_slice %91 {offsets = [0, 384], sizes = [2, 128], strides = [1, 1]} : vector<2x512xf32> to vector<2x128xf32>
    %108 = arith.negf %107 : vector<2x128xf32>
    %109 = math.exp %108 : vector<2x128xf32>
    %cst_64 = arith.constant 1.000000e+00 : f32
    %110 = vector.broadcast %cst_64 : f32 to vector<2x128xf32>
    %111 = arith.addf %110, %109 : vector<2x128xf32>
    %112 = arith.divf %110, %111 : vector<2x128xf32>
    %113 = arith.mulf %104, %92 : vector<2x128xf32>
    %114 = arith.mulf %98, %106 : vector<2x128xf32>
    %115 = arith.addf %113, %114 : vector<2x128xf32>
    %116 = math.tanh %115 : vector<2x128xf32>
    %117 = arith.mulf %112, %116 : vector<2x128xf32>
    %c0_65 = arith.constant 0 : index
    %c0_66 = arith.constant 0 : index
    %118 = vector.load %arg11[%c0_65, %c0_66] : memref<2x128xf32, #tpu.memory_space<vmem>>, vector<2x128xf32>
    tpu.vector_store %arg11[%c0_65, %c0_66], %115 {strides = array<i32>} : memref<2x128xf32, #tpu.memory_space<vmem>>, vector<2x128xf32>,
    %c0_67 = arith.constant 0 : index
    %c0_68 = arith.constant 0 : index
    %119 = vector.load %arg10[%c0_67, %c0_68] : memref<2x256xf32, #tpu.memory_space<vmem>>, vector<2x128xf32>
    tpu.vector_store %arg10[%c0_67, %c0_68], %117 {strides = array<i32>} : memref<2x256xf32, #tpu.memory_space<vmem>>, vector<2x128xf32>,
    %c0_69 = arith.constant 0 : index
    %c0_70 = arith.constant 0 : index
    %120 = vector.load %arg10[%c0_69, %c0_70] : memref<2x256xf32, #tpu.memory_space<vmem>>, vector<2x256xf32>
    %121 = arith.truncf %120 : vector<2x256xf32> to vector<2x256xbf16>
    %c0_71 = arith.constant 0 : index
    %c0_72 = arith.constant 0 : index
    %122 = vector.load %arg3[%c0_71, %c0_72] : memref<256x512xbf16, #tpu.memory_space<vmem>>, vector<256x512xbf16>
    %cst_73 = arith.constant dense<0.000000e+00> : vector<2x512xf32>
    %123 = tpu.matmul %121, %122, %cst_73 {dimension_numbers = #tpu.dot_dimension_numbers<[1], [0], [0], [1], [0, 0, 1, 1], [], []>} : vector<2x256xbf16>, vector<256x512xbf16>, vector<2x512xf32> -> vector<2x512xf32>
    %c0_74 = arith.constant 0 : index
    %c0_75 = arith.constant 0 : index
    %124 = vector.load %arg4[%c0_74, %c0_75] : memref<1x512xf32, #tpu.memory_space<vmem>>, vector<1x512xf32>
    %125 = vector.broadcast %124 : vector<1x512xf32> to vector<2x512xf32>
    %126 = arith.addf %123, %125 : vector<2x512xf32>
    %c0_76 = arith.constant 0 : index
    %c0_77 = arith.constant 0 : index
    %127 = vector.load %arg12[%c0_76, %c0_77] : memref<2x128xf32, #tpu.memory_space<vmem>>, vector<2x128xf32>
    %128 = vector.extract_strided_slice %126 {offsets = [0, 0], sizes = [2, 128], strides = [1, 1]} : vector<2x512xf32> to vector<2x128xf32>
    %129 = arith.negf %128 : vector<2x128xf32>
    %130 = math.exp %129 : vector<2x128xf32>
    %cst_78 = arith.constant 1.000000e+00 : f32
    %131 = vector.broadcast %cst_78 : f32 to vector<2x128xf32>
    %132 = arith.addf %131, %130 : vector<2x128xf32>
    %133 = arith.divf %131, %132 : vector<2x128xf32>
    %134 = vector.extract_strided_slice %126 {offsets = [0, 128], sizes = [2, 128], strides = [1, 1]} : vector<2x512xf32> to vector<2x128xf32>
    %135 = arith.negf %134 : vector<2x128xf32>
    %136 = math.exp %135 : vector<2x128xf32>
    %cst_79 = arith.constant 1.000000e+00 : f32
    %137 = vector.broadcast %cst_79 : f32 to vector<2x128xf32>
    %138 = arith.addf %137, %136 : vector<2x128xf32>
    %139 = arith.divf %137, %138 : vector<2x128xf32>
    %140 = vector.extract_strided_slice %126 {offsets = [0, 256], sizes = [2, 128], strides = [1, 1]} : vector<2x512xf32> to vector<2x128xf32>
    %141 = math.tanh %140 : vector<2x128xf32>
    %142 = vector.extract_strided_slice %126 {offsets = [0, 384], sizes = [2, 128], strides = [1, 1]} : vector<2x512xf32> to vector<2x128xf32>
    %143 = arith.negf %142 : vector<2x128xf32>
    %144 = math.exp %143 : vector<2x128xf32>
    %cst_80 = arith.constant 1.000000e+00 : f32
    %145 = vector.broadcast %cst_80 : f32 to vector<2x128xf32>
    %146 = arith.addf %145, %144 : vector<2x128xf32>
    %147 = arith.divf %145, %146 : vector<2x128xf32>
    %148 = arith.mulf %139, %127 : vector<2x128xf32>
    %149 = arith.mulf %133, %141 : vector<2x128xf32>
    %150 = arith.addf %148, %149 : vector<2x128xf32>
    %151 = math.tanh %150 : vector<2x128xf32>
    %152 = arith.mulf %147, %151 : vector<2x128xf32>
    %c0_81 = arith.constant 0 : index
    %c0_82 = arith.constant 0 : index
    %153 = vector.load %arg12[%c0_81, %c0_82] : memref<2x128xf32, #tpu.memory_space<vmem>>, vector<2x128xf32>
    tpu.vector_store %arg12[%c0_81, %c0_82], %150 {strides = array<i32>} : memref<2x128xf32, #tpu.memory_space<vmem>>, vector<2x128xf32>,
    %c0_83 = arith.constant 0 : index
    %c128_84 = arith.constant 128 : index
    %154 = vector.load %arg10[%c0_83, %c128_84] : memref<2x256xf32, #tpu.memory_space<vmem>>, vector<2x128xf32>
    tpu.vector_store %arg10[%c0_83, %c128_84], %152 {strides = array<i32>} : memref<2x256xf32, #tpu.memory_space<vmem>>, vector<2x128xf32>,
    %c0_85 = arith.constant 0 : index
    %c1_86 = arith.constant 1 : index
    %c0_87 = arith.constant 0 : index
    %155 = vector.load %arg7[%c0_85, %c1_86, %c0_87] : memref<2x8x128xf32, #tpu.memory_space<vmem>>, vector<2x1x128xf32>
    %156 = vector.shape_cast %155 : vector<2x1x128xf32> to vector<2x128xf32>
    %157 = vector.shape_cast %152 : vector<2x128xf32> to vector<2x1x128xf32>
    tpu.vector_store %arg7[%c0_85, %c1_86, %c0_87], %157 {strides = array<i32>} : memref<2x8x128xf32, #tpu.memory_space<vmem>>, vector<2x1x128xf32>,
    %c0_88 = arith.constant 0 : index
    %c2 = arith.constant 2 : index
    %c0_89 = arith.constant 0 : index
    %158 = vector.load %arg1[%c0_88, %c2, %c0_89] : memref<2x8x512xf32, #tpu.memory_space<vmem>>, vector<2x1x512xf32>
    %159 = vector.shape_cast %158 : vector<2x1x512xf32> to vector<2x512xf32>
    %c0_90 = arith.constant 0 : index
    %c0_91 = arith.constant 0 : index
    %160 = vector.load %arg10[%c0_90, %c0_91] : memref<2x256xf32, #tpu.memory_space<vmem>>, vector<2x128xf32>
    %161 = arith.truncf %160 : vector<2x128xf32> to vector<2x128xbf16>
    %c0_92 = arith.constant 0 : index
    %c0_93 = arith.constant 0 : index
    %162 = vector.load %arg2[%c0_92, %c0_93] : memref<128x512xbf16, #tpu.memory_space<vmem>>, vector<128x512xbf16>
    %cst_94 = arith.constant dense<0.000000e+00> : vector<2x512xf32>
    %163 = tpu.matmul %161, %162, %cst_94 {dimension_numbers = #tpu.dot_dimension_numbers<[1], [0], [0], [1], [0, 0, 1, 1], [], []>} : vector<2x128xbf16>, vector<128x512xbf16>, vector<2x512xf32> -> vector<2x512xf32>
    %164 = arith.addf %159, %163 : vector<2x512xf32>
    %c0_95 = arith.constant 0 : index
    %c0_96 = arith.constant 0 : index
    %165 = vector.load %arg11[%c0_95, %c0_96] : memref<2x128xf32, #tpu.memory_space<vmem>>, vector<2x128xf32>
    %166 = vector.extract_strided_slice %164 {offsets = [0, 0], sizes = [2, 128], strides = [1, 1]} : vector<2x512xf32> to vector<2x128xf32>
    %167 = arith.negf %166 : vector<2x128xf32>
    %168 = math.exp %167 : vector<2x128xf32>
    %cst_97 = arith.constant 1.000000e+00 : f32
    %169 = vector.broadcast %cst_97 : f32 to vector<2x128xf32>
    %170 = arith.addf %169, %168 : vector<2x128xf32>
    %171 = arith.divf %169, %170 : vector<2x128xf32>
    %172 = vector.extract_strided_slice %164 {offsets = [0, 128], sizes = [2, 128], strides = [1, 1]} : vector<2x512xf32> to vector<2x128xf32>
    %173 = arith.negf %172 : vector<2x128xf32>
    %174 = math.exp %173 : vector<2x128xf32>
    %cst_98 = arith.constant 1.000000e+00 : f32
    %175 = vector.broadcast %cst_98 : f32 to vector<2x128xf32>
    %176 = arith.addf %175, %174 : vector<2x128xf32>
    %177 = arith.divf %175, %176 : vector<2x128xf32>
    %178 = vector.extract_strided_slice %164 {offsets = [0, 256], sizes = [2, 128], strides = [1, 1]} : vector<2x512xf32> to vector<2x128xf32>
    %179 = math.tanh %178 : vector<2x128xf32>
    %180 = vector.extract_strided_slice %164 {offsets = [0, 384], sizes = [2, 128], strides = [1, 1]} : vector<2x512xf32> to vector<2x128xf32>
    %181 = arith.negf %180 : vector<2x128xf32>
    %182 = math.exp %181 : vector<2x128xf32>
    %cst_99 = arith.constant 1.000000e+00 : f32
    %183 = vector.broadcast %cst_99 : f32 to vector<2x128xf32>
    %184 = arith.addf %183, %182 : vector<2x128xf32>
    %185 = arith.divf %183, %184 : vector<2x128xf32>
    %186 = arith.mulf %177, %165 : vector<2x128xf32>
    %187 = arith.mulf %171, %179 : vector<2x128xf32>
    %188 = arith.addf %186, %187 : vector<2x128xf32>
    %189 = math.tanh %188 : vector<2x128xf32>
    %190 = arith.mulf %185, %189 : vector<2x128xf32>
    %c0_100 = arith.constant 0 : index
    %c0_101 = arith.constant 0 : index
    %191 = vector.load %arg11[%c0_100, %c0_101] : memref<2x128xf32, #tpu.memory_space<vmem>>, vector<2x128xf32>
    tpu.vector_store %arg11[%c0_100, %c0_101], %188 {strides = array<i32>} : memref<2x128xf32, #tpu.memory_space<vmem>>, vector<2x128xf32>,
    %c0_102 = arith.constant 0 : index
    %c0_103 = arith.constant 0 : index
    %192 = vector.load %arg10[%c0_102, %c0_103] : memref<2x256xf32, #tpu.memory_space<vmem>>, vector<2x128xf32>
    tpu.vector_store %arg10[%c0_102, %c0_103], %190 {strides = array<i32>} : memref<2x256xf32, #tpu.memory_space<vmem>>, vector<2x128xf32>,
    %c0_104 = arith.constant 0 : index
    %c0_105 = arith.constant 0 : index
    %193 = vector.load %arg10[%c0_104, %c0_105] : memref<2x256xf32, #tpu.memory_space<vmem>>, vector<2x256xf32>
    %194 = arith.truncf %193 : vector<2x256xf32> to vector<2x256xbf16>
    %c0_106 = arith.constant 0 : index
    %c0_107 = arith.constant 0 : index
    %195 = vector.load %arg3[%c0_106, %c0_107] : memref<256x512xbf16, #tpu.memory_space<vmem>>, vector<256x512xbf16>
    %cst_108 = arith.constant dense<0.000000e+00> : vector<2x512xf32>
    %196 = tpu.matmul %194, %195, %cst_108 {dimension_numbers = #tpu.dot_dimension_numbers<[1], [0], [0], [1], [0, 0, 1, 1], [], []>} : vector<2x256xbf16>, vector<256x512xbf16>, vector<2x512xf32> -> vector<2x512xf32>
    %c0_109 = arith.constant 0 : index
    %c0_110 = arith.constant 0 : index
    %197 = vector.load %arg4[%c0_109, %c0_110] : memref<1x512xf32, #tpu.memory_space<vmem>>, vector<1x512xf32>
    %198 = vector.broadcast %197 : vector<1x512xf32> to vector<2x512xf32>
    %199 = arith.addf %196, %198 : vector<2x512xf32>
    %c0_111 = arith.constant 0 : index
    %c0_112 = arith.constant 0 : index
    %200 = vector.load %arg12[%c0_111, %c0_112] : memref<2x128xf32, #tpu.memory_space<vmem>>, vector<2x128xf32>
    %201 = vector.extract_strided_slice %199 {offsets = [0, 0], sizes = [2, 128], strides = [1, 1]} : vector<2x512xf32> to vector<2x128xf32>
    %202 = arith.negf %201 : vector<2x128xf32>
    %203 = math.exp %202 : vector<2x128xf32>
    %cst_113 = arith.constant 1.000000e+00 : f32
    %204 = vector.broadcast %cst_113 : f32 to vector<2x128xf32>
    %205 = arith.addf %204, %203 : vector<2x128xf32>
    %206 = arith.divf %204, %205 : vector<2x128xf32>
    %207 = vector.extract_strided_slice %199 {offsets = [0, 128], sizes = [2, 128], strides = [1, 1]} : vector<2x512xf32> to vector<2x128xf32>
    %208 = arith.negf %207 : vector<2x128xf32>
    %209 = math.exp %208 : vector<2x128xf32>
    %cst_114 = arith.constant 1.000000e+00 : f32
    %210 = vector.broadcast %cst_114 : f32 to vector<2x128xf32>
    %211 = arith.addf %210, %209 : vector<2x128xf32>
    %212 = arith.divf %210, %211 : vector<2x128xf32>
    %213 = vector.extract_strided_slice %199 {offsets = [0, 256], sizes = [2, 128], strides = [1, 1]} : vector<2x512xf32> to vector<2x128xf32>
    %214 = math.tanh %213 : vector<2x128xf32>
    %215 = vector.extract_strided_slice %199 {offsets = [0, 384], sizes = [2, 128], strides = [1, 1]} : vector<2x512xf32> to vector<2x128xf32>
    %216 = arith.negf %215 : vector<2x128xf32>
    %217 = math.exp %216 : vector<2x128xf32>
    %cst_115 = arith.constant 1.000000e+00 : f32
    %218 = vector.broadcast %cst_115 : f32 to vector<2x128xf32>
    %219 = arith.addf %218, %217 : vector<2x128xf32>
    %220 = arith.divf %218, %219 : vector<2x128xf32>
    %221 = arith.mulf %212, %200 : vector<2x128xf32>
    %222 = arith.mulf %206, %214 : vector<2x128xf32>
    %223 = arith.addf %221, %222 : vector<2x128xf32>
    %224 = math.tanh %223 : vector<2x128xf32>
    %225 = arith.mulf %220, %224 : vector<2x128xf32>
    %c0_116 = arith.constant 0 : index
    %c0_117 = arith.constant 0 : index
    %226 = vector.load %arg12[%c0_116, %c0_117] : memref<2x128xf32, #tpu.memory_space<vmem>>, vector<2x128xf32>
    tpu.vector_store %arg12[%c0_116, %c0_117], %223 {strides = array<i32>} : memref<2x128xf32, #tpu.memory_space<vmem>>, vector<2x128xf32>,
    %c0_118 = arith.constant 0 : index
    %c128_119 = arith.constant 128 : index
    %227 = vector.load %arg10[%c0_118, %c128_119] : memref<2x256xf32, #tpu.memory_space<vmem>>, vector<2x128xf32>
    tpu.vector_store %arg10[%c0_118, %c128_119], %225 {strides = array<i32>} : memref<2x256xf32, #tpu.memory_space<vmem>>, vector<2x128xf32>,
    %c0_120 = arith.constant 0 : index
    %c2_121 = arith.constant 2 : index
    %c0_122 = arith.constant 0 : index
    %228 = vector.load %arg7[%c0_120, %c2_121, %c0_122] : memref<2x8x128xf32, #tpu.memory_space<vmem>>, vector<2x1x128xf32>
    %229 = vector.shape_cast %228 : vector<2x1x128xf32> to vector<2x128xf32>
    %230 = vector.shape_cast %225 : vector<2x128xf32> to vector<2x1x128xf32>
    tpu.vector_store %arg7[%c0_120, %c2_121, %c0_122], %230 {strides = array<i32>} : memref<2x8x128xf32, #tpu.memory_space<vmem>>, vector<2x1x128xf32>,
    %c0_123 = arith.constant 0 : index
    %c3 = arith.constant 3 : index
    %c0_124 = arith.constant 0 : index
    %231 = vector.load %arg1[%c0_123, %c3, %c0_124] : memref<2x8x512xf32, #tpu.memory_space<vmem>>, vector<2x1x512xf32>
    %232 = vector.shape_cast %231 : vector<2x1x512xf32> to vector<2x512xf32>
    %c0_125 = arith.constant 0 : index
    %c0_126 = arith.constant 0 : index
    %233 = vector.load %arg10[%c0_125, %c0_126] : memref<2x256xf32, #tpu.memory_space<vmem>>, vector<2x128xf32>
    %234 = arith.truncf %233 : vector<2x128xf32> to vector<2x128xbf16>
    %c0_127 = arith.constant 0 : index
    %c0_128 = arith.constant 0 : index
    %235 = vector.load %arg2[%c0_127, %c0_128] : memref<128x512xbf16, #tpu.memory_space<vmem>>, vector<128x512xbf16>
    %cst_129 = arith.constant dense<0.000000e+00> : vector<2x512xf32>
    %236 = tpu.matmul %234, %235, %cst_129 {dimension_numbers = #tpu.dot_dimension_numbers<[1], [0], [0], [1], [0, 0, 1, 1], [], []>} : vector<2x128xbf16>, vector<128x512xbf16>, vector<2x512xf32> -> vector<2x512xf32>
    %237 = arith.addf %232, %236 : vector<2x512xf32>
    %c0_130 = arith.constant 0 : index
    %c0_131 = arith.constant 0 : index
    %238 = vector.load %arg11[%c0_130, %c0_131] : memref<2x128xf32, #tpu.memory_space<vmem>>, vector<2x128xf32>
    %239 = vector.extract_strided_slice %237 {offsets = [0, 0], sizes = [2, 128], strides = [1, 1]} : vector<2x512xf32> to vector<2x128xf32>
    %240 = arith.negf %239 : vector<2x128xf32>
    %241 = math.exp %240 : vector<2x128xf32>
    %cst_132 = arith.constant 1.000000e+00 : f32
    %242 = vector.broadcast %cst_132 : f32 to vector<2x128xf32>
    %243 = arith.addf %242, %241 : vector<2x128xf32>
    %244 = arith.divf %242, %243 : vector<2x128xf32>
    %245 = vector.extract_strided_slice %237 {offsets = [0, 128], sizes = [2, 128], strides = [1, 1]} : vector<2x512xf32> to vector<2x128xf32>
    %246 = arith.negf %245 : vector<2x128xf32>
    %247 = math.exp %246 : vector<2x128xf32>
    %cst_133 = arith.constant 1.000000e+00 : f32
    %248 = vector.broadcast %cst_133 : f32 to vector<2x128xf32>
    %249 = arith.addf %248, %247 : vector<2x128xf32>
    %250 = arith.divf %248, %249 : vector<2x128xf32>
    %251 = vector.extract_strided_slice %237 {offsets = [0, 256], sizes = [2, 128], strides = [1, 1]} : vector<2x512xf32> to vector<2x128xf32>
    %252 = math.tanh %251 : vector<2x128xf32>
    %253 = vector.extract_strided_slice %237 {offsets = [0, 384], sizes = [2, 128], strides = [1, 1]} : vector<2x512xf32> to vector<2x128xf32>
    %254 = arith.negf %253 : vector<2x128xf32>
    %255 = math.exp %254 : vector<2x128xf32>
    %cst_134 = arith.constant 1.000000e+00 : f32
    %256 = vector.broadcast %cst_134 : f32 to vector<2x128xf32>
    %257 = arith.addf %256, %255 : vector<2x128xf32>
    %258 = arith.divf %256, %257 : vector<2x128xf32>
    %259 = arith.mulf %250, %238 : vector<2x128xf32>
    %260 = arith.mulf %244, %252 : vector<2x128xf32>
    %261 = arith.addf %259, %260 : vector<2x128xf32>
    %262 = math.tanh %261 : vector<2x128xf32>
    %263 = arith.mulf %258, %262 : vector<2x128xf32>
    %c0_135 = arith.constant 0 : index
    %c0_136 = arith.constant 0 : index
    %264 = vector.load %arg11[%c0_135, %c0_136] : memref<2x128xf32, #tpu.memory_space<vmem>>, vector<2x128xf32>
    tpu.vector_store %arg11[%c0_135, %c0_136], %261 {strides = array<i32>} : memref<2x128xf32, #tpu.memory_space<vmem>>, vector<2x128xf32>,
    %c0_137 = arith.constant 0 : index
    %c0_138 = arith.constant 0 : index
    %265 = vector.load %arg10[%c0_137, %c0_138] : memref<2x256xf32, #tpu.memory_space<vmem>>, vector<2x128xf32>
    tpu.vector_store %arg10[%c0_137, %c0_138], %263 {strides = array<i32>} : memref<2x256xf32, #tpu.memory_space<vmem>>, vector<2x128xf32>,
    %c0_139 = arith.constant 0 : index
    %c0_140 = arith.constant 0 : index
    %266 = vector.load %arg10[%c0_139, %c0_140] : memref<2x256xf32, #tpu.memory_space<vmem>>, vector<2x256xf32>
    %267 = arith.truncf %266 : vector<2x256xf32> to vector<2x256xbf16>
    %c0_141 = arith.constant 0 : index
    %c0_142 = arith.constant 0 : index
    %268 = vector.load %arg3[%c0_141, %c0_142] : memref<256x512xbf16, #tpu.memory_space<vmem>>, vector<256x512xbf16>
    %cst_143 = arith.constant dense<0.000000e+00> : vector<2x512xf32>
    %269 = tpu.matmul %267, %268, %cst_143 {dimension_numbers = #tpu.dot_dimension_numbers<[1], [0], [0], [1], [0, 0, 1, 1], [], []>} : vector<2x256xbf16>, vector<256x512xbf16>, vector<2x512xf32> -> vector<2x512xf32>
    %c0_144 = arith.constant 0 : index
    %c0_145 = arith.constant 0 : index
    %270 = vector.load %arg4[%c0_144, %c0_145] : memref<1x512xf32, #tpu.memory_space<vmem>>, vector<1x512xf32>
    %271 = vector.broadcast %270 : vector<1x512xf32> to vector<2x512xf32>
    %272 = arith.addf %269, %271 : vector<2x512xf32>
    %c0_146 = arith.constant 0 : index
    %c0_147 = arith.constant 0 : index
    %273 = vector.load %arg12[%c0_146, %c0_147] : memref<2x128xf32, #tpu.memory_space<vmem>>, vector<2x128xf32>
    %274 = vector.extract_strided_slice %272 {offsets = [0, 0], sizes = [2, 128], strides = [1, 1]} : vector<2x512xf32> to vector<2x128xf32>
    %275 = arith.negf %274 : vector<2x128xf32>
    %276 = math.exp %275 : vector<2x128xf32>
    %cst_148 = arith.constant 1.000000e+00 : f32
    %277 = vector.broadcast %cst_148 : f32 to vector<2x128xf32>
    %278 = arith.addf %277, %276 : vector<2x128xf32>
    %279 = arith.divf %277, %278 : vector<2x128xf32>
    %280 = vector.extract_strided_slice %272 {offsets = [0, 128], sizes = [2, 128], strides = [1, 1]} : vector<2x512xf32> to vector<2x128xf32>
    %281 = arith.negf %280 : vector<2x128xf32>
    %282 = math.exp %281 : vector<2x128xf32>
    %cst_149 = arith.constant 1.000000e+00 : f32
    %283 = vector.broadcast %cst_149 : f32 to vector<2x128xf32>
    %284 = arith.addf %283, %282 : vector<2x128xf32>
    %285 = arith.divf %283, %284 : vector<2x128xf32>
    %286 = vector.extract_strided_slice %272 {offsets = [0, 256], sizes = [2, 128], strides = [1, 1]} : vector<2x512xf32> to vector<2x128xf32>
    %287 = math.tanh %286 : vector<2x128xf32>
    %288 = vector.extract_strided_slice %272 {offsets = [0, 384], sizes = [2, 128], strides = [1, 1]} : vector<2x512xf32> to vector<2x128xf32>
    %289 = arith.negf %288 : vector<2x128xf32>
    %290 = math.exp %289 : vector<2x128xf32>
    %cst_150 = arith.constant 1.000000e+00 : f32
    %291 = vector.broadcast %cst_150 : f32 to vector<2x128xf32>
    %292 = arith.addf %291, %290 : vector<2x128xf32>
    %293 = arith.divf %291, %292 : vector<2x128xf32>
    %294 = arith.mulf %285, %273 : vector<2x128xf32>
    %295 = arith.mulf %279, %287 : vector<2x128xf32>
    %296 = arith.addf %294, %295 : vector<2x128xf32>
    %297 = math.tanh %296 : vector<2x128xf32>
    %298 = arith.mulf %293, %297 : vector<2x128xf32>
    %c0_151 = arith.constant 0 : index
    %c0_152 = arith.constant 0 : index
    %299 = vector.load %arg12[%c0_151, %c0_152] : memref<2x128xf32, #tpu.memory_space<vmem>>, vector<2x128xf32>
    tpu.vector_store %arg12[%c0_151, %c0_152], %296 {strides = array<i32>} : memref<2x128xf32, #tpu.memory_space<vmem>>, vector<2x128xf32>,
    %c0_153 = arith.constant 0 : index
    %c128_154 = arith.constant 128 : index
    %300 = vector.load %arg10[%c0_153, %c128_154] : memref<2x256xf32, #tpu.memory_space<vmem>>, vector<2x128xf32>
    tpu.vector_store %arg10[%c0_153, %c128_154], %298 {strides = array<i32>} : memref<2x256xf32, #tpu.memory_space<vmem>>, vector<2x128xf32>,
    %c0_155 = arith.constant 0 : index
    %c3_156 = arith.constant 3 : index
    %c0_157 = arith.constant 0 : index
    %301 = vector.load %arg7[%c0_155, %c3_156, %c0_157] : memref<2x8x128xf32, #tpu.memory_space<vmem>>, vector<2x1x128xf32>
    %302 = vector.shape_cast %301 : vector<2x1x128xf32> to vector<2x128xf32>
    %303 = vector.shape_cast %298 : vector<2x128xf32> to vector<2x1x128xf32>
    tpu.vector_store %arg7[%c0_155, %c3_156, %c0_157], %303 {strides = array<i32>} : memref<2x8x128xf32, #tpu.memory_space<vmem>>, vector<2x1x128xf32>,
    %c0_158 = arith.constant 0 : index
    %c4 = arith.constant 4 : index
    %c0_159 = arith.constant 0 : index
    %304 = vector.load %arg1[%c0_158, %c4, %c0_159] : memref<2x8x512xf32, #tpu.memory_space<vmem>>, vector<2x1x512xf32>
    %305 = vector.shape_cast %304 : vector<2x1x512xf32> to vector<2x512xf32>
    %c0_160 = arith.constant 0 : index
    %c0_161 = arith.constant 0 : index
    %306 = vector.load %arg10[%c0_160, %c0_161] : memref<2x256xf32, #tpu.memory_space<vmem>>, vector<2x128xf32>
    %307 = arith.truncf %306 : vector<2x128xf32> to vector<2x128xbf16>
    %c0_162 = arith.constant 0 : index
    %c0_163 = arith.constant 0 : index
    %308 = vector.load %arg2[%c0_162, %c0_163] : memref<128x512xbf16, #tpu.memory_space<vmem>>, vector<128x512xbf16>
    %cst_164 = arith.constant dense<0.000000e+00> : vector<2x512xf32>
    %309 = tpu.matmul %307, %308, %cst_164 {dimension_numbers = #tpu.dot_dimension_numbers<[1], [0], [0], [1], [0, 0, 1, 1], [], []>} : vector<2x128xbf16>, vector<128x512xbf16>, vector<2x512xf32> -> vector<2x512xf32>
    %310 = arith.addf %305, %309 : vector<2x512xf32>
    %c0_165 = arith.constant 0 : index
    %c0_166 = arith.constant 0 : index
    %311 = vector.load %arg11[%c0_165, %c0_166] : memref<2x128xf32, #tpu.memory_space<vmem>>, vector<2x128xf32>
    %312 = vector.extract_strided_slice %310 {offsets = [0, 0], sizes = [2, 128], strides = [1, 1]} : vector<2x512xf32> to vector<2x128xf32>
    %313 = arith.negf %312 : vector<2x128xf32>
    %314 = math.exp %313 : vector<2x128xf32>
    %cst_167 = arith.constant 1.000000e+00 : f32
    %315 = vector.broadcast %cst_167 : f32 to vector<2x128xf32>
    %316 = arith.addf %315, %314 : vector<2x128xf32>
    %317 = arith.divf %315, %316 : vector<2x128xf32>
    %318 = vector.extract_strided_slice %310 {offsets = [0, 128], sizes = [2, 128], strides = [1, 1]} : vector<2x512xf32> to vector<2x128xf32>
    %319 = arith.negf %318 : vector<2x128xf32>
    %320 = math.exp %319 : vector<2x128xf32>
    %cst_168 = arith.constant 1.000000e+00 : f32
    %321 = vector.broadcast %cst_168 : f32 to vector<2x128xf32>
    %322 = arith.addf %321, %320 : vector<2x128xf32>
    %323 = arith.divf %321, %322 : vector<2x128xf32>
    %324 = vector.extract_strided_slice %310 {offsets = [0, 256], sizes = [2, 128], strides = [1, 1]} : vector<2x512xf32> to vector<2x128xf32>
    %325 = math.tanh %324 : vector<2x128xf32>
    %326 = vector.extract_strided_slice %310 {offsets = [0, 384], sizes = [2, 128], strides = [1, 1]} : vector<2x512xf32> to vector<2x128xf32>
    %327 = arith.negf %326 : vector<2x128xf32>
    %328 = math.exp %327 : vector<2x128xf32>
    %cst_169 = arith.constant 1.000000e+00 : f32
    %329 = vector.broadcast %cst_169 : f32 to vector<2x128xf32>
    %330 = arith.addf %329, %328 : vector<2x128xf32>
    %331 = arith.divf %329, %330 : vector<2x128xf32>
    %332 = arith.mulf %323, %311 : vector<2x128xf32>
    %333 = arith.mulf %317, %325 : vector<2x128xf32>
    %334 = arith.addf %332, %333 : vector<2x128xf32>
    %335 = math.tanh %334 : vector<2x128xf32>
    %336 = arith.mulf %331, %335 : vector<2x128xf32>
    %c0_170 = arith.constant 0 : index
    %c0_171 = arith.constant 0 : index
    %337 = vector.load %arg11[%c0_170, %c0_171] : memref<2x128xf32, #tpu.memory_space<vmem>>, vector<2x128xf32>
    tpu.vector_store %arg11[%c0_170, %c0_171], %334 {strides = array<i32>} : memref<2x128xf32, #tpu.memory_space<vmem>>, vector<2x128xf32>,
    %c0_172 = arith.constant 0 : index
    %c0_173 = arith.constant 0 : index
    %338 = vector.load %arg10[%c0_172, %c0_173] : memref<2x256xf32, #tpu.memory_space<vmem>>, vector<2x128xf32>
    tpu.vector_store %arg10[%c0_172, %c0_173], %336 {strides = array<i32>} : memref<2x256xf32, #tpu.memory_space<vmem>>, vector<2x128xf32>,
    %c0_174 = arith.constant 0 : index
    %c0_175 = arith.constant 0 : index
    %339 = vector.load %arg10[%c0_174, %c0_175] : memref<2x256xf32, #tpu.memory_space<vmem>>, vector<2x256xf32>
    %340 = arith.truncf %339 : vector<2x256xf32> to vector<2x256xbf16>
    %c0_176 = arith.constant 0 : index
    %c0_177 = arith.constant 0 : index
    %341 = vector.load %arg3[%c0_176, %c0_177] : memref<256x512xbf16, #tpu.memory_space<vmem>>, vector<256x512xbf16>
    %cst_178 = arith.constant dense<0.000000e+00> : vector<2x512xf32>
    %342 = tpu.matmul %340, %341, %cst_178 {dimension_numbers = #tpu.dot_dimension_numbers<[1], [0], [0], [1], [0, 0, 1, 1], [], []>} : vector<2x256xbf16>, vector<256x512xbf16>, vector<2x512xf32> -> vector<2x512xf32>
    %c0_179 = arith.constant 0 : index
    %c0_180 = arith.constant 0 : index
    %343 = vector.load %arg4[%c0_179, %c0_180] : memref<1x512xf32, #tpu.memory_space<vmem>>, vector<1x512xf32>
    %344 = vector.broadcast %343 : vector<1x512xf32> to vector<2x512xf32>
    %345 = arith.addf %342, %344 : vector<2x512xf32>
    %c0_181 = arith.constant 0 : index
    %c0_182 = arith.constant 0 : index
    %346 = vector.load %arg12[%c0_181, %c0_182] : memref<2x128xf32, #tpu.memory_space<vmem>>, vector<2x128xf32>
    %347 = vector.extract_strided_slice %345 {offsets = [0, 0], sizes = [2, 128], strides = [1, 1]} : vector<2x512xf32> to vector<2x128xf32>
    %348 = arith.negf %347 : vector<2x128xf32>
    %349 = math.exp %348 : vector<2x128xf32>
    %cst_183 = arith.constant 1.000000e+00 : f32
    %350 = vector.broadcast %cst_183 : f32 to vector<2x128xf32>
    %351 = arith.addf %350, %349 : vector<2x128xf32>
    %352 = arith.divf %350, %351 : vector<2x128xf32>
    %353 = vector.extract_strided_slice %345 {offsets = [0, 128], sizes = [2, 128], strides = [1, 1]} : vector<2x512xf32> to vector<2x128xf32>
    %354 = arith.negf %353 : vector<2x128xf32>
    %355 = math.exp %354 : vector<2x128xf32>
    %cst_184 = arith.constant 1.000000e+00 : f32
    %356 = vector.broadcast %cst_184 : f32 to vector<2x128xf32>
    %357 = arith.addf %356, %355 : vector<2x128xf32>
    %358 = arith.divf %356, %357 : vector<2x128xf32>
    %359 = vector.extract_strided_slice %345 {offsets = [0, 256], sizes = [2, 128], strides = [1, 1]} : vector<2x512xf32> to vector<2x128xf32>
    %360 = math.tanh %359 : vector<2x128xf32>
    %361 = vector.extract_strided_slice %345 {offsets = [0, 384], sizes = [2, 128], strides = [1, 1]} : vector<2x512xf32> to vector<2x128xf32>
    %362 = arith.negf %361 : vector<2x128xf32>
    %363 = math.exp %362 : vector<2x128xf32>
    %cst_185 = arith.constant 1.000000e+00 : f32
    %364 = vector.broadcast %cst_185 : f32 to vector<2x128xf32>
    %365 = arith.addf %364, %363 : vector<2x128xf32>
    %366 = arith.divf %364, %365 : vector<2x128xf32>
    %367 = arith.mulf %358, %346 : vector<2x128xf32>
    %368 = arith.mulf %352, %360 : vector<2x128xf32>
    %369 = arith.addf %367, %368 : vector<2x128xf32>
    %370 = math.tanh %369 : vector<2x128xf32>
    %371 = arith.mulf %366, %370 : vector<2x128xf32>
    %c0_186 = arith.constant 0 : index
    %c0_187 = arith.constant 0 : index
    %372 = vector.load %arg12[%c0_186, %c0_187] : memref<2x128xf32, #tpu.memory_space<vmem>>, vector<2x128xf32>
    tpu.vector_store %arg12[%c0_186, %c0_187], %369 {strides = array<i32>} : memref<2x128xf32, #tpu.memory_space<vmem>>, vector<2x128xf32>,
    %c0_188 = arith.constant 0 : index
    %c128_189 = arith.constant 128 : index
    %373 = vector.load %arg10[%c0_188, %c128_189] : memref<2x256xf32, #tpu.memory_space<vmem>>, vector<2x128xf32>
    tpu.vector_store %arg10[%c0_188, %c128_189], %371 {strides = array<i32>} : memref<2x256xf32, #tpu.memory_space<vmem>>, vector<2x128xf32>,
    %c0_190 = arith.constant 0 : index
    %c4_191 = arith.constant 4 : index
    %c0_192 = arith.constant 0 : index
    %374 = vector.load %arg7[%c0_190, %c4_191, %c0_192] : memref<2x8x128xf32, #tpu.memory_space<vmem>>, vector<2x1x128xf32>
    %375 = vector.shape_cast %374 : vector<2x1x128xf32> to vector<2x128xf32>
    %376 = vector.shape_cast %371 : vector<2x128xf32> to vector<2x1x128xf32>
    tpu.vector_store %arg7[%c0_190, %c4_191, %c0_192], %376 {strides = array<i32>} : memref<2x8x128xf32, #tpu.memory_space<vmem>>, vector<2x1x128xf32>,
    %c0_193 = arith.constant 0 : index
    %c5 = arith.constant 5 : index
    %c0_194 = arith.constant 0 : index
    %377 = vector.load %arg1[%c0_193, %c5, %c0_194] : memref<2x8x512xf32, #tpu.memory_space<vmem>>, vector<2x1x512xf32>
    %378 = vector.shape_cast %377 : vector<2x1x512xf32> to vector<2x512xf32>
    %c0_195 = arith.constant 0 : index
    %c0_196 = arith.constant 0 : index
    %379 = vector.load %arg10[%c0_195, %c0_196] : memref<2x256xf32, #tpu.memory_space<vmem>>, vector<2x128xf32>
    %380 = arith.truncf %379 : vector<2x128xf32> to vector<2x128xbf16>
    %c0_197 = arith.constant 0 : index
    %c0_198 = arith.constant 0 : index
    %381 = vector.load %arg2[%c0_197, %c0_198] : memref<128x512xbf16, #tpu.memory_space<vmem>>, vector<128x512xbf16>
    %cst_199 = arith.constant dense<0.000000e+00> : vector<2x512xf32>
    %382 = tpu.matmul %380, %381, %cst_199 {dimension_numbers = #tpu.dot_dimension_numbers<[1], [0], [0], [1], [0, 0, 1, 1], [], []>} : vector<2x128xbf16>, vector<128x512xbf16>, vector<2x512xf32> -> vector<2x512xf32>
    %383 = arith.addf %378, %382 : vector<2x512xf32>
    %c0_200 = arith.constant 0 : index
    %c0_201 = arith.constant 0 : index
    %384 = vector.load %arg11[%c0_200, %c0_201] : memref<2x128xf32, #tpu.memory_space<vmem>>, vector<2x128xf32>
    %385 = vector.extract_strided_slice %383 {offsets = [0, 0], sizes = [2, 128], strides = [1, 1]} : vector<2x512xf32> to vector<2x128xf32>
    %386 = arith.negf %385 : vector<2x128xf32>
    %387 = math.exp %386 : vector<2x128xf32>
    %cst_202 = arith.constant 1.000000e+00 : f32
    %388 = vector.broadcast %cst_202 : f32 to vector<2x128xf32>
    %389 = arith.addf %388, %387 : vector<2x128xf32>
    %390 = arith.divf %388, %389 : vector<2x128xf32>
    %391 = vector.extract_strided_slice %383 {offsets = [0, 128], sizes = [2, 128], strides = [1, 1]} : vector<2x512xf32> to vector<2x128xf32>
    %392 = arith.negf %391 : vector<2x128xf32>
    %393 = math.exp %392 : vector<2x128xf32>
    %cst_203 = arith.constant 1.000000e+00 : f32
    %394 = vector.broadcast %cst_203 : f32 to vector<2x128xf32>
    %395 = arith.addf %394, %393 : vector<2x128xf32>
    %396 = arith.divf %394, %395 : vector<2x128xf32>
    %397 = vector.extract_strided_slice %383 {offsets = [0, 256], sizes = [2, 128], strides = [1, 1]} : vector<2x512xf32> to vector<2x128xf32>
    %398 = math.tanh %397 : vector<2x128xf32>
    %399 = vector.extract_strided_slice %383 {offsets = [0, 384], sizes = [2, 128], strides = [1, 1]} : vector<2x512xf32> to vector<2x128xf32>
    %400 = arith.negf %399 : vector<2x128xf32>
    %401 = math.exp %400 : vector<2x128xf32>
    %cst_204 = arith.constant 1.000000e+00 : f32
    %402 = vector.broadcast %cst_204 : f32 to vector<2x128xf32>
    %403 = arith.addf %402, %401 : vector<2x128xf32>
    %404 = arith.divf %402, %403 : vector<2x128xf32>
    %405 = arith.mulf %396, %384 : vector<2x128xf32>
    %406 = arith.mulf %390, %398 : vector<2x128xf32>
    %407 = arith.addf %405, %406 : vector<2x128xf32>
    %408 = math.tanh %407 : vector<2x128xf32>
    %409 = arith.mulf %404, %408 : vector<2x128xf32>
    %c0_205 = arith.constant 0 : index
    %c0_206 = arith.constant 0 : index
    %410 = vector.load %arg11[%c0_205, %c0_206] : memref<2x128xf32, #tpu.memory_space<vmem>>, vector<2x128xf32>
    tpu.vector_store %arg11[%c0_205, %c0_206], %407 {strides = array<i32>} : memref<2x128xf32, #tpu.memory_space<vmem>>, vector<2x128xf32>,
    %c0_207 = arith.constant 0 : index
    %c0_208 = arith.constant 0 : index
    %411 = vector.load %arg10[%c0_207, %c0_208] : memref<2x256xf32, #tpu.memory_space<vmem>>, vector<2x128xf32>
    tpu.vector_store %arg10[%c0_207, %c0_208], %409 {strides = array<i32>} : memref<2x256xf32, #tpu.memory_space<vmem>>, vector<2x128xf32>,
    %c0_209 = arith.constant 0 : index
    %c0_210 = arith.constant 0 : index
    %412 = vector.load %arg10[%c0_209, %c0_210] : memref<2x256xf32, #tpu.memory_space<vmem>>, vector<2x256xf32>
    %413 = arith.truncf %412 : vector<2x256xf32> to vector<2x256xbf16>
    %c0_211 = arith.constant 0 : index
    %c0_212 = arith.constant 0 : index
    %414 = vector.load %arg3[%c0_211, %c0_212] : memref<256x512xbf16, #tpu.memory_space<vmem>>, vector<256x512xbf16>
    %cst_213 = arith.constant dense<0.000000e+00> : vector<2x512xf32>
    %415 = tpu.matmul %413, %414, %cst_213 {dimension_numbers = #tpu.dot_dimension_numbers<[1], [0], [0], [1], [0, 0, 1, 1], [], []>} : vector<2x256xbf16>, vector<256x512xbf16>, vector<2x512xf32> -> vector<2x512xf32>
    %c0_214 = arith.constant 0 : index
    %c0_215 = arith.constant 0 : index
    %416 = vector.load %arg4[%c0_214, %c0_215] : memref<1x512xf32, #tpu.memory_space<vmem>>, vector<1x512xf32>
    %417 = vector.broadcast %416 : vector<1x512xf32> to vector<2x512xf32>
    %418 = arith.addf %415, %417 : vector<2x512xf32>
    %c0_216 = arith.constant 0 : index
    %c0_217 = arith.constant 0 : index
    %419 = vector.load %arg12[%c0_216, %c0_217] : memref<2x128xf32, #tpu.memory_space<vmem>>, vector<2x128xf32>
    %420 = vector.extract_strided_slice %418 {offsets = [0, 0], sizes = [2, 128], strides = [1, 1]} : vector<2x512xf32> to vector<2x128xf32>
    %421 = arith.negf %420 : vector<2x128xf32>
    %422 = math.exp %421 : vector<2x128xf32>
    %cst_218 = arith.constant 1.000000e+00 : f32
    %423 = vector.broadcast %cst_218 : f32 to vector<2x128xf32>
    %424 = arith.addf %423, %422 : vector<2x128xf32>
    %425 = arith.divf %423, %424 : vector<2x128xf32>
    %426 = vector.extract_strided_slice %418 {offsets = [0, 128], sizes = [2, 128], strides = [1, 1]} : vector<2x512xf32> to vector<2x128xf32>
    %427 = arith.negf %426 : vector<2x128xf32>
    %428 = math.exp %427 : vector<2x128xf32>
    %cst_219 = arith.constant 1.000000e+00 : f32
    %429 = vector.broadcast %cst_219 : f32 to vector<2x128xf32>
    %430 = arith.addf %429, %428 : vector<2x128xf32>
    %431 = arith.divf %429, %430 : vector<2x128xf32>
    %432 = vector.extract_strided_slice %418 {offsets = [0, 256], sizes = [2, 128], strides = [1, 1]} : vector<2x512xf32> to vector<2x128xf32>
    %433 = math.tanh %432 : vector<2x128xf32>
    %434 = vector.extract_strided_slice %418 {offsets = [0, 384], sizes = [2, 128], strides = [1, 1]} : vector<2x512xf32> to vector<2x128xf32>
    %435 = arith.negf %434 : vector<2x128xf32>
    %436 = math.exp %435 : vector<2x128xf32>
    %cst_220 = arith.constant 1.000000e+00 : f32
    %437 = vector.broadcast %cst_220 : f32 to vector<2x128xf32>
    %438 = arith.addf %437, %436 : vector<2x128xf32>
    %439 = arith.divf %437, %438 : vector<2x128xf32>
    %440 = arith.mulf %431, %419 : vector<2x128xf32>
    %441 = arith.mulf %425, %433 : vector<2x128xf32>
    %442 = arith.addf %440, %441 : vector<2x128xf32>
    %443 = math.tanh %442 : vector<2x128xf32>
    %444 = arith.mulf %439, %443 : vector<2x128xf32>
    %c0_221 = arith.constant 0 : index
    %c0_222 = arith.constant 0 : index
    %445 = vector.load %arg12[%c0_221, %c0_222] : memref<2x128xf32, #tpu.memory_space<vmem>>, vector<2x128xf32>
    tpu.vector_store %arg12[%c0_221, %c0_222], %442 {strides = array<i32>} : memref<2x128xf32, #tpu.memory_space<vmem>>, vector<2x128xf32>,
    %c0_223 = arith.constant 0 : index
    %c128_224 = arith.constant 128 : index
    %446 = vector.load %arg10[%c0_223, %c128_224] : memref<2x256xf32, #tpu.memory_space<vmem>>, vector<2x128xf32>
    tpu.vector_store %arg10[%c0_223, %c128_224], %444 {strides = array<i32>} : memref<2x256xf32, #tpu.memory_space<vmem>>, vector<2x128xf32>,
    %c0_225 = arith.constant 0 : index
    %c5_226 = arith.constant 5 : index
    %c0_227 = arith.constant 0 : index
    %447 = vector.load %arg7[%c0_225, %c5_226, %c0_227] : memref<2x8x128xf32, #tpu.memory_space<vmem>>, vector<2x1x128xf32>
    %448 = vector.shape_cast %447 : vector<2x1x128xf32> to vector<2x128xf32>
    %449 = vector.shape_cast %444 : vector<2x128xf32> to vector<2x1x128xf32>
    tpu.vector_store %arg7[%c0_225, %c5_226, %c0_227], %449 {strides = array<i32>} : memref<2x8x128xf32, #tpu.memory_space<vmem>>, vector<2x1x128xf32>,
    %c0_228 = arith.constant 0 : index
    %c6 = arith.constant 6 : index
    %c0_229 = arith.constant 0 : index
    %450 = vector.load %arg1[%c0_228, %c6, %c0_229] : memref<2x8x512xf32, #tpu.memory_space<vmem>>, vector<2x1x512xf32>
    %451 = vector.shape_cast %450 : vector<2x1x512xf32> to vector<2x512xf32>
    %c0_230 = arith.constant 0 : index
    %c0_231 = arith.constant 0 : index
    %452 = vector.load %arg10[%c0_230, %c0_231] : memref<2x256xf32, #tpu.memory_space<vmem>>, vector<2x128xf32>
    %453 = arith.truncf %452 : vector<2x128xf32> to vector<2x128xbf16>
    %c0_232 = arith.constant 0 : index
    %c0_233 = arith.constant 0 : index
    %454 = vector.load %arg2[%c0_232, %c0_233] : memref<128x512xbf16, #tpu.memory_space<vmem>>, vector<128x512xbf16>
    %cst_234 = arith.constant dense<0.000000e+00> : vector<2x512xf32>
    %455 = tpu.matmul %453, %454, %cst_234 {dimension_numbers = #tpu.dot_dimension_numbers<[1], [0], [0], [1], [0, 0, 1, 1], [], []>} : vector<2x128xbf16>, vector<128x512xbf16>, vector<2x512xf32> -> vector<2x512xf32>
    %456 = arith.addf %451, %455 : vector<2x512xf32>
    %c0_235 = arith.constant 0 : index
    %c0_236 = arith.constant 0 : index
    %457 = vector.load %arg11[%c0_235, %c0_236] : memref<2x128xf32, #tpu.memory_space<vmem>>, vector<2x128xf32>
    %458 = vector.extract_strided_slice %456 {offsets = [0, 0], sizes = [2, 128], strides = [1, 1]} : vector<2x512xf32> to vector<2x128xf32>
    %459 = arith.negf %458 : vector<2x128xf32>
    %460 = math.exp %459 : vector<2x128xf32>
    %cst_237 = arith.constant 1.000000e+00 : f32
    %461 = vector.broadcast %cst_237 : f32 to vector<2x128xf32>
    %462 = arith.addf %461, %460 : vector<2x128xf32>
    %463 = arith.divf %461, %462 : vector<2x128xf32>
    %464 = vector.extract_strided_slice %456 {offsets = [0, 128], sizes = [2, 128], strides = [1, 1]} : vector<2x512xf32> to vector<2x128xf32>
    %465 = arith.negf %464 : vector<2x128xf32>
    %466 = math.exp %465 : vector<2x128xf32>
    %cst_238 = arith.constant 1.000000e+00 : f32
    %467 = vector.broadcast %cst_238 : f32 to vector<2x128xf32>
    %468 = arith.addf %467, %466 : vector<2x128xf32>
    %469 = arith.divf %467, %468 : vector<2x128xf32>
    %470 = vector.extract_strided_slice %456 {offsets = [0, 256], sizes = [2, 128], strides = [1, 1]} : vector<2x512xf32> to vector<2x128xf32>
    %471 = math.tanh %470 : vector<2x128xf32>
    %472 = vector.extract_strided_slice %456 {offsets = [0, 384], sizes = [2, 128], strides = [1, 1]} : vector<2x512xf32> to vector<2x128xf32>
    %473 = arith.negf %472 : vector<2x128xf32>
    %474 = math.exp %473 : vector<2x128xf32>
    %cst_239 = arith.constant 1.000000e+00 : f32
    %475 = vector.broadcast %cst_239 : f32 to vector<2x128xf32>
    %476 = arith.addf %475, %474 : vector<2x128xf32>
    %477 = arith.divf %475, %476 : vector<2x128xf32>
    %478 = arith.mulf %469, %457 : vector<2x128xf32>
    %479 = arith.mulf %463, %471 : vector<2x128xf32>
    %480 = arith.addf %478, %479 : vector<2x128xf32>
    %481 = math.tanh %480 : vector<2x128xf32>
    %482 = arith.mulf %477, %481 : vector<2x128xf32>
    %c0_240 = arith.constant 0 : index
    %c0_241 = arith.constant 0 : index
    %483 = vector.load %arg11[%c0_240, %c0_241] : memref<2x128xf32, #tpu.memory_space<vmem>>, vector<2x128xf32>
    tpu.vector_store %arg11[%c0_240, %c0_241], %480 {strides = array<i32>} : memref<2x128xf32, #tpu.memory_space<vmem>>, vector<2x128xf32>,
    %c0_242 = arith.constant 0 : index
    %c0_243 = arith.constant 0 : index
    %484 = vector.load %arg10[%c0_242, %c0_243] : memref<2x256xf32, #tpu.memory_space<vmem>>, vector<2x128xf32>
    tpu.vector_store %arg10[%c0_242, %c0_243], %482 {strides = array<i32>} : memref<2x256xf32, #tpu.memory_space<vmem>>, vector<2x128xf32>,
    %c0_244 = arith.constant 0 : index
    %c0_245 = arith.constant 0 : index
    %485 = vector.load %arg10[%c0_244, %c0_245] : memref<2x256xf32, #tpu.memory_space<vmem>>, vector<2x256xf32>
    %486 = arith.truncf %485 : vector<2x256xf32> to vector<2x256xbf16>
    %c0_246 = arith.constant 0 : index
    %c0_247 = arith.constant 0 : index
    %487 = vector.load %arg3[%c0_246, %c0_247] : memref<256x512xbf16, #tpu.memory_space<vmem>>, vector<256x512xbf16>
    %cst_248 = arith.constant dense<0.000000e+00> : vector<2x512xf32>
    %488 = tpu.matmul %486, %487, %cst_248 {dimension_numbers = #tpu.dot_dimension_numbers<[1], [0], [0], [1], [0, 0, 1, 1], [], []>} : vector<2x256xbf16>, vector<256x512xbf16>, vector<2x512xf32> -> vector<2x512xf32>
    %c0_249 = arith.constant 0 : index
    %c0_250 = arith.constant 0 : index
    %489 = vector.load %arg4[%c0_249, %c0_250] : memref<1x512xf32, #tpu.memory_space<vmem>>, vector<1x512xf32>
    %490 = vector.broadcast %489 : vector<1x512xf32> to vector<2x512xf32>
    %491 = arith.addf %488, %490 : vector<2x512xf32>
    %c0_251 = arith.constant 0 : index
    %c0_252 = arith.constant 0 : index
    %492 = vector.load %arg12[%c0_251, %c0_252] : memref<2x128xf32, #tpu.memory_space<vmem>>, vector<2x128xf32>
    %493 = vector.extract_strided_slice %491 {offsets = [0, 0], sizes = [2, 128], strides = [1, 1]} : vector<2x512xf32> to vector<2x128xf32>
    %494 = arith.negf %493 : vector<2x128xf32>
    %495 = math.exp %494 : vector<2x128xf32>
    %cst_253 = arith.constant 1.000000e+00 : f32
    %496 = vector.broadcast %cst_253 : f32 to vector<2x128xf32>
    %497 = arith.addf %496, %495 : vector<2x128xf32>
    %498 = arith.divf %496, %497 : vector<2x128xf32>
    %499 = vector.extract_strided_slice %491 {offsets = [0, 128], sizes = [2, 128], strides = [1, 1]} : vector<2x512xf32> to vector<2x128xf32>
    %500 = arith.negf %499 : vector<2x128xf32>
    %501 = math.exp %500 : vector<2x128xf32>
    %cst_254 = arith.constant 1.000000e+00 : f32
    %502 = vector.broadcast %cst_254 : f32 to vector<2x128xf32>
    %503 = arith.addf %502, %501 : vector<2x128xf32>
    %504 = arith.divf %502, %503 : vector<2x128xf32>
    %505 = vector.extract_strided_slice %491 {offsets = [0, 256], sizes = [2, 128], strides = [1, 1]} : vector<2x512xf32> to vector<2x128xf32>
    %506 = math.tanh %505 : vector<2x128xf32>
    %507 = vector.extract_strided_slice %491 {offsets = [0, 384], sizes = [2, 128], strides = [1, 1]} : vector<2x512xf32> to vector<2x128xf32>
    %508 = arith.negf %507 : vector<2x128xf32>
    %509 = math.exp %508 : vector<2x128xf32>
    %cst_255 = arith.constant 1.000000e+00 : f32
    %510 = vector.broadcast %cst_255 : f32 to vector<2x128xf32>
    %511 = arith.addf %510, %509 : vector<2x128xf32>
    %512 = arith.divf %510, %511 : vector<2x128xf32>
    %513 = arith.mulf %504, %492 : vector<2x128xf32>
    %514 = arith.mulf %498, %506 : vector<2x128xf32>
    %515 = arith.addf %513, %514 : vector<2x128xf32>
    %516 = math.tanh %515 : vector<2x128xf32>
    %517 = arith.mulf %512, %516 : vector<2x128xf32>
    %c0_256 = arith.constant 0 : index
    %c0_257 = arith.constant 0 : index
    %518 = vector.load %arg12[%c0_256, %c0_257] : memref<2x128xf32, #tpu.memory_space<vmem>>, vector<2x128xf32>
    tpu.vector_store %arg12[%c0_256, %c0_257], %515 {strides = array<i32>} : memref<2x128xf32, #tpu.memory_space<vmem>>, vector<2x128xf32>,
    %c0_258 = arith.constant 0 : index
    %c128_259 = arith.constant 128 : index
    %519 = vector.load %arg10[%c0_258, %c128_259] : memref<2x256xf32, #tpu.memory_space<vmem>>, vector<2x128xf32>
    tpu.vector_store %arg10[%c0_258, %c128_259], %517 {strides = array<i32>} : memref<2x256xf32, #tpu.memory_space<vmem>>, vector<2x128xf32>,
    %c0_260 = arith.constant 0 : index
    %c6_261 = arith.constant 6 : index
    %c0_262 = arith.constant 0 : index
    %520 = vector.load %arg7[%c0_260, %c6_261, %c0_262] : memref<2x8x128xf32, #tpu.memory_space<vmem>>, vector<2x1x128xf32>
    %521 = vector.shape_cast %520 : vector<2x1x128xf32> to vector<2x128xf32>
    %522 = vector.shape_cast %517 : vector<2x128xf32> to vector<2x1x128xf32>
    tpu.vector_store %arg7[%c0_260, %c6_261, %c0_262], %522 {strides = array<i32>} : memref<2x8x128xf32, #tpu.memory_space<vmem>>, vector<2x1x128xf32>,
    %c0_263 = arith.constant 0 : index
    %c7 = arith.constant 7 : index
    %c0_264 = arith.constant 0 : index
    %523 = vector.load %arg1[%c0_263, %c7, %c0_264] : memref<2x8x512xf32, #tpu.memory_space<vmem>>, vector<2x1x512xf32>
    %524 = vector.shape_cast %523 : vector<2x1x512xf32> to vector<2x512xf32>
    %c0_265 = arith.constant 0 : index
    %c0_266 = arith.constant 0 : index
    %525 = vector.load %arg10[%c0_265, %c0_266] : memref<2x256xf32, #tpu.memory_space<vmem>>, vector<2x128xf32>
    %526 = arith.truncf %525 : vector<2x128xf32> to vector<2x128xbf16>
    %c0_267 = arith.constant 0 : index
    %c0_268 = arith.constant 0 : index
    %527 = vector.load %arg2[%c0_267, %c0_268] : memref<128x512xbf16, #tpu.memory_space<vmem>>, vector<128x512xbf16>
    %cst_269 = arith.constant dense<0.000000e+00> : vector<2x512xf32>
    %528 = tpu.matmul %526, %527, %cst_269 {dimension_numbers = #tpu.dot_dimension_numbers<[1], [0], [0], [1], [0, 0, 1, 1], [], []>} : vector<2x128xbf16>, vector<128x512xbf16>, vector<2x512xf32> -> vector<2x512xf32>
    %529 = arith.addf %524, %528 : vector<2x512xf32>
    %c0_270 = arith.constant 0 : index
    %c0_271 = arith.constant 0 : index
    %530 = vector.load %arg11[%c0_270, %c0_271] : memref<2x128xf32, #tpu.memory_space<vmem>>, vector<2x128xf32>
    %531 = vector.extract_strided_slice %529 {offsets = [0, 0], sizes = [2, 128], strides = [1, 1]} : vector<2x512xf32> to vector<2x128xf32>
    %532 = arith.negf %531 : vector<2x128xf32>
    %533 = math.exp %532 : vector<2x128xf32>
    %cst_272 = arith.constant 1.000000e+00 : f32
    %534 = vector.broadcast %cst_272 : f32 to vector<2x128xf32>
    %535 = arith.addf %534, %533 : vector<2x128xf32>
    %536 = arith.divf %534, %535 : vector<2x128xf32>
    %537 = vector.extract_strided_slice %529 {offsets = [0, 128], sizes = [2, 128], strides = [1, 1]} : vector<2x512xf32> to vector<2x128xf32>
    %538 = arith.negf %537 : vector<2x128xf32>
    %539 = math.exp %538 : vector<2x128xf32>
    %cst_273 = arith.constant 1.000000e+00 : f32
    %540 = vector.broadcast %cst_273 : f32 to vector<2x128xf32>
    %541 = arith.addf %540, %539 : vector<2x128xf32>
    %542 = arith.divf %540, %541 : vector<2x128xf32>
    %543 = vector.extract_strided_slice %529 {offsets = [0, 256], sizes = [2, 128], strides = [1, 1]} : vector<2x512xf32> to vector<2x128xf32>
    %544 = math.tanh %543 : vector<2x128xf32>
    %545 = vector.extract_strided_slice %529 {offsets = [0, 384], sizes = [2, 128], strides = [1, 1]} : vector<2x512xf32> to vector<2x128xf32>
    %546 = arith.negf %545 : vector<2x128xf32>
    %547 = math.exp %546 : vector<2x128xf32>
    %cst_274 = arith.constant 1.000000e+00 : f32
    %548 = vector.broadcast %cst_274 : f32 to vector<2x128xf32>
    %549 = arith.addf %548, %547 : vector<2x128xf32>
    %550 = arith.divf %548, %549 : vector<2x128xf32>
    %551 = arith.mulf %542, %530 : vector<2x128xf32>
    %552 = arith.mulf %536, %544 : vector<2x128xf32>
    %553 = arith.addf %551, %552 : vector<2x128xf32>
    %554 = math.tanh %553 : vector<2x128xf32>
    %555 = arith.mulf %550, %554 : vector<2x128xf32>
    %c0_275 = arith.constant 0 : index
    %c0_276 = arith.constant 0 : index
    %556 = vector.load %arg11[%c0_275, %c0_276] : memref<2x128xf32, #tpu.memory_space<vmem>>, vector<2x128xf32>
    tpu.vector_store %arg11[%c0_275, %c0_276], %553 {strides = array<i32>} : memref<2x128xf32, #tpu.memory_space<vmem>>, vector<2x128xf32>,
    %c0_277 = arith.constant 0 : index
    %c0_278 = arith.constant 0 : index
    %557 = vector.load %arg10[%c0_277, %c0_278] : memref<2x256xf32, #tpu.memory_space<vmem>>, vector<2x128xf32>
    tpu.vector_store %arg10[%c0_277, %c0_278], %555 {strides = array<i32>} : memref<2x256xf32, #tpu.memory_space<vmem>>, vector<2x128xf32>,
    %c0_279 = arith.constant 0 : index
    %c0_280 = arith.constant 0 : index
    %558 = vector.load %arg10[%c0_279, %c0_280] : memref<2x256xf32, #tpu.memory_space<vmem>>, vector<2x256xf32>
    %559 = arith.truncf %558 : vector<2x256xf32> to vector<2x256xbf16>
    %c0_281 = arith.constant 0 : index
    %c0_282 = arith.constant 0 : index
    %560 = vector.load %arg3[%c0_281, %c0_282] : memref<256x512xbf16, #tpu.memory_space<vmem>>, vector<256x512xbf16>
    %cst_283 = arith.constant dense<0.000000e+00> : vector<2x512xf32>
    %561 = tpu.matmul %559, %560, %cst_283 {dimension_numbers = #tpu.dot_dimension_numbers<[1], [0], [0], [1], [0, 0, 1, 1], [], []>} : vector<2x256xbf16>, vector<256x512xbf16>, vector<2x512xf32> -> vector<2x512xf32>
    %c0_284 = arith.constant 0 : index
    %c0_285 = arith.constant 0 : index
    %562 = vector.load %arg4[%c0_284, %c0_285] : memref<1x512xf32, #tpu.memory_space<vmem>>, vector<1x512xf32>
    %563 = vector.broadcast %562 : vector<1x512xf32> to vector<2x512xf32>
    %564 = arith.addf %561, %563 : vector<2x512xf32>
    %c0_286 = arith.constant 0 : index
    %c0_287 = arith.constant 0 : index
    %565 = vector.load %arg12[%c0_286, %c0_287] : memref<2x128xf32, #tpu.memory_space<vmem>>, vector<2x128xf32>
    %566 = vector.extract_strided_slice %564 {offsets = [0, 0], sizes = [2, 128], strides = [1, 1]} : vector<2x512xf32> to vector<2x128xf32>
    %567 = arith.negf %566 : vector<2x128xf32>
    %568 = math.exp %567 : vector<2x128xf32>
    %cst_288 = arith.constant 1.000000e+00 : f32
    %569 = vector.broadcast %cst_288 : f32 to vector<2x128xf32>
    %570 = arith.addf %569, %568 : vector<2x128xf32>
    %571 = arith.divf %569, %570 : vector<2x128xf32>
    %572 = vector.extract_strided_slice %564 {offsets = [0, 128], sizes = [2, 128], strides = [1, 1]} : vector<2x512xf32> to vector<2x128xf32>
    %573 = arith.negf %572 : vector<2x128xf32>
    %574 = math.exp %573 : vector<2x128xf32>
    %cst_289 = arith.constant 1.000000e+00 : f32
    %575 = vector.broadcast %cst_289 : f32 to vector<2x128xf32>
    %576 = arith.addf %575, %574 : vector<2x128xf32>
    %577 = arith.divf %575, %576 : vector<2x128xf32>
    %578 = vector.extract_strided_slice %564 {offsets = [0, 256], sizes = [2, 128], strides = [1, 1]} : vector<2x512xf32> to vector<2x128xf32>
    %579 = math.tanh %578 : vector<2x128xf32>
    %580 = vector.extract_strided_slice %564 {offsets = [0, 384], sizes = [2, 128], strides = [1, 1]} : vector<2x512xf32> to vector<2x128xf32>
    %581 = arith.negf %580 : vector<2x128xf32>
    %582 = math.exp %581 : vector<2x128xf32>
    %cst_290 = arith.constant 1.000000e+00 : f32
    %583 = vector.broadcast %cst_290 : f32 to vector<2x128xf32>
    %584 = arith.addf %583, %582 : vector<2x128xf32>
    %585 = arith.divf %583, %584 : vector<2x128xf32>
    %586 = arith.mulf %577, %565 : vector<2x128xf32>
    %587 = arith.mulf %571, %579 : vector<2x128xf32>
    %588 = arith.addf %586, %587 : vector<2x128xf32>
    %589 = math.tanh %588 : vector<2x128xf32>
    %590 = arith.mulf %585, %589 : vector<2x128xf32>
    %c0_291 = arith.constant 0 : index
    %c0_292 = arith.constant 0 : index
    %591 = vector.load %arg12[%c0_291, %c0_292] : memref<2x128xf32, #tpu.memory_space<vmem>>, vector<2x128xf32>
    tpu.vector_store %arg12[%c0_291, %c0_292], %588 {strides = array<i32>} : memref<2x128xf32, #tpu.memory_space<vmem>>, vector<2x128xf32>,
    %c0_293 = arith.constant 0 : index
    %c128_294 = arith.constant 128 : index
    %592 = vector.load %arg10[%c0_293, %c128_294] : memref<2x256xf32, #tpu.memory_space<vmem>>, vector<2x128xf32>
    tpu.vector_store %arg10[%c0_293, %c128_294], %590 {strides = array<i32>} : memref<2x256xf32, #tpu.memory_space<vmem>>, vector<2x128xf32>,
    %c0_295 = arith.constant 0 : index
    %c7_296 = arith.constant 7 : index
    %c0_297 = arith.constant 0 : index
    %593 = vector.load %arg7[%c0_295, %c7_296, %c0_297] : memref<2x8x128xf32, #tpu.memory_space<vmem>>, vector<2x1x128xf32>
    %594 = vector.shape_cast %593 : vector<2x1x128xf32> to vector<2x128xf32>
    %595 = vector.shape_cast %590 : vector<2x128xf32> to vector<2x1x128xf32>
    tpu.vector_store %arg7[%c0_295, %c7_296, %c0_297], %595 {strides = array<i32>} : memref<2x8x128xf32, #tpu.memory_space<vmem>>, vector<2x1x128xf32>,
    %c0_298 = arith.constant 0 : index
    %c0_299 = arith.constant 0 : index
    %596 = vector.load %arg10[%c0_298, %c0_299] : memref<2x256xf32, #tpu.memory_space<vmem>>, vector<2x128xf32>
    %c0_300 = arith.constant 0 : index
    %c0_301 = arith.constant 0 : index
    %c0_302 = arith.constant 0 : index
    %597 = vector.load %arg8[%c0_300, %c0_301, %c0_302] : memref<2x2x128xf32, #tpu.memory_space<vmem>>, vector<1x2x128xf32>
    %598 = vector.shape_cast %597 : vector<1x2x128xf32> to vector<2x128xf32>
    %599 = vector.shape_cast %596 : vector<2x128xf32> to vector<1x2x128xf32>
    tpu.vector_store %arg8[%c0_300, %c0_301, %c0_302], %599 {strides = array<i32>} : memref<2x2x128xf32, #tpu.memory_space<vmem>>, vector<1x2x128xf32>,
    %c0_303 = arith.constant 0 : index
    %c128_304 = arith.constant 128 : index
    %600 = vector.load %arg10[%c0_303, %c128_304] : memref<2x256xf32, #tpu.memory_space<vmem>>, vector<2x128xf32>
    %c1_305 = arith.constant 1 : index
    %c0_306 = arith.constant 0 : index
    %c0_307 = arith.constant 0 : index
    %601 = vector.load %arg8[%c1_305, %c0_306, %c0_307] : memref<2x2x128xf32, #tpu.memory_space<vmem>>, vector<1x2x128xf32>
    %602 = vector.shape_cast %601 : vector<1x2x128xf32> to vector<2x128xf32>
    %603 = vector.shape_cast %600 : vector<2x128xf32> to vector<1x2x128xf32>
    tpu.vector_store %arg8[%c1_305, %c0_306, %c0_307], %603 {strides = array<i32>} : memref<2x2x128xf32, #tpu.memory_space<vmem>>, vector<1x2x128xf32>,
    %c0_308 = arith.constant 0 : index
    %c0_309 = arith.constant 0 : index
    %604 = vector.load %arg11[%c0_308, %c0_309] : memref<2x128xf32, #tpu.memory_space<vmem>>, vector<2x128xf32>
    %c0_310 = arith.constant 0 : index
    %c0_311 = arith.constant 0 : index
    %c0_312 = arith.constant 0 : index
    %605 = vector.load %arg9[%c0_310, %c0_311, %c0_312] : memref<2x2x128xf32, #tpu.memory_space<vmem>>, vector<1x2x128xf32>
    %606 = vector.shape_cast %605 : vector<1x2x128xf32> to vector<2x128xf32>
    %607 = vector.shape_cast %604 : vector<2x128xf32> to vector<1x2x128xf32>
    tpu.vector_store %arg9[%c0_310, %c0_311, %c0_312], %607 {strides = array<i32>} : memref<2x2x128xf32, #tpu.memory_space<vmem>>, vector<1x2x128xf32>,
    %c0_313 = arith.constant 0 : index
    %c0_314 = arith.constant 0 : index
    %608 = vector.load %arg12[%c0_313, %c0_314] : memref<2x128xf32, #tpu.memory_space<vmem>>, vector<2x128xf32>
    %c1_315 = arith.constant 1 : index
    %c0_316 = arith.constant 0 : index
    %c0_317 = arith.constant 0 : index
    %609 = vector.load %arg9[%c1_315, %c0_316, %c0_317] : memref<2x2x128xf32, #tpu.memory_space<vmem>>, vector<1x2x128xf32>
    %610 = vector.shape_cast %609 : vector<1x2x128xf32> to vector<2x128xf32>
    %611 = vector.shape_cast %608 : vector<2x128xf32> to vector<1x2x128xf32>
    tpu.vector_store %arg9[%c1_315, %c0_316, %c0_317], %611 {strides = array<i32>} : memref<2x2x128xf32, #tpu.memory_space<vmem>>, vector<1x2x128xf32>,
    return
  }
  func.func @transform_0(%arg0: i32) -> (i32, i32, i32) {
    %c0_i32 = arith.constant 0 : i32
    %c0_i32_0 = arith.constant 0 : i32
    %c0_i32_1 = arith.constant 0 : i32
    return %arg0, %c0_i32, %c0_i32_0 : i32, i32, i32
  }
  func.func @transform_1(%arg0: i32) -> (i32, i32) {
    %c0_i32 = arith.constant 0 : i32
    %c0_i32_0 = arith.constant 0 : i32
    %c0_i32_1 = arith.constant 0 : i32
    return %c0_i32, %c0_i32_0 : i32, i32
  }
  func.func @transform_2(%arg0: i32) -> (i32, i32) {
    %c0_i32 = arith.constant 0 : i32
    %c0_i32_0 = arith.constant 0 : i32
    %c0_i32_1 = arith.constant 0 : i32
    return %c0_i32, %c0_i32_0 : i32, i32
  }
  func.func @transform_3(%arg0: i32) -> (i32, i32) {
    %c0_i32 = arith.constant 0 : i32
    %c0_i32_0 = arith.constant 0 : i32
    %c0_i32_1 = arith.constant 0 : i32
    return %c0_i32, %c0_i32_0 : i32, i32
  }
  func.func @transform_4(%arg0: i32) -> (i32, i32, i32) {
    %c0_i32 = arith.constant 0 : i32
    %c0_i32_0 = arith.constant 0 : i32
    %c0_i32_1 = arith.constant 0 : i32
    return %c0_i32, %arg0, %c0_i32_0 : i32, i32, i32
  }
  func.func @transform_5(%arg0: i32) -> (i32, i32, i32) {
    %c0_i32 = arith.constant 0 : i32
    %c0_i32_0 = arith.constant 0 : i32
    %c0_i32_1 = arith.constant 0 : i32
    return %c0_i32, %arg0, %c0_i32_0 : i32, i32, i32
  }
  func.func @transform_6(%arg0: i32) -> (i32, i32, i32) {
    %c0_i32 = arith.constant 0 : i32
    %c0_i32_0 = arith.constant 0 : i32
    %c0_i32_1 = arith.constant 0 : i32
    return %arg0, %c0_i32, %c0_i32_0 : i32, i32, i32
  }
  func.func @transform_7(%arg0: i32) -> (i32, i32, i32) {
    %c0_i32 = arith.constant 0 : i32
    %c0_i32_0 = arith.constant 0 : i32
    %c0_i32_1 = arith.constant 0 : i32
    return %c0_i32, %arg0, %c0_i32_0 : i32, i32, i32
  }
  func.func @transform_8(%arg0: i32) -> (i32, i32, i32) {
    %c0_i32 = arith.constant 0 : i32
    %c0_i32_0 = arith.constant 0 : i32
    %c0_i32_1 = arith.constant 0 : i32
    return %c0_i32, %arg0, %c0_i32_0 : i32, i32, i32
  }
}

module attributes {stable_mosaic.version = 11 : i64} {
  func.func @attn_readout_kernel(%arg0: i32, %arg1: i32, %arg2: memref<2xi32, #tpu.memory_space<smem>>, %arg3: memref<1x8x128xf32, #tpu.memory_space<vmem>>, %arg4: memref<1x8x32xf32, #tpu.memory_space<vmem>>, %arg5: memref<128x32xbf16, #tpu.memory_space<vmem>>, %arg6: memref<32x32xbf16, #tpu.memory_space<vmem>>, %arg7: memref<128x32xbf16, #tpu.memory_space<vmem>>, %arg8: memref<32x64xbf16, #tpu.memory_space<vmem>>, %arg9: memref<1x64xf32, #tpu.memory_space<vmem>>, %arg10: memref<1x8x32xf32, #tpu.memory_space<vmem>>, %arg11: memref<1x8x8xf32, #tpu.memory_space<vmem>>, %arg12: memref<1x8x64xf32, #tpu.memory_space<vmem>>, %arg13: memref<8x32xf32, #tpu.memory_space<vmem>>) attributes {dimension_semantics = [#tpu.dimension_semantics<parallel>, #tpu.dimension_semantics<arbitrary>], iteration_bounds = array<i64: 2, 1>, scalar_prefetch = 0 : i64, scratch_operands = 1 : i64, tpu.core_type = #tpu.core_type<tc>, window_params = [{transform_indices = @transform_0, window_bounds = array<i64: 2>}, {transform_indices = @transform_1, window_bounds = array<i64: 1, 8, 128>}, {transform_indices = @transform_2, window_bounds = array<i64: 1, 8, 32>}, {pipeline_mode = #tpu.pipeline_mode<synchronous>, transform_indices = @transform_3, window_bounds = array<i64: 128, 32>}, {pipeline_mode = #tpu.pipeline_mode<synchronous>, transform_indices = @transform_4, window_bounds = array<i64: 32, 32>}, {pipeline_mode = #tpu.pipeline_mode<synchronous>, transform_indices = @transform_5, window_bounds = array<i64: 128, 32>}, {transform_indices = @transform_6, window_bounds = array<i64: 32, 64>}, {transform_indices = @transform_7, window_bounds = array<i64: 1, 64>}, {transform_indices = @transform_8, window_bounds = array<i64: 1, 8, 32>}, {transform_indices = @transform_9, window_bounds = array<i64: 1, 8, 8>}, {transform_indices = @transform_10, window_bounds = array<i64: 1, 8, 64>}]} {
    %c0_i32 = arith.constant 0 : i32
    %0 = arith.cmpi eq, %arg1, %c0_i32 : i32
    %1 = arith.extui %0 : i1 to i32
    %c0_i32_0 = arith.constant 0 : i32
    %2 = arith.cmpi ne, %1, %c0_i32_0 : i32
    scf.if %2 {
      %c0_9 = arith.constant 0 : index
      %c0_10 = arith.constant 0 : index
      %c0_11 = arith.constant 0 : index
      %13 = vector.load %arg3[%c0_9, %c0_10, %c0_11] : memref<1x8x128xf32, #tpu.memory_space<vmem>>, vector<1x8x128xf32>
      %14 = vector.shape_cast %13 : vector<1x8x128xf32> to vector<8x128xf32>
      %15 = arith.truncf %14 : vector<8x128xf32> to vector<8x128xbf16>
      %c0_12 = arith.constant 0 : index
      %c0_13 = arith.constant 0 : index
      %c0_14 = arith.constant 0 : index
      %16 = vector.load %arg4[%c0_12, %c0_13, %c0_14] : memref<1x8x32xf32, #tpu.memory_space<vmem>>, vector<1x8x32xf32>
      %17 = vector.shape_cast %16 : vector<1x8x32xf32> to vector<8x32xf32>
      %18 = arith.truncf %17 : vector<8x32xf32> to vector<8x32xbf16>
      %c0_15 = arith.constant 0 : index
      %c0_16 = arith.constant 0 : index
      %19 = vector.load %arg5[%c0_15, %c0_16] : memref<128x32xbf16, #tpu.memory_space<vmem>>, vector<128x32xbf16>
      %cst_17 = arith.constant dense<0.000000e+00> : vector<8x32xf32>
      %20 = tpu.matmul %15, %19, %cst_17 {dimension_numbers = #tpu.dot_dimension_numbers<[1], [0], [0], [1], [0, 0, 1, 1], [], []>} : vector<8x128xbf16>, vector<128x32xbf16>, vector<8x32xf32> -> vector<8x32xf32>
      %21 = arith.truncf %20 : vector<8x32xf32> to vector<8x32xbf16>
      %cst_18 = arith.constant dense<0.000000e+00> : vector<8x8xf32>
      %22 = tpu.matmul %21, %18, %cst_18 {dimension_numbers = #tpu.dot_dimension_numbers<[1], [1], [0], [0], [0, 0, 1, 0], [], []>} : vector<8x32xbf16>, vector<8x32xbf16>, vector<8x8xf32> -> vector<8x8xf32>
      %23 = tpu.iota {dimensions = array<i32: 1>} : vector<8x8xi32>
      %24 = arith.index_cast %arg0 : i32 to index
      %25 = memref.load %arg2[%24] : memref<2xi32, #tpu.memory_space<smem>>
      %26 = vector.broadcast %25 : i32 to vector<8x8xi32>
      %27 = arith.cmpi slt, %23, %26 : vector<8x8xi32>
      %cst_19 = arith.constant -1.000000e+09 : f32
      %28 = vector.broadcast %cst_19 : f32 to vector<8x8xf32>
      %29 = arith.select %27, %22, %28 : vector<8x8xi1>, vector<8x8xf32>
      %cst_20 = arith.constant dense<0xFF800000> : vector<8xf32>
      %30 = vector.multi_reduction <maximumf>, %29, %cst_20 [1] : vector<8x8xf32> to vector<8xf32>
      %31 = vector.shape_cast %30 : vector<8xf32> to vector<8x1xf32>
      %32 = vector.broadcast %31 : vector<8x1xf32> to vector<8x8xf32>
      %33 = arith.subf %29, %32 : vector<8x8xf32>
      %34 = math.exp %33 : vector<8x8xf32>
      %cst_21 = arith.constant dense<0.000000e+00> : vector<8xf32>
      %35 = vector.multi_reduction <add>, %34, %cst_21 [1] : vector<8x8xf32> to vector<8xf32>
      %36 = vector.shape_cast %35 : vector<8xf32> to vector<8x1xf32>
      %37 = tpu.reciprocal %36 {approx = true} : vector<8x1xf32> -> vector<8x1xf32>
      %38 = vector.broadcast %37 : vector<8x1xf32> to vector<8x8xf32>
      %39 = arith.mulf %34, %38 : vector<8x8xf32>
      %40 = arith.truncf %39 : vector<8x8xf32> to vector<8x8xbf16>
      %cst_22 = arith.constant dense<0.000000e+00> : vector<8x32xf32>
      %41 = tpu.matmul %40, %18, %cst_22 {dimension_numbers = #tpu.dot_dimension_numbers<[1], [0], [0], [1], [0, 0, 1, 1], [], []>} : vector<8x8xbf16>, vector<8x32xbf16>, vector<8x32xf32> -> vector<8x32xf32>
      %42 = arith.truncf %41 : vector<8x32xf32> to vector<8x32xbf16>
      %c0_23 = arith.constant 0 : index
      %c0_24 = arith.constant 0 : index
      %43 = vector.load %arg6[%c0_23, %c0_24] : memref<32x32xbf16, #tpu.memory_space<vmem>>, vector<32x32xbf16>
      %cst_25 = arith.constant dense<0.000000e+00> : vector<8x32xf32>
      %44 = tpu.matmul %42, %43, %cst_25 {dimension_numbers = #tpu.dot_dimension_numbers<[1], [0], [0], [1], [0, 0, 1, 1], [], []>} : vector<8x32xbf16>, vector<32x32xbf16>, vector<8x32xf32> -> vector<8x32xf32>
      %c0_26 = arith.constant 0 : index
      %c0_27 = arith.constant 0 : index
      %45 = vector.load %arg7[%c0_26, %c0_27] : memref<128x32xbf16, #tpu.memory_space<vmem>>, vector<128x32xbf16>
      %cst_28 = arith.constant dense<0.000000e+00> : vector<8x32xf32>
      %46 = tpu.matmul %15, %45, %cst_28 {dimension_numbers = #tpu.dot_dimension_numbers<[1], [0], [0], [1], [0, 0, 1, 1], [], []>} : vector<8x128xbf16>, vector<128x32xbf16>, vector<8x32xf32> -> vector<8x32xf32>
      %47 = arith.addf %44, %46 : vector<8x32xf32>
      %48 = math.tanh %47 : vector<8x32xf32>
      %c0_29 = arith.constant 0 : index
      %c0_30 = arith.constant 0 : index
      %49 = vector.load %arg13[%c0_29, %c0_30] : memref<8x32xf32, #tpu.memory_space<vmem>>, vector<8x32xf32>
      tpu.vector_store %arg13[%c0_29, %c0_30], %48 {strides = array<i32>} : memref<8x32xf32, #tpu.memory_space<vmem>>, vector<8x32xf32>,
      %c0_31 = arith.constant 0 : index
      %c0_32 = arith.constant 0 : index
      %c0_33 = arith.constant 0 : index
      %50 = vector.load %arg10[%c0_31, %c0_32, %c0_33] : memref<1x8x32xf32, #tpu.memory_space<vmem>>, vector<1x8x32xf32>
      %51 = vector.shape_cast %50 : vector<1x8x32xf32> to vector<8x32xf32>
      %52 = vector.shape_cast %48 : vector<8x32xf32> to vector<1x8x32xf32>
      tpu.vector_store %arg10[%c0_31, %c0_32, %c0_33], %52 {strides = array<i32>} : memref<1x8x32xf32, #tpu.memory_space<vmem>>, vector<1x8x32xf32>,
      %c0_34 = arith.constant 0 : index
      %c0_35 = arith.constant 0 : index
      %c0_36 = arith.constant 0 : index
      %53 = vector.load %arg11[%c0_34, %c0_35, %c0_36] : memref<1x8x8xf32, #tpu.memory_space<vmem>>, vector<1x8x8xf32>
      %54 = vector.shape_cast %53 : vector<1x8x8xf32> to vector<8x8xf32>
      %55 = vector.shape_cast %39 : vector<8x8xf32> to vector<1x8x8xf32>
      tpu.vector_store %arg11[%c0_34, %c0_35, %c0_36], %55 {strides = array<i32>} : memref<1x8x8xf32, #tpu.memory_space<vmem>>, vector<1x8x8xf32>,
    } else {
    }
    %c0 = arith.constant 0 : index
    %c0_1 = arith.constant 0 : index
    %3 = vector.load %arg13[%c0, %c0_1] : memref<8x32xf32, #tpu.memory_space<vmem>>, vector<8x32xf32>
    %4 = arith.truncf %3 : vector<8x32xf32> to vector<8x32xbf16>
    %c0_2 = arith.constant 0 : index
    %c0_3 = arith.constant 0 : index
    %5 = vector.load %arg8[%c0_2, %c0_3] : memref<32x64xbf16, #tpu.memory_space<vmem>>, vector<32x64xbf16>
    %cst = arith.constant dense<0.000000e+00> : vector<8x64xf32>
    %6 = tpu.matmul %4, %5, %cst {dimension_numbers = #tpu.dot_dimension_numbers<[1], [0], [0], [1], [0, 0, 1, 1], [], []>} : vector<8x32xbf16>, vector<32x64xbf16>, vector<8x64xf32> -> vector<8x64xf32>
    %c0_4 = arith.constant 0 : index
    %c0_5 = arith.constant 0 : index
    %7 = vector.load %arg9[%c0_4, %c0_5] : memref<1x64xf32, #tpu.memory_space<vmem>>, vector<1x64xf32>
    %8 = vector.broadcast %7 : vector<1x64xf32> to vector<8x64xf32>
    %9 = arith.addf %6, %8 : vector<8x64xf32>
    %c0_6 = arith.constant 0 : index
    %c0_7 = arith.constant 0 : index
    %c0_8 = arith.constant 0 : index
    %10 = vector.load %arg12[%c0_6, %c0_7, %c0_8] : memref<1x8x64xf32, #tpu.memory_space<vmem>>, vector<1x8x64xf32>
    %11 = vector.shape_cast %10 : vector<1x8x64xf32> to vector<8x64xf32>
    %12 = vector.shape_cast %9 : vector<8x64xf32> to vector<1x8x64xf32>
    tpu.vector_store %arg12[%c0_6, %c0_7, %c0_8], %12 {strides = array<i32>} : memref<1x8x64xf32, #tpu.memory_space<vmem>>, vector<1x8x64xf32>,
    return
  }
  func.func @transform_0(%arg0: i32, %arg1: i32) -> i32 {
    %c0_i32 = arith.constant 0 : i32
    %c0_i32_0 = arith.constant 0 : i32
    return %c0_i32 : i32
  }
  func.func @transform_1(%arg0: i32, %arg1: i32) -> (i32, i32, i32) {
    %c0_i32 = arith.constant 0 : i32
    %c0_i32_0 = arith.constant 0 : i32
    %c0_i32_1 = arith.constant 0 : i32
    return %arg0, %c0_i32, %c0_i32_0 : i32, i32, i32
  }
  func.func @transform_2(%arg0: i32, %arg1: i32) -> (i32, i32, i32) {
    %c0_i32 = arith.constant 0 : i32
    %c0_i32_0 = arith.constant 0 : i32
    %c0_i32_1 = arith.constant 0 : i32
    return %arg0, %c0_i32, %c0_i32_0 : i32, i32, i32
  }
  func.func @transform_3(%arg0: i32, %arg1: i32) -> (i32, i32) {
    %c0_i32 = arith.constant 0 : i32
    %c0_i32_0 = arith.constant 0 : i32
    %c0_i32_1 = arith.constant 0 : i32
    return %c0_i32, %c0_i32_0 : i32, i32
  }
  func.func @transform_4(%arg0: i32, %arg1: i32) -> (i32, i32) {
    %c0_i32 = arith.constant 0 : i32
    %c0_i32_0 = arith.constant 0 : i32
    %c0_i32_1 = arith.constant 0 : i32
    return %c0_i32, %c0_i32_0 : i32, i32
  }
  func.func @transform_5(%arg0: i32, %arg1: i32) -> (i32, i32) {
    %c0_i32 = arith.constant 0 : i32
    %c0_i32_0 = arith.constant 0 : i32
    %c0_i32_1 = arith.constant 0 : i32
    return %c0_i32, %c0_i32_0 : i32, i32
  }
  func.func @transform_6(%arg0: i32, %arg1: i32) -> (i32, i32) {
    %c0_i32 = arith.constant 0 : i32
    %c0_i32_0 = arith.constant 0 : i32
    return %c0_i32, %arg1 : i32, i32
  }
  func.func @transform_7(%arg0: i32, %arg1: i32) -> (i32, i32) {
    %c0_i32 = arith.constant 0 : i32
    %c0_i32_0 = arith.constant 0 : i32
    return %c0_i32, %arg1 : i32, i32
  }
  func.func @transform_8(%arg0: i32, %arg1: i32) -> (i32, i32, i32) {
    %c0_i32 = arith.constant 0 : i32
    %c0_i32_0 = arith.constant 0 : i32
    %c0_i32_1 = arith.constant 0 : i32
    return %arg0, %c0_i32, %c0_i32_0 : i32, i32, i32
  }
  func.func @transform_9(%arg0: i32, %arg1: i32) -> (i32, i32, i32) {
    %c0_i32 = arith.constant 0 : i32
    %c0_i32_0 = arith.constant 0 : i32
    %c0_i32_1 = arith.constant 0 : i32
    return %arg0, %c0_i32, %c0_i32_0 : i32, i32, i32
  }
  func.func @transform_10(%arg0: i32, %arg1: i32) -> (i32, i32, i32) {
    %c0_i32 = arith.constant 0 : i32
    %c0_i32_0 = arith.constant 0 : i32
    return %arg0, %c0_i32, %arg1 : i32, i32, i32
  }
}

</mosaic_0001>

<bundles_post_ra>
// kernel: word_decoder_forward.3
= control target key start
LH: loop header
LB: loop body
LE: loop exit
PB: predicated region body
PF: predicated region fallthrough
CT: control target
= control target key end

     0   :  { %v339_v0 = vmov 0.0   ;;  %vm340_vm0 = vmmov 0   ;;  %vm63_vm1 = vcmask 523264   ;;  %v341_v9 = vmov 0   ;;  %s444_s1 = inlined_call_operand.vmem [shape: bf16[64,32], index: 1, kind: input, shape index: {}]   ;;  %s445_s0 = inlined_call_operand.vmem [shape: f32[16,64], index: 0, kind: input, shape index: {}]   ;;  %s446_s3 = inlined_call_operand.vmem [shape: bf16[32,512], index: 3, kind: input, shape index: {}]   ;;  %s447_s2 = inlined_call_operand.vmem [shape: f32[1,32], index: 2, kind: input, shape index: {}]   ;;  %s448_s4 = inlined_call_operand.vmem [shape: f32[1,512], index: 4, kind: input, shape index: {}]   ;;  %s449_s5 = inlined_call_operand.vmem [shape: f32[16,512], index: 5, kind: output, shape index: {}]  }
   0x1   :  { %304 = vmatprep.subr.bf16.mxu0 %v339_v0  ;;  %v319_v1 = vld [vmem:[%s444_s1] sm:$0xff]   ;;  %312 = vmatprep.mubr.msk.bf16.mxu0 %vm340_vm0, %v339_v0  ;;  %v320_v2 = vld [vmem:[%s444_s1 + $0x8] sm:$0xff]   ;;  %v321_v3 = vld [vmem:[%s444_s1 + $0x10] sm:$0xff]   ;;  %vm181_vm2 = vcmask 261120   ;;  %v121_v27 = vlaneseq }
   0x2   :  { %305 = vmatpush3.bf16.msra.mxu0 %v319_v1  ;;  %v322_v4 = vld [vmem:[%s444_s1 + $0x18] sm:$0xff]   ;;  %v21_v5 = vld [vmem:[%s445_s0] sm:$0xff]  ;;  %v22_v6 = vld [vmem:[%s445_s0 + $0x8] sm:$0xff]  ;;  %217 = vmatprep.mubr.bf16.mxu1 %v341_v9 }
   0x3   :  { %306 = vmatprep.subr.bf16.mxu0 %v339_v0  ;;  %v23_v7 = vpack.c.bf16 %v22_v6, %v21_v5  ;;  %v323_v8 = vld [vmem:[%s446_s3 + $0x4] ss:$16 sps:$4 sm:$0xff]   ;;  %v325_v10 = vld [vmem:[%s446_s3] ss:$16 sps:$4 sm:$0xff]   ;;  %v331_v13 = vld [vmem:[%s446_s3 + $0xc] ss:$16 sps:$4 sm:$0xff]  }
   0x4   :  { %185 = vmatprep.subr.bf16.mxu1 %v323_v8  ;;  %v326_v11 = vld [vmem:[%s446_s3 + $0x24] ss:$16 sps:$4 sm:$0xff]   ;;  %v328_v12 = vld [vmem:[%s446_s3 + $0x20] ss:$16 sps:$4 sm:$0xff]   ;;  %v329_v23 = vld [vmem:[%s446_s3 + $0x8] ss:$16 sps:$4 sm:$0xff]  }
   0x5   :  { %186 = vmatpush1.bf16.msra.mxu1 %v325_v10  ;;  %v283_v14 = vld [vmem:[%s447_s2] ss:$0 sm:$0xff]  ;;  %v334_v25 = vld [vmem:[%s446_s3 + $0x2c] ss:$16 sps:$4 sm:$0xff]   ;;  %v332_v26 = vld [vmem:[%s446_s3 + $0x28] ss:$16 sps:$4 sm:$0xff]  }
   0x6   :  { %307 = vmatpush3.bf16.msra.mxu0 %v320_v2  ;;  %187 = vmatprep.subr.bf16.mxu1 %v326_v11  ;;  %v122_v28 = vshrl.u32 %v121_v27, 7  ;;  %v119_v30 = vld [vmem:[%s448_s4] sm:$0xf] }
   0x7   :  { %308 = vmatprep.subr.bf16.mxu0 %v339_v0 }
   0x8   :  { %v123_v29 = vsub.s32 0, %v122_v28  ;;  %v127_v31 = vsub.s32 1, %v122_v28  ;;  %v131_v37 = vsub.s32 2, %v122_v28  ;;  %v135_v40 = vsub.s32 3, %v122_v28 }
   0x9   :  { %188 = vmatpush1.bf16.msra.mxu1 %v328_v12 }
   0xa   :  { %309 = vmatpush3.bf16.msra.mxu0 %v321_v3  ;;  %228 = vmatprep.subr.bf16.mxu1 %v331_v13  ;;  %v124_v32 = vrot.slane %v119_v30, %v123_v29  ;;  %v128_v33 = vrot.slane %v119_v30, %v127_v31  ;;  %v132_v44 = vrot.slane %v119_v30, %v131_v37 }
   0xb   :  { %310 = vmatprep.subr.bf16.mxu0 %v339_v0  ;;  %v136_v45 = vrot.slane %v119_v30, %v135_v40 }
   0xe   :  { %311 = vmatpush3.bf16.msra.mxu0 %v322_v4 }
  0x11   :  { %313 = vmatmul.mubr.msk.bf16.vlgmr.msra.gmra.mrb[0].mxu0 %vm63_vm1, %v23_v7 }
  0xe4   :  { %v101_v15 = vpop.f32.mrb[0].mxu0 }
  0xe5   :  { %v102_v16 = vadd.f32 %v283_v14, %v101_v15  ;;  %v314_v17 = vpop.f32.mrb[1].mxu0 }
  0xe6   :  { %v104_v18 = vpop.f32.mrb[2].mxu0 }
  0xe7   :  { %v105_v19 = vadd.f32 %v283_v14, %v104_v18  ;;  %v315_v20 = vpop.f32.mrb[3].mxu0  ;;  %335 = vtanh.f32 %v102_v16 }
  0xe9   :  { %337 = vtanh.f32 %v105_v19 }
  0xf1   :  { %v336_v21 = vpop.eup %335 }
  0xf3   :  { %v338_v22 = vpop.eup %337 }
  0xf4   :  { %v110_v24 = vpack.c.bf16 %v338_v22, %v336_v21 }
  0xf6   :  { %297 = vmatmul.mubr.msk.bf16.vlgmr.msra.gmra.mrb[0].mxu1 %vm181_vm2, %v110_v24 }
  0xf7   :  { %229 = vmatpush1.bf16.msra.mxu1 %v329_v23  ;;  %260 = vmatprep.mubr.bf16.mxu1 %v341_v9 }
  0xf8   :  { %230 = vmatprep.subr.bf16.mxu1 %v334_v25 }
  0xfb   :  { %231 = vmatpush1.bf16.msra.mxu1 %v332_v26 }
  0xfe   :  { %298 = vmatmul.mubr.msk.bf16.vlgmr.msra.gmra.mrb[4].mxu1 %vm181_vm2, %v110_v24 }
 0x1c9   :  { %v219_v34 = vpop.f32.mrb[0].mxu1 }
 0x1ca   :  { %v220_v35 = vadd.f32 %v219_v34, %v124_v32  ;;  %v221_v36 = vpop.f32.mrb[1].mxu1 }
 0x1cb   :  { %v222_v38 = vadd.f32 %v221_v36, %v128_v33  ;;  %v223_v39 = vpop.f32.mrb[2].mxu1 }
 0x1cc   :  { %271 = vst [vmem:[%s449_s5] sm:$0xff] %v220_v35  ;;  %v224_v41 = vadd.f32 %v223_v39, %v124_v32  ;;  %v225_v42 = vpop.f32.mrb[3].mxu1 }
 0x1cd   :  { %272 = vst [vmem:[%s449_s5 + $0x8] sm:$0xff] %v222_v38  ;;  %v226_v43 = vadd.f32 %v225_v42, %v128_v33 }
 0x1ce   :  { %275 = vst [vmem:[%s449_s5 + $0x20] sm:$0xff] %v224_v41 }
 0x1cf   :  { %276 = vst [vmem:[%s449_s5 + $0x28] sm:$0xff] %v226_v43 }
 0x1d1   :  { %v262_v46 = vpop.f32.mrb[4].mxu1 }
 0x1d2   :  { %v263_v47 = vadd.f32 %v262_v46, %v132_v44  ;;  %v264_v48 = vpop.f32.mrb[5].mxu1 }
 0x1d3   :  { %v265_v49 = vadd.f32 %v264_v48, %v136_v45  ;;  %v266_v50 = vpop.f32.mrb[6].mxu1 }
 0x1d4   :  { %273 = vst [vmem:[%s449_s5 + $0x10] sm:$0xff] %v263_v47  ;;  %v267_v51 = vadd.f32 %v266_v50, %v132_v44  ;;  %v268_v52 = vpop.f32.mrb[7].mxu1 }
 0x1d5   :  { %274 = vst [vmem:[%s449_s5 + $0x18] sm:$0xff] %v265_v49  ;;  %v269_v53 = vadd.f32 %v268_v52, %v136_v45 }
 0x1d6   :  { %277 = vst [vmem:[%s449_s5 + $0x30] sm:$0xff] %v267_v51 }
 0x1d7   :  { %278 = vst [vmem:[%s449_s5 + $0x38] sm:$0xff] %v269_v53 }

// kernel: word_decoder_forward.5
= control target key start
LH: loop header
LB: loop body
LE: loop exit
PB: predicated region body
PF: predicated region fallthrough
CT: control target
= control target key end

     0   :  { %s1945_s0 = inlined_call_operand.vmem [shape: s32[2], index: 0, kind: input, shape index: {}]   ;;  %s1946_s1 = inlined_call_operand.vmem [shape: f32[2,8,128], index: 1, kind: input, shape index: {}]   ;;  %s1947_s2 = inlined_call_operand.vmem [shape: f32[2,8,32], index: 2, kind: input, shape index: {}]   ;;  %s1948_s3 = inlined_call_operand.vmem [shape: bf16[128,32], index: 3, kind: input, shape index: {}]   ;;  %s1949_s4 = inlined_call_operand.vmem [shape: bf16[32,32], index: 4, kind: input, shape index: {}]   ;;  %s1950_s5 = inlined_call_operand.vmem [shape: bf16[128,32], index: 5, kind: input, shape index: {}]   ;;  %s1951_s6 = inlined_call_operand.vmem [shape: bf16[32,64], index: 6, kind: input, shape index: {}]   ;;  %s1952_s7 = inlined_call_operand.vmem [shape: f32[1,64], index: 7, kind: input, shape index: {}]   ;;  %s1953_s8 = inlined_call_operand.hbm [shape: f32[2,8,32], index: 8, kind: output, shape index: {0}]   ;;  %s1954_s9 = inlined_call_operand.hbm [shape: f32[2,8,8], index: 9, kind: output, shape index: {1}]   ;;  %s1955_s10 = inlined_call_operand.hbm [shape: f32[2,8,64], index: 10, kind: output, shape index: {2}]  }
   0x1   :  { %1960 = sst [smem:[#allocation14_spill]] %s1945_s0 }
   0x2   :  { %1961 = sst [smem:[#allocation15_spill]] %s1946_s1 }
   0x3   :  { %16 = vsyncpa [#allocation5], 0 }
   0x4   :  { %17 = vsyncpa [#allocation4], 0 }
   0x5   :  { %19 = vsyncpa [#allocation4 + $0x1], 0 }
   0x6   :  { %20 = vsyncpa [#allocation8], 0 }
   0x7   :  { %22 = vsyncpa [#allocation8 + $0x1], 0  ;;  %s1616_s13 = smov 0   ;;  %s1618_s14 = smov 0  }
   0x8   :  { %s1620_s15 = smov 0   ;;  %s1622_s16 = smov 0  }
   0x9   :  { %s1624_s17 = smov 0   ;;  %s1626_s18 = smov 0  }
   0xa LB: > { %s1647_s19 = sadd.s32 4294967295, %s1553_s18   ;;  %s1956_s20 = sadd.s32 4294967294, %s1553_s18   ;;  %s1553_s18 = sphi %s1626_s18, %s28_s18   ;;  %s1549_s17 = sphi %s1624_s17, %s1976_s17   ;;  %s1545_s16 = sphi %s1622_s16, %s1975_s16   ;;  %s1541_s15 = sphi %s1620_s15, %s1974_s15   ;;  %s1537_s14 = sphi %s1618_s14, %s1973_s14   ;;  %s1533_s13 = sphi %s1616_s13, %s1972_s13  }
   0xb   : > { %s40_s21 = sadd.s32 1, %s1549_s17  ;;  %s235_s22 = sadd.s32 1, %s1541_s15 }
   0xc   : > { %p42_p0 = scmp.ge.s32.totalorder %s40_s21, 2  ;;  %p245_p1 = scmp.ne.s32.totalorder %s1541_s15, %s1537_s14 }
   0xd   : > { %p246_p2 = scmp.eq.s32.totalorder %s1647_s19, 1  ;;  %p251_p3 = scmp.ne.s32.totalorder %s1537_s14, %s1533_s13 }
   0xe   : > { %s1978_s21 = smov (%p42_p0, %s40_s21), 0  ;;  %p252_p5 = scmp.eq.s32.totalorder %s1956_s20, 1 }
   0xf   : > { %1962 = sst [smem:[#allocation13_spill]] %s1978_s21  ;;  %p1659_p4 = por %p246_p2, %p245_p1 }
  0x10   : > { %s232_s24 = ssub.s32 %s1549_s17, %s1978_s21  ;;  %p1147_p6 = scmp.ge.s32.totalorder %s1553_s18, 1 }
  0x11   : > { %p233_p7 = scmp.eq.s32.totalorder %s232_s24, 0  ;;  %p1668_p8 = por %p252_p5, %p251_p3 }
  0x12   : > { %p313_p9 = scmp.lt.s32.totalorder %s1553_s18, 3  ;;  %p1316_p11 = scmp.eq.s32.totalorder %s1647_s19, 0 }
  0x13   : > { %s1674_s26 = scalar_select %p233_p7, %s1541_s15, %s235_s22  }
  0x14   : > { %p1676_p10 = pnand %p1147_p6, %p313_p9  ;;  %s1966_s0 = sld [smem:[#allocation14_spill]] }
  0x16   : > { %p1302_p12 = pneg %p1676_p10 }
  0x18   : > { %p1303_p13 = pnand %p1316_p11, %p1302_p12 }
  0x1a   : > { %s326_s30 = sshll.u32 %s1966_s0, 4  ;;  %p1398_p1 = pneg %p1303_p13  ;;  %s327_s30 = int_to_ptr.vmem [resolvable:$true] %s326_s30 }
  0x1b   : > { %s1396_s11 = scalar_lea.vmem %s327_s30, 16  ;;  %p1404_p5 = scmp.lt.s32.totalorder %s327_s30, %s327_s30 }
  0x1c   : > { %p1397_p0 = scmp.ne.s32.totalorder %s327_s30, %s1396_s11  ;;  %p1405_p6 = scmp.lt.s32.totalorder %s1396_s11, %s1396_s11 }
  0x1e   : > { %p1399_p2 = pnand %p1398_p1, %p1397_p0  ;;  %p1406_p7 = por %p1405_p6, %p1404_p5 }
  0x20   : > { %p1400_p3 = pneg %p1399_p2 }
  0x22   : > { %p1407_p9 = pnand %p1406_p7, %p1400_p3 }
  0x24   : > { %1410 = shalt.err (!%p1407_p9)
}
  0x25   : > { %s1555_s12 = smov [#allocation3]   ;;  %375 = sbr.rel (%p1676_p10) target bundleno = 1498 (0x5da), region = 52 }
  0x26   : > { %1305 = dma.vmem_to_smem (!%p1303_p13), %s327_s30, 16, %s1555_s12, [#allocation5]  }
  0x2c   : > { %1520 = dma.done.wait (%p1316_p11), [#allocation5], 16  }
  0x2d   : > { %1522 = vsyncadd (%p1316_p11), [#allocation5], 4294967280 }
  0x2e   : > { %381 = sfence }
  0x2f   : > { %v1370_v0 = vld [vmem:[%s1948_s3] sm:$0xff]   ;;  %v1556_v1 = vmov 0.0   ;;  %v1371_v2 = vld [vmem:[%s1948_s3 + $0x8] sm:$0xff]   ;;  %vm1557_vm0 = vmmov 0   ;;  %v1372_v3 = vld [vmem:[%s1948_s3 + $0x10] sm:$0xff]   ;;  %p434_p10 = scmp.lt.s32.totalorder %s1545_s16, 1  ;;  %v610_v19 = vlaneseq }
  0x30   : > { %1220 = vmatprep.subr.bf16.mxu0 %v1556_v1  ;;  %1246 = vmatprep.subr.bf16.mxu1 %v1556_v1  ;;  %v1373_v4 = vld [vmem:[%s1948_s3 + $0x18] sm:$0xff]   ;;  %v1374_v5 = vld [vmem:[%s1948_s3 + $0x20] sm:$0xff]   ;;  %v1375_v6 = vld [vmem:[%s1948_s3 + $0x28] sm:$0xff]   ;;  %s1967_s1 = sld [smem:[#allocation15_spill]]  ;;  %vm563_vm1 = vcmask 261120   ;;  %vm616_vm3 = vcmask 64512  }
  0x31   : > { %1221 = vmatpush3.bf16.msra.mxu0 %v1370_v0  ;;  %1236 = vmatprep.mubr.msk.bf16.mxu0 %vm1557_vm0, %v1556_v1  ;;  %s435_s22 = scalar_select %p434_p10, %s1545_s16, 1  ;;  %v1376_v7 = vld [vmem:[%s1948_s3 + $0x30] sm:$0xff]   ;;  %v1377_v8 = vld [vmem:[%s1948_s3 + $0x38] sm:$0xff]   ;;  %v611_v20 = vand.u32 127, %v610_v19  ;;  %vm632_vm4 = vcmask 1043456   ;;  %v1378_v37 = vld [vmem:[%s1950_s5] sm:$0xff]  }
  0x32   : > { %1222 = vmatprep.subr.bf16.mxu0 %v1556_v1  ;;  %1248 = vmatprep.mubr.msk.bf16.mxu1 %vm1557_vm0, %v1556_v1  ;;  %s612_s0 = sld [smem:[#allocation3 + %s1545_s16]]  ;;  %v1379_v39 = vld [vmem:[%s1950_s5 + $0x8] sm:$0xff]   ;;  %v1380_v40 = vld [vmem:[%s1950_s5 + $0x10] sm:$0xff]   ;;  %v1381_v41 = vld [vmem:[%s1950_s5 + $0x18] sm:$0xff]   ;;  %s919_s11 = sand.u32 1, %s1647_s19  }
  0x33   : > { %s1157_s30 = sshll.u32 %s435_s22, 3  ;;  %v1382_v42 = vld [vmem:[%s1950_s5 + $0x20] sm:$0xff]   ;;  %v1383_v43 = vld [vmem:[%s1950_s5 + $0x28] sm:$0xff]   ;;  %v1384_v44 = vld [vmem:[%s1950_s5 + $0x30] sm:$0xff]   ;;  %s1824_s24 = sshll.u32 %s1545_s16, 7 }
  0x34   : > { %s441_s22 = scalar_lea.vmem %s1947_s2, %s1157_s30  ;;  %v1385_v45 = vld [vmem:[%s1950_s5 + $0x38] sm:$0xff]   ;;  %v1386_v46 = vld [vmem:[%s1949_s4] sm:$0xff]   ;;  %v1387_v47 = vld [vmem:[%s1949_s4 + $0x8] sm:$0xff]   ;;  %s1830_s29 = scalar_lea.hbm %s1954_s9, %s1824_s24 }
  0x35   : > { %1223 = vmatpush3.bf16.msra.mxu0 %v1371_v2  ;;  %v456_v11 = vld [vmem:[%s441_s22] sm:$0xff]  ;;  %v1389_v54 = vld [vmem:[%s1951_s6 + $0x8] sm:$0xff]   ;;  %s1840_s19 = scalar_lea.hbm %s1953_s8, %s1824_s24  ;;  %s1842_s16 = scalar_lea.sflag [#allocation8], %s919_s11 }
  0x36   : > { %1224 = vmatprep.subr.bf16.mxu0 %v1556_v1  ;;  %s437_s20 = scalar_lea.vmem %s1967_s1, %s1157_s30  ;;  %v457_v12 = vpack.c.bf16 %v456_v11, %v456_v11  ;;  %v1388_v53 = vld [vmem:[%s1951_s6] sm:$0xff]   ;;  %s1558_s27 = smov [#allocation7]  }
  0x37   : > { %v454_v9 = vld [vmem:[%s437_s20] sm:$0xff]  ;;  %s1958_s20 = sand.u32 1, %s1537_s14   ;;  %s1415_s28 = sshll.u32 %s1558_s27, 4  ;;  %s1416_s28 = int_to_ptr.vmem [resolvable:$false] %s1415_s28 }
  0x38   : > { %v1739_v10 = vpack.c.bf16 %v454_v9, %v454_v9  ;;  %v568_v13 = vsel %vm563_vm1, %v457_v12, 0  ;;  %v613_v21 = vstv %s612_s0  ;;  %v633_v33 = vsel %vm632_vm4, %v457_v12, 0  ;;  %s1757_s21 = sshll.u32 %s1958_s20, 3 }
  0x39   : > { %1225 = vmatpush3.bf16.msra.mxu0 %v1372_v3  ;;  %vm614_vm2 = vcmp.lt.s32.totalorder %v611_v20, %v613_v21  ;;  %1247 = vmatpush3.bf16.msra.mxu1 %v633_v33  ;;  %s426_s12 = scalar_lea.vmem [#allocation7], %s1757_s21  ;;  %s1959_s30 = scalar_lea.vmem [#allocation6], %s1757_s21 }
  0x3a   : > { %1226 = vmatprep.subr.bf16.mxu0 %v1556_v1  ;;  %1252 = vmatprep.subr.bf16.mxu1 %v1556_v1  ;;  %s951_s22 = sshll.u32 %s426_s12, 4  ;;  %s1834_s22 = int_to_ptr.vmem [resolvable:$true] %s951_s22 }
  0x3b   : > { %p1418_p0 = scmp.lt.s32.totalorder %s1834_s22, %s1416_s28 }
  0x3d   : > { %1227 = vmatpush3.bf16.msra.mxu0 %v1373_v4 }
  0x3e   : > { %1228 = vmatprep.subr.bf16.mxu0 %v1556_v1 }
  0x41   : > { %1229 = vmatpush3.bf16.msra.mxu0 %v1374_v5 }
  0x42   : > { %1230 = vmatprep.subr.bf16.mxu0 %v1556_v1 }
  0x45   : > { %1231 = vmatpush3.bf16.msra.mxu0 %v1375_v6 }
  0x46   : > { %1232 = vmatprep.subr.bf16.mxu0 %v1556_v1 }
  0x49   : > { %1233 = vmatpush3.bf16.msra.mxu0 %v1376_v7 }
  0x4a   : > { %1234 = vmatprep.subr.bf16.mxu0 %v1556_v1 }
  0x4d   : > { %1235 = vmatpush3.bf16.msra.mxu0 %v1377_v8 }
  0x4e   : > { %1240 = vmatprep.subr.bf16.mxu0 %v1556_v1 }
  0x50   : > { %1237 = vmatmul.mubr.bf16.vlgmr.msra.gmra.mrb[0].mxu0 %v1739_v10 }
  0x51   : > { %1242 = vmatprep.mubr.msk.bf16.mxu0 %vm1557_vm0, %v1556_v1 }
  0x56   : > { %1241 = vmatpush3.bf16.xpose.msra.mxu0 %v568_v13 }
  0x57   : > { %1280 = vmatprep.subr.bf16.mxu0 %v1556_v1 }
 0x123   : > { %v556_v14 = vpop.f32.mrb[0].mxu0 }
 0x124   : > { %v562_v15 = vpack.c.bf16 %v556_v14, %v556_v14  ;;  %v1238_v16 = vpop.f32.mrb[1].mxu0 }
 0x125   : > { %v559_v17 = vpop.f32.mrb[2].mxu0 }
 0x126   : > { %v1239_v18 = vpop.f32.mrb[3].mxu0  ;;  %1243 = vmatmul.mubr.msk.bf16.vlgmr.msra.gmra.mrb[4].mxu0 %vm563_vm1, %v562_v15 }
 0x127   : > { %1284 = vmatprep.mubr.msk.bf16.mxu0 %vm1557_vm0, %v1556_v1  ;;  %1281 = vmatpush3.bf16.msra.mxu0 %v1388_v53 }
 0x128   : > { %1282 = vmatprep.subr.bf16.mxu0 %v1556_v1 }
 0x12b   : > { %1283 = vmatpush3.bf16.msra.mxu0 %v1389_v54 }
 0x1f9   : > { %v604_v22 = vpop.f32.mrb[4].mxu0 }
 0x1fa   : > { %v615_v23 = vsel %vm614_vm2, %v604_v22, -1e+09  ;;  %v1244_v24 = vpop.f32.mrb[5].mxu0 }
 0x1fb   : > { %v607_v25 = vpop.f32.mrb[6].mxu0  ;;  %v617_v26 = vsel %vm616_vm3, %v615_v23, -inf }
 0x1fc   : > { %618 = vmax.xlane.f32.xlu0 %v617_v26  ;;  %v1245_v27 = vpop.f32.mrb[7].mxu0 }
 0x289   : > { %v619_v28 = vpop.xlane.xlu0 %618 }
 0x28a   : > { %v620_v29 = vsub.f32 %v615_v23, %v619_v28 }
 0x28c   : > { %v621_v30 = vmul.f32 1.442695, %v620_v29 }
 0x28e   : > { %1390 = vpow2.f32 %v621_v30 }
 0x298   : > { %v1391_v31 = vpop.eup %1390 }
 0x299   : > { %v623_v32 = vsel %vm616_vm3, %v1391_v31, 0.0 }
 0x29a   : > { %624 = vadd.xlane.f32.xlu0 %v623_v32 }
 0x327   : > { %v625_v34 = vpop.xlane.xlu0 %624 }
 0x328   : > { %1392 = vrcp.f32 %v625_v34 }
 0x332   : > { %v1393_v35 = vpop.eup %1392 }
 0x333   : > { %v627_v36 = vmul.f32 %v1393_v35, %v1391_v31 }
 0x335   : > { %v628_v38 = vpack.c.bf16 %v627_v36, %v627_v36  ;;  %842 = vst.msk [vmem:[%s426_s12] sm:$0xff] %vm616_vm3, %v627_v36  ;;  %s1417_s12 = scalar_lea.vmem %s1416_s28, 256 }
 0x337   : > { %1249 = vmatmul.mubr.msk.bf16.vlgmr.msra.gmra.mrb[0].mxu1 %vm616_vm3, %v628_v38 }
 0x338   : > { %1253 = vmatpush3.bf16.msra.mxu1 %v1378_v37  ;;  %1268 = vmatprep.mubr.msk.bf16.mxu1 %vm1557_vm0, %v1556_v1 }
 0x339   : > { %1254 = vmatprep.subr.bf16.mxu1 %v1556_v1 }
 0x33c   : > { %1255 = vmatpush3.bf16.msra.mxu1 %v1379_v39 }
 0x33d   : > { %1256 = vmatprep.subr.bf16.mxu1 %v1556_v1 }
 0x340   : > { %1257 = vmatpush3.bf16.msra.mxu1 %v1380_v40 }
 0x341   : > { %1258 = vmatprep.subr.bf16.mxu1 %v1556_v1 }
 0x344   : > { %1259 = vmatpush3.bf16.msra.mxu1 %v1381_v41 }
 0x345   : > { %1260 = vmatprep.subr.bf16.mxu1 %v1556_v1 }
 0x348   : > { %1261 = vmatpush3.bf16.msra.mxu1 %v1382_v42 }
 0x349   : > { %1262 = vmatprep.subr.bf16.mxu1 %v1556_v1 }
 0x34c   : > { %1263 = vmatpush3.bf16.msra.mxu1 %v1383_v43 }
 0x34d   : > { %1264 = vmatprep.subr.bf16.mxu1 %v1556_v1 }
 0x350   : > { %1265 = vmatpush3.bf16.msra.mxu1 %v1384_v44 }
 0x351   : > { %1266 = vmatprep.subr.bf16.mxu1 %v1556_v1 }
 0x354   : > { %1267 = vmatpush3.bf16.msra.mxu1 %v1385_v45 }
 0x355   : > { %1272 = vmatprep.subr.bf16.mxu1 %v1556_v1 }
 0x357   : > { %1269 = vmatmul.mubr.bf16.vlgmr.msra.gmra.mrb[4].mxu1 %v1739_v10 }
 0x358   : > { %1273 = vmatpush3.bf16.msra.mxu1 %v1386_v46  ;;  %1276 = vmatprep.mubr.msk.bf16.mxu1 %vm1557_vm0, %v1556_v1 }
 0x359   : > { %1274 = vmatprep.subr.bf16.mxu1 %v1556_v1 }
 0x35c   : > { %1275 = vmatpush3.bf16.msra.mxu1 %v1387_v47 }
 0x40a   : > { %v669_v48 = vpop.f32.mrb[0].mxu1 }
 0x40b   : > { %v675_v49 = vpack.c.bf16 %v669_v48, %v669_v48  ;;  %v1250_v50 = vpop.f32.mrb[1].mxu1 }
 0x40c   : > { %v672_v51 = vpop.f32.mrb[2].mxu1 }
 0x40d   : > { %v1251_v52 = vpop.f32.mrb[3].mxu1  ;;  %1277 = vmatmul.mubr.msk.bf16.vlgmr.msra.gmra.mrb[4].mxu1 %vm563_vm1, %v675_v49 }
 0x4e0   : > { %v833_v55 = vpop.f32.mrb[4].mxu1 }
 0x4e1   : > { %1394 = vtanh.f32 %v833_v55  ;;  %v1278_v56 = vpop.f32.mrb[5].mxu1 }
 0x4e2   : > { %v836_v57 = vpop.f32.mrb[6].mxu1 }
 0x4e3   : > { %v1279_v58 = vpop.f32.mrb[7].mxu1 }
 0x4eb   : > { %v1395_v59 = vpop.eup %1394 }
 0x4ec   : > { %840 = vst.msk [vmem:[#allocation2] sm:$0xff] %vm563_vm1, %v1395_v59  ;;  %841 = vst.msk [vmem:[%s1959_s30] sm:$0xff] %vm563_vm1, %v1395_v59  ;;  %s1411_s30 = scalar_lea.vmem %s1834_s22, 128 }
 0x4ed   : > { %p1412_p11 = scmp.ne.s32.totalorder %s1834_s22, %s1411_s30  ;;  %p1419_p1 = scmp.lt.s32.totalorder %s1417_s12, %s1411_s30 }
 0x4ef   : > { %p1413_p12 = pnand %p1412_p11, %p1659_p4  ;;  %p1420_p2 = por %p1419_p1, %p1418_p0 }
 0x4f1   : > { %p1414_p13 = pneg %p1413_p12 }
 0x4f3   : > { %v843_v60 = vld [vmem:[#allocation2] sm:$0xff]  ;;  %p1421_p3 = pnand %p1420_p2, %p1414_p13 }
 0x4f4   : > { %v844_v61 = vpack.c.bf16 %v843_v60, %v843_v60 }
 0x4f6   : > { %1285 = vmatmul.mubr.msk.bf16.vlgmr.msra.gmra.mrb[8].mxu0 %vm563_vm1, %v844_v61 }
 0x4f7   : > { %1424 = shalt.err (!%p1421_p3)
}
 0x4f8   : > { %s1425_s20 = scalar_lea.hbm %s1830_s29, 128  ;;  %s1429_s27 = scalar_lea.hbm %s1954_s9, 256 }
 0x4f9   : > { %p1426_p5 = scmp.ne.s32.totalorder %s1830_s29, %s1425_s20  ;;  %p1430_p9 = scmp.lt.u32.totalorder %s1830_s29, %s1954_s9 }
 0x4fa   : > { %p1431_p10 = scmp.lt.u32.totalorder %s1429_s27, %s1425_s20  ;;  %p1433_p12 = scmp.lt.u32.totalorder %s1425_s20, %s1830_s29 }
 0x4fb   : > { %p1427_p6 = pnand %p1426_p5, %p1659_p4 }
 0x4fc   : > { %p1432_p11 = por %p1431_p10, %p1430_p9 }
 0x4fd   : > { %p1428_p7 = pneg %p1427_p6 }
 0x4fe   : > { %p1434_p13 = por %p1433_p12, %p1432_p11 }
 0x500   : > { %p1435_p0 = pnand %p1434_p13, %p1428_p7 }
 0x502   : > { %1438 = shalt.err (!%p1435_p0)
}
 0x503   : > { %1297 = dma.vmem_to_hbm [thread:$0]  (%p1659_p4), %s1834_s22, 128, %s1830_s29, %s1842_s16  }
 0x504   : > { %s1968_s30 = scalar_lea.vmem [#allocation6], %s1757_s21  ;;  %s1969_s1 = sand.u32 1, %s1537_s14  }
 0x505   : > { %s938_s12 = sshll.u32 %s1968_s30, 4  ;;  %s915_s11 = scalar_lea.sflag [#allocation4], %s1969_s1  ;;  %s939_s12 = int_to_ptr.vmem [resolvable:$true] %s938_s12 }
 0x506   : > { %s1439_s0 = scalar_lea.vmem %s939_s12, 128  ;;  %s1559_s20 = smov [#allocation6]  }
 0x507   : > { %p1440_p1 = scmp.ne.s32.totalorder %s939_s12, %s1439_s0  ;;  %s1443_s27 = sshll.u32 %s1559_s20, 4  ;;  %s1444_s27 = int_to_ptr.vmem [resolvable:$false] %s1443_s27 }
 0x508   : > { %s1445_s28 = scalar_lea.vmem %s1444_s27, 256  ;;  %p1446_p5 = scmp.lt.s32.totalorder %s939_s12, %s1444_s27 }
 0x509   : > { %p1441_p2 = pnand %p1440_p1, %p1659_p4  ;;  %p1447_p6 = scmp.lt.s32.totalorder %s1445_s28, %s1439_s0 }
 0x50b   : > { %p1442_p3 = pneg %p1441_p2  ;;  %p1448_p7 = por %p1447_p6, %p1446_p5 }
 0x50d   : > { %p1449_p9 = pnand %p1448_p7, %p1442_p3 }
 0x50f   : > { %1452 = shalt.err (!%p1449_p9)
}
 0x510   : > { %s1453_s29 = scalar_lea.hbm %s1840_s19, 128  ;;  %s1457_s1 = scalar_lea.hbm %s1953_s8, 256 }
 0x511   : > { %p1454_p10 = scmp.ne.s32.totalorder %s1840_s19, %s1453_s29  ;;  %p1458_p13 = scmp.lt.u32.totalorder %s1840_s19, %s1953_s8 }
 0x512   : > { %p1459_p0 = scmp.lt.u32.totalorder %s1457_s1, %s1453_s29  ;;  %p1461_p2 = scmp.lt.u32.totalorder %s1453_s29, %s1840_s19 }
 0x513   : > { %p1455_p11 = pnand %p1454_p10, %p1659_p4 }
 0x514   : > { %p1460_p1 = por %p1459_p0, %p1458_p13 }
 0x515   : > { %p1456_p12 = pneg %p1455_p11 }
 0x516   : > { %p1462_p3 = por %p1461_p2, %p1460_p1 }
 0x518   : > { %p1463_p5 = pnand %p1462_p3, %p1456_p12 }
 0x51a   : > { %1466 = shalt.err (!%p1463_p5)
}
 0x51b   : > { %1296 = dma.vmem_to_hbm [thread:$0]  (%p1659_p4), %s939_s12, 128, %s1840_s19, %s915_s11   ;;  %v1180_v62 = vld [vmem:[%s1952_s7] ss:$0 sm:$0xff]  ;;  %vm912_vm5 = vcmask 523264  }
 0x51c   : > { %s433_s22 = scalar_lea.vmem [#allocation9], %s1757_s21  ;;  %s1895_s20 = scalar_lea.hbm %s1955_s10, %s1824_s24 }
 0x51d   : > { %s965_s30 = sshll.u32 %s433_s22, 4  ;;  %s1560_s21 = smov [#allocation9]   ;;  %s1897_s30 = int_to_ptr.vmem [resolvable:$true] %s965_s30 }
 0x51e   : > { %s1467_s19 = scalar_lea.vmem %s1897_s30, 128  ;;  %s1471_s12 = sshll.u32 %s1560_s21, 4  ;;  %s1472_s12 = int_to_ptr.vmem [resolvable:$false] %s1471_s12 }
 0x51f   : > { %p1468_p6 = scmp.ne.s32.totalorder %s1897_s30, %s1467_s19  ;;  %s1473_s11 = scalar_lea.vmem %s1472_s12, 256 }
 0x520   : > { %p1474_p10 = scmp.lt.s32.totalorder %s1897_s30, %s1472_s12  ;;  %p1475_p11 = scmp.lt.s32.totalorder %s1473_s11, %s1467_s19 }
 0x521   : > { %p1469_p7 = pnand %p1468_p6, %p1659_p4 }
 0x522   : > { %p1476_p12 = por %p1475_p11, %p1474_p10 }
 0x523   : > { %p1470_p9 = pneg %p1469_p7 }
 0x525   : > { %p1477_p13 = pnand %p1476_p12, %p1470_p9 }
 0x5c9   : > { %v906_v63 = vpop.f32.mrb[8].mxu0 }
 0x5ca   : > { %v907_v0 = vadd.f32 %v1180_v62, %v906_v63  ;;  %v1286_v1 = vpop.f32.mrb[9].mxu0 }
 0x5cb   : > { %v909_v2 = vpop.f32.mrb[10].mxu0 }
 0x5cc   : > { %913 = vst.msk [vmem:[%s433_s22] sm:$0xff] %vm912_vm5, %v907_v0  ;;  %v1287_v3 = vpop.f32.mrb[11].mxu0 }
 0x5cd   : > { %1480 = shalt.err (!%p1477_p13)
}
 0x5ce   : > { %s1481_s24 = scalar_lea.hbm %s1895_s20, 128  ;;  %s1485_s28 = scalar_lea.hbm %s1955_s10, 256 }
 0x5cf   : > { %p1482_p0 = scmp.ne.s32.totalorder %s1895_s20, %s1481_s24  ;;  %p1486_p3 = scmp.lt.u32.totalorder %s1895_s20, %s1955_s10 }
 0x5d0   : > { %p1487_p5 = scmp.lt.u32.totalorder %s1485_s28, %s1481_s24  ;;  %p1489_p7 = scmp.lt.u32.totalorder %s1481_s24, %s1895_s20 }
 0x5d1   : > { %p1483_p1 = pnand %p1482_p0, %p1659_p4 }
 0x5d2   : > { %p1488_p6 = por %p1487_p5, %p1486_p3 }
 0x5d3   : > { %p1484_p2 = pneg %p1483_p1 }
 0x5d4   : > { %p1490_p9 = por %p1489_p7, %p1488_p6 }
 0x5d6   : > { %p1491_p10 = pnand %p1490_p9, %p1484_p2 }
 0x5d8   : > { %1494 = shalt.err (!%p1491_p10)
}
 0x5d9   : > { %1298 = dma.vmem_to_hbm [thread:$0]  (%p1659_p4), %s1897_s30, 128, %s1895_s20, %s1842_s16  }
 0x5da PF: > { %p1318_p11 = scmp.ge.s32.totalorder %s1553_s18, 2  ;;  %s977_s1 = sand.u32 1, %s1533_s13  }
 0x5db   : > { %s978_s19 = scalar_lea.sflag [#allocation4], %s977_s1 }
 0x5dc   : > { %p1307_p12 = pnand %p1318_p11, %p1668_p8 }
 0x5de   : > { %1524 = dma.done.wait (!%p1307_p12), %s978_s19, 128  }
 0x5df   : > { %1526 = vsyncadd (!%p1307_p12), %s978_s19, 4294967168  ;;  %s1970_s21 = sadd.s32 4294967294, %s1553_s18  }
 0x5e0   : > { %s986_s12 = sand.u32 1, %s1970_s21  }
 0x5e1   : > { %s987_s11 = scalar_lea.sflag [#allocation8], %s986_s12 }
 0x5e2   : > { %1528 = dma.done.wait (!%p1307_p12), %s987_s11, 256  }
 0x5e3   : > { %1530 = vsyncadd (!%p1307_p12), %s987_s11, 4294967040  ;;  %s28_s18 = sadd.s32 1, %s1553_s18   ;;  %s1971_s23 = sld [smem:[#allocation13_spill]] }
 0x5e4   : > { %p25_p4 = scmp.ge.s32.totalorder %s28_s18, 4   ;;  %s1972_s13 = smov %s1537_s14 }
 0x5e5   : > { %s1973_s14 = smov %s1541_s15  ;;  %s1974_s15 = smov %s1674_s26 }
 0x5e6   : > { %s1975_s16 = smov %s1549_s17  ;;  %27 = sbr.rel (!%p25_p4) target bundleno = 10 (0xa), region = 137 }
 0x5e9   : > { %s1976_s17 = smov %s1971_s23 }
 0x5ed   :  { %1001 = vsyncpa [#allocation4], 1 }
 0x5ee   :  { %1003 = vsyncpa [#allocation4 + $0x1], 1 }
 0x5ef   :  { %1004 = vsyncpa [#allocation8], 1 }
 0x5f0   :  { %1006 = vsyncpa [#allocation8 + $0x1], 1 }
 0x5f1   :  { %1007 = vsyncpa [#allocation5], 1 }
 0x5f2   :  { %1009 = vsyncpa [#allocation5 + $0x1], 1 }

// kernel: word_decoder_forward.4
= control target key start
LH: loop header
LB: loop body
LE: loop exit
PB: predicated region body
PF: predicated region fallthrough
CT: control target
= control target key end

     0   :  { %14 = vsyncpa [#allocation6], 0  ;;  %v12999_v2 = vmov 0   ;;  %s12990_s0 = inlined_call_operand.vmem [shape: f32[2,8,512], index: 0, kind: input, shape index: {}]   ;;  %s12991_s1 = inlined_call_operand.vmem [shape: bf16[128,512], index: 1, kind: input, shape index: {}]   ;;  %s12992_s2 = inlined_call_operand.vmem [shape: bf16[256,512], index: 2, kind: input, shape index: {}]   ;;  %s12993_s3 = inlined_call_operand.vmem [shape: f32[1,512], index: 3, kind: input, shape index: {}]   ;;  %s12994_s4 = inlined_call_operand.vmem [shape: f32[2,2,128], index: 4, kind: input, shape index: {}]   ;;  %s12995_s5 = inlined_call_operand.vmem [shape: f32[2,2,128], index: 5, kind: input, shape index: {}]   ;;  %s12996_s6 = inlined_call_operand.vmem [shape: f32[2,8,128], index: 6, kind: output, shape index: {0}]   ;;  %s12997_s7 = inlined_call_operand.hbm [shape: f32[2,2,128], index: 7, kind: output, shape index: {1}]   ;;  %s12998_s8 = inlined_call_operand.hbm [shape: f32[2,2,128], index: 8, kind: output, shape index: {2}]  }
   0x1   :  { %v8955_v0 = vld [vmem:[%s12991_s1 + $0x4] ss:$16 sps:$4 sm:$0xff]   ;;  %v8957_v1 = vld [vmem:[%s12991_s1 + $0xc] ss:$16 sps:$4 sm:$0xff]   ;;  %268 = vmatprep.mubr.bf16.mxu0 %v12999_v2  ;;  %309 = vmatprep.mubr.bf16.mxu1 %v12999_v2  ;;  %v8959_v3 = vld [vmem:[%s12991_s1] ss:$16 sps:$4 sm:$0xff]  }
   0x2   :  { %236 = vmatprep.subr.bf16.mxu0 %v8955_v0  ;;  %v8960_v4 = vld [vmem:[%s12991_s1 + $0x8] ss:$16 sps:$4 sm:$0xff]   ;;  %277 = vmatprep.subr.bf16.mxu1 %v8957_v1  ;;  %v8961_v5 = vld [vmem:[%s12991_s1 + $0x24] ss:$16 sps:$4 sm:$0xff]   ;;  %v8963_v6 = vld [vmem:[%s12991_s1 + $0x2c] ss:$16 sps:$4 sm:$0xff]  }
   0x3   :  { %237 = vmatpush1.bf16.msra.mxu0 %v8959_v3  ;;  %278 = vmatpush1.bf16.msra.mxu1 %v8960_v4  ;;  %v8965_v7 = vld [vmem:[%s12991_s1 + $0x20] ss:$16 sps:$4 sm:$0xff]   ;;  %v8966_v8 = vld [vmem:[%s12991_s1 + $0x28] ss:$16 sps:$4 sm:$0xff]   ;;  %v8967_v9 = vld [vmem:[%s12991_s1 + $0x44] ss:$16 sps:$4 sm:$0xff]  }
   0x4   :  { %238 = vmatprep.subr.bf16.mxu0 %v8961_v5  ;;  %279 = vmatprep.subr.bf16.mxu1 %v8963_v6  ;;  %v8969_v10 = vld [vmem:[%s12991_s1 + $0x4c] ss:$16 sps:$4 sm:$0xff]   ;;  %v8971_v11 = vld [vmem:[%s12991_s1 + $0x40] ss:$16 sps:$4 sm:$0xff]   ;;  %v8972_v12 = vld [vmem:[%s12991_s1 + $0x48] ss:$16 sps:$4 sm:$0xff]  }
   0x5   :  { %v8973_v13 = vld [vmem:[%s12991_s1 + $0x64] ss:$16 sps:$4 sm:$0xff]   ;;  %v8975_v14 = vld [vmem:[%s12991_s1 + $0x6c] ss:$16 sps:$4 sm:$0xff]   ;;  %v8977_v15 = vld [vmem:[%s12991_s1 + $0x60] ss:$16 sps:$4 sm:$0xff]  }
   0x6   :  { %v8978_v16 = vld [vmem:[%s12991_s1 + $0x68] ss:$16 sps:$4 sm:$0xff]   ;;  %v8979_v17 = vld [vmem:[%s12991_s1 + $0x84] ss:$16 sps:$4 sm:$0xff]   ;;  %v8981_v18 = vld [vmem:[%s12991_s1 + $0x8c] ss:$16 sps:$4 sm:$0xff]  }
   0x7   :  { %239 = vmatpush1.bf16.msra.mxu0 %v8965_v7  ;;  %280 = vmatpush1.bf16.msra.mxu1 %v8966_v8  ;;  %v8983_v19 = vld [vmem:[%s12991_s1 + $0x80] ss:$16 sps:$4 sm:$0xff]   ;;  %v8984_v20 = vld [vmem:[%s12991_s1 + $0x88] ss:$16 sps:$4 sm:$0xff]   ;;  %v8985_v21 = vld [vmem:[%s12991_s1 + $0xa4] ss:$16 sps:$4 sm:$0xff]  }
   0x8   :  { %240 = vmatprep.subr.bf16.mxu0 %v8967_v9  ;;  %281 = vmatprep.subr.bf16.mxu1 %v8969_v10  ;;  %v8987_v22 = vld [vmem:[%s12991_s1 + $0xac] ss:$16 sps:$4 sm:$0xff]   ;;  %v8989_v23 = vld [vmem:[%s12991_s1 + $0xa0] ss:$16 sps:$4 sm:$0xff]   ;;  %v8990_v24 = vld [vmem:[%s12991_s1 + $0xa8] ss:$16 sps:$4 sm:$0xff]  }
   0x9   :  { %v8991_v25 = vld [vmem:[%s12991_s1 + $0xc4] ss:$16 sps:$4 sm:$0xff]   ;;  %v8993_v26 = vld [vmem:[%s12991_s1 + $0xcc] ss:$16 sps:$4 sm:$0xff]   ;;  %v29_v27 = vld [vmem:[%s12994_s4] sm:$0xf]  }
   0xa   :  { %v8995_v28 = vld [vmem:[%s12991_s1 + $0xc0] ss:$16 sps:$4 sm:$0xff]   ;;  %v8996_v29 = vld [vmem:[%s12991_s1 + $0xc8] ss:$16 sps:$4 sm:$0xff]   ;;  %30 = vst [vmem:[#allocation2] sm:$0xf] %v29_v27  }
   0xb   :  { %241 = vmatpush1.bf16.msra.mxu0 %v8971_v11  ;;  %282 = vmatpush1.bf16.msra.mxu1 %v8972_v12  ;;  %v8997_v30 = vld [vmem:[%s12991_s1 + $0xe4] ss:$16 sps:$4 sm:$0xff]   ;;  %v8999_v31 = vld [vmem:[%s12991_s1 + $0xec] ss:$16 sps:$4 sm:$0xff]   ;;  %v9001_v32 = vld [vmem:[%s12991_s1 + $0xe0] ss:$16 sps:$4 sm:$0xff]  }
   0xc   :  { %242 = vmatprep.subr.bf16.mxu0 %v8973_v13  ;;  %283 = vmatprep.subr.bf16.mxu1 %v8975_v14  ;;  %v9002_v33 = vld [vmem:[%s12991_s1 + $0xe8] ss:$16 sps:$4 sm:$0xff]   ;;  %v34_v36 = vld [vmem:[%s12995_s5] sm:$0x3]  ;;  %v10153_v37 = vld [vmem:[%s12992_s2 + $0x4] ss:$16 sps:$4 sm:$0xff]  }
   0xd   :  { %35 = vst [vmem:[#allocation3] sm:$0x3] %v34_v36  ;;  %v10158_v38 = vld [vmem:[%s12992_s2 + $0xc] ss:$16 sps:$4 sm:$0xff]   ;;  %v10163_v39 = vld [vmem:[%s12992_s2] ss:$16 sps:$4 sm:$0xff]  }
   0xe   :  { %v10168_v40 = vld [vmem:[%s12992_s2 + $0x8] ss:$16 sps:$4 sm:$0xff]   ;;  %v10177_v41 = vld [vmem:[%s12992_s2 + $0x24] ss:$16 sps:$4 sm:$0xff]   ;;  %v10182_v42 = vld [vmem:[%s12992_s2 + $0x2c] ss:$16 sps:$4 sm:$0xff]  }
   0xf   :  { %243 = vmatpush1.bf16.msra.mxu0 %v8977_v15  ;;  %284 = vmatpush1.bf16.msra.mxu1 %v8978_v16  ;;  %v10187_v43 = vld [vmem:[%s12992_s2 + $0x20] ss:$16 sps:$4 sm:$0xff]   ;;  %v10192_v44 = vld [vmem:[%s12992_s2 + $0x28] ss:$16 sps:$4 sm:$0xff]   ;;  %v10201_v45 = vld [vmem:[%s12992_s2 + $0x44] ss:$16 sps:$4 sm:$0xff]  }
  0x10   :  { %244 = vmatprep.subr.bf16.mxu0 %v8979_v17  ;;  %285 = vmatprep.subr.bf16.mxu1 %v8981_v18  ;;  %v10206_v46 = vld [vmem:[%s12992_s2 + $0x4c] ss:$16 sps:$4 sm:$0xff]   ;;  %v10211_v47 = vld [vmem:[%s12992_s2 + $0x40] ss:$16 sps:$4 sm:$0xff]   ;;  %v10216_v48 = vld [vmem:[%s12992_s2 + $0x48] ss:$16 sps:$4 sm:$0xff]  }
  0x11   :  { %v42_v34 = vld [vmem:[#allocation2] sm:$0x3]  ;;  %v10225_v49 = vld [vmem:[%s12992_s2 + $0x64] ss:$16 sps:$4 sm:$0xff]   ;;  %v10230_v50 = vld [vmem:[%s12992_s2 + $0x6c] ss:$16 sps:$4 sm:$0xff]  }
  0x12   :  { %v43_v35 = vpack.c.bf16 %v42_v34, %v42_v34  ;;  %v10235_v51 = vld [vmem:[%s12992_s2 + $0x60] ss:$16 sps:$4 sm:$0xff]   ;;  %v10240_v52 = vld [vmem:[%s12992_s2 + $0x68] ss:$16 sps:$4 sm:$0xff]   ;;  %v10249_v53 = vld [vmem:[%s12992_s2 + $0x84] ss:$16 sps:$4 sm:$0xff]  }
  0x13   :  { %245 = vmatpush1.bf16.msra.mxu0 %v8983_v19  ;;  %286 = vmatpush1.bf16.msra.mxu1 %v8984_v20  ;;  %v10254_v54 = vld [vmem:[%s12992_s2 + $0x8c] ss:$16 sps:$4 sm:$0xff]   ;;  %v10259_v55 = vld [vmem:[%s12992_s2 + $0x80] ss:$16 sps:$4 sm:$0xff]   ;;  %v10264_v56 = vld [vmem:[%s12992_s2 + $0x88] ss:$16 sps:$4 sm:$0xff]  }
  0x14   :  { %246 = vmatprep.subr.bf16.mxu0 %v8985_v21  ;;  %287 = vmatprep.subr.bf16.mxu1 %v8987_v22 }
  0x17   :  { %247 = vmatpush1.bf16.msra.mxu0 %v8989_v23  ;;  %288 = vmatpush1.bf16.msra.mxu1 %v8990_v24 }
  0x18   :  { %248 = vmatprep.subr.bf16.mxu0 %v8991_v25  ;;  %289 = vmatprep.subr.bf16.mxu1 %v8993_v26 }
  0x1b   :  { %249 = vmatpush1.bf16.msra.mxu0 %v8995_v28  ;;  %290 = vmatpush1.bf16.msra.mxu1 %v8996_v29 }
  0x1c   :  { %250 = vmatprep.subr.bf16.mxu0 %v8997_v30  ;;  %291 = vmatprep.subr.bf16.mxu1 %v8999_v31 }
  0x1f   :  { %251 = vmatpush1.bf16.msra.mxu0 %v9001_v32  ;;  %292 = vmatpush1.bf16.msra.mxu1 %v9002_v33 }
  0x20   :  { %897 = vmatprep.subr.bf16.mxu0 %v10153_v37  ;;  %938 = vmatprep.subr.bf16.mxu1 %v10158_v38 }
  0x22   :  { %269 = vmatmul.mubr.bf16.vlgmr.msra.gmra.mrb[0].mxu0 %v43_v35  ;;  %310 = vmatmul.mubr.bf16.vlgmr.msra.gmra.mrb[0].mxu1 %v43_v35 }
  0x23   :  { %898 = vmatpush1.bf16.msra.mxu0 %v10163_v39  ;;  %939 = vmatpush1.bf16.msra.mxu1 %v10168_v40 }
  0x24   :  { %899 = vmatprep.subr.bf16.mxu0 %v10177_v41  ;;  %940 = vmatprep.subr.bf16.mxu1 %v10182_v42 }
  0x27   :  { %900 = vmatpush1.bf16.msra.mxu0 %v10187_v43  ;;  %941 = vmatpush1.bf16.msra.mxu1 %v10192_v44 }
  0x28   :  { %901 = vmatprep.subr.bf16.mxu0 %v10201_v45  ;;  %942 = vmatprep.subr.bf16.mxu1 %v10206_v46 }
  0x2b   :  { %902 = vmatpush1.bf16.msra.mxu0 %v10211_v47  ;;  %943 = vmatpush1.bf16.msra.mxu1 %v10216_v48 }
  0x2c   :  { %903 = vmatprep.subr.bf16.mxu0 %v10225_v49  ;;  %944 = vmatprep.subr.bf16.mxu1 %v10230_v50 }
  0x2f   :  { %904 = vmatpush1.bf16.msra.mxu0 %v10235_v51  ;;  %945 = vmatpush1.bf16.msra.mxu1 %v10240_v52 }
  0x30   :  { %905 = vmatprep.subr.bf16.mxu0 %v10249_v53  ;;  %946 = vmatprep.subr.bf16.mxu1 %v10254_v54 }
  0x33   :  { %906 = vmatpush1.bf16.msra.mxu0 %v10259_v55  ;;  %947 = vmatpush1.bf16.msra.mxu1 %v10264_v56 }
  0x34   :  { %15 = vsyncpa [#allocation8], 0  ;;  %v10273_v57 = vld [vmem:[%s12992_s2 + $0xa4] ss:$16 sps:$4 sm:$0xff]   ;;  %v10278_v58 = vld [vmem:[%s12992_s2 + $0xac] ss:$16 sps:$4 sm:$0xff]  }
  0x35   :  { %v10283_v59 = vld [vmem:[%s12992_s2 + $0xa0] ss:$16 sps:$4 sm:$0xff]   ;;  %v10288_v60 = vld [vmem:[%s12992_s2 + $0xa8] ss:$16 sps:$4 sm:$0xff]   ;;  %907 = vmatprep.subr.bf16.mxu0 %v10273_v57  ;;  %948 = vmatprep.subr.bf16.mxu1 %v10278_v58  ;;  %v10297_v61 = vld [vmem:[%s12992_s2 + $0xc4] ss:$16 sps:$4 sm:$0xff]  }
  0x36   :  { %v10302_v62 = vld [vmem:[%s12992_s2 + $0xcc] ss:$16 sps:$4 sm:$0xff]   ;;  %v10307_v63 = vld [vmem:[%s12992_s2 + $0xc0] ss:$16 sps:$4 sm:$0xff]   ;;  %v10312_v0 = vld [vmem:[%s12992_s2 + $0xc8] ss:$16 sps:$4 sm:$0xff]  }
  0x37   :  { %908 = vmatpush1.bf16.msra.mxu0 %v10283_v59  ;;  %949 = vmatpush1.bf16.msra.mxu1 %v10288_v60  ;;  %v10321_v1 = vld [vmem:[%s12992_s2 + $0xe4] ss:$16 sps:$4 sm:$0xff]   ;;  %v10326_v3 = vld [vmem:[%s12992_s2 + $0xec] ss:$16 sps:$4 sm:$0xff]   ;;  %v10331_v4 = vld [vmem:[%s12992_s2 + $0xe0] ss:$16 sps:$4 sm:$0xff]  }
  0x38   :  { %909 = vmatprep.subr.bf16.mxu0 %v10297_v61  ;;  %950 = vmatprep.subr.bf16.mxu1 %v10302_v62  ;;  %v10336_v5 = vld [vmem:[%s12992_s2 + $0xe8] ss:$16 sps:$4 sm:$0xff]   ;;  %v10345_v6 = vld [vmem:[%s12992_s2 + $0x104] ss:$16 sps:$4 sm:$0xff]   ;;  %v10350_v7 = vld [vmem:[%s12992_s2 + $0x10c] ss:$16 sps:$4 sm:$0xff]  }
  0x39   :  { %v10355_v8 = vld [vmem:[%s12992_s2 + $0x100] ss:$16 sps:$4 sm:$0xff]   ;;  %v10360_v9 = vld [vmem:[%s12992_s2 + $0x108] ss:$16 sps:$4 sm:$0xff]   ;;  %v10369_v10 = vld [vmem:[%s12992_s2 + $0x124] ss:$16 sps:$4 sm:$0xff]  }
  0x3a   :  { %v10374_v11 = vld [vmem:[%s12992_s2 + $0x12c] ss:$16 sps:$4 sm:$0xff]   ;;  %v10379_v12 = vld [vmem:[%s12992_s2 + $0x120] ss:$16 sps:$4 sm:$0xff]   ;;  %v10384_v13 = vld [vmem:[%s12992_s2 + $0x128] ss:$16 sps:$4 sm:$0xff]  }
  0x3b   :  { %910 = vmatpush1.bf16.msra.mxu0 %v10307_v63  ;;  %951 = vmatpush1.bf16.msra.mxu1 %v10312_v0  ;;  %13212 = vst [vmem:[#allocation11_spill] sm:$0xff] %v10384_v13  ;;  %v10393_v14 = vld [vmem:[%s12992_s2 + $0x144] ss:$16 sps:$4 sm:$0xff]   ;;  %v10398_v15 = vld [vmem:[%s12992_s2 + $0x14c] ss:$16 sps:$4 sm:$0xff]  }
  0x3c   :  { %911 = vmatprep.subr.bf16.mxu0 %v10321_v1  ;;  %952 = vmatprep.subr.bf16.mxu1 %v10326_v3  ;;  %13213 = vst [vmem:[#allocation12_spill] sm:$0xff] %v10393_v14  ;;  %13214 = vst [vmem:[#allocation13_spill] sm:$0xff] %v10398_v15  ;;  %v10403_v16 = vld [vmem:[%s12992_s2 + $0x140] ss:$16 sps:$4 sm:$0xff]   ;;  %v10408_v17 = vld [vmem:[%s12992_s2 + $0x148] ss:$16 sps:$4 sm:$0xff]  }
  0x3d   :  { %13215 = vst [vmem:[#allocation14_spill] sm:$0xff] %v10403_v16  ;;  %13216 = vst [vmem:[#allocation15_spill] sm:$0xff] %v10408_v17  ;;  %v10417_v18 = vld [vmem:[%s12992_s2 + $0x164] ss:$16 sps:$4 sm:$0xff]   ;;  %v10422_v19 = vld [vmem:[%s12992_s2 + $0x16c] ss:$16 sps:$4 sm:$0xff]  }
  0x3e   :  { %13217 = vst [vmem:[#allocation16_spill] sm:$0xff] %v10417_v18  ;;  %13218 = vst [vmem:[#allocation17_spill] sm:$0xff] %v10422_v19  ;;  %v10427_v20 = vld [vmem:[%s12992_s2 + $0x160] ss:$16 sps:$4 sm:$0xff]   ;;  %v10432_v21 = vld [vmem:[%s12992_s2 + $0x168] ss:$16 sps:$4 sm:$0xff]  }
  0x3f   :  { %912 = vmatpush1.bf16.msra.mxu0 %v10331_v4  ;;  %953 = vmatpush1.bf16.msra.mxu1 %v10336_v5  ;;  %13219 = vst [vmem:[#allocation18_spill] sm:$0xff] %v10427_v20  ;;  %13220 = vst [vmem:[#allocation19_spill] sm:$0xff] %v10432_v21  ;;  %v10441_v22 = vld [vmem:[%s12992_s2 + $0x184] ss:$16 sps:$4 sm:$0xff]   ;;  %v10446_v23 = vld [vmem:[%s12992_s2 + $0x18c] ss:$16 sps:$4 sm:$0xff]  }
  0x40   :  { %913 = vmatprep.subr.bf16.mxu0 %v10345_v6  ;;  %954 = vmatprep.subr.bf16.mxu1 %v10350_v7  ;;  %13221 = vst [vmem:[#allocation20_spill] sm:$0xff] %v10441_v22  ;;  %13222 = vst [vmem:[#allocation21_spill] sm:$0xff] %v10446_v23  ;;  %v10451_v24 = vld [vmem:[%s12992_s2 + $0x180] ss:$16 sps:$4 sm:$0xff]   ;;  %v10456_v25 = vld [vmem:[%s12992_s2 + $0x188] ss:$16 sps:$4 sm:$0xff]  }
  0x41   :  { %13223 = vst [vmem:[#allocation22_spill] sm:$0xff] %v10451_v24  ;;  %13224 = vst [vmem:[#allocation23_spill] sm:$0xff] %v10456_v25  ;;  %v10465_v26 = vld [vmem:[%s12992_s2 + $0x1a4] ss:$16 sps:$4 sm:$0xff]   ;;  %v10470_v27 = vld [vmem:[%s12992_s2 + $0x1ac] ss:$16 sps:$4 sm:$0xff]  }
  0x42   :  { %13225 = vst [vmem:[#allocation24_spill] sm:$0xff] %v10465_v26  ;;  %13226 = vst [vmem:[#allocation25_spill] sm:$0xff] %v10470_v27  ;;  %v10475_v28 = vld [vmem:[%s12992_s2 + $0x1a0] ss:$16 sps:$4 sm:$0xff]   ;;  %v10480_v29 = vld [vmem:[%s12992_s2 + $0x1a8] ss:$16 sps:$4 sm:$0xff]  }
  0x43   :  { %914 = vmatpush1.bf16.msra.mxu0 %v10355_v8  ;;  %955 = vmatpush1.bf16.msra.mxu1 %v10360_v9  ;;  %13227 = vst [vmem:[#allocation26_spill] sm:$0xff] %v10475_v28  ;;  %13228 = vst [vmem:[#allocation27_spill] sm:$0xff] %v10480_v29  ;;  %v10489_v30 = vld [vmem:[%s12992_s2 + $0x1c4] ss:$16 sps:$4 sm:$0xff]   ;;  %v10494_v31 = vld [vmem:[%s12992_s2 + $0x1cc] ss:$16 sps:$4 sm:$0xff]  }
  0x44   :  { %915 = vmatprep.subr.bf16.mxu0 %v10369_v10  ;;  %956 = vmatprep.subr.bf16.mxu1 %v10374_v11  ;;  %13229 = vst [vmem:[#allocation28_spill] sm:$0xff] %v10489_v30  ;;  %13230 = vst [vmem:[#allocation29_spill] sm:$0xff] %v10494_v31  ;;  %v10499_v32 = vld [vmem:[%s12992_s2 + $0x1c0] ss:$16 sps:$4 sm:$0xff]   ;;  %v10504_v33 = vld [vmem:[%s12992_s2 + $0x1c8] ss:$16 sps:$4 sm:$0xff]  }
  0x45   :  { %13231 = vst [vmem:[#allocation30_spill] sm:$0xff] %v10499_v32  ;;  %13232 = vst [vmem:[#allocation31_spill] sm:$0xff] %v10504_v33  ;;  %v10511_v34 = vld [vmem:[%s12992_s2 + $0x1e4] ss:$16 sps:$4 sm:$0xff]   ;;  %v10516_v35 = vld [vmem:[%s12992_s2 + $0x1ec] ss:$16 sps:$4 sm:$0xff]  }
  0x46   :  { %13233 = vst [vmem:[#allocation32_spill] sm:$0xff] %v10511_v34  ;;  %13234 = vst [vmem:[#allocation33_spill] sm:$0xff] %v10516_v35  ;;  %v10523_v36 = vld [vmem:[%s12992_s2 + $0x1e0] ss:$16 sps:$4 sm:$0xff]   ;;  %v10528_v2 = vld [vmem:[%s12992_s2 + $0x1e8] ss:$16 sps:$4 sm:$0xff]  }
  0x47   :  { %916 = vmatpush1.bf16.msra.mxu0 %v10379_v12  ;;  %957 = vmatpush1.bf16.msra.mxu1 %v10384_v13  ;;  %13235 = vst [vmem:[#allocation34_spill] sm:$0xff] %v10523_v36  ;;  %13236 = vst [vmem:[#allocation35_spill] sm:$0xff] %v10528_v2 }
  0x48   :  { %917 = vmatprep.subr.bf16.mxu0 %v10393_v14  ;;  %958 = vmatprep.subr.bf16.mxu1 %v10398_v15 }
  0x4b   :  { %918 = vmatpush1.bf16.msra.mxu0 %v10403_v16  ;;  %959 = vmatpush1.bf16.msra.mxu1 %v10408_v17 }
  0x4c   :  { %919 = vmatprep.subr.bf16.mxu0 %v10417_v18  ;;  %960 = vmatprep.subr.bf16.mxu1 %v10422_v19 }
  0x4f   :  { %920 = vmatpush1.bf16.msra.mxu0 %v10427_v20  ;;  %961 = vmatpush1.bf16.msra.mxu1 %v10432_v21  ;;  %v39_v20 = vld [vmem:[%s12990_s0] ss:$8 sm:$0xf] }
  0x50   :  { %921 = vmatprep.subr.bf16.mxu0 %v10441_v22  ;;  %962 = vmatprep.subr.bf16.mxu1 %v10446_v23 }
  0x53   :  { %922 = vmatpush1.bf16.msra.mxu0 %v10451_v24  ;;  %963 = vmatpush1.bf16.msra.mxu1 %v10456_v25 }
  0x54   :  { %923 = vmatprep.subr.bf16.mxu0 %v10465_v26  ;;  %964 = vmatprep.subr.bf16.mxu1 %v10470_v27 }
  0x57   :  { %924 = vmatpush1.bf16.msra.mxu0 %v10475_v28  ;;  %965 = vmatpush1.bf16.msra.mxu1 %v10480_v29  ;;  %v327_v29 = vlaneseq }
  0x58   :  { %925 = vmatprep.subr.bf16.mxu0 %v10489_v30  ;;  %966 = vmatprep.subr.bf16.mxu1 %v10494_v31  ;;  %v9996_v31 = vmov 1966171168  }
  0x59   :  { %v325_v30 = vunpack.c.l.s4 %v9996_v31  ;;  %v10540_v28 = vshrl.u32 %v327_v29, 7 }
  0x5b   :  { %926 = vmatpush1.bf16.msra.mxu0 %v10499_v32  ;;  %967 = vmatpush1.bf16.msra.mxu1 %v10504_v33  ;;  %v9915_v33 = vld [vmem:[%s12991_s1 + $0x4] ss:$16 sps:$4 sm:$0xff]   ;;  %v9916_v32 = vld [vmem:[%s12991_s1 + $0xc] ss:$16 sps:$4 sm:$0xff]   ;;  %13237 = vst [vmem:[#allocation36_spill] sm:$0xff] %v10540_v28 }
  0x5c   :  { %927 = vmatprep.subr.bf16.mxu0 %v10511_v34  ;;  %968 = vmatprep.subr.bf16.mxu1 %v10516_v35  ;;  %v326_v34 = vunpack.c.0.s8 %v325_v30 }
  0x5f   :  { %928 = vmatpush1.bf16.msra.mxu0 %v10523_v36  ;;  %969 = vmatpush1.bf16.msra.mxu1 %v10528_v2  ;;  %v10543_v2 = vsub.s32 %v326_v34, %v10540_v28  ;;  %v8046_v34 = vld [vmem:[%s12990_s0 + $0x20] ss:$8 sm:$0xf] }
  0x60   :  { %1231 = vmatprep.subr.bf16.mxu0 %v9915_v33  ;;  %1272 = vmatprep.subr.bf16.mxu1 %v9916_v32 }
  0xf5   :  { %v270_v35 = vpop.f32.mrb[0].mxu0  ;;  %v311_v36 = vpop.f32.mrb[0].mxu1 }
  0xf6   :  { %v272_v27 = vpop.f32.mrb[1].mxu0  ;;  %v313_v26 = vpop.f32.mrb[1].mxu1 }
  0xf7   :  { %v322_v25 = vcombine.low %v270_v35, %v272_v27  ;;  %v323_v33 = vcombine.low %v311_v36, %v313_v26  ;;  %v274_v24 = vpop.f32.mrb[2].mxu0  ;;  %v315_v23 = vpop.f32.mrb[2].mxu1 }
  0xf8   :  { %v275_v22 = vpop.f32.mrb[3].mxu0  ;;  %v316_v21 = vpop.f32.mrb[3].mxu1 }
  0xf9   :  { %v330_v32 = vrot.slane %v322_v25, %v10543_v2  ;;  %v337_v31 = vrot.slane %v323_v33, %v10543_v2 }
  0xfb   :  { %v338_v30 = vcombine.low %v330_v32, %v337_v31  ;;  %v339_v29 = vcombine.high %v330_v32, %v337_v31 }
  0xfd   :  { %v346_v26 = vrot.slane %v338_v30, %v10543_v2  ;;  %v353_v23 = vrot.slane %v339_v29, %v10543_v2 }
  0xff   :  { %v356_v22 = vadd.f32 %v346_v26, %v39_v20  ;;  %v357_v21 = vadd.f32 %v8046_v34, %v353_v23 }
 0x101   :  { %v8079_v24 = vmul.f32 -1.442695, %v356_v22  ;;  %v8080_v25 = vmul.f32 -1.442695, %v357_v21  ;;  %v373_v27 = vrot.slane %v356_v22, 1  ;;  %v374_v35 = vrot.slane %v357_v21, 1 }
 0x102   :  { %v395_v32 = vrot.slane %v356_v22, 3  ;;  %v396_v31 = vrot.slane %v357_v21, 3  ;;  %v389_v28 = vrot.slane %v356_v22, 2  ;;  %v390_v19 = vrot.slane %v357_v21, 2 }
 0x103   :  { %9531 = vpow2.f32 %v8079_v24  ;;  %v8081_v36 = vmul.f32 -1.442695, %v373_v27  ;;  %v8082_v33 = vmul.f32 -1.442695, %v374_v35 }
 0x104   :  { %9533 = vpow2.f32 %v8080_v25  ;;  %v8083_v18 = vmul.f32 -1.442695, %v395_v32  ;;  %v8084_v30 = vmul.f32 -1.442695, %v396_v31 }
 0x105   :  { %9535 = vpow2.f32 %v8081_v36  ;;  %v8085_v35 = vld.sshfl [vmem:[#allocation3] sm:$0x11 pattern:$0x75316420] }
 0x106   :  { %9537 = vpow2.f32 %v8082_v33  ;;  %v419_v21 = vcombine.high %v8085_v35, %v8085_v35 }
 0x107   :  { %9539 = vtanh.f32 %v389_v28 }
 0x108   :  { %9541 = vtanh.f32 %v390_v19  ;;  %v426_v19 = vrot.slane %v8085_v35, %v10543_v2 }
 0x109   :  { %9543 = vpow2.f32 %v8083_v18  ;;  %v433_v18 = vrot.slane %v419_v21, %v10543_v2 }
 0x10a   :  { %9545 = vpow2.f32 %v8084_v30 }
 0x10d   :  { %v9532_v29 = vpop.eup %9531 }
 0x10e   :  { %v9534_v20 = vpop.eup %9533  ;;  %v365_v34 = vadd.f32 1.0, %v9532_v29 }
 0x10f   :  { %v9536_v26 = vpop.eup %9535  ;;  %v366_v23 = vadd.f32 1.0, %v9534_v20 }
 0x110   :  { %v9538_v24 = vpop.eup %9537  ;;  %9547 = vrcp.f32 %v365_v34  ;;  %v383_v25 = vadd.f32 1.0, %v9536_v26 }
 0x111   :  { %9549 = vrcp.f32 %v366_v23  ;;  %v384_v27 = vadd.f32 1.0, %v9538_v24  ;;  %v9540_v22 = vpop.eup %9539 }
 0x112   :  { %9551 = vrcp.f32 %v383_v25  ;;  %v9542_v36 = vpop.eup %9541 }
 0x113   :  { %9553 = vrcp.f32 %v384_v27  ;;  %v9544_v28 = vpop.eup %9543 }
 0x114   :  { %v9546_v33 = vpop.eup %9545  ;;  %v405_v30 = vadd.f32 1.0, %v9544_v28 }
 0x115   :  { %v406_v20 = vadd.f32 1.0, %v9546_v33 }
 0x116   :  { %9555 = vrcp.f32 %v405_v30  ;;  %v9922_v30 = vld [vmem:[%s12991_s1 + $0x28] ss:$16 sps:$4 sm:$0xff]  }
 0x117   :  { %9557 = vrcp.f32 %v406_v20  ;;  %v9924_v20 = vld [vmem:[%s12991_s1 + $0x4c] ss:$16 sps:$4 sm:$0xff]  }
 0x11a   :  { %v9548_v32 = vpop.eup %9547 }
 0x11b   :  { %v9550_v31 = vpop.eup %9549  ;;  %v438_v23 = vmul.f32 %v9548_v32, %v9540_v22 }
 0x11c   :  { %v9552_v29 = vpop.eup %9551  ;;  %v439_v25 = vmul.f32 %v9550_v31, %v9542_v36  ;;  %v9921_v31 = vld [vmem:[%s12991_s1 + $0x20] ss:$16 sps:$4 sm:$0xff]  }
 0x11d   :  { %v9554_v34 = vpop.eup %9553  ;;  %v436_v26 = vmul.f32 %v9552_v29, %v426_v19  ;;  %v9923_v29 = vld [vmem:[%s12991_s1 + $0x44] ss:$16 sps:$4 sm:$0xff]  }
 0x11e   :  { %v437_v24 = vmul.f32 %v9554_v34, %v433_v18  ;;  %v9925_v34 = vld [vmem:[%s12991_s1 + $0x40] ss:$16 sps:$4 sm:$0xff]  }
 0x11f   :  { %v440_v27 = vadd.f32 %v438_v23, %v436_v26  ;;  %v9926_v26 = vld [vmem:[%s12991_s1 + $0x48] ss:$16 sps:$4 sm:$0xff]   ;;  %v9927_v23 = vld [vmem:[%s12991_s1 + $0x64] ss:$16 sps:$4 sm:$0xff]  }
 0x120   :  { %v441_v17 = vadd.f32 %v439_v25, %v437_v24  ;;  %v9556_v21 = vpop.eup %9555  ;;  %v9928_v24 = vld [vmem:[%s12991_s1 + $0x6c] ss:$16 sps:$4 sm:$0xff]   ;;  %v9929_v25 = vld [vmem:[%s12991_s1 + $0x60] ss:$16 sps:$4 sm:$0xff]  }
 0x121   :  { %9559 = vtanh.f32 %v440_v27  ;;  %v9558_v15 = vpop.eup %9557 }
 0x122   :  { %9561 = vtanh.f32 %v441_v17  ;;  %v448_v16 = vcombine.low %v440_v27, %v441_v17  ;;  %v9918_v17 = vld [vmem:[%s12991_s1 + $0x8] ss:$16 sps:$4 sm:$0xff]  }
 0x123   :  { %v9930_v27 = vld [vmem:[%s12991_s1 + $0x68] ss:$16 sps:$4 sm:$0xff]  }
 0x124   :  { %v455_v35 = vrot.slane %v448_v16, %v10543_v2  ;;  %v9917_v16 = vld [vmem:[%s12991_s1] ss:$16 sps:$4 sm:$0xff]  }
 0x126   :  { %8086 = vst.sshfl [vmem:[#allocation3] sm:$0x5 pattern:$0x73625140] %v455_v35  ;;  %v9931_v35 = vld [vmem:[%s12991_s1 + $0x84] ss:$16 sps:$4 sm:$0xff]  }
 0x12b   :  { %v9560_v28 = vpop.eup %9559 }
 0x12c   :  { %v9562_v14 = vpop.eup %9561  ;;  %v444_v33 = vmul.f32 %v9560_v28, %v9556_v21  ;;  %v9932_v21 = vld [vmem:[%s12991_s1 + $0x8c] ss:$16 sps:$4 sm:$0xff]   ;;  %v9933_v28 = vld [vmem:[%s12991_s1 + $0x80] ss:$16 sps:$4 sm:$0xff]  }
 0x12d   :  { %v445_v13 = vmul.f32 %v9562_v14, %v9558_v15  ;;  %v9920_v14 = vld [vmem:[%s12991_s1 + $0x2c] ss:$16 sps:$4 sm:$0xff]   ;;  %v13238_v15 = vmov 0  }
 0x12f   :  { %v467_v19 = vcombine.low %v444_v33, %v445_v13  ;;  %v9919_v13 = vld [vmem:[%s12991_s1 + $0x24] ss:$16 sps:$4 sm:$0xff]   ;;  %v9934_v33 = vld [vmem:[%s12991_s1 + $0x88] ss:$16 sps:$4 sm:$0xff]  }
 0x131   :  { %8087 = vst.sshfl [vmem:[#allocation2] sm:$0x11 pattern:$0x75316420] %v467_v19  ;;  %v9935_v19 = vld [vmem:[%s12991_s1 + $0xa4] ss:$16 sps:$4 sm:$0xff]  }
 0x138   :  { %v8088_v22 = vld.sshfl [vmem:[#allocation2] sm:$0x33 pattern:$0x76325410] }
 0x139   :  { %v486_v36 = vcombine.high %v8088_v22, %v8088_v22  ;;  %v489_v18 = vpack.c.bf16 %v8088_v22, %v8088_v22  ;;  %v9936_v22 = vld [vmem:[%s12991_s1 + $0xac] ss:$16 sps:$4 sm:$0xff]  }
 0x13b   :  { %v490_v32 = vpack.c.bf16 %v486_v36, %v486_v36  ;;  %v9937_v36 = vld [vmem:[%s12991_s1 + $0xa0] ss:$16 sps:$4 sm:$0xff]  }
 0x13d   :  { %929 = vmatprep.mubr.bf16.mxu0 %v490_v32  ;;  %970 = vmatprep.mubr.bf16.mxu1 %v490_v32  ;;  %v9938_v32 = vld [vmem:[%s12991_s1 + $0xa8] ss:$16 sps:$4 sm:$0xff]  }
 0x13e   :  { %930 = vmatmul.mubr.bf16.vlgmr.msra.gmra.mrb[4].mxu0 %v489_v18  ;;  %971 = vmatmul.mubr.bf16.vlgmr.msra.gmra.mrb[4].mxu1 %v489_v18  ;;  %v9939_v18 = vld [vmem:[%s12991_s1 + $0xc4] ss:$16 sps:$4 sm:$0xff]  }
 0x13f   :  { %1232 = vmatpush1.bf16.msra.mxu0 %v9917_v16  ;;  %1273 = vmatpush1.bf16.msra.mxu1 %v9918_v17  ;;  %v9940_v16 = vld [vmem:[%s12991_s1 + $0xcc] ss:$16 sps:$4 sm:$0xff]   ;;  %v9941_v17 = vld [vmem:[%s12991_s1 + $0xc0] ss:$16 sps:$4 sm:$0xff]  }
 0x140   :  { %1233 = vmatprep.subr.bf16.mxu0 %v9919_v13  ;;  %1274 = vmatprep.subr.bf16.mxu1 %v9920_v14  ;;  %v9942_v13 = vld [vmem:[%s12991_s1 + $0xc8] ss:$16 sps:$4 sm:$0xff]   ;;  %v9943_v14 = vld [vmem:[%s12991_s1 + $0xe4] ss:$16 sps:$4 sm:$0xff]  }
 0x141   :  { %1263 = vmatprep.mubr.bf16.mxu0 %v13238_v15  ;;  %1304 = vmatprep.mubr.bf16.mxu1 %v13238_v15 }
 0x143   :  { %1234 = vmatpush1.bf16.msra.mxu0 %v9921_v31  ;;  %1275 = vmatpush1.bf16.msra.mxu1 %v9922_v30  ;;  %v9944_v31 = vld [vmem:[%s12991_s1 + $0xec] ss:$16 sps:$4 sm:$0xff]   ;;  %v1037_v30 = vld [vmem:[#allocation2] sm:$0x3] }
 0x144   :  { %1235 = vmatprep.subr.bf16.mxu0 %v9923_v29  ;;  %1276 = vmatprep.subr.bf16.mxu1 %v9924_v20  ;;  %v9945_v29 = vld [vmem:[%s12991_s1 + $0xe0] ss:$16 sps:$4 sm:$0xff]   ;;  %v9946_v20 = vld [vmem:[%s12991_s1 + $0xe8] ss:$16 sps:$4 sm:$0xff]  }
 0x147   :  { %1236 = vmatpush1.bf16.msra.mxu0 %v9925_v34  ;;  %1277 = vmatpush1.bf16.msra.mxu1 %v9926_v26  ;;  %v1038_v34 = vpack.c.bf16 %v1037_v30, %v1037_v30 }
 0x148   :  { %1237 = vmatprep.subr.bf16.mxu0 %v9927_v23  ;;  %1278 = vmatprep.subr.bf16.mxu1 %v9928_v24 }
 0x14b   :  { %1238 = vmatpush1.bf16.msra.mxu0 %v9929_v25  ;;  %1279 = vmatpush1.bf16.msra.mxu1 %v9930_v27 }
 0x14c   :  { %1239 = vmatprep.subr.bf16.mxu0 %v9931_v35  ;;  %1280 = vmatprep.subr.bf16.mxu1 %v9932_v21 }
 0x14f   :  { %1240 = vmatpush1.bf16.msra.mxu0 %v9933_v28  ;;  %1281 = vmatpush1.bf16.msra.mxu1 %v9934_v33 }
 0x150   :  { %1241 = vmatprep.subr.bf16.mxu0 %v9935_v19  ;;  %1282 = vmatprep.subr.bf16.mxu1 %v9936_v22 }
 0x153   :  { %1242 = vmatpush1.bf16.msra.mxu0 %v9937_v36  ;;  %1283 = vmatpush1.bf16.msra.mxu1 %v9938_v32 }
 0x154   :  { %1243 = vmatprep.subr.bf16.mxu0 %v9939_v18  ;;  %1284 = vmatprep.subr.bf16.mxu1 %v9940_v16 }
 0x157   :  { %1244 = vmatpush1.bf16.msra.mxu0 %v9941_v17  ;;  %1285 = vmatpush1.bf16.msra.mxu1 %v9942_v13 }
 0x158   :  { %1245 = vmatprep.subr.bf16.mxu0 %v9943_v14  ;;  %1286 = vmatprep.subr.bf16.mxu1 %v9944_v31 }
 0x15b   :  { %1246 = vmatpush1.bf16.msra.mxu0 %v9945_v29  ;;  %1287 = vmatpush1.bf16.msra.mxu1 %v9946_v20 }
 0x15c   :  { %1892 = vmatprep.subr.bf16.mxu0 %v10153_v37  ;;  %1933 = vmatprep.subr.bf16.mxu1 %v10158_v38  ;;  %v13239_v37 = vld [vmem:[#allocation11_spill] sm:$0xff]  ;;  %v13240_v38 = vld [vmem:[#allocation12_spill] sm:$0xff] }
 0x15e   :  { %1264 = vmatmul.mubr.bf16.vlgmr.msra.gmra.mrb[8].mxu0 %v1038_v34  ;;  %1305 = vmatmul.mubr.bf16.vlgmr.msra.gmra.mrb[8].mxu1 %v1038_v34 }
 0x15f   :  { %1893 = vmatpush1.bf16.msra.mxu0 %v10163_v39  ;;  %1934 = vmatpush1.bf16.msra.mxu1 %v10168_v40  ;;  %v13241_v39 = vld [vmem:[#allocation13_spill] sm:$0xff]  ;;  %v13242_v40 = vld [vmem:[#allocation14_spill] sm:$0xff] }
 0x160   :  { %1894 = vmatprep.subr.bf16.mxu0 %v10177_v41  ;;  %1935 = vmatprep.subr.bf16.mxu1 %v10182_v42  ;;  %v13243_v41 = vld [vmem:[#allocation15_spill] sm:$0xff]  ;;  %v13244_v42 = vld [vmem:[#allocation16_spill] sm:$0xff] }
 0x163   :  { %1895 = vmatpush1.bf16.msra.mxu0 %v10187_v43  ;;  %1936 = vmatpush1.bf16.msra.mxu1 %v10192_v44  ;;  %v13245_v43 = vld [vmem:[#allocation17_spill] sm:$0xff]  ;;  %v13246_v44 = vld [vmem:[#allocation18_spill] sm:$0xff] }
 0x164   :  { %1896 = vmatprep.subr.bf16.mxu0 %v10201_v45  ;;  %1937 = vmatprep.subr.bf16.mxu1 %v10206_v46  ;;  %v13247_v45 = vld [vmem:[#allocation19_spill] sm:$0xff]  ;;  %v13248_v46 = vld [vmem:[#allocation20_spill] sm:$0xff] }
 0x167   :  { %1897 = vmatpush1.bf16.msra.mxu0 %v10211_v47  ;;  %1938 = vmatpush1.bf16.msra.mxu1 %v10216_v48  ;;  %v13249_v47 = vld [vmem:[#allocation21_spill] sm:$0xff]  ;;  %v13250_v48 = vld [vmem:[#allocation22_spill] sm:$0xff] }
 0x168   :  { %1898 = vmatprep.subr.bf16.mxu0 %v10225_v49  ;;  %1939 = vmatprep.subr.bf16.mxu1 %v10230_v50  ;;  %v13251_v49 = vld [vmem:[#allocation23_spill] sm:$0xff]  ;;  %v13252_v50 = vld [vmem:[#allocation24_spill] sm:$0xff] }
 0x16b   :  { %1899 = vmatpush1.bf16.msra.mxu0 %v10235_v51  ;;  %1940 = vmatpush1.bf16.msra.mxu1 %v10240_v52  ;;  %v13253_v51 = vld [vmem:[#allocation25_spill] sm:$0xff]  ;;  %v13254_v52 = vld [vmem:[#allocation26_spill] sm:$0xff] }
 0x16c   :  { %1900 = vmatprep.subr.bf16.mxu0 %v10249_v53  ;;  %1941 = vmatprep.subr.bf16.mxu1 %v10254_v54  ;;  %v13255_v53 = vld [vmem:[#allocation27_spill] sm:$0xff]  ;;  %v13256_v54 = vld [vmem:[#allocation28_spill] sm:$0xff] }
 0x16f   :  { %1901 = vmatpush1.bf16.msra.mxu0 %v10259_v55  ;;  %1942 = vmatpush1.bf16.msra.mxu1 %v10264_v56  ;;  %v13257_v55 = vld [vmem:[#allocation29_spill] sm:$0xff]  ;;  %v13258_v56 = vld [vmem:[#allocation30_spill] sm:$0xff] }
 0x170   :  { %1902 = vmatprep.subr.bf16.mxu0 %v10273_v57  ;;  %1943 = vmatprep.subr.bf16.mxu1 %v10278_v58  ;;  %v13259_v57 = vld [vmem:[#allocation31_spill] sm:$0xff]  ;;  %v13260_v58 = vld [vmem:[#allocation32_spill] sm:$0xff] }
 0x173   :  { %1903 = vmatpush1.bf16.msra.mxu0 %v10283_v59  ;;  %1944 = vmatpush1.bf16.msra.mxu1 %v10288_v60  ;;  %v13261_v59 = vld [vmem:[#allocation33_spill] sm:$0xff]  ;;  %v13262_v60 = vld [vmem:[#allocation34_spill] sm:$0xff] }
 0x174   :  { %1904 = vmatprep.subr.bf16.mxu0 %v10297_v61  ;;  %1945 = vmatprep.subr.bf16.mxu1 %v10302_v62  ;;  %v13263_v61 = vld [vmem:[#allocation35_spill] sm:$0xff]  ;;  %v8045_v62 = vld [vmem:[%s12995_s5 + $0x2] sm:$0x3] }
 0x175   :  { %38 = vst [vmem:[#allocation4] sm:$0x3] %v8045_v62 }
 0x177   :  { %1905 = vmatpush1.bf16.msra.mxu0 %v10307_v63  ;;  %1946 = vmatpush1.bf16.msra.mxu1 %v10312_v0  ;;  %v10720_v63 = vld [vmem:[%s12991_s1 + $0x4] ss:$16 sps:$4 sm:$0xff]   ;;  %v10725_v0 = vld [vmem:[%s12991_s1 + $0xc] ss:$16 sps:$4 sm:$0xff]  }
 0x178   :  { %1906 = vmatprep.subr.bf16.mxu0 %v10321_v1  ;;  %1947 = vmatprep.subr.bf16.mxu1 %v10326_v3  ;;  %v13264_v1 = vld [vmem:[#allocation36_spill] sm:$0xff] }
 0x179   :  { %v10730_v3 = vsub.s32 0, %v13264_v1  ;;  %v10745_v19 = vsub.s32 2, %v13264_v1 }
 0x17b   :  { %1907 = vmatpush1.bf16.msra.mxu0 %v10331_v4  ;;  %1948 = vmatpush1.bf16.msra.mxu1 %v10336_v5  ;;  %13265 = vst [vmem:[#allocation11_spill] sm:$0xff] %v10730_v3  ;;  %v555_v4 = vld [vmem:[%s12993_s3] sm:$0xf]  ;;  %v10736_v5 = vsub.s32 1, %v13264_v1  ;;  %13268 = vst [vmem:[#allocation14_spill] sm:$0xff] %v10745_v19 }
 0x17c   :  { %1908 = vmatprep.subr.bf16.mxu0 %v10345_v6  ;;  %1949 = vmatprep.subr.bf16.mxu1 %v10350_v7  ;;  %v560_v6 = vrot.slane %v555_v4, %v10730_v3  ;;  %v568_v36 = vrot.slane %v555_v4, %v10745_v19  ;;  %v979_v29 = vld [vmem:[#allocation4] sm:$0x3] }
 0x17d   :  { %13266 = vst [vmem:[#allocation12_spill] sm:$0xff] %v10736_v5  ;;  %v564_v7 = vrot.slane %v555_v4, %v10736_v5 }
 0x17f   :  { %1909 = vmatpush1.bf16.msra.mxu0 %v10355_v8  ;;  %1950 = vmatpush1.bf16.msra.mxu1 %v10360_v9 }
 0x180   :  { %1910 = vmatprep.subr.bf16.mxu0 %v10369_v10  ;;  %1951 = vmatprep.subr.bf16.mxu1 %v10374_v11  ;;  %v10741_v10 = vsub.s32 3, %v13264_v1 }
 0x182   :  { %13267 = vst [vmem:[#allocation13_spill] sm:$0xff] %v10741_v10  ;;  %v572_v33 = vrot.slane %v555_v4, %v10741_v10 }
 0x183   :  { %1911 = vmatpush1.bf16.msra.mxu0 %v10379_v12  ;;  %1952 = vmatpush1.bf16.msra.mxu1 %v13239_v37 }
 0x184   :  { %1912 = vmatprep.subr.bf16.mxu0 %v13240_v38  ;;  %1953 = vmatprep.subr.bf16.mxu1 %v13241_v39 }
 0x187   :  { %1913 = vmatpush1.bf16.msra.mxu0 %v13242_v40  ;;  %1954 = vmatpush1.bf16.msra.mxu1 %v13243_v41 }
 0x188   :  { %1914 = vmatprep.subr.bf16.mxu0 %v13244_v42  ;;  %1955 = vmatprep.subr.bf16.mxu1 %v13245_v43 }
 0x18b   :  { %1915 = vmatpush1.bf16.msra.mxu0 %v13246_v44  ;;  %1956 = vmatpush1.bf16.msra.mxu1 %v13247_v45 }
 0x18c   :  { %1916 = vmatprep.subr.bf16.mxu0 %v13248_v46  ;;  %1957 = vmatprep.subr.bf16.mxu1 %v13249_v47 }
 0x18f   :  { %1917 = vmatpush1.bf16.msra.mxu0 %v13250_v48  ;;  %1958 = vmatpush1.bf16.msra.mxu1 %v13251_v49 }
 0x190   :  { %1918 = vmatprep.subr.bf16.mxu0 %v13252_v50  ;;  %1959 = vmatprep.subr.bf16.mxu1 %v13253_v51 }
 0x193   :  { %1919 = vmatpush1.bf16.msra.mxu0 %v13254_v52  ;;  %1960 = vmatpush1.bf16.msra.mxu1 %v13255_v53 }
 0x194   :  { %1920 = vmatprep.subr.bf16.mxu0 %v13256_v54  ;;  %1961 = vmatprep.subr.bf16.mxu1 %v13257_v55  ;;  %v8158_v55 = vld [vmem:[%s12990_s0 + $0x1] ss:$8 sm:$0xf] }
 0x197   :  { %1921 = vmatpush1.bf16.msra.mxu0 %v13258_v56  ;;  %1962 = vmatpush1.bf16.msra.mxu1 %v13259_v57  ;;  %v8159_v56 = vld [vmem:[%s12990_s0 + $0x21] ss:$8 sm:$0xf] }
 0x198   :  { %1922 = vmatprep.subr.bf16.mxu0 %v13260_v58  ;;  %1963 = vmatprep.subr.bf16.mxu1 %v13261_v59 }
 0x19b   :  { %1923 = vmatpush1.bf16.msra.mxu0 %v13262_v60  ;;  %1964 = vmatpush1.bf16.msra.mxu1 %v13263_v61 }
 0x19c   :  { %2226 = vmatprep.subr.bf16.mxu0 %v10720_v63  ;;  %2267 = vmatprep.subr.bf16.mxu1 %v10725_v0 }
 0x211   :  { %v931_v8 = vpop.f32.mrb[4].mxu0  ;;  %v972_v9 = vpop.f32.mrb[4].mxu1 }
 0x212   :  { %v932_v11 = vadd.f32 %v931_v8, %v560_v6  ;;  %v933_v12 = vpop.f32.mrb[5].mxu0  ;;  %v974_v26 = vpop.f32.mrb[5].mxu1  ;;  %v973_v18 = vadd.f32 %v972_v9, %v568_v36 }
 0x213   :  { %v934_v23 = vadd.f32 %v933_v12, %v564_v7  ;;  %v935_v24 = vpop.f32.mrb[6].mxu0  ;;  %v976_v25 = vpop.f32.mrb[6].mxu1  ;;  %v975_v22 = vadd.f32 %v974_v26, %v572_v33 }
 0x214   :  { %v8153_v27 = vmul.f32 -1.442695, %v932_v11  ;;  %v936_v35 = vpop.f32.mrb[7].mxu0  ;;  %v977_v21 = vpop.f32.mrb[7].mxu1 }
 0x215   :  { %v8154_v28 = vmul.f32 -1.442695, %v934_v23  ;;  %v8155_v32 = vmul.f32 -1.442695, %v975_v22 }
 0x216   :  { %9563 = vpow2.f32 %v8153_v27 }
 0x217   :  { %9565 = vpow2.f32 %v8154_v28 }
 0x218   :  { %9567 = vpow2.f32 %v8155_v32 }
 0x219   :  { %9569 = vtanh.f32 %v973_v18 }
 0x220   :  { %v9564_v16 = vpop.eup %9563 }
 0x221   :  { %v9566_v17 = vpop.eup %9565  ;;  %v983_v13 = vadd.f32 1.0, %v9564_v16 }
 0x222   :  { %v989_v14 = vadd.f32 1.0, %v9566_v17  ;;  %v9568_v31 = vpop.eup %9567 }
 0x223   :  { %9571 = vrcp.f32 %v983_v13  ;;  %v9570_v30 = vpop.eup %9569  ;;  %v996_v38 = vadd.f32 1.0, %v9568_v31  ;;  %v8198_v13 = vld.sshfl [vmem:[#allocation3] sm:$0x11 pattern:$0x75316420] }
 0x224   :  { %9573 = vrcp.f32 %v989_v14 }
 0x225   :  { %9575 = vrcp.f32 %v996_v38 }
 0x22d   :  { %v9572_v20 = vpop.eup %9571 }
 0x22e   :  { %v9574_v34 = vpop.eup %9573  ;;  %v1000_v37 = vmul.f32 %v9572_v20, %v9570_v30 }
 0x22f   :  { %v999_v39 = vmul.f32 %v9574_v34, %v979_v29  ;;  %v9576_v61 = vpop.eup %9575  ;;  %v1414_v29 = vcombine.high %v8198_v13, %v8198_v13 }
 0x231   :  { %v1001_v40 = vadd.f32 %v1000_v37, %v999_v39  ;;  %v1265_v41 = vpop.f32.mrb[8].mxu0  ;;  %v1306_v42 = vpop.f32.mrb[8].mxu1  ;;  %v1421_v39 = vrot.slane %v8198_v13, %v10543_v2  ;;  %v10908_v13 = vld [vmem:[%s12991_s1 + $0xcc] ss:$16 sps:$4 sm:$0xff]  }
 0x232   :  { %v1267_v43 = vpop.f32.mrb[9].mxu0  ;;  %v1308_v44 = vpop.f32.mrb[9].mxu1 }
 0x233   :  { %9577 = vtanh.f32 %v1001_v40  ;;  %1004 = vst [vmem:[#allocation4] sm:$0x3] %v1001_v40  ;;  %v1317_v45 = vcombine.low %v1265_v41, %v1267_v43  ;;  %v1318_v46 = vcombine.low %v1306_v42, %v1308_v44  ;;  %v1269_v47 = vpop.f32.mrb[10].mxu0  ;;  %v1310_v48 = vpop.f32.mrb[10].mxu1  ;;  %v1428_v42 = vrot.slane %v1414_v29, %v10543_v2  ;;  %v10932_v29 = vld [vmem:[%s12991_s1 + $0xec] ss:$16 sps:$4 sm:$0xff]  }
 0x234   :  { %v1270_v49 = vpop.f32.mrb[11].mxu0  ;;  %v1311_v50 = vpop.f32.mrb[11].mxu1 }
 0x235   :  { %v1325_v51 = vrot.slane %v1317_v45, %v10543_v2  ;;  %v1332_v52 = vrot.slane %v1318_v46, %v10543_v2 }
 0x237   :  { %v1333_v53 = vcombine.low %v1325_v51, %v1332_v52  ;;  %v1334_v54 = vcombine.high %v1325_v51, %v1332_v52 }
 0x239   :  { %v1341_v57 = vrot.slane %v1333_v53, %v10543_v2  ;;  %v1348_v58 = vrot.slane %v1334_v54, %v10543_v2 }
 0x23b   :  { %v1351_v59 = vadd.f32 %v8158_v55, %v1341_v57  ;;  %v1352_v60 = vadd.f32 %v8159_v56, %v1348_v58 }
 0x23d   :  { %v9578_v62 = vpop.eup %9577  ;;  %v8192_v1 = vmul.f32 -1.442695, %v1351_v59  ;;  %v8193_v4 = vmul.f32 -1.442695, %v1352_v60  ;;  %v1368_v6 = vrot.slane %v1351_v59, 1  ;;  %v1369_v7 = vrot.slane %v1352_v60, 1 }
 0x23e   :  { %v1003_v8 = vmul.f32 %v9578_v62, %v9576_v61  ;;  %v1390_v23 = vrot.slane %v1351_v59, 3  ;;  %v1391_v24 = vrot.slane %v1352_v60, 3  ;;  %v1384_v25 = vrot.slane %v1351_v59, 2  ;;  %v10771_v62 = vld [vmem:[%s12991_s1] ss:$16 sps:$4 sm:$0xff]  }
 0x23f   :  { %9579 = vpow2.f32 %v8192_v1  ;;  %v8194_v9 = vmul.f32 -1.442695, %v1368_v6  ;;  %v8195_v11 = vmul.f32 -1.442695, %v1369_v7  ;;  %v1385_v27 = vrot.slane %v1352_v60, 2 }
 0x240   :  { %1005 = vst [vmem:[#allocation2 + $0x2] sm:$0x3] %v1003_v8  ;;  %v1013_v12 = vrot.slane %v1003_v8, %v10543_v2  ;;  %9581 = vpow2.f32 %v8193_v4  ;;  %v8196_v35 = vmul.f32 -1.442695, %v1390_v23  ;;  %v8197_v21 = vmul.f32 -1.442695, %v1391_v24 }
 0x241   :  { %9583 = vpow2.f32 %v8194_v9  ;;  %v10776_v1 = vld [vmem:[%s12991_s1 + $0x8] ss:$16 sps:$4 sm:$0xff]   ;;  %v10781_v6 = vld [vmem:[%s12991_s1 + $0x24] ss:$16 sps:$4 sm:$0xff]   ;;  %v10786_v7 = vld [vmem:[%s12991_s1 + $0x2c] ss:$16 sps:$4 sm:$0xff]  }
 0x242   :  { %v1014_v26 = vcombine.high %v1013_v12, %v1013_v12  ;;  %8156 = vst.sshfl [vmem:[%s12996_s6] sm:$0x1 pattern:$0x73625140] %v1013_v12  ;;  %9585 = vpow2.f32 %v8195_v11  ;;  %v10793_v8 = vld [vmem:[%s12991_s1 + $0x20] ss:$16 sps:$4 sm:$0xff]  }
 0x243   :  { %9587 = vtanh.f32 %v1384_v25  ;;  %v10798_v9 = vld [vmem:[%s12991_s1 + $0x28] ss:$16 sps:$4 sm:$0xff]   ;;  %v10805_v11 = vld [vmem:[%s12991_s1 + $0x44] ss:$16 sps:$4 sm:$0xff]   ;;  %v10810_v12 = vld [vmem:[%s12991_s1 + $0x4c] ss:$16 sps:$4 sm:$0xff]  }
 0x244   :  { %8157 = vst.sshfl [vmem:[%s12996_s6 + $0x8] sm:$0x1 pattern:$0x73625140] %v1014_v26  ;;  %9589 = vtanh.f32 %v1385_v27  ;;  %v10819_v26 = vld [vmem:[%s12991_s1 + $0x40] ss:$16 sps:$4 sm:$0xff]  }
 0x245   :  { %9591 = vpow2.f32 %v8196_v35  ;;  %v10824_v23 = vld [vmem:[%s12991_s1 + $0x48] ss:$16 sps:$4 sm:$0xff]   ;;  %v10831_v24 = vld [vmem:[%s12991_s1 + $0x64] ss:$16 sps:$4 sm:$0xff]   ;;  %v10836_v25 = vld [vmem:[%s12991_s1 + $0x6c] ss:$16 sps:$4 sm:$0xff]  }
 0x246   :  { %9593 = vpow2.f32 %v8197_v21  ;;  %v10843_v27 = vld [vmem:[%s12991_s1 + $0x60] ss:$16 sps:$4 sm:$0xff]   ;;  %v10848_v35 = vld [vmem:[%s12991_s1 + $0x68] ss:$16 sps:$4 sm:$0xff]   ;;  %v10855_v21 = vld [vmem:[%s12991_s1 + $0x84] ss:$16 sps:$4 sm:$0xff]  }
 0x249   :  { %v9580_v28 = vpop.eup %9579 }
 0x24a   :  { %v9582_v33 = vpop.eup %9581  ;;  %v1360_v22 = vadd.f32 1.0, %v9580_v28  ;;  %v10860_v28 = vld [vmem:[%s12991_s1 + $0x8c] ss:$16 sps:$4 sm:$0xff]  }
 0x24b   :  { %v9584_v36 = vpop.eup %9583  ;;  %v1361_v32 = vadd.f32 1.0, %v9582_v33  ;;  %v10867_v33 = vld [vmem:[%s12991_s1 + $0x80] ss:$16 sps:$4 sm:$0xff]  }
 0x24c   :  { %v9586_v18 = vpop.eup %9585  ;;  %9595 = vrcp.f32 %v1360_v22  ;;  %v1378_v16 = vadd.f32 1.0, %v9584_v36  ;;  %v10872_v22 = vld [vmem:[%s12991_s1 + $0x88] ss:$16 sps:$4 sm:$0xff]   ;;  %v10879_v36 = vld [vmem:[%s12991_s1 + $0xa4] ss:$16 sps:$4 sm:$0xff]  }
 0x24d   :  { %9597 = vrcp.f32 %v1361_v32  ;;  %v1379_v17 = vadd.f32 1.0, %v9586_v18  ;;  %v9588_v14 = vpop.eup %9587  ;;  %v10884_v32 = vld [vmem:[%s12991_s1 + $0xac] ss:$16 sps:$4 sm:$0xff]   ;;  %v10891_v18 = vld [vmem:[%s12991_s1 + $0xa0] ss:$16 sps:$4 sm:$0xff]  }
 0x24e   :  { %9599 = vrcp.f32 %v1378_v16  ;;  %v9590_v31 = vpop.eup %9589  ;;  %v10896_v16 = vld [vmem:[%s12991_s1 + $0xa8] ss:$16 sps:$4 sm:$0xff]  }
 0x24f   :  { %9601 = vrcp.f32 %v1379_v17  ;;  %v9592_v30 = vpop.eup %9591  ;;  %v10903_v17 = vld [vmem:[%s12991_s1 + $0xc4] ss:$16 sps:$4 sm:$0xff]  }
 0x250   :  { %v9594_v20 = vpop.eup %9593  ;;  %v1400_v38 = vadd.f32 1.0, %v9592_v30  ;;  %v10927_v30 = vld [vmem:[%s12991_s1 + $0xe4] ss:$16 sps:$4 sm:$0xff]  }
 0x251   :  { %v1401_v41 = vadd.f32 1.0, %v9594_v20  ;;  %v10939_v20 = vld [vmem:[%s12991_s1 + $0xe0] ss:$16 sps:$4 sm:$0xff]  }
 0x252   :  { %9603 = vrcp.f32 %v1400_v38 }
 0x253   :  { %9605 = vrcp.f32 %v1401_v41  ;;  %v10963_v41 = vld [vmem:[%s12992_s2] ss:$16 sps:$4 sm:$0xff]  }
 0x256   :  { %v9596_v34 = vpop.eup %9595 }
 0x257   :  { %v9598_v37 = vpop.eup %9597  ;;  %v1433_v45 = vmul.f32 %v9596_v34, %v9588_v14  ;;  %v10915_v14 = vld [vmem:[%s12991_s1 + $0xc0] ss:$16 sps:$4 sm:$0xff]   ;;  %v10944_v34 = vld [vmem:[%s12991_s1 + $0xe8] ss:$16 sps:$4 sm:$0xff]  }
 0x258   :  { %v9600_v40 = vpop.eup %9599  ;;  %v1434_v47 = vmul.f32 %v9598_v37, %v9590_v31  ;;  %v10920_v31 = vld [vmem:[%s12991_s1 + $0xc8] ss:$16 sps:$4 sm:$0xff]  }
 0x259   :  { %v9602_v43 = vpop.eup %9601  ;;  %v1431_v44 = vmul.f32 %v9600_v40, %v1421_v39  ;;  %v10953_v39 = vld [vmem:[%s12992_s2 + $0x4] ss:$16 sps:$4 sm:$0xff]   ;;  %v10958_v40 = vld [vmem:[%s12992_s2 + $0xc] ss:$16 sps:$4 sm:$0xff]  }
 0x25a   :  { %v1432_v46 = vmul.f32 %v9602_v43, %v1428_v42  ;;  %v10968_v42 = vld [vmem:[%s12992_s2 + $0x8] ss:$16 sps:$4 sm:$0xff]   ;;  %v10977_v43 = vld [vmem:[%s12992_s2 + $0x24] ss:$16 sps:$4 sm:$0xff]  }
 0x25b   :  { %v1435_v48 = vadd.f32 %v1433_v45, %v1431_v44  ;;  %v10982_v44 = vld [vmem:[%s12992_s2 + $0x2c] ss:$16 sps:$4 sm:$0xff]   ;;  %v10987_v45 = vld [vmem:[%s12992_s2 + $0x20] ss:$16 sps:$4 sm:$0xff]  }
 0x25c   :  { %v1436_v49 = vadd.f32 %v1434_v47, %v1432_v46  ;;  %v9604_v52 = vpop.eup %9603  ;;  %v10992_v46 = vld [vmem:[%s12992_s2 + $0x28] ss:$16 sps:$4 sm:$0xff]   ;;  %v11001_v47 = vld [vmem:[%s12992_s2 + $0x44] ss:$16 sps:$4 sm:$0xff]  }
 0x25d   :  { %9607 = vtanh.f32 %v1435_v48  ;;  %v9606_v53 = vpop.eup %9605  ;;  %13269 = vst [vmem:[#allocation15_spill] sm:$0xff] %v11001_v47 }
 0x25e   :  { %9609 = vtanh.f32 %v1436_v49  ;;  %v1443_v50 = vcombine.low %v1435_v48, %v1436_v49  ;;  %v11006_v48 = vld [vmem:[%s12992_s2 + $0x4c] ss:$16 sps:$4 sm:$0xff]   ;;  %v11011_v49 = vld [vmem:[%s12992_s2 + $0x40] ss:$16 sps:$4 sm:$0xff]  }
 0x25f   :  { %13270 = vst [vmem:[#allocation16_spill] sm:$0xff] %v11006_v48  ;;  %13271 = vst [vmem:[#allocation17_spill] sm:$0xff] %v11011_v49 }
 0x260   :  { %v1450_v51 = vrot.slane %v1443_v50, %v10543_v2  ;;  %v11016_v50 = vld [vmem:[%s12992_s2 + $0x48] ss:$16 sps:$4 sm:$0xff]  }
 0x261   :  { %13272 = vst [vmem:[#allocation18_spill] sm:$0xff] %v11016_v50 }
 0x262   :  { %8199 = vst.sshfl [vmem:[#allocation3] sm:$0x5 pattern:$0x73625140] %v1450_v51  ;;  %v11025_v51 = vld [vmem:[%s12992_s2 + $0x64] ss:$16 sps:$4 sm:$0xff]  }
 0x263   :  { %13273 = vst [vmem:[#allocation19_spill] sm:$0xff] %v11025_v51 }
 0x267   :  { %v9608_v54 = vpop.eup %9607 }
 0x268   :  { %v9610_v55 = vpop.eup %9609  ;;  %v1439_v56 = vmul.f32 %v9608_v54, %v9604_v52  ;;  %v11030_v52 = vld [vmem:[%s12992_s2 + $0x6c] ss:$16 sps:$4 sm:$0xff]   ;;  %v11040_v54 = vld [vmem:[%s12992_s2 + $0x68] ss:$16 sps:$4 sm:$0xff]  }
 0x269   :  { %v1440_v57 = vmul.f32 %v9610_v55, %v9606_v53  ;;  %13274 = vst [vmem:[#allocation20_spill] sm:$0xff] %v11030_v52  ;;  %v11035_v53 = vld [vmem:[%s12992_s2 + $0x60] ss:$16 sps:$4 sm:$0xff]   ;;  %13276 = vst [vmem:[#allocation22_spill] sm:$0xff] %v11040_v54  ;;  %v11049_v55 = vld [vmem:[%s12992_s2 + $0x84] ss:$16 sps:$4 sm:$0xff]  }
 0x26a   :  { %13275 = vst [vmem:[#allocation21_spill] sm:$0xff] %v11035_v53  ;;  %13277 = vst [vmem:[#allocation23_spill] sm:$0xff] %v11049_v55 }
 0x26b   :  { %v1462_v58 = vcombine.low %v1439_v56, %v1440_v57  ;;  %v11054_v56 = vld [vmem:[%s12992_s2 + $0x8c] ss:$16 sps:$4 sm:$0xff]   ;;  %v11059_v57 = vld [vmem:[%s12992_s2 + $0x80] ss:$16 sps:$4 sm:$0xff]  }
 0x26c   :  { %13278 = vst [vmem:[#allocation24_spill] sm:$0xff] %v11054_v56  ;;  %13279 = vst [vmem:[#allocation25_spill] sm:$0xff] %v11059_v57 }
 0x26d   :  { %8200 = vst.sshfl [vmem:[#allocation2] sm:$0x11 pattern:$0x75316420] %v1462_v58  ;;  %v11064_v58 = vld [vmem:[%s12992_s2 + $0x88] ss:$16 sps:$4 sm:$0xff]  }
 0x26e   :  { %13280 = vst [vmem:[#allocation26_spill] sm:$0xff] %v11064_v58 }
 0x274   :  { %v8201_v59 = vld.sshfl [vmem:[#allocation2] sm:$0x33 pattern:$0x76325410] }
 0x275   :  { %v1481_v60 = vcombine.high %v8201_v59, %v8201_v59  ;;  %v1484_v4 = vpack.c.bf16 %v8201_v59, %v8201_v59  ;;  %v2032_v37 = vld [vmem:[#allocation2] sm:$0x3]  ;;  %v11073_v59 = vld [vmem:[%s12992_s2 + $0xa4] ss:$16 sps:$4 sm:$0xff]  }
 0x276   :  { %v2033_v38 = vpack.c.bf16 %v2032_v37, %v2032_v37  ;;  %13281 = vst [vmem:[#allocation27_spill] sm:$0xff] %v11073_v59  ;;  %v11097_v37 = vld [vmem:[%s12992_s2 + $0xc4] ss:$16 sps:$4 sm:$0xff]  }
 0x277   :  { %v1485_v61 = vpack.c.bf16 %v1481_v60, %v1481_v60  ;;  %v11078_v60 = vld [vmem:[%s12992_s2 + $0xac] ss:$16 sps:$4 sm:$0xff]   ;;  %13285 = vst [vmem:[#allocation31_spill] sm:$0xff] %v11097_v37 }
 0x278   :  { %13282 = vst [vmem:[#allocation28_spill] sm:$0xff] %v11078_v60 }
 0x279   :  { %1924 = vmatprep.mubr.bf16.mxu0 %v1485_v61  ;;  %1965 = vmatprep.mubr.bf16.mxu1 %v1485_v61  ;;  %v11083_v61 = vld [vmem:[%s12992_s2 + $0xa0] ss:$16 sps:$4 sm:$0xff]  }
 0x27a   :  { %1925 = vmatmul.mubr.bf16.vlgmr.msra.gmra.mrb[12].mxu0 %v1484_v4  ;;  %1966 = vmatmul.mubr.bf16.vlgmr.msra.gmra.mrb[12].mxu1 %v1484_v4  ;;  %13283 = vst [vmem:[#allocation29_spill] sm:$0xff] %v11083_v61  ;;  %v11088_v4 = vld [vmem:[%s12992_s2 + $0xa8] ss:$16 sps:$4 sm:$0xff]  }
 0x27b   :  { %2227 = vmatpush1.bf16.msra.mxu0 %v10771_v62  ;;  %2268 = vmatpush1.bf16.msra.mxu1 %v10776_v1  ;;  %13284 = vst [vmem:[#allocation30_spill] sm:$0xff] %v11088_v4 }
 0x27c   :  { %2228 = vmatprep.subr.bf16.mxu0 %v10781_v6  ;;  %2269 = vmatprep.subr.bf16.mxu1 %v10786_v7 }
 0x27d   :  { %2258 = vmatprep.mubr.bf16.mxu0 %v13238_v15  ;;  %2299 = vmatprep.mubr.bf16.mxu1 %v13238_v15 }
 0x27f   :  { %2229 = vmatpush1.bf16.msra.mxu0 %v10793_v8  ;;  %2270 = vmatpush1.bf16.msra.mxu1 %v10798_v9 }
 0x280   :  { %2230 = vmatprep.subr.bf16.mxu0 %v10805_v11  ;;  %2271 = vmatprep.subr.bf16.mxu1 %v10810_v12 }
 0x283   :  { %2231 = vmatpush1.bf16.msra.mxu0 %v10819_v26  ;;  %2272 = vmatpush1.bf16.msra.mxu1 %v10824_v23 }
 0x284   :  { %2232 = vmatprep.subr.bf16.mxu0 %v10831_v24  ;;  %2273 = vmatprep.subr.bf16.mxu1 %v10836_v25 }
 0x287   :  { %2233 = vmatpush1.bf16.msra.mxu0 %v10843_v27  ;;  %2274 = vmatpush1.bf16.msra.mxu1 %v10848_v35 }
 0x288   :  { %2234 = vmatprep.subr.bf16.mxu0 %v10855_v21  ;;  %2275 = vmatprep.subr.bf16.mxu1 %v10860_v28 }
 0x28b   :  { %2235 = vmatpush1.bf16.msra.mxu0 %v10867_v33  ;;  %2276 = vmatpush1.bf16.msra.mxu1 %v10872_v22 }
 0x28c   :  { %2236 = vmatprep.subr.bf16.mxu0 %v10879_v36  ;;  %2277 = vmatprep.subr.bf16.mxu1 %v10884_v32 }
 0x28f   :  { %2237 = vmatpush1.bf16.msra.mxu0 %v10891_v18  ;;  %2278 = vmatpush1.bf16.msra.mxu1 %v10896_v16 }
 0x290   :  { %2238 = vmatprep.subr.bf16.mxu0 %v10903_v17  ;;  %2279 = vmatprep.subr.bf16.mxu1 %v10908_v13 }
 0x293   :  { %2239 = vmatpush1.bf16.msra.mxu0 %v10915_v14  ;;  %2280 = vmatpush1.bf16.msra.mxu1 %v10920_v31 }
 0x294   :  { %2240 = vmatprep.subr.bf16.mxu0 %v10927_v30  ;;  %2281 = vmatprep.subr.bf16.mxu1 %v10932_v29 }
 0x297   :  { %2241 = vmatpush1.bf16.msra.mxu0 %v10939_v20  ;;  %2282 = vmatpush1.bf16.msra.mxu1 %v10944_v34 }
 0x298   :  { %2887 = vmatprep.subr.bf16.mxu0 %v10953_v39  ;;  %2928 = vmatprep.subr.bf16.mxu1 %v10958_v40 }
 0x29a   :  { %2259 = vmatmul.mubr.bf16.vlgmr.msra.gmra.mrb[16].mxu0 %v2033_v38  ;;  %2300 = vmatmul.mubr.bf16.vlgmr.msra.gmra.mrb[16].mxu1 %v2033_v38  ;;  %v11102_v38 = vld [vmem:[%s12992_s2 + $0xcc] ss:$16 sps:$4 sm:$0xff]  }
 0x29b   :  { %2888 = vmatpush1.bf16.msra.mxu0 %v10963_v41  ;;  %2929 = vmatpush1.bf16.msra.mxu1 %v10968_v42  ;;  %13286 = vst [vmem:[#allocation32_spill] sm:$0xff] %v11102_v38 }
 0x29c   :  { %2889 = vmatprep.subr.bf16.mxu0 %v10977_v43  ;;  %2930 = vmatprep.subr.bf16.mxu1 %v10982_v44 }
 0x29f   :  { %2890 = vmatpush1.bf16.msra.mxu0 %v10987_v45  ;;  %2931 = vmatpush1.bf16.msra.mxu1 %v10992_v46 }
 0x2a0   :  { %2891 = vmatprep.subr.bf16.mxu0 %v11001_v47  ;;  %2932 = vmatprep.subr.bf16.mxu1 %v11006_v48 }
 0x2a3   :  { %2892 = vmatpush1.bf16.msra.mxu0 %v11011_v49  ;;  %2933 = vmatpush1.bf16.msra.mxu1 %v11016_v50 }
 0x2a4   :  { %2893 = vmatprep.subr.bf16.mxu0 %v11025_v51  ;;  %2934 = vmatprep.subr.bf16.mxu1 %v11030_v52 }
 0x2a7   :  { %2894 = vmatpush1.bf16.msra.mxu0 %v11035_v53  ;;  %2935 = vmatpush1.bf16.msra.mxu1 %v11040_v54 }
 0x2a8   :  { %2895 = vmatprep.subr.bf16.mxu0 %v11049_v55  ;;  %2936 = vmatprep.subr.bf16.mxu1 %v11054_v56 }
 0x2ab   :  { %2896 = vmatpush1.bf16.msra.mxu0 %v11059_v57  ;;  %2937 = vmatpush1.bf16.msra.mxu1 %v11064_v58  ;;  %v11304_v58 = vld [vmem:[%s12992_s2 + $0x1c8] ss:$16 sps:$4 sm:$0xff]  }
 0x2ac   :  { %2897 = vmatprep.subr.bf16.mxu0 %v11073_v59  ;;  %2938 = vmatprep.subr.bf16.mxu1 %v11078_v60  ;;  %v11107_v59 = vld [vmem:[%s12992_s2 + $0xc0] ss:$16 sps:$4 sm:$0xff]   ;;  %v11126_v60 = vld [vmem:[%s12992_s2 + $0xec] ss:$16 sps:$4 sm:$0xff]   ;;  %13320 = vst [vmem:[#allocation66_spill] sm:$0xff] %v11304_v58 }
 0x2ad   :  { %13287 = vst [vmem:[#allocation33_spill] sm:$0xff] %v11107_v59  ;;  %13290 = vst [vmem:[#allocation36_spill] sm:$0xff] %v11126_v60 }
 0x2af   :  { %2898 = vmatpush1.bf16.msra.mxu0 %v11083_v61  ;;  %2939 = vmatpush1.bf16.msra.mxu1 %v11088_v4  ;;  %v11112_v61 = vld [vmem:[%s12992_s2 + $0xc8] ss:$16 sps:$4 sm:$0xff]   ;;  %v11121_v4 = vld [vmem:[%s12992_s2 + $0xe4] ss:$16 sps:$4 sm:$0xff]  }
 0x2b0   :  { %13288 = vst [vmem:[#allocation34_spill] sm:$0xff] %v11112_v61  ;;  %2899 = vmatprep.subr.bf16.mxu0 %v11097_v37  ;;  %2940 = vmatprep.subr.bf16.mxu1 %v11102_v38  ;;  %13289 = vst [vmem:[#allocation35_spill] sm:$0xff] %v11121_v4  ;;  %v11131_v37 = vld [vmem:[%s12992_s2 + $0xe0] ss:$16 sps:$4 sm:$0xff]   ;;  %v11150_v38 = vld [vmem:[%s12992_s2 + $0x10c] ss:$16 sps:$4 sm:$0xff]  }
 0x2b1   :  { %13291 = vst [vmem:[#allocation37_spill] sm:$0xff] %v11131_v37  ;;  %13294 = vst [vmem:[#allocation40_spill] sm:$0xff] %v11150_v38 }
 0x2b3   :  { %2900 = vmatpush1.bf16.msra.mxu0 %v11107_v59  ;;  %2941 = vmatpush1.bf16.msra.mxu1 %v11112_v61  ;;  %v11136_v59 = vld [vmem:[%s12992_s2 + $0xe8] ss:$16 sps:$4 sm:$0xff]   ;;  %v11145_v61 = vld [vmem:[%s12992_s2 + $0x104] ss:$16 sps:$4 sm:$0xff]  }
 0x2b4   :  { %13292 = vst [vmem:[#allocation38_spill] sm:$0xff] %v11136_v59  ;;  %2901 = vmatprep.subr.bf16.mxu0 %v11121_v4  ;;  %2942 = vmatprep.subr.bf16.mxu1 %v11126_v60  ;;  %13293 = vst [vmem:[#allocation39_spill] sm:$0xff] %v11145_v61  ;;  %v11155_v4 = vld [vmem:[%s12992_s2 + $0x100] ss:$16 sps:$4 sm:$0xff]   ;;  %v11174_v60 = vld [vmem:[%s12992_s2 + $0x12c] ss:$16 sps:$4 sm:$0xff]  }
 0x2b5   :  { %13295 = vst [vmem:[#allocation41_spill] sm:$0xff] %v11155_v4  ;;  %13298 = vst [vmem:[#allocation44_spill] sm:$0xff] %v11174_v60 }
 0x2b7   :  { %2902 = vmatpush1.bf16.msra.mxu0 %v11131_v37  ;;  %2943 = vmatpush1.bf16.msra.mxu1 %v11136_v59  ;;  %v11160_v37 = vld [vmem:[%s12992_s2 + $0x108] ss:$16 sps:$4 sm:$0xff]   ;;  %v11169_v59 = vld [vmem:[%s12992_s2 + $0x124] ss:$16 sps:$4 sm:$0xff]  }
 0x2b8   :  { %13296 = vst [vmem:[#allocation42_spill] sm:$0xff] %v11160_v37  ;;  %2903 = vmatprep.subr.bf16.mxu0 %v11145_v61  ;;  %2944 = vmatprep.subr.bf16.mxu1 %v11150_v38  ;;  %13297 = vst [vmem:[#allocation43_spill] sm:$0xff] %v11169_v59  ;;  %v11179_v61 = vld [vmem:[%s12992_s2 + $0x120] ss:$16 sps:$4 sm:$0xff]   ;;  %v11198_v38 = vld [vmem:[%s12992_s2 + $0x14c] ss:$16 sps:$4 sm:$0xff]  }
 0x2b9   :  { %13299 = vst [vmem:[#allocation45_spill] sm:$0xff] %v11179_v61  ;;  %13302 = vst [vmem:[#allocation48_spill] sm:$0xff] %v11198_v38 }
 0x2bb   :  { %2904 = vmatpush1.bf16.msra.mxu0 %v11155_v4  ;;  %2945 = vmatpush1.bf16.msra.mxu1 %v11160_v37  ;;  %v11184_v4 = vld [vmem:[%s12992_s2 + $0x128] ss:$16 sps:$4 sm:$0xff]   ;;  %v11193_v37 = vld [vmem:[%s12992_s2 + $0x144] ss:$16 sps:$4 sm:$0xff]  }
 0x2bc   :  { %13300 = vst [vmem:[#allocation46_spill] sm:$0xff] %v11184_v4  ;;  %2905 = vmatprep.subr.bf16.mxu0 %v11169_v59  ;;  %2946 = vmatprep.subr.bf16.mxu1 %v11174_v60  ;;  %13301 = vst [vmem:[#allocation47_spill] sm:$0xff] %v11193_v37  ;;  %v11203_v59 = vld [vmem:[%s12992_s2 + $0x140] ss:$16 sps:$4 sm:$0xff]   ;;  %v11222_v60 = vld [vmem:[%s12992_s2 + $0x16c] ss:$16 sps:$4 sm:$0xff]  }
 0x2bd   :  { %13303 = vst [vmem:[#allocation49_spill] sm:$0xff] %v11203_v59  ;;  %13306 = vst [vmem:[#allocation52_spill] sm:$0xff] %v11222_v60 }
 0x2bf   :  { %2906 = vmatpush1.bf16.msra.mxu0 %v11179_v61  ;;  %2947 = vmatpush1.bf16.msra.mxu1 %v11184_v4  ;;  %v11208_v61 = vld [vmem:[%s12992_s2 + $0x148] ss:$16 sps:$4 sm:$0xff]   ;;  %v11217_v4 = vld [vmem:[%s12992_s2 + $0x164] ss:$16 sps:$4 sm:$0xff]  }
 0x2c0   :  { %13304 = vst [vmem:[#allocation50_spill] sm:$0xff] %v11208_v61  ;;  %2907 = vmatprep.subr.bf16.mxu0 %v11193_v37  ;;  %2948 = vmatprep.subr.bf16.mxu1 %v11198_v38  ;;  %13305 = vst [vmem:[#allocation51_spill] sm:$0xff] %v11217_v4  ;;  %v11227_v37 = vld [vmem:[%s12992_s2 + $0x160] ss:$16 sps:$4 sm:$0xff]   ;;  %v11246_v38 = vld [vmem:[%s12992_s2 + $0x18c] ss:$16 sps:$4 sm:$0xff]  }
 0x2c1   :  { %13307 = vst [vmem:[#allocation53_spill] sm:$0xff] %v11227_v37  ;;  %13310 = vst [vmem:[#allocation56_spill] sm:$0xff] %v11246_v38 }
 0x2c3   :  { %2908 = vmatpush1.bf16.msra.mxu0 %v11203_v59  ;;  %2949 = vmatpush1.bf16.msra.mxu1 %v11208_v61  ;;  %v11232_v59 = vld [vmem:[%s12992_s2 + $0x168] ss:$16 sps:$4 sm:$0xff]   ;;  %v11241_v61 = vld [vmem:[%s12992_s2 + $0x184] ss:$16 sps:$4 sm:$0xff]  }
 0x2c4   :  { %13308 = vst [vmem:[#allocation54_spill] sm:$0xff] %v11232_v59  ;;  %2909 = vmatprep.subr.bf16.mxu0 %v11217_v4  ;;  %2950 = vmatprep.subr.bf16.mxu1 %v11222_v60  ;;  %13309 = vst [vmem:[#allocation55_spill] sm:$0xff] %v11241_v61  ;;  %v11251_v4 = vld [vmem:[%s12992_s2 + $0x180] ss:$16 sps:$4 sm:$0xff]  }
 0x2c5   :  { %13311 = vst [vmem:[#allocation57_spill] sm:$0xff] %v11251_v4  ;;  %v11270_v60 = vld [vmem:[%s12992_s2 + $0x1a0] ss:$16 sps:$4 sm:$0xff]  }
 0x2c6   :  { %13314 = vst [vmem:[#allocation60_spill] sm:$0xff] %v11270_v60 }
 0x2c7   :  { %2910 = vmatpush1.bf16.msra.mxu0 %v11227_v37  ;;  %2951 = vmatpush1.bf16.msra.mxu1 %v11232_v59  ;;  %v11256_v37 = vld [vmem:[%s12992_s2 + $0x188] ss:$16 sps:$4 sm:$0xff]   ;;  %v11263_v59 = vld [vmem:[%s12992_s2 + $0x1a4] ss:$16 sps:$4 sm:$0xff]  }
 0x2c8   :  { %13312 = vst [vmem:[#allocation58_spill] sm:$0xff] %v11256_v37  ;;  %2911 = vmatprep.subr.bf16.mxu0 %v11241_v61  ;;  %2952 = vmatprep.subr.bf16.mxu1 %v11246_v38  ;;  %13313 = vst [vmem:[#allocation59_spill] sm:$0xff] %v11263_v59  ;;  %v11275_v61 = vld [vmem:[%s12992_s2 + $0x1a8] ss:$16 sps:$4 sm:$0xff]   ;;  %v11280_v38 = vld [vmem:[%s12992_s2 + $0x1ac] ss:$16 sps:$4 sm:$0xff]  }
 0x2c9   :  { %13315 = vst [vmem:[#allocation61_spill] sm:$0xff] %v11275_v61  ;;  %13316 = vst [vmem:[#allocation62_spill] sm:$0xff] %v11280_v38 }
 0x2cb   :  { %2912 = vmatpush1.bf16.msra.mxu0 %v11251_v4  ;;  %2953 = vmatpush1.bf16.msra.mxu1 %v11256_v37  ;;  %v11286_v37 = vld [vmem:[%s12992_s2 + $0x1c4] ss:$16 sps:$4 sm:$0xff]   ;;  %v11291_v4 = vld [vmem:[%s12992_s2 + $0x1cc] ss:$16 sps:$4 sm:$0xff]  }
 0x2cc   :  { %2913 = vmatprep.subr.bf16.mxu0 %v11263_v59  ;;  %13317 = vst [vmem:[#allocation63_spill] sm:$0xff] %v11286_v37  ;;  %13318 = vst [vmem:[#allocation64_spill] sm:$0xff] %v11291_v4  ;;  %2954 = vmatprep.subr.bf16.mxu1 %v11280_v38  ;;  %v11299_v59 = vld [vmem:[%s12992_s2 + $0x1c0] ss:$16 sps:$4 sm:$0xff]  }
 0x2cd   :  { %13319 = vst [vmem:[#allocation65_spill] sm:$0xff] %v11299_v59 }
 0x2cf   :  { %2914 = vmatpush1.bf16.msra.mxu0 %v11270_v60  ;;  %2955 = vmatpush1.bf16.msra.mxu1 %v11275_v61  ;;  %v11311_v60 = vld [vmem:[%s12992_s2 + $0x1e4] ss:$16 sps:$4 sm:$0xff]   ;;  %v11316_v61 = vld [vmem:[%s12992_s2 + $0x1ec] ss:$16 sps:$4 sm:$0xff]  }
 0x2d0   :  { %2915 = vmatprep.subr.bf16.mxu0 %v11286_v37  ;;  %2956 = vmatprep.subr.bf16.mxu1 %v11291_v4  ;;  %13321 = vst [vmem:[#allocation67_spill] sm:$0xff] %v11311_v60  ;;  %13322 = vst [vmem:[#allocation68_spill] sm:$0xff] %v11316_v61  ;;  %v11323_v37 = vld [vmem:[%s12992_s2 + $0x1e0] ss:$16 sps:$4 sm:$0xff]   ;;  %v11328_v4 = vld [vmem:[%s12992_s2 + $0x1e8] ss:$16 sps:$4 sm:$0xff]  }
 0x2d1   :  { %13323 = vst [vmem:[#allocation69_spill] sm:$0xff] %v11323_v37  ;;  %13324 = vst [vmem:[#allocation70_spill] sm:$0xff] %v11328_v4 }
 0x2d3   :  { %2916 = vmatpush1.bf16.msra.mxu0 %v11299_v59  ;;  %2957 = vmatpush1.bf16.msra.mxu1 %v11304_v58  ;;  %v1550_v58 = vld [vmem:[%s12993_s3] sm:$0xf] }
 0x2d4   :  { %2917 = vmatprep.subr.bf16.mxu0 %v11311_v60  ;;  %2958 = vmatprep.subr.bf16.mxu1 %v11316_v61  ;;  %v1555_v59 = vrot.slane %v1550_v58, %v10730_v3  ;;  %v1559_v38 = vrot.slane %v1550_v58, %v10736_v5  ;;  %v1567_v51 = vrot.slane %v1550_v58, %v10741_v10 }
 0x2d5   :  { %v1563_v3 = vrot.slane %v1550_v58, %v10745_v19 }
 0x2d7   :  { %2918 = vmatpush1.bf16.msra.mxu0 %v11323_v37  ;;  %2959 = vmatpush1.bf16.msra.mxu1 %v11328_v4 }
 0x2d8   :  { %3221 = vmatprep.subr.bf16.mxu0 %v10720_v63  ;;  %3262 = vmatprep.subr.bf16.mxu1 %v10725_v0 }
 0x34d   :  { %v1926_v57 = vpop.f32.mrb[12].mxu0  ;;  %v1967_v60 = vpop.f32.mrb[12].mxu1 }
 0x34e   :  { %v1927_v56 = vadd.f32 %v1926_v57, %v1555_v59  ;;  %v1928_v61 = vpop.f32.mrb[13].mxu0  ;;  %v1969_v55 = vpop.f32.mrb[13].mxu1  ;;  %v1968_v49 = vadd.f32 %v1967_v60, %v1563_v3 }
 0x34f   :  { %v1929_v37 = vadd.f32 %v1928_v61, %v1559_v38  ;;  %v1930_v54 = vpop.f32.mrb[14].mxu0  ;;  %v1971_v4 = vpop.f32.mrb[14].mxu1  ;;  %v1970_v50 = vadd.f32 %v1969_v55, %v1567_v51 }
 0x350   :  { %v8266_v53 = vmul.f32 -1.442695, %v1927_v56  ;;  %v1931_v63 = vpop.f32.mrb[15].mxu0  ;;  %v1972_v52 = vpop.f32.mrb[15].mxu1 }
 0x351   :  { %v8267_v0 = vmul.f32 -1.442695, %v1929_v37  ;;  %v8268_v5 = vmul.f32 -1.442695, %v1970_v50 }
 0x352   :  { %9611 = vpow2.f32 %v8266_v53  ;;  %v1974_v53 = vld [vmem:[#allocation4] sm:$0x3] }
 0x353   :  { %9613 = vpow2.f32 %v8267_v0 }
 0x354   :  { %9615 = vpow2.f32 %v8268_v5 }
 0x355   :  { %9617 = vtanh.f32 %v1968_v49 }
 0x35c   :  { %v9612_v48 = vpop.eup %9611 }
 0x35d   :  { %v9614_v57 = vpop.eup %9613  ;;  %v1978_v59 = vadd.f32 1.0, %v9612_v48 }
 0x35e   :  { %v1984_v54 = vadd.f32 1.0, %v9614_v57  ;;  %v9616_v56 = vpop.eup %9615 }
 0x35f   :  { %9619 = vrcp.f32 %v1978_v59  ;;  %v9618_v52 = vpop.eup %9617  ;;  %v1991_v38 = vadd.f32 1.0, %v9616_v56 }
 0x360   :  { %9621 = vrcp.f32 %v1984_v54 }
 0x361   :  { %9623 = vrcp.f32 %v1991_v38 }
 0x369   :  { %v9620_v61 = vpop.eup %9619 }
 0x36a   :  { %v9622_v4 = vpop.eup %9621  ;;  %v1995_v37 = vmul.f32 %v9620_v61, %v9618_v52  ;;  %v8271_v61 = vld [vmem:[%s12990_s0 + $0x2] ss:$8 sm:$0xf] }
 0x36b   :  { %v1994_v51 = vmul.f32 %v9622_v4, %v1974_v53  ;;  %v8272_v4 = vld [vmem:[%s12990_s0 + $0x22] ss:$8 sm:$0xf] }
 0x36d   :  { %v1996_v55 = vadd.f32 %v1995_v37, %v1994_v51  ;;  %v2260_v58 = vpop.f32.mrb[16].mxu0  ;;  %v2301_v50 = vpop.f32.mrb[16].mxu1 }
 0x36e   :  { %v2262_v3 = vpop.f32.mrb[17].mxu0  ;;  %v2303_v60 = vpop.f32.mrb[17].mxu1 }
 0x36f   :  { %9625 = vtanh.f32 %v1996_v55  ;;  %1999 = vst [vmem:[#allocation4] sm:$0x3] %v1996_v55  ;;  %v2312_v5 = vcombine.low %v2260_v58, %v2262_v3  ;;  %v2313_v48 = vcombine.low %v2301_v50, %v2303_v60  ;;  %v2264_v49 = vpop.f32.mrb[18].mxu0  ;;  %v2305_v63 = vpop.f32.mrb[18].mxu1 }
 0x370   :  { %v2265_v0 = vpop.f32.mrb[19].mxu0  ;;  %v2306_v57 = vpop.f32.mrb[19].mxu1 }
 0x371   :  { %v2320_v59 = vrot.slane %v2312_v5, %v10543_v2  ;;  %v2327_v54 = vrot.slane %v2313_v48, %v10543_v2  ;;  %v9624_v55 = vpop.eup %9623 }
 0x373   :  { %v2328_v56 = vcombine.low %v2320_v59, %v2327_v54  ;;  %v2329_v52 = vcombine.high %v2320_v59, %v2327_v54 }
 0x375   :  { %v2336_v37 = vrot.slane %v2328_v56, %v10543_v2  ;;  %v2343_v53 = vrot.slane %v2329_v52, %v10543_v2 }
 0x377   :  { %v2346_v38 = vadd.f32 %v8271_v61, %v2336_v37  ;;  %v2347_v51 = vadd.f32 %v8272_v4, %v2343_v53 }
 0x379   :  { %v9626_v58 = vpop.eup %9625  ;;  %v8305_v50 = vmul.f32 -1.442695, %v2346_v38  ;;  %v8306_v3 = vmul.f32 -1.442695, %v2347_v51  ;;  %v2363_v60 = vrot.slane %v2346_v38, 1  ;;  %v2364_v5 = vrot.slane %v2347_v51, 1 }
 0x37a   :  { %v1998_v48 = vmul.f32 %v9626_v58, %v9624_v55  ;;  %v2385_v59 = vrot.slane %v2346_v38, 3  ;;  %v2386_v54 = vrot.slane %v2347_v51, 3  ;;  %v2379_v56 = vrot.slane %v2346_v38, 2 }
 0x37b   :  { %9627 = vpow2.f32 %v8305_v50  ;;  %v8307_v49 = vmul.f32 -1.442695, %v2363_v60  ;;  %v8308_v63 = vmul.f32 -1.442695, %v2364_v5  ;;  %v2380_v52 = vrot.slane %v2347_v51, 2 }
 0x37c   :  { %2000 = vst [vmem:[#allocation2 + $0x2] sm:$0x3] %v1998_v48  ;;  %v2008_v0 = vrot.slane %v1998_v48, %v10543_v2  ;;  %9629 = vpow2.f32 %v8306_v3  ;;  %v8309_v61 = vmul.f32 -1.442695, %v2385_v59  ;;  %v8310_v4 = vmul.f32 -1.442695, %v2386_v54 }
 0x37d   :  { %9631 = vpow2.f32 %v8307_v49  ;;  %v8311_v38 = vld.sshfl [vmem:[#allocation3] sm:$0x11 pattern:$0x75316420] }
 0x37e   :  { %v2009_v57 = vcombine.high %v2008_v0, %v2008_v0  ;;  %8269 = vst.sshfl [vmem:[%s12996_s6 + $0x1] sm:$0x1 pattern:$0x73625140] %v2008_v0  ;;  %9633 = vpow2.f32 %v8308_v63  ;;  %v2409_v63 = vcombine.high %v8311_v38, %v8311_v38 }
 0x37f   :  { %9635 = vtanh.f32 %v2379_v56  ;;  %v2416_v56 = vrot.slane %v8311_v38, %v10543_v2 }
 0x380   :  { %8270 = vst.sshfl [vmem:[%s12996_s6 + $0x9] sm:$0x1 pattern:$0x73625140] %v2009_v57  ;;  %9637 = vtanh.f32 %v2380_v52 }
 0x381   :  { %9639 = vpow2.f32 %v8309_v61 }
 0x382   :  { %9641 = vpow2.f32 %v8310_v4  ;;  %v2423_v4 = vrot.slane %v2409_v63, %v10543_v2 }
 0x385   :  { %v9628_v37 = vpop.eup %9627 }
 0x386   :  { %v9630_v53 = vpop.eup %9629  ;;  %v2355_v55 = vadd.f32 1.0, %v9628_v37 }
 0x387   :  { %v9632_v58 = vpop.eup %9631  ;;  %v2356_v50 = vadd.f32 1.0, %v9630_v53 }
 0x388   :  { %v9634_v3 = vpop.eup %9633  ;;  %9643 = vrcp.f32 %v2355_v55  ;;  %v2373_v60 = vadd.f32 1.0, %v9632_v58 }
 0x389   :  { %9645 = vrcp.f32 %v2356_v50  ;;  %v2374_v5 = vadd.f32 1.0, %v9634_v3  ;;  %v9636_v51 = vpop.eup %9635 }
 0x38a   :  { %9647 = vrcp.f32 %v2373_v60  ;;  %v9638_v48 = vpop.eup %9637 }
 0x38b   :  { %9649 = vrcp.f32 %v2374_v5  ;;  %v9640_v49 = vpop.eup %9639 }
 0x38c   :  { %v9642_v0 = vpop.eup %9641  ;;  %v2395_v54 = vadd.f32 1.0, %v9640_v49 }
 0x38d   :  { %v2396_v61 = vadd.f32 1.0, %v9642_v0 }
 0x38e   :  { %9651 = vrcp.f32 %v2395_v54  ;;  %v13364_v54 = vld [vmem:[#allocation54_spill] sm:$0xff] }
 0x38f   :  { %9653 = vrcp.f32 %v2396_v61  ;;  %v13366_v61 = vld [vmem:[#allocation56_spill] sm:$0xff] }
 0x392   :  { %v9644_v57 = vpop.eup %9643 }
 0x393   :  { %v9646_v59 = vpop.eup %9645  ;;  %v2428_v55 = vmul.f32 %v9644_v57, %v9636_v51 }
 0x394   :  { %v9648_v52 = vpop.eup %9647  ;;  %v2429_v50 = vmul.f32 %v9646_v59, %v9638_v48 }
 0x395   :  { %v9650_v37 = vpop.eup %9649  ;;  %v2426_v53 = vmul.f32 %v9648_v52, %v2416_v56  ;;  %v13365_v52 = vld [vmem:[#allocation55_spill] sm:$0xff] }
 0x396   :  { %v2427_v58 = vmul.f32 %v9650_v37, %v2423_v4  ;;  %v13367_v4 = vld [vmem:[#allocation57_spill] sm:$0xff]  ;;  %v13368_v37 = vld [vmem:[#allocation58_spill] sm:$0xff] }
 0x397   :  { %v2430_v3 = vadd.f32 %v2428_v55, %v2426_v53  ;;  %v13369_v53 = vld [vmem:[#allocation59_spill] sm:$0xff]  ;;  %v13370_v55 = vld [vmem:[#allocation62_spill] sm:$0xff] }
 0x398   :  { %v2431_v60 = vadd.f32 %v2429_v50, %v2427_v58  ;;  %v9652_v38 = vpop.eup %9651  ;;  %v13371_v58 = vld [vmem:[#allocation60_spill] sm:$0xff]  ;;  %v13372_v50 = vld [vmem:[#allocation61_spill] sm:$0xff] }
 0x399   :  { %9655 = vtanh.f32 %v2430_v3  ;;  %v9654_v19 = vpop.eup %9653 }
 0x39a   :  { %9657 = vtanh.f32 %v2431_v60  ;;  %v2438_v5 = vcombine.low %v2430_v3, %v2431_v60  ;;  %v13373_v3 = vld [vmem:[#allocation63_spill] sm:$0xff]  ;;  %v13374_v60 = vld [vmem:[#allocation64_spill] sm:$0xff] }
 0x39c   :  { %v2445_v49 = vrot.slane %v2438_v5, %v10543_v2  ;;  %v13375_v5 = vld [vmem:[#allocation65_spill] sm:$0xff] }
 0x39e   :  { %8312 = vst.sshfl [vmem:[#allocation3] sm:$0x5 pattern:$0x73625140] %v2445_v49  ;;  %v13376_v49 = vld [vmem:[#allocation66_spill] sm:$0xff] }
 0x3a3   :  { %v9656_v0 = vpop.eup %9655 }
 0x3a4   :  { %v9658_v10 = vpop.eup %9657  ;;  %v2434_v63 = vmul.f32 %v9656_v0, %v9652_v38  ;;  %v13377_v38 = vld [vmem:[#allocation67_spill] sm:$0xff]  ;;  %v13378_v0 = vld [vmem:[#allocation68_spill] sm:$0xff] }
 0x3a5   :  { %v2435_v47 = vmul.f32 %v9658_v10, %v9654_v19 }
 0x3a7   :  { %v2457_v56 = vcombine.low %v2434_v63, %v2435_v47  ;;  %v13363_v47 = vld [vmem:[#allocation53_spill] sm:$0xff] }
 0x3a8   :  { %v13379_v63 = vld [vmem:[#allocation69_spill] sm:$0xff] }
 0x3a9   :  { %8313 = vst.sshfl [vmem:[#allocation2] sm:$0x11 pattern:$0x75316420] %v2457_v56  ;;  %v13380_v56 = vld [vmem:[#allocation70_spill] sm:$0xff] }
 0x3b0   :  { %v8314_v51 = vld.sshfl [vmem:[#allocation2] sm:$0x33 pattern:$0x76325410] }
 0x3b1   :  { %v2476_v48 = vcombine.high %v8314_v51, %v8314_v51  ;;  %v2479_v59 = vpack.c.bf16 %v8314_v51, %v8314_v51  ;;  %v3027_v10 = vld [vmem:[#allocation2] sm:$0x3]  ;;  %v11462_v51 = vld [vmem:[%s12991_s1 + $0x4] ss:$16 sps:$4 sm:$0xff]  }
 0x3b2   :  { %v3028_v19 = vpack.c.bf16 %v3027_v10, %v3027_v10 }
 0x3b3   :  { %v2480_v57 = vpack.c.bf16 %v2476_v48, %v2476_v48  ;;  %v11467_v48 = vld [vmem:[%s12991_s1 + $0xc] ss:$16 sps:$4 sm:$0xff]  }
 0x3b5   :  { %2919 = vmatprep.mubr.bf16.mxu0 %v2480_v57  ;;  %2960 = vmatprep.mubr.bf16.mxu1 %v2480_v57  ;;  %v2545_v57 = vld [vmem:[%s12993_s3] sm:$0xf] }
 0x3b6   :  { %2920 = vmatmul.mubr.bf16.vlgmr.msra.gmra.mrb[20].mxu0 %v2479_v59  ;;  %2961 = vmatmul.mubr.bf16.vlgmr.msra.gmra.mrb[20].mxu1 %v2479_v59  ;;  %v13381_v59 = vld [vmem:[#allocation11_spill] sm:$0xff] }
 0x3b7   :  { %3222 = vmatpush1.bf16.msra.mxu0 %v10771_v62  ;;  %3263 = vmatpush1.bf16.msra.mxu1 %v10776_v1  ;;  %v13325_v62 = vld [vmem:[#allocation15_spill] sm:$0xff]  ;;  %v13326_v1 = vld [vmem:[#allocation16_spill] sm:$0xff]  ;;  %v2550_v10 = vrot.slane %v2545_v57, %v13381_v59 }
 0x3b8   :  { %3223 = vmatprep.subr.bf16.mxu0 %v10781_v6  ;;  %3264 = vmatprep.subr.bf16.mxu1 %v10786_v7  ;;  %v13327_v6 = vld [vmem:[#allocation17_spill] sm:$0xff]  ;;  %v13328_v7 = vld [vmem:[#allocation18_spill] sm:$0xff] }
 0x3b9   :  { %3253 = vmatprep.mubr.bf16.mxu0 %v13238_v15  ;;  %3294 = vmatprep.mubr.bf16.mxu1 %v13238_v15 }
 0x3bb   :  { %3224 = vmatpush1.bf16.msra.mxu0 %v10793_v8  ;;  %3265 = vmatpush1.bf16.msra.mxu1 %v10798_v9  ;;  %v13329_v8 = vld [vmem:[#allocation19_spill] sm:$0xff]  ;;  %v13330_v9 = vld [vmem:[#allocation20_spill] sm:$0xff] }
 0x3bc   :  { %3225 = vmatprep.subr.bf16.mxu0 %v10805_v11  ;;  %3266 = vmatprep.subr.bf16.mxu1 %v10810_v12  ;;  %v13331_v11 = vld [vmem:[#allocation21_spill] sm:$0xff]  ;;  %v13332_v12 = vld [vmem:[#allocation22_spill] sm:$0xff] }
 0x3bf   :  { %3226 = vmatpush1.bf16.msra.mxu0 %v10819_v26  ;;  %3267 = vmatpush1.bf16.msra.mxu1 %v10824_v23  ;;  %v13333_v26 = vld [vmem:[#allocation23_spill] sm:$0xff]  ;;  %v13334_v23 = vld [vmem:[#allocation24_spill] sm:$0xff] }
 0x3c0   :  { %3227 = vmatprep.subr.bf16.mxu0 %v10831_v24  ;;  %3268 = vmatprep.subr.bf16.mxu1 %v10836_v25  ;;  %v13335_v24 = vld [vmem:[#allocation25_spill] sm:$0xff]  ;;  %v13336_v25 = vld [vmem:[#allocation26_spill] sm:$0xff] }
 0x3c3   :  { %3228 = vmatpush1.bf16.msra.mxu0 %v10843_v27  ;;  %3269 = vmatpush1.bf16.msra.mxu1 %v10848_v35  ;;  %v13337_v27 = vld [vmem:[#allocation27_spill] sm:$0xff]  ;;  %v13338_v35 = vld [vmem:[#allocation28_spill] sm:$0xff] }
 0x3c4   :  { %3229 = vmatprep.subr.bf16.mxu0 %v10855_v21  ;;  %3270 = vmatprep.subr.bf16.mxu1 %v10860_v28  ;;  %v13339_v21 = vld [vmem:[#allocation29_spill] sm:$0xff]  ;;  %v13340_v28 = vld [vmem:[#allocation30_spill] sm:$0xff] }
 0x3c7   :  { %3230 = vmatpush1.bf16.msra.mxu0 %v10867_v33  ;;  %3271 = vmatpush1.bf16.msra.mxu1 %v10872_v22  ;;  %v13341_v33 = vld [vmem:[#allocation31_spill] sm:$0xff]  ;;  %v13342_v22 = vld [vmem:[#allocation32_spill] sm:$0xff] }
 0x3c8   :  { %3231 = vmatprep.subr.bf16.mxu0 %v10879_v36  ;;  %3272 = vmatprep.subr.bf16.mxu1 %v10884_v32  ;;  %v13343_v36 = vld [vmem:[#allocation33_spill] sm:$0xff]  ;;  %v13344_v32 = vld [vmem:[#allocation34_spill] sm:$0xff] }
 0x3cb   :  { %3232 = vmatpush1.bf16.msra.mxu0 %v10891_v18  ;;  %3273 = vmatpush1.bf16.msra.mxu1 %v10896_v16  ;;  %v13345_v18 = vld [vmem:[#allocation35_spill] sm:$0xff]  ;;  %v13346_v16 = vld [vmem:[#allocation36_spill] sm:$0xff] }
 0x3cc   :  { %3233 = vmatprep.subr.bf16.mxu0 %v10903_v17  ;;  %3274 = vmatprep.subr.bf16.mxu1 %v10908_v13  ;;  %v13347_v17 = vld [vmem:[#allocation37_spill] sm:$0xff]  ;;  %v13348_v13 = vld [vmem:[#allocation38_spill] sm:$0xff] }
 0x3cf   :  { %3234 = vmatpush1.bf16.msra.mxu0 %v10915_v14  ;;  %3275 = vmatpush1.bf16.msra.mxu1 %v10920_v31  ;;  %v13349_v14 = vld [vmem:[#allocation39_spill] sm:$0xff]  ;;  %v13350_v31 = vld [vmem:[#allocation40_spill] sm:$0xff] }
 0x3d0   :  { %3235 = vmatprep.subr.bf16.mxu0 %v10927_v30  ;;  %3276 = vmatprep.subr.bf16.mxu1 %v10932_v29  ;;  %v13351_v30 = vld [vmem:[#allocation41_spill] sm:$0xff]  ;;  %v13352_v29 = vld [vmem:[#allocation42_spill] sm:$0xff] }
 0x3d3   :  { %3236 = vmatpush1.bf16.msra.mxu0 %v10939_v20  ;;  %3277 = vmatpush1.bf16.msra.mxu1 %v10944_v34  ;;  %v13353_v20 = vld [vmem:[#allocation43_spill] sm:$0xff]  ;;  %v13354_v34 = vld [vmem:[#allocation44_spill] sm:$0xff] }
 0x3d4   :  { %3882 = vmatprep.subr.bf16.mxu0 %v10953_v39  ;;  %3923 = vmatprep.subr.bf16.mxu1 %v10958_v40  ;;  %v13355_v39 = vld [vmem:[#allocation45_spill] sm:$0xff]  ;;  %v13356_v40 = vld [vmem:[#allocation46_spill] sm:$0xff] }
 0x3d6   :  { %3254 = vmatmul.mubr.bf16.vlgmr.msra.gmra.mrb[24].mxu0 %v3028_v19  ;;  %3295 = vmatmul.mubr.bf16.vlgmr.msra.gmra.mrb[24].mxu1 %v3028_v19  ;;  %v13382_v19 = vld [vmem:[#allocation12_spill] sm:$0xff] }
 0x3d7   :  { %3883 = vmatpush1.bf16.msra.mxu0 %v10963_v41  ;;  %3924 = vmatpush1.bf16.msra.mxu1 %v10968_v42  ;;  %v13357_v41 = vld [vmem:[#allocation47_spill] sm:$0xff]  ;;  %v13358_v42 = vld [vmem:[#allocation48_spill] sm:$0xff] }
 0x3d8   :  { %3884 = vmatprep.subr.bf16.mxu0 %v10977_v43  ;;  %3925 = vmatprep.subr.bf16.mxu1 %v10982_v44  ;;  %v13359_v43 = vld [vmem:[#allocation49_spill] sm:$0xff]  ;;  %v13360_v44 = vld [vmem:[#allocation50_spill] sm:$0xff] }
 0x3db   :  { %3885 = vmatpush1.bf16.msra.mxu0 %v10987_v45  ;;  %3926 = vmatpush1.bf16.msra.mxu1 %v10992_v46  ;;  %v13361_v45 = vld [vmem:[#allocation51_spill] sm:$0xff]  ;;  %v13362_v46 = vld [vmem:[#allocation52_spill] sm:$0xff] }
 0x3dc   :  { %3886 = vmatprep.subr.bf16.mxu0 %v13325_v62  ;;  %3927 = vmatprep.subr.bf16.mxu1 %v13326_v1  ;;  %v2554_v62 = vrot.slane %v2545_v57, %v13382_v19 }
 0x3df   :  { %3887 = vmatpush1.bf16.msra.mxu0 %v13327_v6  ;;  %3928 = vmatpush1.bf16.msra.mxu1 %v13328_v7 }
 0x3e0   :  { %3888 = vmatprep.subr.bf16.mxu0 %v13329_v8  ;;  %3929 = vmatprep.subr.bf16.mxu1 %v13330_v9 }
 0x3e3   :  { %3889 = vmatpush1.bf16.msra.mxu0 %v13331_v11  ;;  %3930 = vmatpush1.bf16.msra.mxu1 %v13332_v12 }
 0x3e4   :  { %3890 = vmatprep.subr.bf16.mxu0 %v13333_v26  ;;  %3931 = vmatprep.subr.bf16.mxu1 %v13334_v23 }
 0x3e7   :  { %3891 = vmatpush1.bf16.msra.mxu0 %v13335_v24  ;;  %3932 = vmatpush1.bf16.msra.mxu1 %v13336_v25 }
 0x3e8   :  { %3892 = vmatprep.subr.bf16.mxu0 %v13337_v27  ;;  %3933 = vmatprep.subr.bf16.mxu1 %v13338_v35  ;;  %v13383_v35 = vld [vmem:[#allocation13_spill] sm:$0xff] }
 0x3eb   :  { %3893 = vmatpush1.bf16.msra.mxu0 %v13339_v21  ;;  %3934 = vmatpush1.bf16.msra.mxu1 %v13340_v28  ;;  %v2562_v21 = vrot.slane %v2545_v57, %v13383_v35 }
 0x3ec   :  { %3894 = vmatprep.subr.bf16.mxu0 %v13341_v33  ;;  %3935 = vmatprep.subr.bf16.mxu1 %v13342_v22  ;;  %v13384_v33 = vld [vmem:[#allocation14_spill] sm:$0xff] }
 0x3ed   :  { %v2558_v22 = vrot.slane %v2545_v57, %v13384_v33 }
 0x3ef   :  { %3895 = vmatpush1.bf16.msra.mxu0 %v13343_v36  ;;  %3936 = vmatpush1.bf16.msra.mxu1 %v13344_v32 }
 0x3f0   :  { %3896 = vmatprep.subr.bf16.mxu0 %v13345_v18  ;;  %3937 = vmatprep.subr.bf16.mxu1 %v13346_v16 }
 0x3f3   :  { %3897 = vmatpush1.bf16.msra.mxu0 %v13347_v17  ;;  %3938 = vmatpush1.bf16.msra.mxu1 %v13348_v13 }
 0x3f4   :  { %3898 = vmatprep.subr.bf16.mxu0 %v13349_v14  ;;  %3939 = vmatprep.subr.bf16.mxu1 %v13350_v31 }
 0x3f7   :  { %3899 = vmatpush1.bf16.msra.mxu0 %v13351_v30  ;;  %3940 = vmatpush1.bf16.msra.mxu1 %v13352_v29 }
 0x3f8   :  { %3900 = vmatprep.subr.bf16.mxu0 %v13353_v20  ;;  %3941 = vmatprep.subr.bf16.mxu1 %v13354_v34  ;;  %v2969_v34 = vld [vmem:[#allocation4] sm:$0x3] }
 0x3fb   :  { %3901 = vmatpush1.bf16.msra.mxu0 %v13355_v39  ;;  %3942 = vmatpush1.bf16.msra.mxu1 %v13356_v40 }
 0x3fc   :  { %3902 = vmatprep.subr.bf16.mxu0 %v13357_v41  ;;  %3943 = vmatprep.subr.bf16.mxu1 %v13358_v42 }
 0x3ff   :  { %3903 = vmatpush1.bf16.msra.mxu0 %v13359_v43  ;;  %3944 = vmatpush1.bf16.msra.mxu1 %v13360_v44 }
 0x400   :  { %3904 = vmatprep.subr.bf16.mxu0 %v13361_v45  ;;  %3945 = vmatprep.subr.bf16.mxu1 %v13362_v46 }
 0x403   :  { %3905 = vmatpush1.bf16.msra.mxu0 %v13363_v47  ;;  %3946 = vmatpush1.bf16.msra.mxu1 %v13364_v54 }
 0x404   :  { %3906 = vmatprep.subr.bf16.mxu0 %v13365_v52  ;;  %3947 = vmatprep.subr.bf16.mxu1 %v13366_v61 }
 0x407   :  { %3907 = vmatpush1.bf16.msra.mxu0 %v13367_v4  ;;  %3948 = vmatpush1.bf16.msra.mxu1 %v13368_v37 }
 0x408   :  { %3908 = vmatprep.subr.bf16.mxu0 %v13369_v53  ;;  %3949 = vmatprep.subr.bf16.mxu1 %v13370_v55 }
 0x40b   :  { %3909 = vmatpush1.bf16.msra.mxu0 %v13371_v58  ;;  %3950 = vmatpush1.bf16.msra.mxu1 %v13372_v50  ;;  %v8384_v50 = vld [vmem:[%s12990_s0 + $0x3] ss:$8 sm:$0xf] }
 0x40c   :  { %3910 = vmatprep.subr.bf16.mxu0 %v13373_v3  ;;  %3951 = vmatprep.subr.bf16.mxu1 %v13374_v60  ;;  %v8385_v3 = vld [vmem:[%s12990_s0 + $0x23] ss:$8 sm:$0xf] }
 0x40f   :  { %3911 = vmatpush1.bf16.msra.mxu0 %v13375_v5  ;;  %3952 = vmatpush1.bf16.msra.mxu1 %v13376_v49 }
 0x410   :  { %3912 = vmatprep.subr.bf16.mxu0 %v13377_v38  ;;  %3953 = vmatprep.subr.bf16.mxu1 %v13378_v0 }
 0x413   :  { %3913 = vmatpush1.bf16.msra.mxu0 %v13379_v63  ;;  %3954 = vmatpush1.bf16.msra.mxu1 %v13380_v56 }
 0x414   :  { %4216 = vmatprep.subr.bf16.mxu0 %v11462_v51  ;;  %4257 = vmatprep.subr.bf16.mxu1 %v11467_v48 }
 0x489   :  { %v2921_v1 = vpop.f32.mrb[20].mxu0  ;;  %v2962_v6 = vpop.f32.mrb[20].mxu1 }
 0x48a   :  { %v2922_v7 = vadd.f32 %v2921_v1, %v2550_v10  ;;  %v2923_v8 = vpop.f32.mrb[21].mxu0  ;;  %v2964_v9 = vpop.f32.mrb[21].mxu1  ;;  %v2963_v32 = vadd.f32 %v2962_v6, %v2558_v22 }
 0x48b   :  { %v2924_v11 = vadd.f32 %v2923_v8, %v2554_v62  ;;  %v2925_v12 = vpop.f32.mrb[22].mxu0  ;;  %v2966_v26 = vpop.f32.mrb[22].mxu1  ;;  %v2965_v28 = vadd.f32 %v2964_v9, %v2562_v21 }
 0x48c   :  { %v8379_v23 = vmul.f32 -1.442695, %v2922_v7  ;;  %v2926_v24 = vpop.f32.mrb[23].mxu0  ;;  %v2967_v25 = vpop.f32.mrb[23].mxu1 }
 0x48d   :  { %v8380_v27 = vmul.f32 -1.442695, %v2924_v11  ;;  %v8381_v36 = vmul.f32 -1.442695, %v2965_v28 }
 0x48e   :  { %9659 = vpow2.f32 %v8379_v23 }
 0x48f   :  { %9661 = vpow2.f32 %v8380_v27 }
 0x490   :  { %9663 = vpow2.f32 %v8381_v36 }
 0x491   :  { %9665 = vtanh.f32 %v2963_v32 }
 0x498   :  { %v9660_v18 = vpop.eup %9659 }
 0x499   :  { %v9662_v16 = vpop.eup %9661  ;;  %v2973_v17 = vadd.f32 1.0, %v9660_v18 }
 0x49a   :  { %v2979_v13 = vadd.f32 1.0, %v9662_v16  ;;  %v9664_v14 = vpop.eup %9663 }
 0x49b   :  { %9667 = vrcp.f32 %v2973_v17  ;;  %v9666_v31 = vpop.eup %9665  ;;  %v2986_v39 = vadd.f32 1.0, %v9664_v14  ;;  %v8424_v17 = vld.sshfl [vmem:[#allocation3] sm:$0x11 pattern:$0x75316420] }
 0x49c   :  { %9669 = vrcp.f32 %v2979_v13 }
 0x49d   :  { %9671 = vrcp.f32 %v2986_v39 }
 0x4a5   :  { %v9668_v30 = vpop.eup %9667 }
 0x4a6   :  { %v9670_v29 = vpop.eup %9669  ;;  %v2990_v20 = vmul.f32 %v9668_v30, %v9666_v31  ;;  %v3404_v30 = vcombine.high %v8424_v17, %v8424_v17 }
 0x4a7   :  { %v2989_v40 = vmul.f32 %v9670_v29, %v2969_v34  ;;  %v9672_v0 = vpop.eup %9671 }
 0x4a9   :  { %v2991_v41 = vadd.f32 %v2990_v20, %v2989_v40  ;;  %v3255_v42 = vpop.f32.mrb[24].mxu0  ;;  %v3296_v43 = vpop.f32.mrb[24].mxu1  ;;  %v3411_v40 = vrot.slane %v8424_v17, %v10543_v2  ;;  %v11638_v17 = vld [vmem:[%s12991_s1 + $0xcc] ss:$16 sps:$4 sm:$0xff]  }
 0x4aa   :  { %v3257_v44 = vpop.f32.mrb[25].mxu0  ;;  %v3298_v45 = vpop.f32.mrb[25].mxu1 }
 0x4ab   :  { %9673 = vtanh.f32 %v2991_v41  ;;  %2994 = vst [vmem:[#allocation4] sm:$0x3] %v2991_v41  ;;  %v3307_v46 = vcombine.low %v3255_v42, %v3257_v44  ;;  %v3308_v47 = vcombine.low %v3296_v43, %v3298_v45  ;;  %v3259_v54 = vpop.f32.mrb[26].mxu0  ;;  %v3300_v52 = vpop.f32.mrb[26].mxu1  ;;  %v3418_v43 = vrot.slane %v3404_v30, %v10543_v2  ;;  %v11662_v30 = vld [vmem:[%s12991_s1 + $0xec] ss:$16 sps:$4 sm:$0xff]  }
 0x4ac   :  { %v3260_v61 = vpop.f32.mrb[27].mxu0  ;;  %v3301_v4 = vpop.f32.mrb[27].mxu1 }
 0x4ad   :  { %v3315_v37 = vrot.slane %v3307_v46, %v10543_v2  ;;  %v3322_v53 = vrot.slane %v3308_v47, %v10543_v2 }
 0x4af   :  { %v3323_v55 = vcombine.low %v3315_v37, %v3322_v53  ;;  %v3324_v58 = vcombine.high %v3315_v37, %v3322_v53 }
 0x4b1   :  { %v3331_v60 = vrot.slane %v3323_v55, %v10543_v2  ;;  %v3338_v5 = vrot.slane %v3324_v58, %v10543_v2 }
 0x4b3   :  { %v3341_v49 = vadd.f32 %v8384_v50, %v3331_v60  ;;  %v3342_v38 = vadd.f32 %v8385_v3, %v3338_v5 }
 0x4b5   :  { %v9674_v63 = vpop.eup %9673  ;;  %v8418_v56 = vmul.f32 -1.442695, %v3341_v49  ;;  %v8419_v57 = vmul.f32 -1.442695, %v3342_v38  ;;  %v3358_v10 = vrot.slane %v3341_v49, 1  ;;  %v3359_v62 = vrot.slane %v3342_v38, 1 }
 0x4b6   :  { %v2993_v1 = vmul.f32 %v9674_v63, %v9672_v0  ;;  %v3380_v11 = vrot.slane %v3341_v49, 3  ;;  %v3381_v12 = vrot.slane %v3342_v38, 3  ;;  %v3374_v26 = vrot.slane %v3341_v49, 2  ;;  %v11501_v63 = vld [vmem:[%s12991_s1] ss:$16 sps:$4 sm:$0xff]  }
 0x4b7   :  { %9675 = vpow2.f32 %v8418_v56  ;;  %v8420_v6 = vmul.f32 -1.442695, %v3358_v10  ;;  %v8421_v7 = vmul.f32 -1.442695, %v3359_v62  ;;  %v3375_v23 = vrot.slane %v3342_v38, 2 }
 0x4b8   :  { %2995 = vst [vmem:[#allocation2 + $0x2] sm:$0x3] %v2993_v1  ;;  %v3003_v8 = vrot.slane %v2993_v1, %v10543_v2  ;;  %9677 = vpow2.f32 %v8419_v57  ;;  %v8422_v24 = vmul.f32 -1.442695, %v3380_v11  ;;  %v8423_v25 = vmul.f32 -1.442695, %v3381_v12 }
 0x4b9   :  { %9679 = vpow2.f32 %v8420_v6  ;;  %v11506_v56 = vld [vmem:[%s12991_s1 + $0x8] ss:$16 sps:$4 sm:$0xff]   ;;  %v11511_v10 = vld [vmem:[%s12991_s1 + $0x24] ss:$16 sps:$4 sm:$0xff]   ;;  %v11516_v62 = vld [vmem:[%s12991_s1 + $0x2c] ss:$16 sps:$4 sm:$0xff]  }
 0x4ba   :  { %v3004_v9 = vcombine.high %v3003_v8, %v3003_v8  ;;  %8382 = vst.sshfl [vmem:[%s12996_s6 + $0x2] sm:$0x1 pattern:$0x73625140] %v3003_v8  ;;  %9681 = vpow2.f32 %v8421_v7  ;;  %v11523_v1 = vld [vmem:[%s12991_s1 + $0x20] ss:$16 sps:$4 sm:$0xff]  }
 0x4bb   :  { %9683 = vtanh.f32 %v3374_v26  ;;  %v11528_v6 = vld [vmem:[%s12991_s1 + $0x28] ss:$16 sps:$4 sm:$0xff]   ;;  %v11535_v7 = vld [vmem:[%s12991_s1 + $0x44] ss:$16 sps:$4 sm:$0xff]   ;;  %v11540_v8 = vld [vmem:[%s12991_s1 + $0x4c] ss:$16 sps:$4 sm:$0xff]  }
 0x4bc   :  { %8383 = vst.sshfl [vmem:[%s12996_s6 + $0xa] sm:$0x1 pattern:$0x73625140] %v3004_v9  ;;  %9685 = vtanh.f32 %v3375_v23  ;;  %v11549_v9 = vld [vmem:[%s12991_s1 + $0x40] ss:$16 sps:$4 sm:$0xff]  }
 0x4bd   :  { %9687 = vpow2.f32 %v8422_v24  ;;  %v11554_v11 = vld [vmem:[%s12991_s1 + $0x48] ss:$16 sps:$4 sm:$0xff]   ;;  %v11561_v12 = vld [vmem:[%s12991_s1 + $0x64] ss:$16 sps:$4 sm:$0xff]   ;;  %v11566_v26 = vld [vmem:[%s12991_s1 + $0x6c] ss:$16 sps:$4 sm:$0xff]  }
 0x4be   :  { %9689 = vpow2.f32 %v8423_v25  ;;  %v11573_v23 = vld [vmem:[%s12991_s1 + $0x60] ss:$16 sps:$4 sm:$0xff]   ;;  %v11578_v24 = vld [vmem:[%s12991_s1 + $0x68] ss:$16 sps:$4 sm:$0xff]   ;;  %v11585_v25 = vld [vmem:[%s12991_s1 + $0x84] ss:$16 sps:$4 sm:$0xff]  }
 0x4c1   :  { %v9676_v27 = vpop.eup %9675 }
 0x4c2   :  { %v9678_v21 = vpop.eup %9677  ;;  %v3350_v28 = vadd.f32 1.0, %v9676_v27  ;;  %v11590_v27 = vld [vmem:[%s12991_s1 + $0x8c] ss:$16 sps:$4 sm:$0xff]  }
 0x4c3   :  { %v9680_v22 = vpop.eup %9679  ;;  %v3351_v36 = vadd.f32 1.0, %v9678_v21  ;;  %v11597_v21 = vld [vmem:[%s12991_s1 + $0x80] ss:$16 sps:$4 sm:$0xff]  }
 0x4c4   :  { %v9682_v32 = vpop.eup %9681  ;;  %9691 = vrcp.f32 %v3350_v28  ;;  %v3368_v18 = vadd.f32 1.0, %v9680_v22  ;;  %v11602_v28 = vld [vmem:[%s12991_s1 + $0x88] ss:$16 sps:$4 sm:$0xff]   ;;  %v11609_v22 = vld [vmem:[%s12991_s1 + $0xa4] ss:$16 sps:$4 sm:$0xff]  }
 0x4c5   :  { %9693 = vrcp.f32 %v3351_v36  ;;  %v3369_v16 = vadd.f32 1.0, %v9682_v32  ;;  %v9684_v13 = vpop.eup %9683  ;;  %v11614_v36 = vld [vmem:[%s12991_s1 + $0xac] ss:$16 sps:$4 sm:$0xff]   ;;  %v11621_v32 = vld [vmem:[%s12991_s1 + $0xa0] ss:$16 sps:$4 sm:$0xff]  }
 0x4c6   :  { %9695 = vrcp.f32 %v3368_v18  ;;  %v9686_v14 = vpop.eup %9685  ;;  %v11626_v18 = vld [vmem:[%s12991_s1 + $0xa8] ss:$16 sps:$4 sm:$0xff]  }
 0x4c7   :  { %9697 = vrcp.f32 %v3369_v16  ;;  %v9688_v31 = vpop.eup %9687  ;;  %v11633_v16 = vld [vmem:[%s12991_s1 + $0xc4] ss:$16 sps:$4 sm:$0xff]  }
 0x4c8   :  { %v9690_v29 = vpop.eup %9689  ;;  %v3390_v39 = vadd.f32 1.0, %v9688_v31  ;;  %v11657_v31 = vld [vmem:[%s12991_s1 + $0xe4] ss:$16 sps:$4 sm:$0xff]  }
 0x4c9   :  { %v3391_v42 = vadd.f32 1.0, %v9690_v29  ;;  %v11669_v29 = vld [vmem:[%s12991_s1 + $0xe0] ss:$16 sps:$4 sm:$0xff]  }
 0x4ca   :  { %9699 = vrcp.f32 %v3390_v39 }
 0x4cb   :  { %9701 = vrcp.f32 %v3391_v42  ;;  %v11693_v42 = vld [vmem:[%s12992_s2] ss:$16 sps:$4 sm:$0xff]  }
 0x4ce   :  { %v9692_v20 = vpop.eup %9691 }
 0x4cf   :  { %v9694_v34 = vpop.eup %9693  ;;  %v3423_v46 = vmul.f32 %v9692_v20, %v9684_v13  ;;  %v11645_v13 = vld [vmem:[%s12991_s1 + $0xc0] ss:$16 sps:$4 sm:$0xff]   ;;  %v11674_v20 = vld [vmem:[%s12991_s1 + $0xe8] ss:$16 sps:$4 sm:$0xff]  }
 0x4d0   :  { %v9696_v41 = vpop.eup %9695  ;;  %v3424_v54 = vmul.f32 %v9694_v34, %v9686_v14  ;;  %v11650_v14 = vld [vmem:[%s12991_s1 + $0xc8] ss:$16 sps:$4 sm:$0xff]  }
 0x4d1   :  { %v9698_v44 = vpop.eup %9697  ;;  %v3421_v45 = vmul.f32 %v9696_v41, %v3411_v40  ;;  %v11683_v40 = vld [vmem:[%s12992_s2 + $0x4] ss:$16 sps:$4 sm:$0xff]   ;;  %v11688_v41 = vld [vmem:[%s12992_s2 + $0xc] ss:$16 sps:$4 sm:$0xff]  }
 0x4d2   :  { %v3422_v47 = vmul.f32 %v9698_v44, %v3418_v43  ;;  %v11698_v43 = vld [vmem:[%s12992_s2 + $0x8] ss:$16 sps:$4 sm:$0xff]   ;;  %v11707_v44 = vld [vmem:[%s12992_s2 + $0x24] ss:$16 sps:$4 sm:$0xff]  }
 0x4d3   :  { %v3425_v52 = vadd.f32 %v3423_v46, %v3421_v45  ;;  %v11712_v45 = vld [vmem:[%s12992_s2 + $0x2c] ss:$16 sps:$4 sm:$0xff]   ;;  %v11717_v46 = vld [vmem:[%s12992_s2 + $0x20] ss:$16 sps:$4 sm:$0xff]  }
 0x4d4   :  { %v3426_v61 = vadd.f32 %v3424_v54, %v3422_v47  ;;  %v9700_v53 = vpop.eup %9699  ;;  %v11722_v47 = vld [vmem:[%s12992_s2 + $0x28] ss:$16 sps:$4 sm:$0xff]   ;;  %v11731_v54 = vld [vmem:[%s12992_s2 + $0x44] ss:$16 sps:$4 sm:$0xff]  }
 0x4d5   :  { %9703 = vtanh.f32 %v3425_v52  ;;  %v9702_v55 = vpop.eup %9701  ;;  %13385 = vst [vmem:[#allocation15_spill] sm:$0xff] %v11731_v54 }
 0x4d6   :  { %9705 = vtanh.f32 %v3426_v61  ;;  %v3433_v4 = vcombine.low %v3425_v52, %v3426_v61  ;;  %v11736_v52 = vld [vmem:[%s12992_s2 + $0x4c] ss:$16 sps:$4 sm:$0xff]   ;;  %v11741_v61 = vld [vmem:[%s12992_s2 + $0x40] ss:$16 sps:$4 sm:$0xff]  }
 0x4d7   :  { %13386 = vst [vmem:[#allocation16_spill] sm:$0xff] %v11736_v52  ;;  %13387 = vst [vmem:[#allocation17_spill] sm:$0xff] %v11741_v61 }
 0x4d8   :  { %v3440_v37 = vrot.slane %v3433_v4, %v10543_v2  ;;  %v11746_v4 = vld [vmem:[%s12992_s2 + $0x48] ss:$16 sps:$4 sm:$0xff]  }
 0x4d9   :  { %13388 = vst [vmem:[#allocation18_spill] sm:$0xff] %v11746_v4 }
 0x4da   :  { %8425 = vst.sshfl [vmem:[#allocation3] sm:$0x5 pattern:$0x73625140] %v3440_v37  ;;  %v11755_v37 = vld [vmem:[%s12992_s2 + $0x64] ss:$16 sps:$4 sm:$0xff]  }
 0x4db   :  { %13389 = vst [vmem:[#allocation19_spill] sm:$0xff] %v11755_v37 }
 0x4df   :  { %v9704_v58 = vpop.eup %9703 }
 0x4e0   :  { %v9706_v50 = vpop.eup %9705  ;;  %v3429_v3 = vmul.f32 %v9704_v58, %v9700_v53  ;;  %v11760_v53 = vld [vmem:[%s12992_s2 + $0x6c] ss:$16 sps:$4 sm:$0xff]   ;;  %v11770_v58 = vld [vmem:[%s12992_s2 + $0x68] ss:$16 sps:$4 sm:$0xff]  }
 0x4e1   :  { %v3430_v60 = vmul.f32 %v9706_v50, %v9702_v55  ;;  %13390 = vst [vmem:[#allocation20_spill] sm:$0xff] %v11760_v53  ;;  %v11765_v55 = vld [vmem:[%s12992_s2 + $0x60] ss:$16 sps:$4 sm:$0xff]   ;;  %13392 = vst [vmem:[#allocation22_spill] sm:$0xff] %v11770_v58  ;;  %v11779_v50 = vld [vmem:[%s12992_s2 + $0x84] ss:$16 sps:$4 sm:$0xff]  }
 0x4e2   :  { %13391 = vst [vmem:[#allocation21_spill] sm:$0xff] %v11765_v55  ;;  %13393 = vst [vmem:[#allocation23_spill] sm:$0xff] %v11779_v50 }
 0x4e3   :  { %v3452_v5 = vcombine.low %v3429_v3, %v3430_v60  ;;  %v11784_v3 = vld [vmem:[%s12992_s2 + $0x8c] ss:$16 sps:$4 sm:$0xff]   ;;  %v11789_v60 = vld [vmem:[%s12992_s2 + $0x80] ss:$16 sps:$4 sm:$0xff]  }
 0x4e4   :  { %13394 = vst [vmem:[#allocation24_spill] sm:$0xff] %v11784_v3  ;;  %13395 = vst [vmem:[#allocation25_spill] sm:$0xff] %v11789_v60 }
 0x4e5   :  { %8426 = vst.sshfl [vmem:[#allocation2] sm:$0x11 pattern:$0x75316420] %v3452_v5  ;;  %v11794_v5 = vld [vmem:[%s12992_s2 + $0x88] ss:$16 sps:$4 sm:$0xff]  }
 0x4e6   :  { %13396 = vst [vmem:[#allocation26_spill] sm:$0xff] %v11794_v5 }
 0x4ec   :  { %v8427_v49 = vld.sshfl [vmem:[#allocation2] sm:$0x33 pattern:$0x76325410] }
 0x4ed   :  { %v3471_v38 = vcombine.high %v8427_v49, %v8427_v49  ;;  %v3474_v57 = vpack.c.bf16 %v8427_v49, %v8427_v49  ;;  %v4022_v34 = vld [vmem:[#allocation2] sm:$0x3]  ;;  %v11803_v49 = vld [vmem:[%s12992_s2 + $0xa4] ss:$16 sps:$4 sm:$0xff]  }
 0x4ee   :  { %v4023_v39 = vpack.c.bf16 %v4022_v34, %v4022_v34  ;;  %13397 = vst [vmem:[#allocation27_spill] sm:$0xff] %v11803_v49  ;;  %v11827_v34 = vld [vmem:[%s12992_s2 + $0xc4] ss:$16 sps:$4 sm:$0xff]  }
 0x4ef   :  { %v3475_v0 = vpack.c.bf16 %v3471_v38, %v3471_v38  ;;  %v11808_v38 = vld [vmem:[%s12992_s2 + $0xac] ss:$16 sps:$4 sm:$0xff]   ;;  %13401 = vst [vmem:[#allocation31_spill] sm:$0xff] %v11827_v34 }
 0x4f0   :  { %13398 = vst [vmem:[#allocation28_spill] sm:$0xff] %v11808_v38 }
 0x4f1   :  { %3914 = vmatprep.mubr.bf16.mxu0 %v3475_v0  ;;  %3955 = vmatprep.mubr.bf16.mxu1 %v3475_v0  ;;  %v11813_v0 = vld [vmem:[%s12992_s2 + $0xa0] ss:$16 sps:$4 sm:$0xff]  }
 0x4f2   :  { %3915 = vmatmul.mubr.bf16.vlgmr.msra.gmra.mrb[28].mxu0 %v3474_v57  ;;  %3956 = vmatmul.mubr.bf16.vlgmr.msra.gmra.mrb[28].mxu1 %v3474_v57  ;;  %13399 = vst [vmem:[#allocation29_spill] sm:$0xff] %v11813_v0  ;;  %v11818_v57 = vld [vmem:[%s12992_s2 + $0xa8] ss:$16 sps:$4 sm:$0xff]  }
 0x4f3   :  { %4217 = vmatpush1.bf16.msra.mxu0 %v11501_v63  ;;  %4258 = vmatpush1.bf16.msra.mxu1 %v11506_v56  ;;  %13400 = vst [vmem:[#allocation30_spill] sm:$0xff] %v11818_v57 }
 0x4f4   :  { %4218 = vmatprep.subr.bf16.mxu0 %v11511_v10  ;;  %4259 = vmatprep.subr.bf16.mxu1 %v11516_v62 }
 0x4f5   :  { %4248 = vmatprep.mubr.bf16.mxu0 %v13238_v15  ;;  %4289 = vmatprep.mubr.bf16.mxu1 %v13238_v15 }
 0x4f7   :  { %4219 = vmatpush1.bf16.msra.mxu0 %v11523_v1  ;;  %4260 = vmatpush1.bf16.msra.mxu1 %v11528_v6 }
 0x4f8   :  { %4220 = vmatprep.subr.bf16.mxu0 %v11535_v7  ;;  %4261 = vmatprep.subr.bf16.mxu1 %v11540_v8 }
 0x4fb   :  { %4221 = vmatpush1.bf16.msra.mxu0 %v11549_v9  ;;  %4262 = vmatpush1.bf16.msra.mxu1 %v11554_v11 }
 0x4fc   :  { %4222 = vmatprep.subr.bf16.mxu0 %v11561_v12  ;;  %4263 = vmatprep.subr.bf16.mxu1 %v11566_v26 }
 0x4ff   :  { %4223 = vmatpush1.bf16.msra.mxu0 %v11573_v23  ;;  %4264 = vmatpush1.bf16.msra.mxu1 %v11578_v24 }
 0x500   :  { %4224 = vmatprep.subr.bf16.mxu0 %v11585_v25  ;;  %4265 = vmatprep.subr.bf16.mxu1 %v11590_v27 }
 0x503   :  { %4225 = vmatpush1.bf16.msra.mxu0 %v11597_v21  ;;  %4266 = vmatpush1.bf16.msra.mxu1 %v11602_v28 }
 0x504   :  { %4226 = vmatprep.subr.bf16.mxu0 %v11609_v22  ;;  %4267 = vmatprep.subr.bf16.mxu1 %v11614_v36 }
 0x507   :  { %4227 = vmatpush1.bf16.msra.mxu0 %v11621_v32  ;;  %4268 = vmatpush1.bf16.msra.mxu1 %v11626_v18 }
 0x508   :  { %4228 = vmatprep.subr.bf16.mxu0 %v11633_v16  ;;  %4269 = vmatprep.subr.bf16.mxu1 %v11638_v17 }
 0x50b   :  { %4229 = vmatpush1.bf16.msra.mxu0 %v11645_v13  ;;  %4270 = vmatpush1.bf16.msra.mxu1 %v11650_v14 }
 0x50c   :  { %4230 = vmatprep.subr.bf16.mxu0 %v11657_v31  ;;  %4271 = vmatprep.subr.bf16.mxu1 %v11662_v30 }
 0x50f   :  { %4231 = vmatpush1.bf16.msra.mxu0 %v11669_v29  ;;  %4272 = vmatpush1.bf16.msra.mxu1 %v11674_v20 }
 0x510   :  { %4877 = vmatprep.subr.bf16.mxu0 %v11683_v40  ;;  %4918 = vmatprep.subr.bf16.mxu1 %v11688_v41 }
 0x512   :  { %4249 = vmatmul.mubr.bf16.vlgmr.msra.gmra.mrb[32].mxu0 %v4023_v39  ;;  %4290 = vmatmul.mubr.bf16.vlgmr.msra.gmra.mrb[32].mxu1 %v4023_v39  ;;  %v11832_v39 = vld [vmem:[%s12992_s2 + $0xcc] ss:$16 sps:$4 sm:$0xff]  }
 0x513   :  { %4878 = vmatpush1.bf16.msra.mxu0 %v11693_v42  ;;  %4919 = vmatpush1.bf16.msra.mxu1 %v11698_v43  ;;  %13402 = vst [vmem:[#allocation32_spill] sm:$0xff] %v11832_v39 }
 0x514   :  { %4879 = vmatprep.subr.bf16.mxu0 %v11707_v44  ;;  %4920 = vmatprep.subr.bf16.mxu1 %v11712_v45 }
 0x517   :  { %4880 = vmatpush1.bf16.msra.mxu0 %v11717_v46  ;;  %4921 = vmatpush1.bf16.msra.mxu1 %v11722_v47 }
 0x518   :  { %4881 = vmatprep.subr.bf16.mxu0 %v11731_v54  ;;  %4922 = vmatprep.subr.bf16.mxu1 %v11736_v52 }
 0x51b   :  { %4882 = vmatpush1.bf16.msra.mxu0 %v11741_v61  ;;  %4923 = vmatpush1.bf16.msra.mxu1 %v11746_v4 }
 0x51c   :  { %4883 = vmatprep.subr.bf16.mxu0 %v11755_v37  ;;  %4924 = vmatprep.subr.bf16.mxu1 %v11760_v53 }
 0x51f   :  { %4884 = vmatpush1.bf16.msra.mxu0 %v11765_v55  ;;  %4925 = vmatpush1.bf16.msra.mxu1 %v11770_v58 }
 0x520   :  { %4885 = vmatprep.subr.bf16.mxu0 %v11779_v50  ;;  %4926 = vmatprep.subr.bf16.mxu1 %v11784_v3 }
 0x523   :  { %4886 = vmatpush1.bf16.msra.mxu0 %v11789_v60  ;;  %4927 = vmatpush1.bf16.msra.mxu1 %v11794_v5  ;;  %v12034_v5 = vld [vmem:[%s12992_s2 + $0x1c8] ss:$16 sps:$4 sm:$0xff]  }
 0x524   :  { %4887 = vmatprep.subr.bf16.mxu0 %v11803_v49  ;;  %4928 = vmatprep.subr.bf16.mxu1 %v11808_v38  ;;  %v11837_v49 = vld [vmem:[%s12992_s2 + $0xc0] ss:$16 sps:$4 sm:$0xff]   ;;  %v11856_v38 = vld [vmem:[%s12992_s2 + $0xec] ss:$16 sps:$4 sm:$0xff]   ;;  %13436 = vst [vmem:[#allocation66_spill] sm:$0xff] %v12034_v5 }
 0x525   :  { %13403 = vst [vmem:[#allocation33_spill] sm:$0xff] %v11837_v49  ;;  %13406 = vst [vmem:[#allocation36_spill] sm:$0xff] %v11856_v38 }
 0x527   :  { %4888 = vmatpush1.bf16.msra.mxu0 %v11813_v0  ;;  %4929 = vmatpush1.bf16.msra.mxu1 %v11818_v57  ;;  %v11842_v0 = vld [vmem:[%s12992_s2 + $0xc8] ss:$16 sps:$4 sm:$0xff]   ;;  %v11851_v57 = vld [vmem:[%s12992_s2 + $0xe4] ss:$16 sps:$4 sm:$0xff]  }
 0x528   :  { %13404 = vst [vmem:[#allocation34_spill] sm:$0xff] %v11842_v0  ;;  %4889 = vmatprep.subr.bf16.mxu0 %v11827_v34  ;;  %4930 = vmatprep.subr.bf16.mxu1 %v11832_v39  ;;  %13405 = vst [vmem:[#allocation35_spill] sm:$0xff] %v11851_v57  ;;  %v11861_v34 = vld [vmem:[%s12992_s2 + $0xe0] ss:$16 sps:$4 sm:$0xff]   ;;  %v11880_v39 = vld [vmem:[%s12992_s2 + $0x10c] ss:$16 sps:$4 sm:$0xff]  }
 0x529   :  { %13407 = vst [vmem:[#allocation37_spill] sm:$0xff] %v11861_v34  ;;  %13410 = vst [vmem:[#allocation40_spill] sm:$0xff] %v11880_v39 }
 0x52b   :  { %4890 = vmatpush1.bf16.msra.mxu0 %v11837_v49  ;;  %4931 = vmatpush1.bf16.msra.mxu1 %v11842_v0  ;;  %v11866_v49 = vld [vmem:[%s12992_s2 + $0xe8] ss:$16 sps:$4 sm:$0xff]   ;;  %v11875_v0 = vld [vmem:[%s12992_s2 + $0x104] ss:$16 sps:$4 sm:$0xff]  }
 0x52c   :  { %13408 = vst [vmem:[#allocation38_spill] sm:$0xff] %v11866_v49  ;;  %4891 = vmatprep.subr.bf16.mxu0 %v11851_v57  ;;  %4932 = vmatprep.subr.bf16.mxu1 %v11856_v38  ;;  %13409 = vst [vmem:[#allocation39_spill] sm:$0xff] %v11875_v0  ;;  %v11885_v57 = vld [vmem:[%s12992_s2 + $0x100] ss:$16 sps:$4 sm:$0xff]   ;;  %v11904_v38 = vld [vmem:[%s12992_s2 + $0x12c] ss:$16 sps:$4 sm:$0xff]  }
 0x52d   :  { %13411 = vst [vmem:[#allocation41_spill] sm:$0xff] %v11885_v57  ;;  %13414 = vst [vmem:[#allocation44_spill] sm:$0xff] %v11904_v38 }
 0x52f   :  { %4892 = vmatpush1.bf16.msra.mxu0 %v11861_v34  ;;  %4933 = vmatpush1.bf16.msra.mxu1 %v11866_v49  ;;  %v11890_v34 = vld [vmem:[%s12992_s2 + $0x108] ss:$16 sps:$4 sm:$0xff]   ;;  %v11899_v49 = vld [vmem:[%s12992_s2 + $0x124] ss:$16 sps:$4 sm:$0xff]  }
 0x530   :  { %13412 = vst [vmem:[#allocation42_spill] sm:$0xff] %v11890_v34  ;;  %4893 = vmatprep.subr.bf16.mxu0 %v11875_v0  ;;  %4934 = vmatprep.subr.bf16.mxu1 %v11880_v39  ;;  %13413 = vst [vmem:[#allocation43_spill] sm:$0xff] %v11899_v49  ;;  %v11909_v0 = vld [vmem:[%s12992_s2 + $0x120] ss:$16 sps:$4 sm:$0xff]   ;;  %v11928_v39 = vld [vmem:[%s12992_s2 + $0x14c] ss:$16 sps:$4 sm:$0xff]  }
 0x531   :  { %13415 = vst [vmem:[#allocation45_spill] sm:$0xff] %v11909_v0  ;;  %13418 = vst [vmem:[#allocation48_spill] sm:$0xff] %v11928_v39 }
 0x533   :  { %4894 = vmatpush1.bf16.msra.mxu0 %v11885_v57  ;;  %4935 = vmatpush1.bf16.msra.mxu1 %v11890_v34  ;;  %v11914_v57 = vld [vmem:[%s12992_s2 + $0x128] ss:$16 sps:$4 sm:$0xff]   ;;  %v11923_v34 = vld [vmem:[%s12992_s2 + $0x144] ss:$16 sps:$4 sm:$0xff]  }
 0x534   :  { %13416 = vst [vmem:[#allocation46_spill] sm:$0xff] %v11914_v57  ;;  %4895 = vmatprep.subr.bf16.mxu0 %v11899_v49  ;;  %4936 = vmatprep.subr.bf16.mxu1 %v11904_v38  ;;  %13417 = vst [vmem:[#allocation47_spill] sm:$0xff] %v11923_v34  ;;  %v11933_v49 = vld [vmem:[%s12992_s2 + $0x140] ss:$16 sps:$4 sm:$0xff]   ;;  %v11952_v38 = vld [vmem:[%s12992_s2 + $0x16c] ss:$16 sps:$4 sm:$0xff]  }
 0x535   :  { %13419 = vst [vmem:[#allocation49_spill] sm:$0xff] %v11933_v49  ;;  %13422 = vst [vmem:[#allocation52_spill] sm:$0xff] %v11952_v38 }
 0x537   :  { %4896 = vmatpush1.bf16.msra.mxu0 %v11909_v0  ;;  %4937 = vmatpush1.bf16.msra.mxu1 %v11914_v57  ;;  %v11938_v0 = vld [vmem:[%s12992_s2 + $0x148] ss:$16 sps:$4 sm:$0xff]   ;;  %v11947_v57 = vld [vmem:[%s12992_s2 + $0x164] ss:$16 sps:$4 sm:$0xff]  }
 0x538   :  { %13420 = vst [vmem:[#allocation50_spill] sm:$0xff] %v11938_v0  ;;  %4897 = vmatprep.subr.bf16.mxu0 %v11923_v34  ;;  %4938 = vmatprep.subr.bf16.mxu1 %v11928_v39  ;;  %13421 = vst [vmem:[#allocation51_spill] sm:$0xff] %v11947_v57  ;;  %v11957_v34 = vld [vmem:[%s12992_s2 + $0x160] ss:$16 sps:$4 sm:$0xff]   ;;  %v11976_v39 = vld [vmem:[%s12992_s2 + $0x18c] ss:$16 sps:$4 sm:$0xff]  }
 0x539   :  { %13423 = vst [vmem:[#allocation53_spill] sm:$0xff] %v11957_v34  ;;  %13426 = vst [vmem:[#allocation56_spill] sm:$0xff] %v11976_v39 }
 0x53b   :  { %4898 = vmatpush1.bf16.msra.mxu0 %v11933_v49  ;;  %4939 = vmatpush1.bf16.msra.mxu1 %v11938_v0  ;;  %v11962_v49 = vld [vmem:[%s12992_s2 + $0x168] ss:$16 sps:$4 sm:$0xff]   ;;  %v11971_v0 = vld [vmem:[%s12992_s2 + $0x184] ss:$16 sps:$4 sm:$0xff]  }
 0x53c   :  { %13424 = vst [vmem:[#allocation54_spill] sm:$0xff] %v11962_v49  ;;  %4899 = vmatprep.subr.bf16.mxu0 %v11947_v57  ;;  %4940 = vmatprep.subr.bf16.mxu1 %v11952_v38  ;;  %13425 = vst [vmem:[#allocation55_spill] sm:$0xff] %v11971_v0  ;;  %v11981_v57 = vld [vmem:[%s12992_s2 + $0x180] ss:$16 sps:$4 sm:$0xff]  }
 0x53d   :  { %13427 = vst [vmem:[#allocation57_spill] sm:$0xff] %v11981_v57  ;;  %v12000_v38 = vld [vmem:[%s12992_s2 + $0x1a0] ss:$16 sps:$4 sm:$0xff]  }
 0x53e   :  { %13430 = vst [vmem:[#allocation62_spill] sm:$0xff] %v12000_v38 }
 0x53f   :  { %4900 = vmatpush1.bf16.msra.mxu0 %v11957_v34  ;;  %4941 = vmatpush1.bf16.msra.mxu1 %v11962_v49  ;;  %v11986_v34 = vld [vmem:[%s12992_s2 + $0x188] ss:$16 sps:$4 sm:$0xff]   ;;  %v11993_v49 = vld [vmem:[%s12992_s2 + $0x1a4] ss:$16 sps:$4 sm:$0xff]  }
 0x540   :  { %13428 = vst [vmem:[#allocation58_spill] sm:$0xff] %v11986_v34  ;;  %4901 = vmatprep.subr.bf16.mxu0 %v11971_v0  ;;  %4942 = vmatprep.subr.bf16.mxu1 %v11976_v39  ;;  %13429 = vst [vmem:[#allocation59_spill] sm:$0xff] %v11993_v49  ;;  %v12005_v0 = vld [vmem:[%s12992_s2 + $0x1a8] ss:$16 sps:$4 sm:$0xff]   ;;  %v12010_v39 = vld [vmem:[%s12992_s2 + $0x1ac] ss:$16 sps:$4 sm:$0xff]  }
 0x541   :  { %13431 = vst [vmem:[#allocation60_spill] sm:$0xff] %v12005_v0  ;;  %13432 = vst [vmem:[#allocation61_spill] sm:$0xff] %v12010_v39 }
 0x543   :  { %4902 = vmatpush1.bf16.msra.mxu0 %v11981_v57  ;;  %4943 = vmatpush1.bf16.msra.mxu1 %v11986_v34  ;;  %v12016_v34 = vld [vmem:[%s12992_s2 + $0x1c4] ss:$16 sps:$4 sm:$0xff]   ;;  %v12021_v57 = vld [vmem:[%s12992_s2 + $0x1cc] ss:$16 sps:$4 sm:$0xff]  }
 0x544   :  { %4903 = vmatprep.subr.bf16.mxu0 %v11993_v49  ;;  %13433 = vst [vmem:[#allocation63_spill] sm:$0xff] %v12016_v34  ;;  %13434 = vst [vmem:[#allocation64_spill] sm:$0xff] %v12021_v57  ;;  %4944 = vmatprep.subr.bf16.mxu1 %v12010_v39  ;;  %v12029_v49 = vld [vmem:[%s12992_s2 + $0x1c0] ss:$16 sps:$4 sm:$0xff]  }
 0x545   :  { %13435 = vst [vmem:[#allocation65_spill] sm:$0xff] %v12029_v49 }
 0x547   :  { %4904 = vmatpush1.bf16.msra.mxu0 %v12000_v38  ;;  %4945 = vmatpush1.bf16.msra.mxu1 %v12005_v0  ;;  %v12041_v38 = vld [vmem:[%s12992_s2 + $0x1e4] ss:$16 sps:$4 sm:$0xff]   ;;  %v12046_v0 = vld [vmem:[%s12992_s2 + $0x1ec] ss:$16 sps:$4 sm:$0xff]  }
 0x548   :  { %4905 = vmatprep.subr.bf16.mxu0 %v12016_v34  ;;  %4946 = vmatprep.subr.bf16.mxu1 %v12021_v57  ;;  %13437 = vst [vmem:[#allocation67_spill] sm:$0xff] %v12041_v38  ;;  %13438 = vst [vmem:[#allocation68_spill] sm:$0xff] %v12046_v0  ;;  %v12053_v34 = vld [vmem:[%s12992_s2 + $0x1e0] ss:$16 sps:$4 sm:$0xff]   ;;  %v12058_v57 = vld [vmem:[%s12992_s2 + $0x1e8] ss:$16 sps:$4 sm:$0xff]  }
 0x549   :  { %13439 = vst [vmem:[#allocation69_spill] sm:$0xff] %v12053_v34  ;;  %13440 = vst [vmem:[#allocation70_spill] sm:$0xff] %v12058_v57 }
 0x54b   :  { %4906 = vmatpush1.bf16.msra.mxu0 %v12029_v49  ;;  %4947 = vmatpush1.bf16.msra.mxu1 %v12034_v5  ;;  %v3540_v5 = vld [vmem:[%s12993_s3] sm:$0xf] }
 0x54c   :  { %4907 = vmatprep.subr.bf16.mxu0 %v12041_v38  ;;  %4948 = vmatprep.subr.bf16.mxu1 %v12046_v0  ;;  %v3545_v49 = vrot.slane %v3540_v5, %v13381_v59  ;;  %v3549_v39 = vrot.slane %v3540_v5, %v13382_v19  ;;  %v3557_v37 = vrot.slane %v3540_v5, %v13383_v35 }
 0x54d   :  { %v3553_v59 = vrot.slane %v3540_v5, %v13384_v33 }
 0x54f   :  { %4908 = vmatpush1.bf16.msra.mxu0 %v12053_v34  ;;  %4949 = vmatpush1.bf16.msra.mxu1 %v12058_v57 }
 0x550   :  { %5211 = vmatprep.subr.bf16.mxu0 %v11462_v51  ;;  %5252 = vmatprep.subr.bf16.mxu1 %v11467_v48 }
 0x5c5   :  { %v3916_v60 = vpop.f32.mrb[28].mxu0  ;;  %v3957_v38 = vpop.f32.mrb[28].mxu1 }
 0x5c6   :  { %v3917_v3 = vadd.f32 %v3916_v60, %v3545_v49  ;;  %v3918_v0 = vpop.f32.mrb[29].mxu0  ;;  %v3959_v50 = vpop.f32.mrb[29].mxu1  ;;  %v3958_v61 = vadd.f32 %v3957_v38, %v3553_v59 }
 0x5c7   :  { %v3919_v34 = vadd.f32 %v3918_v0, %v3549_v39  ;;  %v3920_v58 = vpop.f32.mrb[30].mxu0  ;;  %v3961_v57 = vpop.f32.mrb[30].mxu1  ;;  %v3960_v4 = vadd.f32 %v3959_v50, %v3557_v37 }
 0x5c8   :  { %v8492_v55 = vmul.f32 -1.442695, %v3917_v3  ;;  %v3921_v51 = vpop.f32.mrb[31].mxu0  ;;  %v3962_v53 = vpop.f32.mrb[31].mxu1 }
 0x5c9   :  { %v8493_v48 = vmul.f32 -1.442695, %v3919_v34  ;;  %v8494_v19 = vmul.f32 -1.442695, %v3960_v4 }
 0x5ca   :  { %9707 = vpow2.f32 %v8492_v55  ;;  %v3964_v55 = vld [vmem:[#allocation4] sm:$0x3] }
 0x5cb   :  { %9709 = vpow2.f32 %v8493_v48 }
 0x5cc   :  { %9711 = vpow2.f32 %v8494_v19 }
 0x5cd   :  { %9713 = vtanh.f32 %v3958_v61 }
 0x5d4   :  { %v9708_v52 = vpop.eup %9707 }
 0x5d5   :  { %v9710_v60 = vpop.eup %9709  ;;  %v3968_v49 = vadd.f32 1.0, %v9708_v52 }
 0x5d6   :  { %v3974_v58 = vadd.f32 1.0, %v9710_v60  ;;  %v9712_v3 = vpop.eup %9711 }
 0x5d7   :  { %9715 = vrcp.f32 %v3968_v49  ;;  %v9714_v53 = vpop.eup %9713  ;;  %v3981_v39 = vadd.f32 1.0, %v9712_v3 }
 0x5d8   :  { %9717 = vrcp.f32 %v3974_v58 }
 0x5d9   :  { %9719 = vrcp.f32 %v3981_v39 }
 0x5e1   :  { %v9716_v0 = vpop.eup %9715 }
 0x5e2   :  { %v9718_v57 = vpop.eup %9717  ;;  %v3985_v34 = vmul.f32 %v9716_v0, %v9714_v53  ;;  %v8497_v0 = vld [vmem:[%s12990_s0 + $0x4] ss:$8 sm:$0xf] }
 0x5e3   :  { %v3984_v37 = vmul.f32 %v9718_v57, %v3964_v55  ;;  %v8498_v57 = vld [vmem:[%s12990_s0 + $0x24] ss:$8 sm:$0xf] }
 0x5e5   :  { %v3986_v50 = vadd.f32 %v3985_v34, %v3984_v37  ;;  %v4250_v5 = vpop.f32.mrb[32].mxu0  ;;  %v4291_v4 = vpop.f32.mrb[32].mxu1 }
 0x5e6   :  { %v4252_v59 = vpop.f32.mrb[33].mxu0  ;;  %v4293_v38 = vpop.f32.mrb[33].mxu1 }
 0x5e7   :  { %9721 = vtanh.f32 %v3986_v50  ;;  %3989 = vst [vmem:[#allocation4] sm:$0x3] %v3986_v50  ;;  %v4302_v19 = vcombine.low %v4250_v5, %v4252_v59  ;;  %v4303_v52 = vcombine.low %v4291_v4, %v4293_v38  ;;  %v4254_v61 = vpop.f32.mrb[34].mxu0  ;;  %v4295_v51 = vpop.f32.mrb[34].mxu1 }
 0x5e8   :  { %v4255_v48 = vpop.f32.mrb[35].mxu0  ;;  %v4296_v60 = vpop.f32.mrb[35].mxu1 }
 0x5e9   :  { %v4310_v49 = vrot.slane %v4302_v19, %v10543_v2  ;;  %v4317_v58 = vrot.slane %v4303_v52, %v10543_v2  ;;  %v9720_v50 = vpop.eup %9719 }
 0x5eb   :  { %v4318_v3 = vcombine.low %v4310_v49, %v4317_v58  ;;  %v4319_v53 = vcombine.high %v4310_v49, %v4317_v58 }
 0x5ed   :  { %v4326_v34 = vrot.slane %v4318_v3, %v10543_v2  ;;  %v4333_v55 = vrot.slane %v4319_v53, %v10543_v2 }
 0x5ef   :  { %v4336_v39 = vadd.f32 %v8497_v0, %v4326_v34  ;;  %v4337_v37 = vadd.f32 %v8498_v57, %v4333_v55 }
 0x5f1   :  { %v9722_v5 = vpop.eup %9721  ;;  %v8531_v4 = vmul.f32 -1.442695, %v4336_v39  ;;  %v8532_v59 = vmul.f32 -1.442695, %v4337_v37  ;;  %v4353_v38 = vrot.slane %v4336_v39, 1  ;;  %v4354_v19 = vrot.slane %v4337_v37, 1 }
 0x5f2   :  { %v3988_v52 = vmul.f32 %v9722_v5, %v9720_v50  ;;  %v4375_v49 = vrot.slane %v4336_v39, 3  ;;  %v4376_v58 = vrot.slane %v4337_v37, 3  ;;  %v4369_v3 = vrot.slane %v4336_v39, 2 }
 0x5f3   :  { %9723 = vpow2.f32 %v8531_v4  ;;  %v8533_v61 = vmul.f32 -1.442695, %v4353_v38  ;;  %v8534_v51 = vmul.f32 -1.442695, %v4354_v19  ;;  %v4370_v53 = vrot.slane %v4337_v37, 2 }
 0x5f4   :  { %3990 = vst [vmem:[#allocation2 + $0x2] sm:$0x3] %v3988_v52  ;;  %v3998_v48 = vrot.slane %v3988_v52, %v10543_v2  ;;  %9725 = vpow2.f32 %v8532_v59  ;;  %v8535_v0 = vmul.f32 -1.442695, %v4375_v49  ;;  %v8536_v57 = vmul.f32 -1.442695, %v4376_v58 }
 0x5f5   :  { %9727 = vpow2.f32 %v8533_v61  ;;  %v8537_v39 = vld.sshfl [vmem:[#allocation3] sm:$0x11 pattern:$0x75316420] }
 0x5f6   :  { %v3999_v60 = vcombine.high %v3998_v48, %v3998_v48  ;;  %8495 = vst.sshfl [vmem:[%s12996_s6 + $0x3] sm:$0x1 pattern:$0x73625140] %v3998_v48  ;;  %9729 = vpow2.f32 %v8534_v51  ;;  %v4399_v51 = vcombine.high %v8537_v39, %v8537_v39 }
 0x5f7   :  { %9731 = vtanh.f32 %v4369_v3  ;;  %v4406_v3 = vrot.slane %v8537_v39, %v10543_v2 }
 0x5f8   :  { %8496 = vst.sshfl [vmem:[%s12996_s6 + $0xb] sm:$0x1 pattern:$0x73625140] %v3999_v60  ;;  %9733 = vtanh.f32 %v4370_v53 }
 0x5f9   :  { %9735 = vpow2.f32 %v8535_v0 }
 0x5fa   :  { %9737 = vpow2.f32 %v8536_v57  ;;  %v4413_v57 = vrot.slane %v4399_v51, %v10543_v2 }
 0x5fd   :  { %v9724_v34 = vpop.eup %9723 }
 0x5fe   :  { %v9726_v55 = vpop.eup %9725  ;;  %v4345_v50 = vadd.f32 1.0, %v9724_v34 }
 0x5ff   :  { %v9728_v5 = vpop.eup %9727  ;;  %v4346_v4 = vadd.f32 1.0, %v9726_v55 }
 0x600   :  { %v9730_v59 = vpop.eup %9729  ;;  %9739 = vrcp.f32 %v4345_v50  ;;  %v4363_v38 = vadd.f32 1.0, %v9728_v5 }
 0x601   :  { %9741 = vrcp.f32 %v4346_v4  ;;  %v4364_v19 = vadd.f32 1.0, %v9730_v59  ;;  %v9732_v37 = vpop.eup %9731 }
 0x602   :  { %9743 = vrcp.f32 %v4363_v38  ;;  %v9734_v52 = vpop.eup %9733 }
 0x603   :  { %9745 = vrcp.f32 %v4364_v19  ;;  %v9736_v61 = vpop.eup %9735 }
 0x604   :  { %v9738_v48 = vpop.eup %9737  ;;  %v4385_v58 = vadd.f32 1.0, %v9736_v61 }
 0x605   :  { %v4386_v0 = vadd.f32 1.0, %v9738_v48 }
 0x606   :  { %9747 = vrcp.f32 %v4385_v58  ;;  %v13480_v58 = vld [vmem:[#allocation54_spill] sm:$0xff] }
 0x607   :  { %9749 = vrcp.f32 %v4386_v0  ;;  %v13482_v0 = vld [vmem:[#allocation56_spill] sm:$0xff] }
 0x60a   :  { %v9740_v60 = vpop.eup %9739 }
 0x60b   :  { %v9742_v49 = vpop.eup %9741  ;;  %v4418_v50 = vmul.f32 %v9740_v60, %v9732_v37 }
 0x60c   :  { %v9744_v53 = vpop.eup %9743  ;;  %v4419_v4 = vmul.f32 %v9742_v49, %v9734_v52 }
 0x60d   :  { %v9746_v34 = vpop.eup %9745  ;;  %v4416_v55 = vmul.f32 %v9744_v53, %v4406_v3  ;;  %v13481_v53 = vld [vmem:[#allocation55_spill] sm:$0xff] }
 0x60e   :  { %v4417_v5 = vmul.f32 %v9746_v34, %v4413_v57  ;;  %v13483_v57 = vld [vmem:[#allocation57_spill] sm:$0xff]  ;;  %v13484_v34 = vld [vmem:[#allocation58_spill] sm:$0xff] }
 0x60f   :  { %v4420_v59 = vadd.f32 %v4418_v50, %v4416_v55  ;;  %v13485_v55 = vld [vmem:[#allocation59_spill] sm:$0xff]  ;;  %v13486_v50 = vld [vmem:[#allocation61_spill] sm:$0xff] }
 0x610   :  { %v4421_v38 = vadd.f32 %v4419_v4, %v4417_v5  ;;  %v9748_v39 = vpop.eup %9747  ;;  %v13487_v5 = vld [vmem:[#allocation62_spill] sm:$0xff]  ;;  %v13488_v4 = vld [vmem:[#allocation60_spill] sm:$0xff] }
 0x611   :  { %9751 = vtanh.f32 %v4420_v59  ;;  %v9750_v33 = vpop.eup %9749 }
 0x612   :  { %9753 = vtanh.f32 %v4421_v38  ;;  %v4428_v19 = vcombine.low %v4420_v59, %v4421_v38  ;;  %v13489_v59 = vld [vmem:[#allocation63_spill] sm:$0xff]  ;;  %v13490_v38 = vld [vmem:[#allocation64_spill] sm:$0xff] }
 0x614   :  { %v4435_v61 = vrot.slane %v4428_v19, %v10543_v2  ;;  %v13491_v19 = vld [vmem:[#allocation65_spill] sm:$0xff] }
 0x616   :  { %8538 = vst.sshfl [vmem:[#allocation3] sm:$0x5 pattern:$0x73625140] %v4435_v61  ;;  %v13492_v61 = vld [vmem:[#allocation66_spill] sm:$0xff] }
 0x61b   :  { %v9752_v48 = vpop.eup %9751 }
 0x61c   :  { %v9754_v35 = vpop.eup %9753  ;;  %v4424_v51 = vmul.f32 %v9752_v48, %v9748_v39  ;;  %v13493_v39 = vld [vmem:[#allocation67_spill] sm:$0xff]  ;;  %v13494_v48 = vld [vmem:[#allocation68_spill] sm:$0xff] }
 0x61d   :  { %v4425_v54 = vmul.f32 %v9754_v35, %v9750_v33 }
 0x61f   :  { %v4447_v3 = vcombine.low %v4424_v51, %v4425_v54  ;;  %v13479_v54 = vld [vmem:[#allocation53_spill] sm:$0xff] }
 0x620   :  { %v13495_v51 = vld [vmem:[#allocation69_spill] sm:$0xff] }
 0x621   :  { %8539 = vst.sshfl [vmem:[#allocation2] sm:$0x11 pattern:$0x75316420] %v4447_v3  ;;  %v13496_v3 = vld [vmem:[#allocation70_spill] sm:$0xff] }
 0x628   :  { %v8540_v37 = vld.sshfl [vmem:[#allocation2] sm:$0x33 pattern:$0x76325410] }
 0x629   :  { %v4466_v52 = vcombine.high %v8540_v37, %v8540_v37  ;;  %v4469_v49 = vpack.c.bf16 %v8540_v37, %v8540_v37  ;;  %v5017_v35 = vld [vmem:[#allocation2] sm:$0x3]  ;;  %v12192_v37 = vld [vmem:[%s12991_s1 + $0x4] ss:$16 sps:$4 sm:$0xff]  }
 0x62a   :  { %v5018_v33 = vpack.c.bf16 %v5017_v35, %v5017_v35 }
 0x62b   :  { %v4470_v60 = vpack.c.bf16 %v4466_v52, %v4466_v52  ;;  %v12197_v52 = vld [vmem:[%s12991_s1 + $0xc] ss:$16 sps:$4 sm:$0xff]  }
 0x62d   :  { %4909 = vmatprep.mubr.bf16.mxu0 %v4470_v60  ;;  %4950 = vmatprep.mubr.bf16.mxu1 %v4470_v60  ;;  %v4535_v60 = vld [vmem:[%s12993_s3] sm:$0xf] }
 0x62e   :  { %4910 = vmatmul.mubr.bf16.vlgmr.msra.gmra.mrb[36].mxu0 %v4469_v49  ;;  %4951 = vmatmul.mubr.bf16.vlgmr.msra.gmra.mrb[36].mxu1 %v4469_v49  ;;  %v13497_v49 = vld [vmem:[#allocation11_spill] sm:$0xff] }
 0x62f   :  { %5212 = vmatpush1.bf16.msra.mxu0 %v11501_v63  ;;  %5253 = vmatpush1.bf16.msra.mxu1 %v11506_v56  ;;  %v13441_v63 = vld [vmem:[#allocation15_spill] sm:$0xff]  ;;  %v13442_v56 = vld [vmem:[#allocation16_spill] sm:$0xff]  ;;  %v4540_v35 = vrot.slane %v4535_v60, %v13497_v49 }
 0x630   :  { %5213 = vmatprep.subr.bf16.mxu0 %v11511_v10  ;;  %5254 = vmatprep.subr.bf16.mxu1 %v11516_v62  ;;  %v13443_v10 = vld [vmem:[#allocation17_spill] sm:$0xff]  ;;  %v13444_v62 = vld [vmem:[#allocation18_spill] sm:$0xff] }
 0x631   :  { %5243 = vmatprep.mubr.bf16.mxu0 %v13238_v15  ;;  %5284 = vmatprep.mubr.bf16.mxu1 %v13238_v15 }
 0x633   :  { %5214 = vmatpush1.bf16.msra.mxu0 %v11523_v1  ;;  %5255 = vmatpush1.bf16.msra.mxu1 %v11528_v6  ;;  %v13445_v1 = vld [vmem:[#allocation19_spill] sm:$0xff]  ;;  %v13446_v6 = vld [vmem:[#allocation20_spill] sm:$0xff] }
 0x634   :  { %5215 = vmatprep.subr.bf16.mxu0 %v11535_v7  ;;  %5256 = vmatprep.subr.bf16.mxu1 %v11540_v8  ;;  %v13447_v7 = vld [vmem:[#allocation21_spill] sm:$0xff]  ;;  %v13448_v8 = vld [vmem:[#allocation22_spill] sm:$0xff] }
 0x637   :  { %5216 = vmatpush1.bf16.msra.mxu0 %v11549_v9  ;;  %5257 = vmatpush1.bf16.msra.mxu1 %v11554_v11  ;;  %v13449_v9 = vld [vmem:[#allocation23_spill] sm:$0xff]  ;;  %v13450_v11 = vld [vmem:[#allocation24_spill] sm:$0xff] }
 0x638   :  { %5217 = vmatprep.subr.bf16.mxu0 %v11561_v12  ;;  %5258 = vmatprep.subr.bf16.mxu1 %v11566_v26  ;;  %v13451_v12 = vld [vmem:[#allocation25_spill] sm:$0xff]  ;;  %v13452_v26 = vld [vmem:[#allocation26_spill] sm:$0xff] }
 0x63b   :  { %5218 = vmatpush1.bf16.msra.mxu0 %v11573_v23  ;;  %5259 = vmatpush1.bf16.msra.mxu1 %v11578_v24  ;;  %v13453_v23 = vld [vmem:[#allocation27_spill] sm:$0xff]  ;;  %v13454_v24 = vld [vmem:[#allocation28_spill] sm:$0xff] }
 0x63c   :  { %5219 = vmatprep.subr.bf16.mxu0 %v11585_v25  ;;  %5260 = vmatprep.subr.bf16.mxu1 %v11590_v27  ;;  %v13455_v25 = vld [vmem:[#allocation29_spill] sm:$0xff]  ;;  %v13456_v27 = vld [vmem:[#allocation30_spill] sm:$0xff] }
 0x63f   :  { %5220 = vmatpush1.bf16.msra.mxu0 %v11597_v21  ;;  %5261 = vmatpush1.bf16.msra.mxu1 %v11602_v28  ;;  %v13457_v21 = vld [vmem:[#allocation31_spill] sm:$0xff]  ;;  %v13458_v28 = vld [vmem:[#allocation32_spill] sm:$0xff] }
 0x640   :  { %5221 = vmatprep.subr.bf16.mxu0 %v11609_v22  ;;  %5262 = vmatprep.subr.bf16.mxu1 %v11614_v36  ;;  %v13459_v22 = vld [vmem:[#allocation33_spill] sm:$0xff]  ;;  %v13460_v36 = vld [vmem:[#allocation34_spill] sm:$0xff] }
 0x643   :  { %5222 = vmatpush1.bf16.msra.mxu0 %v11621_v32  ;;  %5263 = vmatpush1.bf16.msra.mxu1 %v11626_v18  ;;  %v13461_v32 = vld [vmem:[#allocation35_spill] sm:$0xff]  ;;  %v13462_v18 = vld [vmem:[#allocation36_spill] sm:$0xff] }
 0x644   :  { %5223 = vmatprep.subr.bf16.mxu0 %v11633_v16  ;;  %5264 = vmatprep.subr.bf16.mxu1 %v11638_v17  ;;  %v13463_v16 = vld [vmem:[#allocation37_spill] sm:$0xff]  ;;  %v13464_v17 = vld [vmem:[#allocation38_spill] sm:$0xff] }
 0x647   :  { %5224 = vmatpush1.bf16.msra.mxu0 %v11645_v13  ;;  %5265 = vmatpush1.bf16.msra.mxu1 %v11650_v14  ;;  %v13465_v13 = vld [vmem:[#allocation39_spill] sm:$0xff]  ;;  %v13466_v14 = vld [vmem:[#allocation40_spill] sm:$0xff] }
 0x648   :  { %5225 = vmatprep.subr.bf16.mxu0 %v11657_v31  ;;  %5266 = vmatprep.subr.bf16.mxu1 %v11662_v30  ;;  %v13467_v31 = vld [vmem:[#allocation41_spill] sm:$0xff]  ;;  %v13468_v30 = vld [vmem:[#allocation42_spill] sm:$0xff] }
 0x64b   :  { %5226 = vmatpush1.bf16.msra.mxu0 %v11669_v29  ;;  %5267 = vmatpush1.bf16.msra.mxu1 %v11674_v20  ;;  %v13469_v29 = vld [vmem:[#allocation43_spill] sm:$0xff]  ;;  %v13470_v20 = vld [vmem:[#allocation44_spill] sm:$0xff] }
 0x64c   :  { %5872 = vmatprep.subr.bf16.mxu0 %v11683_v40  ;;  %5913 = vmatprep.subr.bf16.mxu1 %v11688_v41  ;;  %v13471_v40 = vld [vmem:[#allocation45_spill] sm:$0xff]  ;;  %v13472_v41 = vld [vmem:[#allocation46_spill] sm:$0xff] }
 0x64e   :  { %5244 = vmatmul.mubr.bf16.vlgmr.msra.gmra.mrb[40].mxu0 %v5018_v33  ;;  %5285 = vmatmul.mubr.bf16.vlgmr.msra.gmra.mrb[40].mxu1 %v5018_v33  ;;  %v13498_v33 = vld [vmem:[#allocation12_spill] sm:$0xff] }
 0x64f   :  { %5873 = vmatpush1.bf16.msra.mxu0 %v11693_v42  ;;  %5914 = vmatpush1.bf16.msra.mxu1 %v11698_v43  ;;  %v13473_v42 = vld [vmem:[#allocation47_spill] sm:$0xff]  ;;  %v13474_v43 = vld [vmem:[#allocation48_spill] sm:$0xff] }
 0x650   :  { %5874 = vmatprep.subr.bf16.mxu0 %v11707_v44  ;;  %5915 = vmatprep.subr.bf16.mxu1 %v11712_v45  ;;  %v13475_v44 = vld [vmem:[#allocation49_spill] sm:$0xff]  ;;  %v13476_v45 = vld [vmem:[#allocation50_spill] sm:$0xff] }
 0x653   :  { %5875 = vmatpush1.bf16.msra.mxu0 %v11717_v46  ;;  %5916 = vmatpush1.bf16.msra.mxu1 %v11722_v47  ;;  %v13477_v46 = vld [vmem:[#allocation51_spill] sm:$0xff]  ;;  %v13478_v47 = vld [vmem:[#allocation52_spill] sm:$0xff] }
 0x654   :  { %5876 = vmatprep.subr.bf16.mxu0 %v13441_v63  ;;  %5917 = vmatprep.subr.bf16.mxu1 %v13442_v56  ;;  %v4544_v63 = vrot.slane %v4535_v60, %v13498_v33 }
 0x657   :  { %5877 = vmatpush1.bf16.msra.mxu0 %v13443_v10  ;;  %5918 = vmatpush1.bf16.msra.mxu1 %v13444_v62 }
 0x658   :  { %5878 = vmatprep.subr.bf16.mxu0 %v13445_v1  ;;  %5919 = vmatprep.subr.bf16.mxu1 %v13446_v6 }
 0x65b   :  { %5879 = vmatpush1.bf16.msra.mxu0 %v13447_v7  ;;  %5920 = vmatpush1.bf16.msra.mxu1 %v13448_v8 }
 0x65c   :  { %5880 = vmatprep.subr.bf16.mxu0 %v13449_v9  ;;  %5921 = vmatprep.subr.bf16.mxu1 %v13450_v11 }
 0x65f   :  { %5881 = vmatpush1.bf16.msra.mxu0 %v13451_v12  ;;  %5922 = vmatpush1.bf16.msra.mxu1 %v13452_v26 }
 0x660   :  { %5882 = vmatprep.subr.bf16.mxu0 %v13453_v23  ;;  %5923 = vmatprep.subr.bf16.mxu1 %v13454_v24  ;;  %v13499_v24 = vld [vmem:[#allocation13_spill] sm:$0xff] }
 0x663   :  { %5883 = vmatpush1.bf16.msra.mxu0 %v13455_v25  ;;  %5924 = vmatpush1.bf16.msra.mxu1 %v13456_v27  ;;  %v4552_v25 = vrot.slane %v4535_v60, %v13499_v24 }
 0x664   :  { %5884 = vmatprep.subr.bf16.mxu0 %v13457_v21  ;;  %5925 = vmatprep.subr.bf16.mxu1 %v13458_v28  ;;  %v13500_v21 = vld [vmem:[#allocation14_spill] sm:$0xff] }
 0x665   :  { %v4548_v28 = vrot.slane %v4535_v60, %v13500_v21 }
 0x667   :  { %5885 = vmatpush1.bf16.msra.mxu0 %v13459_v22  ;;  %5926 = vmatpush1.bf16.msra.mxu1 %v13460_v36 }
 0x668   :  { %5886 = vmatprep.subr.bf16.mxu0 %v13461_v32  ;;  %5927 = vmatprep.subr.bf16.mxu1 %v13462_v18 }
 0x66b   :  { %5887 = vmatpush1.bf16.msra.mxu0 %v13463_v16  ;;  %5928 = vmatpush1.bf16.msra.mxu1 %v13464_v17 }
 0x66c   :  { %5888 = vmatprep.subr.bf16.mxu0 %v13465_v13  ;;  %5929 = vmatprep.subr.bf16.mxu1 %v13466_v14 }
 0x66f   :  { %5889 = vmatpush1.bf16.msra.mxu0 %v13467_v31  ;;  %5930 = vmatpush1.bf16.msra.mxu1 %v13468_v30 }
 0x670   :  { %5890 = vmatprep.subr.bf16.mxu0 %v13469_v29  ;;  %5931 = vmatprep.subr.bf16.mxu1 %v13470_v20  ;;  %v4959_v20 = vld [vmem:[#allocation4] sm:$0x3] }
 0x673   :  { %5891 = vmatpush1.bf16.msra.mxu0 %v13471_v40  ;;  %5932 = vmatpush1.bf16.msra.mxu1 %v13472_v41 }
 0x674   :  { %5892 = vmatprep.subr.bf16.mxu0 %v13473_v42  ;;  %5933 = vmatprep.subr.bf16.mxu1 %v13474_v43 }
 0x677   :  { %5893 = vmatpush1.bf16.msra.mxu0 %v13475_v44  ;;  %5934 = vmatpush1.bf16.msra.mxu1 %v13476_v45 }
 0x678   :  { %5894 = vmatprep.subr.bf16.mxu0 %v13477_v46  ;;  %5935 = vmatprep.subr.bf16.mxu1 %v13478_v47 }
 0x67b   :  { %5895 = vmatpush1.bf16.msra.mxu0 %v13479_v54  ;;  %5936 = vmatpush1.bf16.msra.mxu1 %v13480_v58 }
 0x67c   :  { %5896 = vmatprep.subr.bf16.mxu0 %v13481_v53  ;;  %5937 = vmatprep.subr.bf16.mxu1 %v13482_v0 }
 0x67f   :  { %5897 = vmatpush1.bf16.msra.mxu0 %v13483_v57  ;;  %5938 = vmatpush1.bf16.msra.mxu1 %v13484_v34 }
 0x680   :  { %5898 = vmatprep.subr.bf16.mxu0 %v13485_v55  ;;  %5939 = vmatprep.subr.bf16.mxu1 %v13486_v50 }
 0x683   :  { %5899 = vmatpush1.bf16.msra.mxu0 %v13487_v5  ;;  %5940 = vmatpush1.bf16.msra.mxu1 %v13488_v4  ;;  %v8610_v4 = vld [vmem:[%s12990_s0 + $0x5] ss:$8 sm:$0xf] }
 0x684   :  { %5900 = vmatprep.subr.bf16.mxu0 %v13489_v59  ;;  %5941 = vmatprep.subr.bf16.mxu1 %v13490_v38  ;;  %v8611_v59 = vld [vmem:[%s12990_s0 + $0x25] ss:$8 sm:$0xf] }
 0x687   :  { %5901 = vmatpush1.bf16.msra.mxu0 %v13491_v19  ;;  %5942 = vmatpush1.bf16.msra.mxu1 %v13492_v61 }
 0x688   :  { %5902 = vmatprep.subr.bf16.mxu0 %v13493_v39  ;;  %5943 = vmatprep.subr.bf16.mxu1 %v13494_v48 }
 0x68b   :  { %5903 = vmatpush1.bf16.msra.mxu0 %v13495_v51  ;;  %5944 = vmatpush1.bf16.msra.mxu1 %v13496_v3 }
 0x68c   :  { %6206 = vmatprep.subr.bf16.mxu0 %v12192_v37  ;;  %6247 = vmatprep.subr.bf16.mxu1 %v12197_v52 }
 0x701   :  { %v4911_v56 = vpop.f32.mrb[36].mxu0  ;;  %v4952_v10 = vpop.f32.mrb[36].mxu1 }
 0x702   :  { %v4912_v62 = vadd.f32 %v4911_v56, %v4540_v35  ;;  %v4913_v1 = vpop.f32.mrb[37].mxu0  ;;  %v4954_v6 = vpop.f32.mrb[37].mxu1  ;;  %v4953_v36 = vadd.f32 %v4952_v10, %v4548_v28 }
 0x703   :  { %v4914_v7 = vadd.f32 %v4913_v1, %v4544_v63  ;;  %v4915_v8 = vpop.f32.mrb[38].mxu0  ;;  %v4956_v9 = vpop.f32.mrb[38].mxu1  ;;  %v4955_v27 = vadd.f32 %v4954_v6, %v4552_v25 }
 0x704   :  { %v8605_v11 = vmul.f32 -1.442695, %v4912_v62  ;;  %v4916_v12 = vpop.f32.mrb[39].mxu0  ;;  %v4957_v26 = vpop.f32.mrb[39].mxu1 }
 0x705   :  { %v8606_v23 = vmul.f32 -1.442695, %v4914_v7  ;;  %v8607_v22 = vmul.f32 -1.442695, %v4955_v27 }
 0x706   :  { %9755 = vpow2.f32 %v8605_v11 }
 0x707   :  { %9757 = vpow2.f32 %v8606_v23 }
 0x708   :  { %9759 = vpow2.f32 %v8607_v22 }
 0x709   :  { %9761 = vtanh.f32 %v4953_v36 }
 0x710   :  { %v9756_v32 = vpop.eup %9755 }
 0x711   :  { %v9758_v18 = vpop.eup %9757  ;;  %v4963_v16 = vadd.f32 1.0, %v9756_v32 }
 0x712   :  { %v4969_v17 = vadd.f32 1.0, %v9758_v18  ;;  %v9760_v13 = vpop.eup %9759 }
 0x713   :  { %9763 = vrcp.f32 %v4963_v16  ;;  %v9762_v14 = vpop.eup %9761  ;;  %v4976_v40 = vadd.f32 1.0, %v9760_v13  ;;  %v8650_v16 = vld.sshfl [vmem:[#allocation3] sm:$0x11 pattern:$0x75316420] }
 0x714   :  { %9765 = vrcp.f32 %v4969_v17 }
 0x715   :  { %9767 = vrcp.f32 %v4976_v40 }
 0x71d   :  { %v9764_v31 = vpop.eup %9763 }
 0x71e   :  { %v9766_v30 = vpop.eup %9765  ;;  %v4980_v29 = vmul.f32 %v9764_v31, %v9762_v14  ;;  %v5394_v31 = vcombine.high %v8650_v16, %v8650_v16 }
 0x71f   :  { %v4979_v41 = vmul.f32 %v9766_v30, %v4959_v20  ;;  %v9768_v48 = vpop.eup %9767 }
 0x721   :  { %v4981_v42 = vadd.f32 %v4980_v29, %v4979_v41  ;;  %v5245_v43 = vpop.f32.mrb[40].mxu0  ;;  %v5286_v44 = vpop.f32.mrb[40].mxu1  ;;  %v5401_v41 = vrot.slane %v8650_v16, %v10543_v2  ;;  %v12368_v16 = vld [vmem:[%s12991_s1 + $0xcc] ss:$16 sps:$4 sm:$0xff]  }
 0x722   :  { %v5247_v45 = vpop.f32.mrb[41].mxu0  ;;  %v5288_v46 = vpop.f32.mrb[41].mxu1 }
 0x723   :  { %9769 = vtanh.f32 %v4981_v42  ;;  %4984 = vst [vmem:[#allocation4] sm:$0x3] %v4981_v42  ;;  %v5297_v47 = vcombine.low %v5245_v43, %v5247_v45  ;;  %v5298_v54 = vcombine.low %v5286_v44, %v5288_v46  ;;  %v5249_v58 = vpop.f32.mrb[42].mxu0  ;;  %v5290_v53 = vpop.f32.mrb[42].mxu1  ;;  %v5408_v44 = vrot.slane %v5394_v31, %v10543_v2  ;;  %v12392_v31 = vld [vmem:[%s12991_s1 + $0xec] ss:$16 sps:$4 sm:$0xff]  }
 0x724   :  { %v5250_v0 = vpop.f32.mrb[43].mxu0  ;;  %v5291_v57 = vpop.f32.mrb[43].mxu1 }
 0x725   :  { %v5305_v34 = vrot.slane %v5297_v47, %v10543_v2  ;;  %v5312_v55 = vrot.slane %v5298_v54, %v10543_v2 }
 0x727   :  { %v5313_v50 = vcombine.low %v5305_v34, %v5312_v55  ;;  %v5314_v5 = vcombine.high %v5305_v34, %v5312_v55 }
 0x729   :  { %v5321_v38 = vrot.slane %v5313_v50, %v10543_v2  ;;  %v5328_v19 = vrot.slane %v5314_v5, %v10543_v2 }
 0x72b   :  { %v5331_v61 = vadd.f32 %v8610_v4, %v5321_v38  ;;  %v5332_v39 = vadd.f32 %v8611_v59, %v5328_v19 }
 0x72d   :  { %v9770_v51 = vpop.eup %9769  ;;  %v8644_v3 = vmul.f32 -1.442695, %v5331_v61  ;;  %v8645_v60 = vmul.f32 -1.442695, %v5332_v39  ;;  %v5348_v35 = vrot.slane %v5331_v61, 1  ;;  %v5349_v63 = vrot.slane %v5332_v39, 1 }
 0x72e   :  { %v4983_v56 = vmul.f32 %v9770_v51, %v9768_v48  ;;  %v5370_v7 = vrot.slane %v5331_v61, 3  ;;  %v5371_v8 = vrot.slane %v5332_v39, 3  ;;  %v5364_v9 = vrot.slane %v5331_v61, 2  ;;  %v12231_v51 = vld [vmem:[%s12991_s1] ss:$16 sps:$4 sm:$0xff]  }
 0x72f   :  { %9771 = vpow2.f32 %v8644_v3  ;;  %v8646_v10 = vmul.f32 -1.442695, %v5348_v35  ;;  %v8647_v62 = vmul.f32 -1.442695, %v5349_v63  ;;  %v5365_v11 = vrot.slane %v5332_v39, 2 }
 0x730   :  { %4985 = vst [vmem:[#allocation2 + $0x2] sm:$0x3] %v4983_v56  ;;  %v4993_v1 = vrot.slane %v4983_v56, %v10543_v2  ;;  %9773 = vpow2.f32 %v8645_v60  ;;  %v8648_v12 = vmul.f32 -1.442695, %v5370_v7  ;;  %v8649_v26 = vmul.f32 -1.442695, %v5371_v8 }
 0x731   :  { %9775 = vpow2.f32 %v8646_v10  ;;  %v12236_v3 = vld [vmem:[%s12991_s1 + $0x8] ss:$16 sps:$4 sm:$0xff]   ;;  %v12241_v35 = vld [vmem:[%s12991_s1 + $0x24] ss:$16 sps:$4 sm:$0xff]   ;;  %v12246_v63 = vld [vmem:[%s12991_s1 + $0x2c] ss:$16 sps:$4 sm:$0xff]  }
 0x732   :  { %v4994_v6 = vcombine.high %v4993_v1, %v4993_v1  ;;  %8608 = vst.sshfl [vmem:[%s12996_s6 + $0x4] sm:$0x1 pattern:$0x73625140] %v4993_v1  ;;  %9777 = vpow2.f32 %v8647_v62  ;;  %v12253_v56 = vld [vmem:[%s12991_s1 + $0x20] ss:$16 sps:$4 sm:$0xff]  }
 0x733   :  { %9779 = vtanh.f32 %v5364_v9  ;;  %v12258_v10 = vld [vmem:[%s12991_s1 + $0x28] ss:$16 sps:$4 sm:$0xff]   ;;  %v12265_v62 = vld [vmem:[%s12991_s1 + $0x44] ss:$16 sps:$4 sm:$0xff]   ;;  %v12270_v1 = vld [vmem:[%s12991_s1 + $0x4c] ss:$16 sps:$4 sm:$0xff]  }
 0x734   :  { %8609 = vst.sshfl [vmem:[%s12996_s6 + $0xc] sm:$0x1 pattern:$0x73625140] %v4994_v6  ;;  %9781 = vtanh.f32 %v5365_v11  ;;  %v12279_v6 = vld [vmem:[%s12991_s1 + $0x40] ss:$16 sps:$4 sm:$0xff]  }
 0x735   :  { %9783 = vpow2.f32 %v8648_v12  ;;  %v12284_v7 = vld [vmem:[%s12991_s1 + $0x48] ss:$16 sps:$4 sm:$0xff]   ;;  %v12291_v8 = vld [vmem:[%s12991_s1 + $0x64] ss:$16 sps:$4 sm:$0xff]   ;;  %v12296_v9 = vld [vmem:[%s12991_s1 + $0x6c] ss:$16 sps:$4 sm:$0xff]  }
 0x736   :  { %9785 = vpow2.f32 %v8649_v26  ;;  %v12303_v11 = vld [vmem:[%s12991_s1 + $0x60] ss:$16 sps:$4 sm:$0xff]   ;;  %v12308_v12 = vld [vmem:[%s12991_s1 + $0x68] ss:$16 sps:$4 sm:$0xff]   ;;  %v12315_v26 = vld [vmem:[%s12991_s1 + $0x84] ss:$16 sps:$4 sm:$0xff]  }
 0x739   :  { %v9772_v23 = vpop.eup %9771 }
 0x73a   :  { %v9774_v25 = vpop.eup %9773  ;;  %v5340_v27 = vadd.f32 1.0, %v9772_v23  ;;  %v12320_v23 = vld [vmem:[%s12991_s1 + $0x8c] ss:$16 sps:$4 sm:$0xff]  }
 0x73b   :  { %v9776_v28 = vpop.eup %9775  ;;  %v5341_v22 = vadd.f32 1.0, %v9774_v25  ;;  %v12327_v25 = vld [vmem:[%s12991_s1 + $0x80] ss:$16 sps:$4 sm:$0xff]  }
 0x73c   :  { %v9778_v36 = vpop.eup %9777  ;;  %9787 = vrcp.f32 %v5340_v27  ;;  %v5358_v32 = vadd.f32 1.0, %v9776_v28  ;;  %v12332_v27 = vld [vmem:[%s12991_s1 + $0x88] ss:$16 sps:$4 sm:$0xff]   ;;  %v12339_v28 = vld [vmem:[%s12991_s1 + $0xa4] ss:$16 sps:$4 sm:$0xff]  }
 0x73d   :  { %9789 = vrcp.f32 %v5341_v22  ;;  %v5359_v18 = vadd.f32 1.0, %v9778_v36  ;;  %v9780_v17 = vpop.eup %9779  ;;  %v12344_v22 = vld [vmem:[%s12991_s1 + $0xac] ss:$16 sps:$4 sm:$0xff]   ;;  %v12351_v36 = vld [vmem:[%s12991_s1 + $0xa0] ss:$16 sps:$4 sm:$0xff]  }
 0x73e   :  { %9791 = vrcp.f32 %v5358_v32  ;;  %v9782_v13 = vpop.eup %9781  ;;  %v12356_v32 = vld [vmem:[%s12991_s1 + $0xa8] ss:$16 sps:$4 sm:$0xff]  }
 0x73f   :  { %9793 = vrcp.f32 %v5359_v18  ;;  %v9784_v14 = vpop.eup %9783  ;;  %v12363_v18 = vld [vmem:[%s12991_s1 + $0xc4] ss:$16 sps:$4 sm:$0xff]  }
 0x740   :  { %v9786_v30 = vpop.eup %9785  ;;  %v5380_v40 = vadd.f32 1.0, %v9784_v14  ;;  %v12387_v14 = vld [vmem:[%s12991_s1 + $0xe4] ss:$16 sps:$4 sm:$0xff]  }
 0x741   :  { %v5381_v43 = vadd.f32 1.0, %v9786_v30  ;;  %v12399_v30 = vld [vmem:[%s12991_s1 + $0xe0] ss:$16 sps:$4 sm:$0xff]  }
 0x742   :  { %9795 = vrcp.f32 %v5380_v40 }
 0x743   :  { %9797 = vrcp.f32 %v5381_v43  ;;  %v12423_v43 = vld [vmem:[%s12992_s2] ss:$16 sps:$4 sm:$0xff]  }
 0x746   :  { %v9788_v29 = vpop.eup %9787 }
 0x747   :  { %v9790_v20 = vpop.eup %9789  ;;  %v5413_v47 = vmul.f32 %v9788_v29, %v9780_v17  ;;  %v12375_v17 = vld [vmem:[%s12991_s1 + $0xc0] ss:$16 sps:$4 sm:$0xff]   ;;  %v12404_v29 = vld [vmem:[%s12991_s1 + $0xe8] ss:$16 sps:$4 sm:$0xff]  }
 0x748   :  { %v9792_v42 = vpop.eup %9791  ;;  %v5414_v58 = vmul.f32 %v9790_v20, %v9782_v13  ;;  %v12380_v13 = vld [vmem:[%s12991_s1 + $0xc8] ss:$16 sps:$4 sm:$0xff]  }
 0x749   :  { %v9794_v45 = vpop.eup %9793  ;;  %v5411_v46 = vmul.f32 %v9792_v42, %v5401_v41  ;;  %v12413_v41 = vld [vmem:[%s12992_s2 + $0x4] ss:$16 sps:$4 sm:$0xff]   ;;  %v12418_v42 = vld [vmem:[%s12992_s2 + $0xc] ss:$16 sps:$4 sm:$0xff]  }
 0x74a   :  { %v5412_v54 = vmul.f32 %v9794_v45, %v5408_v44  ;;  %v12428_v44 = vld [vmem:[%s12992_s2 + $0x8] ss:$16 sps:$4 sm:$0xff]   ;;  %v12437_v45 = vld [vmem:[%s12992_s2 + $0x24] ss:$16 sps:$4 sm:$0xff]  }
 0x74b   :  { %v5415_v53 = vadd.f32 %v5413_v47, %v5411_v46  ;;  %v12442_v46 = vld [vmem:[%s12992_s2 + $0x2c] ss:$16 sps:$4 sm:$0xff]   ;;  %v12447_v47 = vld [vmem:[%s12992_s2 + $0x20] ss:$16 sps:$4 sm:$0xff]  }
 0x74c   :  { %v5416_v0 = vadd.f32 %v5414_v58, %v5412_v54  ;;  %v9796_v55 = vpop.eup %9795  ;;  %v12452_v54 = vld [vmem:[%s12992_s2 + $0x28] ss:$16 sps:$4 sm:$0xff]   ;;  %v12461_v58 = vld [vmem:[%s12992_s2 + $0x44] ss:$16 sps:$4 sm:$0xff]  }
 0x74d   :  { %9799 = vtanh.f32 %v5415_v53  ;;  %v9798_v50 = vpop.eup %9797  ;;  %13501 = vst [vmem:[#allocation15_spill] sm:$0xff] %v12461_v58 }
 0x74e   :  { %9801 = vtanh.f32 %v5416_v0  ;;  %v5423_v57 = vcombine.low %v5415_v53, %v5416_v0  ;;  %v12466_v53 = vld [vmem:[%s12992_s2 + $0x4c] ss:$16 sps:$4 sm:$0xff]   ;;  %v12471_v0 = vld [vmem:[%s12992_s2 + $0x40] ss:$16 sps:$4 sm:$0xff]  }
 0x74f   :  { %13502 = vst [vmem:[#allocation16_spill] sm:$0xff] %v12466_v53  ;;  %13503 = vst [vmem:[#allocation17_spill] sm:$0xff] %v12471_v0 }
 0x750   :  { %v5430_v34 = vrot.slane %v5423_v57, %v10543_v2  ;;  %v12476_v57 = vld [vmem:[%s12992_s2 + $0x48] ss:$16 sps:$4 sm:$0xff]  }
 0x751   :  { %13504 = vst [vmem:[#allocation18_spill] sm:$0xff] %v12476_v57 }
 0x752   :  { %8651 = vst.sshfl [vmem:[#allocation3] sm:$0x5 pattern:$0x73625140] %v5430_v34  ;;  %v12485_v34 = vld [vmem:[%s12992_s2 + $0x64] ss:$16 sps:$4 sm:$0xff]  }
 0x753   :  { %13505 = vst [vmem:[#allocation19_spill] sm:$0xff] %v12485_v34 }
 0x757   :  { %v9800_v5 = vpop.eup %9799 }
 0x758   :  { %v9802_v4 = vpop.eup %9801  ;;  %v5419_v59 = vmul.f32 %v9800_v5, %v9796_v55  ;;  %v12490_v55 = vld [vmem:[%s12992_s2 + $0x6c] ss:$16 sps:$4 sm:$0xff]   ;;  %v12500_v5 = vld [vmem:[%s12992_s2 + $0x68] ss:$16 sps:$4 sm:$0xff]  }
 0x759   :  { %v5420_v38 = vmul.f32 %v9802_v4, %v9798_v50  ;;  %13506 = vst [vmem:[#allocation20_spill] sm:$0xff] %v12490_v55  ;;  %v12495_v50 = vld [vmem:[%s12992_s2 + $0x60] ss:$16 sps:$4 sm:$0xff]   ;;  %13508 = vst [vmem:[#allocation22_spill] sm:$0xff] %v12500_v5  ;;  %v12509_v4 = vld [vmem:[%s12992_s2 + $0x84] ss:$16 sps:$4 sm:$0xff]  }
 0x75a   :  { %13507 = vst [vmem:[#allocation21_spill] sm:$0xff] %v12495_v50  ;;  %13509 = vst [vmem:[#allocation23_spill] sm:$0xff] %v12509_v4 }
 0x75b   :  { %v5442_v19 = vcombine.low %v5419_v59, %v5420_v38  ;;  %v12514_v59 = vld [vmem:[%s12992_s2 + $0x8c] ss:$16 sps:$4 sm:$0xff]   ;;  %v12519_v38 = vld [vmem:[%s12992_s2 + $0x80] ss:$16 sps:$4 sm:$0xff]  }
 0x75c   :  { %13510 = vst [vmem:[#allocation24_spill] sm:$0xff] %v12514_v59  ;;  %13511 = vst [vmem:[#allocation25_spill] sm:$0xff] %v12519_v38 }
 0x75d   :  { %8652 = vst.sshfl [vmem:[#allocation2] sm:$0x11 pattern:$0x75316420] %v5442_v19  ;;  %v12524_v19 = vld [vmem:[%s12992_s2 + $0x88] ss:$16 sps:$4 sm:$0xff]  }
 0x75e   :  { %13512 = vst [vmem:[#allocation26_spill] sm:$0xff] %v12524_v19 }
 0x764   :  { %v8653_v61 = vld.sshfl [vmem:[#allocation2] sm:$0x33 pattern:$0x76325410] }
 0x765   :  { %v5461_v39 = vcombine.high %v8653_v61, %v8653_v61  ;;  %v5464_v60 = vpack.c.bf16 %v8653_v61, %v8653_v61  ;;  %v6012_v20 = vld [vmem:[#allocation2] sm:$0x3]  ;;  %v12533_v61 = vld [vmem:[%s12992_s2 + $0xa4] ss:$16 sps:$4 sm:$0xff]  }
 0x766   :  { %v6013_v40 = vpack.c.bf16 %v6012_v20, %v6012_v20  ;;  %13513 = vst [vmem:[#allocation27_spill] sm:$0xff] %v12533_v61  ;;  %v12557_v20 = vld [vmem:[%s12992_s2 + $0xc4] ss:$16 sps:$4 sm:$0xff]  }
 0x767   :  { %v5465_v48 = vpack.c.bf16 %v5461_v39, %v5461_v39  ;;  %v12538_v39 = vld [vmem:[%s12992_s2 + $0xac] ss:$16 sps:$4 sm:$0xff]   ;;  %13517 = vst [vmem:[#allocation31_spill] sm:$0xff] %v12557_v20 }
 0x768   :  { %13514 = vst [vmem:[#allocation28_spill] sm:$0xff] %v12538_v39 }
 0x769   :  { %5904 = vmatprep.mubr.bf16.mxu0 %v5465_v48  ;;  %5945 = vmatprep.mubr.bf16.mxu1 %v5465_v48  ;;  %v12543_v48 = vld [vmem:[%s12992_s2 + $0xa0] ss:$16 sps:$4 sm:$0xff]  }
 0x76a   :  { %5905 = vmatmul.mubr.bf16.vlgmr.msra.gmra.mrb[44].mxu0 %v5464_v60  ;;  %5946 = vmatmul.mubr.bf16.vlgmr.msra.gmra.mrb[44].mxu1 %v5464_v60  ;;  %13515 = vst [vmem:[#allocation29_spill] sm:$0xff] %v12543_v48  ;;  %v12548_v60 = vld [vmem:[%s12992_s2 + $0xa8] ss:$16 sps:$4 sm:$0xff]  }
 0x76b   :  { %6207 = vmatpush1.bf16.msra.mxu0 %v12231_v51  ;;  %6248 = vmatpush1.bf16.msra.mxu1 %v12236_v3  ;;  %13516 = vst [vmem:[#allocation30_spill] sm:$0xff] %v12548_v60 }
 0x76c   :  { %6208 = vmatprep.subr.bf16.mxu0 %v12241_v35  ;;  %6249 = vmatprep.subr.bf16.mxu1 %v12246_v63 }
 0x76d   :  { %6238 = vmatprep.mubr.bf16.mxu0 %v13238_v15  ;;  %6279 = vmatprep.mubr.bf16.mxu1 %v13238_v15 }
 0x76f   :  { %6209 = vmatpush1.bf16.msra.mxu0 %v12253_v56  ;;  %6250 = vmatpush1.bf16.msra.mxu1 %v12258_v10 }
 0x770   :  { %6210 = vmatprep.subr.bf16.mxu0 %v12265_v62  ;;  %6251 = vmatprep.subr.bf16.mxu1 %v12270_v1 }
 0x773   :  { %6211 = vmatpush1.bf16.msra.mxu0 %v12279_v6  ;;  %6252 = vmatpush1.bf16.msra.mxu1 %v12284_v7 }
 0x774   :  { %6212 = vmatprep.subr.bf16.mxu0 %v12291_v8  ;;  %6253 = vmatprep.subr.bf16.mxu1 %v12296_v9 }
 0x777   :  { %6213 = vmatpush1.bf16.msra.mxu0 %v12303_v11  ;;  %6254 = vmatpush1.bf16.msra.mxu1 %v12308_v12 }
 0x778   :  { %6214 = vmatprep.subr.bf16.mxu0 %v12315_v26  ;;  %6255 = vmatprep.subr.bf16.mxu1 %v12320_v23 }
 0x77b   :  { %6215 = vmatpush1.bf16.msra.mxu0 %v12327_v25  ;;  %6256 = vmatpush1.bf16.msra.mxu1 %v12332_v27 }
 0x77c   :  { %6216 = vmatprep.subr.bf16.mxu0 %v12339_v28  ;;  %6257 = vmatprep.subr.bf16.mxu1 %v12344_v22 }
 0x77f   :  { %6217 = vmatpush1.bf16.msra.mxu0 %v12351_v36  ;;  %6258 = vmatpush1.bf16.msra.mxu1 %v12356_v32 }
 0x780   :  { %6218 = vmatprep.subr.bf16.mxu0 %v12363_v18  ;;  %6259 = vmatprep.subr.bf16.mxu1 %v12368_v16 }
 0x783   :  { %6219 = vmatpush1.bf16.msra.mxu0 %v12375_v17  ;;  %6260 = vmatpush1.bf16.msra.mxu1 %v12380_v13 }
 0x784   :  { %6220 = vmatprep.subr.bf16.mxu0 %v12387_v14  ;;  %6261 = vmatprep.subr.bf16.mxu1 %v12392_v31 }
 0x787   :  { %6221 = vmatpush1.bf16.msra.mxu0 %v12399_v30  ;;  %6262 = vmatpush1.bf16.msra.mxu1 %v12404_v29 }
 0x788   :  { %6867 = vmatprep.subr.bf16.mxu0 %v12413_v41  ;;  %6908 = vmatprep.subr.bf16.mxu1 %v12418_v42 }
 0x78a   :  { %6239 = vmatmul.mubr.bf16.vlgmr.msra.gmra.mrb[48].mxu0 %v6013_v40  ;;  %6280 = vmatmul.mubr.bf16.vlgmr.msra.gmra.mrb[48].mxu1 %v6013_v40  ;;  %v12562_v40 = vld [vmem:[%s12992_s2 + $0xcc] ss:$16 sps:$4 sm:$0xff]  }
 0x78b   :  { %6868 = vmatpush1.bf16.msra.mxu0 %v12423_v43  ;;  %6909 = vmatpush1.bf16.msra.mxu1 %v12428_v44  ;;  %13518 = vst [vmem:[#allocation32_spill] sm:$0xff] %v12562_v40 }
 0x78c   :  { %6869 = vmatprep.subr.bf16.mxu0 %v12437_v45  ;;  %6910 = vmatprep.subr.bf16.mxu1 %v12442_v46 }
 0x78f   :  { %6870 = vmatpush1.bf16.msra.mxu0 %v12447_v47  ;;  %6911 = vmatpush1.bf16.msra.mxu1 %v12452_v54 }
 0x790   :  { %6871 = vmatprep.subr.bf16.mxu0 %v12461_v58  ;;  %6912 = vmatprep.subr.bf16.mxu1 %v12466_v53 }
 0x793   :  { %6872 = vmatpush1.bf16.msra.mxu0 %v12471_v0  ;;  %6913 = vmatpush1.bf16.msra.mxu1 %v12476_v57 }
 0x794   :  { %6873 = vmatprep.subr.bf16.mxu0 %v12485_v34  ;;  %6914 = vmatprep.subr.bf16.mxu1 %v12490_v55 }
 0x797   :  { %6874 = vmatpush1.bf16.msra.mxu0 %v12495_v50  ;;  %6915 = vmatpush1.bf16.msra.mxu1 %v12500_v5 }
 0x798   :  { %6875 = vmatprep.subr.bf16.mxu0 %v12509_v4  ;;  %6916 = vmatprep.subr.bf16.mxu1 %v12514_v59 }
 0x79b   :  { %6876 = vmatpush1.bf16.msra.mxu0 %v12519_v38  ;;  %6917 = vmatpush1.bf16.msra.mxu1 %v12524_v19  ;;  %v12764_v19 = vld [vmem:[%s12992_s2 + $0x1c8] ss:$16 sps:$4 sm:$0xff]  }
 0x79c   :  { %6877 = vmatprep.subr.bf16.mxu0 %v12533_v61  ;;  %6918 = vmatprep.subr.bf16.mxu1 %v12538_v39  ;;  %v12567_v61 = vld [vmem:[%s12992_s2 + $0xc0] ss:$16 sps:$4 sm:$0xff]   ;;  %v12586_v39 = vld [vmem:[%s12992_s2 + $0xec] ss:$16 sps:$4 sm:$0xff]   ;;  %13552 = vst [vmem:[#allocation66_spill] sm:$0xff] %v12764_v19 }
 0x79d   :  { %13519 = vst [vmem:[#allocation33_spill] sm:$0xff] %v12567_v61  ;;  %13522 = vst [vmem:[#allocation36_spill] sm:$0xff] %v12586_v39 }
 0x79f   :  { %6878 = vmatpush1.bf16.msra.mxu0 %v12543_v48  ;;  %6919 = vmatpush1.bf16.msra.mxu1 %v12548_v60  ;;  %v12572_v48 = vld [vmem:[%s12992_s2 + $0xc8] ss:$16 sps:$4 sm:$0xff]   ;;  %v12581_v60 = vld [vmem:[%s12992_s2 + $0xe4] ss:$16 sps:$4 sm:$0xff]  }
 0x7a0   :  { %13520 = vst [vmem:[#allocation34_spill] sm:$0xff] %v12572_v48  ;;  %6879 = vmatprep.subr.bf16.mxu0 %v12557_v20  ;;  %6920 = vmatprep.subr.bf16.mxu1 %v12562_v40  ;;  %13521 = vst [vmem:[#allocation35_spill] sm:$0xff] %v12581_v60  ;;  %v12591_v20 = vld [vmem:[%s12992_s2 + $0xe0] ss:$16 sps:$4 sm:$0xff]   ;;  %v12610_v40 = vld [vmem:[%s12992_s2 + $0x10c] ss:$16 sps:$4 sm:$0xff]  }
 0x7a1   :  { %13523 = vst [vmem:[#allocation37_spill] sm:$0xff] %v12591_v20  ;;  %13526 = vst [vmem:[#allocation40_spill] sm:$0xff] %v12610_v40 }
 0x7a3   :  { %6880 = vmatpush1.bf16.msra.mxu0 %v12567_v61  ;;  %6921 = vmatpush1.bf16.msra.mxu1 %v12572_v48  ;;  %v12596_v61 = vld [vmem:[%s12992_s2 + $0xe8] ss:$16 sps:$4 sm:$0xff]   ;;  %v12605_v48 = vld [vmem:[%s12992_s2 + $0x104] ss:$16 sps:$4 sm:$0xff]  }
 0x7a4   :  { %13524 = vst [vmem:[#allocation38_spill] sm:$0xff] %v12596_v61  ;;  %6881 = vmatprep.subr.bf16.mxu0 %v12581_v60  ;;  %6922 = vmatprep.subr.bf16.mxu1 %v12586_v39  ;;  %13525 = vst [vmem:[#allocation39_spill] sm:$0xff] %v12605_v48  ;;  %v12615_v60 = vld [vmem:[%s12992_s2 + $0x100] ss:$16 sps:$4 sm:$0xff]   ;;  %v12634_v39 = vld [vmem:[%s12992_s2 + $0x12c] ss:$16 sps:$4 sm:$0xff]  }
 0x7a5   :  { %13527 = vst [vmem:[#allocation41_spill] sm:$0xff] %v12615_v60  ;;  %13530 = vst [vmem:[#allocation44_spill] sm:$0xff] %v12634_v39 }
 0x7a7   :  { %6882 = vmatpush1.bf16.msra.mxu0 %v12591_v20  ;;  %6923 = vmatpush1.bf16.msra.mxu1 %v12596_v61  ;;  %v12620_v20 = vld [vmem:[%s12992_s2 + $0x108] ss:$16 sps:$4 sm:$0xff]   ;;  %v12629_v61 = vld [vmem:[%s12992_s2 + $0x124] ss:$16 sps:$4 sm:$0xff]  }
 0x7a8   :  { %13528 = vst [vmem:[#allocation42_spill] sm:$0xff] %v12620_v20  ;;  %6883 = vmatprep.subr.bf16.mxu0 %v12605_v48  ;;  %6924 = vmatprep.subr.bf16.mxu1 %v12610_v40  ;;  %13529 = vst [vmem:[#allocation43_spill] sm:$0xff] %v12629_v61  ;;  %v12639_v48 = vld [vmem:[%s12992_s2 + $0x120] ss:$16 sps:$4 sm:$0xff]   ;;  %v12658_v40 = vld [vmem:[%s12992_s2 + $0x14c] ss:$16 sps:$4 sm:$0xff]  }
 0x7a9   :  { %13531 = vst [vmem:[#allocation45_spill] sm:$0xff] %v12639_v48  ;;  %13534 = vst [vmem:[#allocation48_spill] sm:$0xff] %v12658_v40 }
 0x7ab   :  { %6884 = vmatpush1.bf16.msra.mxu0 %v12615_v60  ;;  %6925 = vmatpush1.bf16.msra.mxu1 %v12620_v20  ;;  %v12644_v60 = vld [vmem:[%s12992_s2 + $0x128] ss:$16 sps:$4 sm:$0xff]   ;;  %v12653_v20 = vld [vmem:[%s12992_s2 + $0x144] ss:$16 sps:$4 sm:$0xff]  }
 0x7ac   :  { %13532 = vst [vmem:[#allocation46_spill] sm:$0xff] %v12644_v60  ;;  %6885 = vmatprep.subr.bf16.mxu0 %v12629_v61  ;;  %6926 = vmatprep.subr.bf16.mxu1 %v12634_v39  ;;  %13533 = vst [vmem:[#allocation47_spill] sm:$0xff] %v12653_v20  ;;  %v12663_v61 = vld [vmem:[%s12992_s2 + $0x140] ss:$16 sps:$4 sm:$0xff]   ;;  %v12682_v39 = vld [vmem:[%s12992_s2 + $0x16c] ss:$16 sps:$4 sm:$0xff]  }
 0x7ad   :  { %13535 = vst [vmem:[#allocation49_spill] sm:$0xff] %v12663_v61  ;;  %13538 = vst [vmem:[#allocation52_spill] sm:$0xff] %v12682_v39 }
 0x7af   :  { %6886 = vmatpush1.bf16.msra.mxu0 %v12639_v48  ;;  %6927 = vmatpush1.bf16.msra.mxu1 %v12644_v60  ;;  %v12668_v48 = vld [vmem:[%s12992_s2 + $0x148] ss:$16 sps:$4 sm:$0xff]   ;;  %v12677_v60 = vld [vmem:[%s12992_s2 + $0x164] ss:$16 sps:$4 sm:$0xff]  }
 0x7b0   :  { %13536 = vst [vmem:[#allocation50_spill] sm:$0xff] %v12668_v48  ;;  %6887 = vmatprep.subr.bf16.mxu0 %v12653_v20  ;;  %6928 = vmatprep.subr.bf16.mxu1 %v12658_v40  ;;  %13537 = vst [vmem:[#allocation51_spill] sm:$0xff] %v12677_v60  ;;  %v12687_v20 = vld [vmem:[%s12992_s2 + $0x160] ss:$16 sps:$4 sm:$0xff]   ;;  %v12706_v40 = vld [vmem:[%s12992_s2 + $0x18c] ss:$16 sps:$4 sm:$0xff]  }
 0x7b1   :  { %13539 = vst [vmem:[#allocation53_spill] sm:$0xff] %v12687_v20  ;;  %13542 = vst [vmem:[#allocation56_spill] sm:$0xff] %v12706_v40 }
 0x7b3   :  { %6888 = vmatpush1.bf16.msra.mxu0 %v12663_v61  ;;  %6929 = vmatpush1.bf16.msra.mxu1 %v12668_v48  ;;  %v12692_v61 = vld [vmem:[%s12992_s2 + $0x168] ss:$16 sps:$4 sm:$0xff]   ;;  %v12701_v48 = vld [vmem:[%s12992_s2 + $0x184] ss:$16 sps:$4 sm:$0xff]  }
 0x7b4   :  { %13540 = vst [vmem:[#allocation54_spill] sm:$0xff] %v12692_v61  ;;  %6889 = vmatprep.subr.bf16.mxu0 %v12677_v60  ;;  %6930 = vmatprep.subr.bf16.mxu1 %v12682_v39  ;;  %13541 = vst [vmem:[#allocation55_spill] sm:$0xff] %v12701_v48  ;;  %v12711_v60 = vld [vmem:[%s12992_s2 + $0x180] ss:$16 sps:$4 sm:$0xff]  }
 0x7b5   :  { %13543 = vst [vmem:[#allocation57_spill] sm:$0xff] %v12711_v60  ;;  %v12730_v39 = vld [vmem:[%s12992_s2 + $0x1a0] ss:$16 sps:$4 sm:$0xff]  }
 0x7b6   :  { %13546 = vst [vmem:[#allocation61_spill] sm:$0xff] %v12730_v39 }
 0x7b7   :  { %6890 = vmatpush1.bf16.msra.mxu0 %v12687_v20  ;;  %6931 = vmatpush1.bf16.msra.mxu1 %v12692_v61  ;;  %v12716_v20 = vld [vmem:[%s12992_s2 + $0x188] ss:$16 sps:$4 sm:$0xff]   ;;  %v12723_v61 = vld [vmem:[%s12992_s2 + $0x1a4] ss:$16 sps:$4 sm:$0xff]  }
 0x7b8   :  { %13544 = vst [vmem:[#allocation58_spill] sm:$0xff] %v12716_v20  ;;  %6891 = vmatprep.subr.bf16.mxu0 %v12701_v48  ;;  %6932 = vmatprep.subr.bf16.mxu1 %v12706_v40  ;;  %13545 = vst [vmem:[#allocation59_spill] sm:$0xff] %v12723_v61  ;;  %v12735_v48 = vld [vmem:[%s12992_s2 + $0x1a8] ss:$16 sps:$4 sm:$0xff]   ;;  %v12740_v40 = vld [vmem:[%s12992_s2 + $0x1ac] ss:$16 sps:$4 sm:$0xff]  }
 0x7b9   :  { %13547 = vst [vmem:[#allocation62_spill] sm:$0xff] %v12735_v48  ;;  %13548 = vst [vmem:[#allocation60_spill] sm:$0xff] %v12740_v40 }
 0x7bb   :  { %6892 = vmatpush1.bf16.msra.mxu0 %v12711_v60  ;;  %6933 = vmatpush1.bf16.msra.mxu1 %v12716_v20  ;;  %v12746_v20 = vld [vmem:[%s12992_s2 + $0x1c4] ss:$16 sps:$4 sm:$0xff]   ;;  %v12751_v60 = vld [vmem:[%s12992_s2 + $0x1cc] ss:$16 sps:$4 sm:$0xff]  }
 0x7bc   :  { %6893 = vmatprep.subr.bf16.mxu0 %v12723_v61  ;;  %13549 = vst [vmem:[#allocation63_spill] sm:$0xff] %v12746_v20  ;;  %13550 = vst [vmem:[#allocation64_spill] sm:$0xff] %v12751_v60  ;;  %6934 = vmatprep.subr.bf16.mxu1 %v12740_v40  ;;  %v12759_v61 = vld [vmem:[%s12992_s2 + $0x1c0] ss:$16 sps:$4 sm:$0xff]  }
 0x7bd   :  { %13551 = vst [vmem:[#allocation65_spill] sm:$0xff] %v12759_v61 }
 0x7bf   :  { %6894 = vmatpush1.bf16.msra.mxu0 %v12730_v39  ;;  %6935 = vmatpush1.bf16.msra.mxu1 %v12735_v48  ;;  %v12771_v39 = vld [vmem:[%s12992_s2 + $0x1e4] ss:$16 sps:$4 sm:$0xff]   ;;  %v12776_v48 = vld [vmem:[%s12992_s2 + $0x1ec] ss:$16 sps:$4 sm:$0xff]  }
 0x7c0   :  { %6895 = vmatprep.subr.bf16.mxu0 %v12746_v20  ;;  %6936 = vmatprep.subr.bf16.mxu1 %v12751_v60  ;;  %13553 = vst [vmem:[#allocation67_spill] sm:$0xff] %v12771_v39  ;;  %13554 = vst [vmem:[#allocation68_spill] sm:$0xff] %v12776_v48  ;;  %v12783_v20 = vld [vmem:[%s12992_s2 + $0x1e0] ss:$16 sps:$4 sm:$0xff]   ;;  %v12788_v60 = vld [vmem:[%s12992_s2 + $0x1e8] ss:$16 sps:$4 sm:$0xff]  }
 0x7c1   :  { %13555 = vst [vmem:[#allocation69_spill] sm:$0xff] %v12783_v20  ;;  %13556 = vst [vmem:[#allocation70_spill] sm:$0xff] %v12788_v60 }
 0x7c3   :  { %6896 = vmatpush1.bf16.msra.mxu0 %v12759_v61  ;;  %6937 = vmatpush1.bf16.msra.mxu1 %v12764_v19  ;;  %v5530_v19 = vld [vmem:[%s12993_s3] sm:$0xf] }
 0x7c4   :  { %6897 = vmatprep.subr.bf16.mxu0 %v12771_v39  ;;  %6938 = vmatprep.subr.bf16.mxu1 %v12776_v48  ;;  %v5535_v61 = vrot.slane %v5530_v19, %v13497_v49  ;;  %v5539_v40 = vrot.slane %v5530_v19, %v13498_v33  ;;  %v5547_v34 = vrot.slane %v5530_v19, %v13499_v24 }
 0x7c5   :  { %v5543_v49 = vrot.slane %v5530_v19, %v13500_v21 }
 0x7c7   :  { %6898 = vmatpush1.bf16.msra.mxu0 %v12783_v20  ;;  %6939 = vmatpush1.bf16.msra.mxu1 %v12788_v60 }
 0x7c8   :  { %7201 = vmatprep.subr.bf16.mxu0 %v12192_v37  ;;  %7242 = vmatprep.subr.bf16.mxu1 %v12197_v52 }
 0x83d   :  { %v5906_v38 = vpop.f32.mrb[44].mxu0  ;;  %v5947_v39 = vpop.f32.mrb[44].mxu1 }
 0x83e   :  { %v5907_v59 = vadd.f32 %v5906_v38, %v5535_v61  ;;  %v5908_v48 = vpop.f32.mrb[45].mxu0  ;;  %v5949_v4 = vpop.f32.mrb[45].mxu1  ;;  %v5948_v0 = vadd.f32 %v5947_v39, %v5543_v49 }
 0x83f   :  { %v5909_v20 = vadd.f32 %v5908_v48, %v5539_v40  ;;  %v5910_v5 = vpop.f32.mrb[46].mxu0  ;;  %v5951_v60 = vpop.f32.mrb[46].mxu1  ;;  %v5950_v57 = vadd.f32 %v5949_v4, %v5547_v34 }
 0x840   :  { %v8718_v50 = vmul.f32 -1.442695, %v5907_v59  ;;  %v5911_v37 = vpop.f32.mrb[47].mxu0  ;;  %v5952_v55 = vpop.f32.mrb[47].mxu1 }
 0x841   :  { %v8719_v52 = vmul.f32 -1.442695, %v5909_v20  ;;  %v8720_v33 = vmul.f32 -1.442695, %v5950_v57 }
 0x842   :  { %9803 = vpow2.f32 %v8718_v50  ;;  %v5954_v50 = vld [vmem:[#allocation4] sm:$0x3] }
 0x843   :  { %9805 = vpow2.f32 %v8719_v52 }
 0x844   :  { %9807 = vpow2.f32 %v8720_v33 }
 0x845   :  { %9809 = vtanh.f32 %v5948_v0 }
 0x84c   :  { %v9804_v53 = vpop.eup %9803 }
 0x84d   :  { %v9806_v38 = vpop.eup %9805  ;;  %v5958_v61 = vadd.f32 1.0, %v9804_v53 }
 0x84e   :  { %v5964_v5 = vadd.f32 1.0, %v9806_v38  ;;  %v9808_v59 = vpop.eup %9807 }
 0x84f   :  { %9811 = vrcp.f32 %v5958_v61  ;;  %v9810_v55 = vpop.eup %9809  ;;  %v5971_v40 = vadd.f32 1.0, %v9808_v59 }
 0x850   :  { %9813 = vrcp.f32 %v5964_v5 }
 0x851   :  { %9815 = vrcp.f32 %v5971_v40 }
 0x859   :  { %v9812_v48 = vpop.eup %9811 }
 0x85a   :  { %v9814_v60 = vpop.eup %9813  ;;  %v5975_v20 = vmul.f32 %v9812_v48, %v9810_v55  ;;  %v8723_v48 = vld [vmem:[%s12990_s0 + $0x6] ss:$8 sm:$0xf] }
 0x85b   :  { %v5974_v34 = vmul.f32 %v9814_v60, %v5954_v50  ;;  %v8724_v60 = vld [vmem:[%s12990_s0 + $0x26] ss:$8 sm:$0xf] }
 0x85d   :  { %v5976_v4 = vadd.f32 %v5975_v20, %v5974_v34  ;;  %v6240_v19 = vpop.f32.mrb[48].mxu0  ;;  %v6281_v57 = vpop.f32.mrb[48].mxu1 }
 0x85e   :  { %v6242_v49 = vpop.f32.mrb[49].mxu0  ;;  %v6283_v39 = vpop.f32.mrb[49].mxu1 }
 0x85f   :  { %9817 = vtanh.f32 %v5976_v4  ;;  %5979 = vst [vmem:[#allocation4] sm:$0x3] %v5976_v4  ;;  %v6292_v33 = vcombine.low %v6240_v19, %v6242_v49  ;;  %v6293_v53 = vcombine.low %v6281_v57, %v6283_v39  ;;  %v6244_v0 = vpop.f32.mrb[50].mxu0  ;;  %v6285_v37 = vpop.f32.mrb[50].mxu1 }
 0x860   :  { %v6245_v52 = vpop.f32.mrb[51].mxu0  ;;  %v6286_v38 = vpop.f32.mrb[51].mxu1 }
 0x861   :  { %v6300_v61 = vrot.slane %v6292_v33, %v10543_v2  ;;  %v6307_v5 = vrot.slane %v6293_v53, %v10543_v2  ;;  %v9816_v4 = vpop.eup %9815 }
 0x863   :  { %v6308_v59 = vcombine.low %v6300_v61, %v6307_v5  ;;  %v6309_v55 = vcombine.high %v6300_v61, %v6307_v5 }
 0x865   :  { %v6316_v20 = vrot.slane %v6308_v59, %v10543_v2  ;;  %v6323_v50 = vrot.slane %v6309_v55, %v10543_v2 }
 0x867   :  { %v6326_v40 = vadd.f32 %v8723_v48, %v6316_v20  ;;  %v6327_v34 = vadd.f32 %v8724_v60, %v6323_v50 }
 0x869   :  { %v9818_v19 = vpop.eup %9817  ;;  %v8757_v57 = vmul.f32 -1.442695, %v6326_v40  ;;  %v8758_v49 = vmul.f32 -1.442695, %v6327_v34  ;;  %v6343_v39 = vrot.slane %v6326_v40, 1  ;;  %v6344_v33 = vrot.slane %v6327_v34, 1 }
 0x86a   :  { %v5978_v53 = vmul.f32 %v9818_v19, %v9816_v4  ;;  %v6365_v61 = vrot.slane %v6326_v40, 3  ;;  %v6366_v5 = vrot.slane %v6327_v34, 3  ;;  %v6359_v59 = vrot.slane %v6326_v40, 2 }
 0x86b   :  { %9819 = vpow2.f32 %v8757_v57  ;;  %v8759_v0 = vmul.f32 -1.442695, %v6343_v39  ;;  %v8760_v37 = vmul.f32 -1.442695, %v6344_v33  ;;  %v6360_v55 = vrot.slane %v6327_v34, 2 }
 0x86c   :  { %v5988_v52 = vrot.slane %v5978_v53, %v10543_v2  ;;  %5980 = vst [vmem:[#allocation2 + $0x2] sm:$0x3] %v5978_v53  ;;  %9821 = vpow2.f32 %v8758_v49  ;;  %v8761_v48 = vmul.f32 -1.442695, %v6365_v61  ;;  %v8762_v60 = vmul.f32 -1.442695, %v6366_v5 }
 0x86d   :  { %9823 = vpow2.f32 %v8759_v0  ;;  %v8763_v40 = vld.sshfl [vmem:[#allocation3] sm:$0x11 pattern:$0x75316420] }
 0x86e   :  { %v5989_v38 = vcombine.high %v5988_v52, %v5988_v52  ;;  %8721 = vst.sshfl [vmem:[%s12996_s6 + $0x5] sm:$0x1 pattern:$0x73625140] %v5988_v52  ;;  %9825 = vpow2.f32 %v8760_v37  ;;  %v6389_v37 = vcombine.high %v8763_v40, %v8763_v40 }
 0x86f   :  { %9827 = vtanh.f32 %v6359_v59  ;;  %v6396_v59 = vrot.slane %v8763_v40, %v10543_v2 }
 0x870   :  { %8722 = vst.sshfl [vmem:[%s12996_s6 + $0xd] sm:$0x1 pattern:$0x73625140] %v5989_v38  ;;  %9829 = vtanh.f32 %v6360_v55 }
 0x871   :  { %9831 = vpow2.f32 %v8761_v48 }
 0x872   :  { %9833 = vpow2.f32 %v8762_v60  ;;  %v6403_v60 = vrot.slane %v6389_v37, %v10543_v2 }
 0x875   :  { %v9820_v20 = vpop.eup %9819 }
 0x876   :  { %v9822_v50 = vpop.eup %9821  ;;  %v6335_v4 = vadd.f32 1.0, %v9820_v20 }
 0x877   :  { %v9824_v19 = vpop.eup %9823  ;;  %v6336_v57 = vadd.f32 1.0, %v9822_v50 }
 0x878   :  { %v9826_v49 = vpop.eup %9825  ;;  %9835 = vrcp.f32 %v6335_v4  ;;  %v6353_v39 = vadd.f32 1.0, %v9824_v19 }
 0x879   :  { %9837 = vrcp.f32 %v6336_v57  ;;  %v6354_v33 = vadd.f32 1.0, %v9826_v49  ;;  %v9828_v34 = vpop.eup %9827 }
 0x87a   :  { %9839 = vrcp.f32 %v6353_v39  ;;  %v9830_v53 = vpop.eup %9829 }
 0x87b   :  { %9841 = vrcp.f32 %v6354_v33  ;;  %v9832_v0 = vpop.eup %9831 }
 0x87c   :  { %v9834_v52 = vpop.eup %9833  ;;  %v6375_v5 = vadd.f32 1.0, %v9832_v0 }
 0x87d   :  { %v6376_v48 = vadd.f32 1.0, %v9834_v52 }
 0x87e   :  { %9843 = vrcp.f32 %v6375_v5  ;;  %v13597_v5 = vld [vmem:[#allocation55_spill] sm:$0xff] }
 0x87f   :  { %9845 = vrcp.f32 %v6376_v48  ;;  %v13599_v48 = vld [vmem:[#allocation57_spill] sm:$0xff] }
 0x882   :  { %v9836_v38 = vpop.eup %9835 }
 0x883   :  { %v9838_v61 = vpop.eup %9837  ;;  %v6408_v4 = vmul.f32 %v9836_v38, %v9828_v34 }
 0x884   :  { %v9840_v55 = vpop.eup %9839  ;;  %v6409_v57 = vmul.f32 %v9838_v61, %v9830_v53 }
 0x885   :  { %v9842_v20 = vpop.eup %9841  ;;  %v6406_v50 = vmul.f32 %v9840_v55, %v6396_v59  ;;  %v13598_v55 = vld [vmem:[#allocation56_spill] sm:$0xff] }
 0x886   :  { %v6407_v19 = vmul.f32 %v9842_v20, %v6403_v60  ;;  %v13600_v60 = vld [vmem:[#allocation58_spill] sm:$0xff]  ;;  %v13601_v20 = vld [vmem:[#allocation59_spill] sm:$0xff] }
 0x887   :  { %v6410_v49 = vadd.f32 %v6408_v4, %v6406_v50  ;;  %v13602_v50 = vld [vmem:[#allocation60_spill] sm:$0xff]  ;;  %v13603_v4 = vld [vmem:[#allocation61_spill] sm:$0xff] }
 0x888   :  { %v6411_v39 = vadd.f32 %v6409_v57, %v6407_v19  ;;  %v9844_v40 = vpop.eup %9843  ;;  %v13604_v19 = vld [vmem:[#allocation62_spill] sm:$0xff]  ;;  %v13605_v57 = vld [vmem:[#allocation63_spill] sm:$0xff] }
 0x889   :  { %9847 = vtanh.f32 %v6410_v49  ;;  %v9846_v21 = vpop.eup %9845 }
 0x88a   :  { %9849 = vtanh.f32 %v6411_v39  ;;  %v6418_v33 = vcombine.low %v6410_v49, %v6411_v39  ;;  %v13606_v49 = vld [vmem:[#allocation64_spill] sm:$0xff]  ;;  %v13607_v39 = vld [vmem:[#allocation65_spill] sm:$0xff] }
 0x88c   :  { %v6425_v0 = vrot.slane %v6418_v33, %v10543_v2  ;;  %v13608_v33 = vld [vmem:[#allocation66_spill] sm:$0xff] }
 0x88e   :  { %8764 = vst.sshfl [vmem:[#allocation3] sm:$0x5 pattern:$0x73625140] %v6425_v0  ;;  %v13609_v0 = vld [vmem:[#allocation67_spill] sm:$0xff] }
 0x893   :  { %v9848_v52 = vpop.eup %9847 }
 0x894   :  { %v9850_v24 = vpop.eup %9849  ;;  %v6414_v37 = vmul.f32 %v9848_v52, %v9844_v40  ;;  %v13610_v40 = vld [vmem:[#allocation68_spill] sm:$0xff]  ;;  %v13611_v52 = vld [vmem:[#allocation69_spill] sm:$0xff] }
 0x895   :  { %v6415_v58 = vmul.f32 %v9850_v24, %v9846_v21  ;;  %v13557_v21 = vld [vmem:[#allocation15_spill] sm:$0xff] }
 0x897   :  { %v6437_v59 = vcombine.low %v6414_v37, %v6415_v58  ;;  %v13596_v58 = vld [vmem:[#allocation54_spill] sm:$0xff] }
 0x898   :  { %v13612_v37 = vld [vmem:[#allocation70_spill] sm:$0xff] }
 0x899   :  { %8765 = vst.sshfl [vmem:[#allocation2] sm:$0x11 pattern:$0x75316420] %v6437_v59  ;;  %v6525_v59 = vld [vmem:[%s12993_s3] sm:$0xf] }
 0x8a0   :  { %v8766_v34 = vld.sshfl [vmem:[#allocation2] sm:$0x33 pattern:$0x76325410] }
 0x8a1   :  { %v6456_v53 = vcombine.high %v8766_v34, %v8766_v34  ;;  %v6459_v61 = vpack.c.bf16 %v8766_v34, %v8766_v34  ;;  %v13613_v34 = vld [vmem:[#allocation11_spill] sm:$0xff] }
 0x8a3   :  { %v6460_v38 = vpack.c.bf16 %v6456_v53, %v6456_v53  ;;  %v6530_v53 = vrot.slane %v6525_v59, %v13613_v34 }
 0x8a5   :  { %6899 = vmatprep.mubr.bf16.mxu0 %v6460_v38  ;;  %6940 = vmatprep.mubr.bf16.mxu1 %v6460_v38  ;;  %v13614_v38 = vld [vmem:[#allocation12_spill] sm:$0xff] }
 0x8a6   :  { %6900 = vmatmul.mubr.bf16.vlgmr.msra.gmra.mrb[52].mxu0 %v6459_v61  ;;  %6941 = vmatmul.mubr.bf16.vlgmr.msra.gmra.mrb[52].mxu1 %v6459_v61  ;;  %v6534_v61 = vrot.slane %v6525_v59, %v13614_v38 }
 0x8a7   :  { %7202 = vmatpush1.bf16.msra.mxu0 %v12231_v51  ;;  %7243 = vmatpush1.bf16.msra.mxu1 %v12236_v3  ;;  %v13558_v51 = vld [vmem:[#allocation16_spill] sm:$0xff]  ;;  %v13559_v3 = vld [vmem:[#allocation17_spill] sm:$0xff] }
 0x8a8   :  { %7203 = vmatprep.subr.bf16.mxu0 %v12241_v35  ;;  %7244 = vmatprep.subr.bf16.mxu1 %v12246_v63  ;;  %v13560_v35 = vld [vmem:[#allocation18_spill] sm:$0xff]  ;;  %v13561_v63 = vld [vmem:[#allocation19_spill] sm:$0xff] }
 0x8a9   :  { %7233 = vmatprep.mubr.bf16.mxu0 %v13238_v15  ;;  %7274 = vmatprep.mubr.bf16.mxu1 %v13238_v15  ;;  %v7007_v15 = vld [vmem:[#allocation2] sm:$0x3] }
 0x8aa   :  { %v7008_v24 = vpack.c.bf16 %v7007_v15, %v7007_v15 }
 0x8ab   :  { %7204 = vmatpush1.bf16.msra.mxu0 %v12253_v56  ;;  %7245 = vmatpush1.bf16.msra.mxu1 %v12258_v10  ;;  %v13562_v56 = vld [vmem:[#allocation20_spill] sm:$0xff]  ;;  %v13563_v10 = vld [vmem:[#allocation21_spill] sm:$0xff] }
 0x8ac   :  { %7205 = vmatprep.subr.bf16.mxu0 %v12265_v62  ;;  %7246 = vmatprep.subr.bf16.mxu1 %v12270_v1  ;;  %v13564_v62 = vld [vmem:[#allocation22_spill] sm:$0xff]  ;;  %v13565_v1 = vld [vmem:[#allocation23_spill] sm:$0xff] }
 0x8af   :  { %7206 = vmatpush1.bf16.msra.mxu0 %v12279_v6  ;;  %7247 = vmatpush1.bf16.msra.mxu1 %v12284_v7  ;;  %v13566_v6 = vld [vmem:[#allocation24_spill] sm:$0xff]  ;;  %v13567_v7 = vld [vmem:[#allocation25_spill] sm:$0xff] }
 0x8b0   :  { %7207 = vmatprep.subr.bf16.mxu0 %v12291_v8  ;;  %7248 = vmatprep.subr.bf16.mxu1 %v12296_v9  ;;  %v13568_v8 = vld [vmem:[#allocation26_spill] sm:$0xff]  ;;  %v13569_v9 = vld [vmem:[#allocation27_spill] sm:$0xff] }
 0x8b3   :  { %7208 = vmatpush1.bf16.msra.mxu0 %v12303_v11  ;;  %7249 = vmatpush1.bf16.msra.mxu1 %v12308_v12  ;;  %v13570_v11 = vld [vmem:[#allocation28_spill] sm:$0xff]  ;;  %v13571_v12 = vld [vmem:[#allocation29_spill] sm:$0xff] }
 0x8b4   :  { %7209 = vmatprep.subr.bf16.mxu0 %v12315_v26  ;;  %7250 = vmatprep.subr.bf16.mxu1 %v12320_v23  ;;  %v13572_v26 = vld [vmem:[#allocation30_spill] sm:$0xff]  ;;  %v13573_v23 = vld [vmem:[#allocation31_spill] sm:$0xff] }
 0x8b7   :  { %7210 = vmatpush1.bf16.msra.mxu0 %v12327_v25  ;;  %7251 = vmatpush1.bf16.msra.mxu1 %v12332_v27  ;;  %v13574_v25 = vld [vmem:[#allocation32_spill] sm:$0xff]  ;;  %v13575_v27 = vld [vmem:[#allocation33_spill] sm:$0xff] }
 0x8b8   :  { %7211 = vmatprep.subr.bf16.mxu0 %v12339_v28  ;;  %7252 = vmatprep.subr.bf16.mxu1 %v12344_v22  ;;  %v13576_v28 = vld [vmem:[#allocation34_spill] sm:$0xff]  ;;  %v13577_v22 = vld [vmem:[#allocation35_spill] sm:$0xff] }
 0x8bb   :  { %7212 = vmatpush1.bf16.msra.mxu0 %v12351_v36  ;;  %7253 = vmatpush1.bf16.msra.mxu1 %v12356_v32  ;;  %v13578_v36 = vld [vmem:[#allocation36_spill] sm:$0xff]  ;;  %v13579_v32 = vld [vmem:[#allocation37_spill] sm:$0xff] }
 0x8bc   :  { %7213 = vmatprep.subr.bf16.mxu0 %v12363_v18  ;;  %7254 = vmatprep.subr.bf16.mxu1 %v12368_v16  ;;  %v13580_v18 = vld [vmem:[#allocation38_spill] sm:$0xff]  ;;  %v13581_v16 = vld [vmem:[#allocation39_spill] sm:$0xff] }
 0x8bf   :  { %7214 = vmatpush1.bf16.msra.mxu0 %v12375_v17  ;;  %7255 = vmatpush1.bf16.msra.mxu1 %v12380_v13  ;;  %v13582_v17 = vld [vmem:[#allocation40_spill] sm:$0xff]  ;;  %v13583_v13 = vld [vmem:[#allocation41_spill] sm:$0xff] }
 0x8c0   :  { %7215 = vmatprep.subr.bf16.mxu0 %v12387_v14  ;;  %7256 = vmatprep.subr.bf16.mxu1 %v12392_v31  ;;  %v13584_v14 = vld [vmem:[#allocation42_spill] sm:$0xff]  ;;  %v13585_v31 = vld [vmem:[#allocation43_spill] sm:$0xff] }
 0x8c3   :  { %7216 = vmatpush1.bf16.msra.mxu0 %v12399_v30  ;;  %7257 = vmatpush1.bf16.msra.mxu1 %v12404_v29  ;;  %v13586_v30 = vld [vmem:[#allocation44_spill] sm:$0xff]  ;;  %v13587_v29 = vld [vmem:[#allocation45_spill] sm:$0xff] }
 0x8c4   :  { %7862 = vmatprep.subr.bf16.mxu0 %v12413_v41  ;;  %7903 = vmatprep.subr.bf16.mxu1 %v12418_v42  ;;  %v13588_v41 = vld [vmem:[#allocation46_spill] sm:$0xff]  ;;  %v13589_v42 = vld [vmem:[#allocation47_spill] sm:$0xff] }
 0x8c6   :  { %7234 = vmatmul.mubr.bf16.vlgmr.msra.gmra.mrb[56].mxu0 %v7008_v24  ;;  %7275 = vmatmul.mubr.bf16.vlgmr.msra.gmra.mrb[56].mxu1 %v7008_v24 }
 0x8c7   :  { %7863 = vmatpush1.bf16.msra.mxu0 %v12423_v43  ;;  %7904 = vmatpush1.bf16.msra.mxu1 %v12428_v44  ;;  %v13590_v43 = vld [vmem:[#allocation48_spill] sm:$0xff]  ;;  %v13591_v44 = vld [vmem:[#allocation49_spill] sm:$0xff] }
 0x8c8   :  { %7864 = vmatprep.subr.bf16.mxu0 %v12437_v45  ;;  %7905 = vmatprep.subr.bf16.mxu1 %v12442_v46  ;;  %v13592_v45 = vld [vmem:[#allocation50_spill] sm:$0xff]  ;;  %v13593_v46 = vld [vmem:[#allocation51_spill] sm:$0xff] }
 0x8cb   :  { %7865 = vmatpush1.bf16.msra.mxu0 %v12447_v47  ;;  %7906 = vmatpush1.bf16.msra.mxu1 %v12452_v54  ;;  %v13594_v47 = vld [vmem:[#allocation52_spill] sm:$0xff]  ;;  %v13595_v54 = vld [vmem:[#allocation53_spill] sm:$0xff] }
 0x8cc   :  { %7866 = vmatprep.subr.bf16.mxu0 %v13557_v21  ;;  %7907 = vmatprep.subr.bf16.mxu1 %v13558_v51 }
 0x8cf   :  { %7867 = vmatpush1.bf16.msra.mxu0 %v13559_v3  ;;  %7908 = vmatpush1.bf16.msra.mxu1 %v13560_v35 }
 0x8d0   :  { %7868 = vmatprep.subr.bf16.mxu0 %v13561_v63  ;;  %7909 = vmatprep.subr.bf16.mxu1 %v13562_v56 }
 0x8d3   :  { %7869 = vmatpush1.bf16.msra.mxu0 %v13563_v10  ;;  %7910 = vmatpush1.bf16.msra.mxu1 %v13564_v62 }
 0x8d4   :  { %7870 = vmatprep.subr.bf16.mxu0 %v13565_v1  ;;  %7911 = vmatprep.subr.bf16.mxu1 %v13566_v6 }
 0x8d7   :  { %7871 = vmatpush1.bf16.msra.mxu0 %v13567_v7  ;;  %7912 = vmatpush1.bf16.msra.mxu1 %v13568_v8  ;;  %v13615_v7 = vld [vmem:[#allocation13_spill] sm:$0xff] }
 0x8d8   :  { %7872 = vmatprep.subr.bf16.mxu0 %v13569_v9  ;;  %7913 = vmatprep.subr.bf16.mxu1 %v13570_v11  ;;  %v6542_v8 = vrot.slane %v6525_v59, %v13615_v7  ;;  %v13616_v11 = vld [vmem:[#allocation14_spill] sm:$0xff] }
 0x8db   :  { %7873 = vmatpush1.bf16.msra.mxu0 %v13571_v12  ;;  %7914 = vmatpush1.bf16.msra.mxu1 %v13572_v26  ;;  %v6538_v12 = vrot.slane %v6525_v59, %v13616_v11 }
 0x8dc   :  { %7874 = vmatprep.subr.bf16.mxu0 %v13573_v23  ;;  %7915 = vmatprep.subr.bf16.mxu1 %v13574_v25 }
 0x8df   :  { %7875 = vmatpush1.bf16.msra.mxu0 %v13575_v27  ;;  %7916 = vmatpush1.bf16.msra.mxu1 %v13576_v28 }
 0x8e0   :  { %7876 = vmatprep.subr.bf16.mxu0 %v13577_v22  ;;  %7917 = vmatprep.subr.bf16.mxu1 %v13578_v36 }
 0x8e3   :  { %7877 = vmatpush1.bf16.msra.mxu0 %v13579_v32  ;;  %7918 = vmatpush1.bf16.msra.mxu1 %v13580_v18 }
 0x8e4   :  { %7878 = vmatprep.subr.bf16.mxu0 %v13581_v16  ;;  %7919 = vmatprep.subr.bf16.mxu1 %v13582_v17 }
 0x8e7   :  { %7879 = vmatpush1.bf16.msra.mxu0 %v13583_v13  ;;  %7920 = vmatpush1.bf16.msra.mxu1 %v13584_v14  ;;  %v6949_v13 = vld [vmem:[#allocation4] sm:$0x3] }
 0x8e8   :  { %7880 = vmatprep.subr.bf16.mxu0 %v13585_v31  ;;  %7921 = vmatprep.subr.bf16.mxu1 %v13586_v30 }
 0x8eb   :  { %7881 = vmatpush1.bf16.msra.mxu0 %v13587_v29  ;;  %7922 = vmatpush1.bf16.msra.mxu1 %v13588_v41 }
 0x8ec   :  { %7882 = vmatprep.subr.bf16.mxu0 %v13589_v42  ;;  %7923 = vmatprep.subr.bf16.mxu1 %v13590_v43 }
 0x8ef   :  { %7883 = vmatpush1.bf16.msra.mxu0 %v13591_v44  ;;  %7924 = vmatpush1.bf16.msra.mxu1 %v13592_v45 }
 0x8f0   :  { %7884 = vmatprep.subr.bf16.mxu0 %v13593_v46  ;;  %7925 = vmatprep.subr.bf16.mxu1 %v13594_v47 }
 0x8f3   :  { %7885 = vmatpush1.bf16.msra.mxu0 %v13595_v54  ;;  %7926 = vmatpush1.bf16.msra.mxu1 %v13596_v58 }
 0x8f4   :  { %7886 = vmatprep.subr.bf16.mxu0 %v13597_v5  ;;  %7927 = vmatprep.subr.bf16.mxu1 %v13598_v55 }
 0x8f7   :  { %7887 = vmatpush1.bf16.msra.mxu0 %v13599_v48  ;;  %7928 = vmatpush1.bf16.msra.mxu1 %v13600_v60 }
 0x8f8   :  { %7888 = vmatprep.subr.bf16.mxu0 %v13601_v20  ;;  %7929 = vmatprep.subr.bf16.mxu1 %v13602_v50  ;;  %v8836_v20 = vld [vmem:[%s12990_s0 + $0x7] ss:$8 sm:$0xf] }
 0x8f9   :  { %v8837_v50 = vld [vmem:[%s12990_s0 + $0x27] ss:$8 sm:$0xf] }
 0x8fb   :  { %7889 = vmatpush1.bf16.msra.mxu0 %v13603_v4  ;;  %7930 = vmatpush1.bf16.msra.mxu1 %v13604_v19 }
 0x8fc   :  { %7890 = vmatprep.subr.bf16.mxu0 %v13605_v57  ;;  %7931 = vmatprep.subr.bf16.mxu1 %v13606_v49 }
 0x8ff   :  { %7891 = vmatpush1.bf16.msra.mxu0 %v13607_v39  ;;  %7932 = vmatpush1.bf16.msra.mxu1 %v13608_v33 }
 0x900   :  { %7892 = vmatprep.subr.bf16.mxu0 %v13609_v0  ;;  %7933 = vmatprep.subr.bf16.mxu1 %v13610_v40 }
 0x903   :  { %7893 = vmatpush1.bf16.msra.mxu0 %v13611_v52  ;;  %7934 = vmatpush1.bf16.msra.mxu1 %v13612_v37 }
 0x979   :  { %v6901_v15 = vpop.f32.mrb[52].mxu0  ;;  %v6942_v24 = vpop.f32.mrb[52].mxu1 }
 0x97a   :  { %v6902_v21 = vadd.f32 %v6901_v15, %v6530_v53  ;;  %v6903_v51 = vpop.f32.mrb[53].mxu0  ;;  %v6944_v3 = vpop.f32.mrb[53].mxu1  ;;  %v6943_v23 = vadd.f32 %v6942_v24, %v6538_v12 }
 0x97b   :  { %v6904_v35 = vadd.f32 %v6903_v51, %v6534_v61  ;;  %v6905_v63 = vpop.f32.mrb[54].mxu0  ;;  %v6946_v56 = vpop.f32.mrb[54].mxu1  ;;  %v6945_v9 = vadd.f32 %v6944_v3, %v6542_v8 }
 0x97c   :  { %v8831_v10 = vmul.f32 -1.442695, %v6902_v21  ;;  %v6906_v62 = vpop.f32.mrb[55].mxu0  ;;  %v6947_v1 = vpop.f32.mrb[55].mxu1 }
 0x97d   :  { %v8832_v6 = vmul.f32 -1.442695, %v6904_v35  ;;  %v8833_v26 = vmul.f32 -1.442695, %v6945_v9 }
 0x97e   :  { %9851 = vpow2.f32 %v8831_v10 }
 0x97f   :  { %9853 = vpow2.f32 %v8832_v6 }
 0x980   :  { %9855 = vpow2.f32 %v8833_v26 }
 0x981   :  { %9857 = vtanh.f32 %v6943_v23  ;;  %v8876_v23 = vld.sshfl [vmem:[#allocation3] sm:$0x11 pattern:$0x75316420] }
 0x988   :  { %v9852_v25 = vpop.eup %9851 }
 0x989   :  { %v9854_v27 = vpop.eup %9853  ;;  %v6953_v28 = vadd.f32 1.0, %v9852_v25 }
 0x98a   :  { %v6959_v22 = vadd.f32 1.0, %v9854_v27  ;;  %v9856_v36 = vpop.eup %9855 }
 0x98b   :  { %9859 = vrcp.f32 %v6953_v28  ;;  %v9858_v32 = vpop.eup %9857  ;;  %v6966_v14 = vadd.f32 1.0, %v9856_v36 }
 0x98c   :  { %9861 = vrcp.f32 %v6959_v22  ;;  %v7384_v22 = vcombine.high %v8876_v23, %v8876_v23 }
 0x98d   :  { %9863 = vrcp.f32 %v6966_v14 }
 0x995   :  { %v9860_v18 = vpop.eup %9859 }
 0x996   :  { %v9862_v16 = vpop.eup %9861  ;;  %v6970_v17 = vmul.f32 %v9860_v18, %v9858_v32 }
 0x997   :  { %v6969_v31 = vmul.f32 %v9862_v16, %v6949_v13  ;;  %v9864_v39 = vpop.eup %9863 }
 0x999   :  { %v6971_v30 = vadd.f32 %v6970_v17, %v6969_v31  ;;  %v7235_v29 = vpop.f32.mrb[56].mxu0  ;;  %v7276_v41 = vpop.f32.mrb[56].mxu1  ;;  %v7391_v17 = vrot.slane %v8876_v23, %v10543_v2  ;;  %v7398_v31 = vrot.slane %v7384_v22, %v10543_v2 }
 0x99a   :  { %v7237_v42 = vpop.f32.mrb[57].mxu0  ;;  %v7278_v43 = vpop.f32.mrb[57].mxu1 }
 0x99b   :  { %9865 = vtanh.f32 %v6971_v30  ;;  %6974 = vst [vmem:[#allocation4] sm:$0x3] %v6971_v30  ;;  %v7287_v44 = vcombine.low %v7235_v29, %v7237_v42  ;;  %v7288_v45 = vcombine.low %v7276_v41, %v7278_v43  ;;  %v7239_v46 = vpop.f32.mrb[58].mxu0  ;;  %v7280_v47 = vpop.f32.mrb[58].mxu1 }
 0x99c   :  { %v7240_v54 = vpop.f32.mrb[59].mxu0  ;;  %v7281_v58 = vpop.f32.mrb[59].mxu1 }
 0x99d   :  { %v7295_v5 = vrot.slane %v7287_v44, %v10543_v2  ;;  %v7302_v55 = vrot.slane %v7288_v45, %v10543_v2 }
 0x99f   :  { %v7303_v48 = vcombine.low %v7295_v5, %v7302_v55  ;;  %v7304_v60 = vcombine.high %v7295_v5, %v7302_v55 }
 0x9a1   :  { %v7311_v4 = vrot.slane %v7303_v48, %v10543_v2  ;;  %v7318_v19 = vrot.slane %v7304_v60, %v10543_v2 }
 0x9a3   :  { %v7321_v57 = vadd.f32 %v8836_v20, %v7311_v4  ;;  %v7322_v49 = vadd.f32 %v8837_v50, %v7318_v19 }
 0x9a5   :  { %v9866_v33 = vpop.eup %9865  ;;  %v8870_v0 = vmul.f32 -1.442695, %v7321_v57  ;;  %v8871_v40 = vmul.f32 -1.442695, %v7322_v49  ;;  %v7338_v52 = vrot.slane %v7321_v57, 1  ;;  %v7339_v37 = vrot.slane %v7322_v49, 1 }
 0x9a6   :  { %v6973_v59 = vmul.f32 %v9866_v33, %v9864_v39  ;;  %v7360_v21 = vrot.slane %v7321_v57, 3  ;;  %v7361_v51 = vrot.slane %v7322_v49, 3  ;;  %v7354_v3 = vrot.slane %v7321_v57, 2  ;;  %v7520_v39 = vld [vmem:[%s12993_s3] sm:$0xf]  ;;  %s9997_s3 = smov [#allocation7]  }
 0x9a7   :  { %9867 = vpow2.f32 %v8870_v0  ;;  %v8872_v53 = vmul.f32 -1.442695, %v7338_v52  ;;  %v8873_v61 = vmul.f32 -1.442695, %v7339_v37  ;;  %v7355_v35 = vrot.slane %v7322_v49, 2  ;;  %s8027_s12 = sshll.u32 %s9997_s3, 4  ;;  %s8028_s12 = int_to_ptr.vmem [resolvable:$true] %s8027_s12 }
 0x9a8   :  { %v6983_v15 = vrot.slane %v6973_v59, %v10543_v2  ;;  %6975 = vst [vmem:[#allocation2 + $0x2] sm:$0x3] %v6973_v59  ;;  %9869 = vpow2.f32 %v8871_v40  ;;  %v8874_v63 = vmul.f32 -1.442695, %v7360_v21  ;;  %v8875_v56 = vmul.f32 -1.442695, %v7361_v51  ;;  %p9952_p1 = scmp.lt.s32.totalorder %s8028_s12, %s8028_s12 }
 0x9a9   :  { %9871 = vpow2.f32 %v8872_v53  ;;  %v7525_v33 = vrot.slane %v7520_v39, %v13613_v34  ;;  %v7529_v0 = vrot.slane %v7520_v39, %v13614_v38  ;;  %v7533_v34 = vrot.slane %v7520_v39, %v13616_v11  ;;  %s9947_s13 = scalar_lea.vmem %s8028_s12, 64 }
 0x9aa   :  { %v6984_v24 = vcombine.high %v6983_v15, %v6983_v15  ;;  %8834 = vst.sshfl [vmem:[%s12996_s6 + $0x6] sm:$0x1 pattern:$0x73625140] %v6983_v15  ;;  %9873 = vpow2.f32 %v8873_v61  ;;  %p9948_p0 = scmp.ne.s32.totalorder %s8028_s12, %s9947_s13  ;;  %p9953_p2 = scmp.lt.s32.totalorder %s9947_s13, %s9947_s13 }
 0x9ab   :  { %9875 = vtanh.f32 %v7354_v3 }
 0x9ac   :  { %8835 = vst.sshfl [vmem:[%s12996_s6 + $0xe] sm:$0x1 pattern:$0x73625140] %v6984_v24  ;;  %9877 = vtanh.f32 %v7355_v35  ;;  %p9954_p3 = por %p9953_p2, %p9952_p1 }
 0x9ad   :  { %9879 = vpow2.f32 %v8874_v63  ;;  %v7537_v63 = vrot.slane %v7520_v39, %v13615_v7 }
 0x9ae   :  { %9881 = vpow2.f32 %v8875_v56  ;;  %p9955_p4 = pnand %p9954_p3, %p9948_p0 }
 0x9b1   :  { %v9868_v10 = vpop.eup %9867 }
 0x9b2   :  { %v9870_v62 = vpop.eup %9869  ;;  %v7330_v1 = vadd.f32 1.0, %v9868_v10 }
 0x9b3   :  { %v9872_v6 = vpop.eup %9871  ;;  %v7331_v8 = vadd.f32 1.0, %v9870_v62 }
 0x9b4   :  { %v9874_v9 = vpop.eup %9873  ;;  %9883 = vrcp.f32 %v7330_v1  ;;  %v7348_v12 = vadd.f32 1.0, %v9872_v6 }
 0x9b5   :  { %9885 = vrcp.f32 %v7331_v8  ;;  %v7349_v26 = vadd.f32 1.0, %v9874_v9  ;;  %v9876_v25 = vpop.eup %9875 }
 0x9b6   :  { %9887 = vrcp.f32 %v7348_v12  ;;  %v9878_v27 = vpop.eup %9877 }
 0x9b7   :  { %9889 = vrcp.f32 %v7349_v26  ;;  %v9880_v28 = vpop.eup %9879 }
 0x9b8   :  { %v9882_v36 = vpop.eup %9881  ;;  %v7370_v16 = vadd.f32 1.0, %v9880_v28 }
 0x9b9   :  { %v7371_v14 = vadd.f32 1.0, %v9882_v36 }
 0x9ba   :  { %9891 = vrcp.f32 %v7370_v16 }
 0x9bb   :  { %9893 = vrcp.f32 %v7371_v14 }
 0x9be   :  { %v9884_v32 = vpop.eup %9883 }
 0x9bf   :  { %v9886_v18 = vpop.eup %9885  ;;  %v7403_v41 = vmul.f32 %v9884_v32, %v9876_v25  ;;  %v7944_v25 = vld [vmem:[#allocation4] sm:$0x3] }
 0x9c0   :  { %v9888_v13 = vpop.eup %9887  ;;  %v7404_v43 = vmul.f32 %v9886_v18, %v9878_v27 }
 0x9c1   :  { %v9890_v30 = vpop.eup %9889  ;;  %v7401_v29 = vmul.f32 %v9888_v13, %v7391_v17 }
 0x9c2   :  { %v7402_v42 = vmul.f32 %v9890_v30, %v7398_v31 }
 0x9c3   :  { %v7405_v44 = vadd.f32 %v7403_v41, %v7401_v29 }
 0x9c4   :  { %v7406_v45 = vadd.f32 %v7404_v43, %v7402_v42  ;;  %v9892_v54 = vpop.eup %9891 }
 0x9c5   :  { %9895 = vtanh.f32 %v7405_v44  ;;  %v9894_v58 = vpop.eup %9893 }
 0x9c6   :  { %9897 = vtanh.f32 %v7406_v45  ;;  %v7413_v46 = vcombine.low %v7405_v44, %v7406_v45 }
 0x9c8   :  { %v7420_v47 = vrot.slane %v7413_v46, %v10543_v2 }
 0x9ca   :  { %8877 = vst.sshfl [vmem:[#allocation3] sm:$0x5 pattern:$0x73625140] %v7420_v47 }
 0x9cf   :  { %v9896_v5 = vpop.eup %9895 }
 0x9d0   :  { %v9898_v55 = vpop.eup %9897  ;;  %v7409_v48 = vmul.f32 %v9896_v5, %v9892_v54 }
 0x9d1   :  { %v7410_v60 = vmul.f32 %v9898_v55, %v9894_v58  ;;  %v8003_v20 = vld [vmem:[#allocation3] sm:$0x3] }
 0x9d2   :  { %8004 = vst [vmem:[#allocation7] sm:$0x3] %v8003_v20 }
 0x9d3   :  { %v7432_v50 = vcombine.low %v7409_v48, %v7410_v60 }
 0x9d5   :  { %8878 = vst.sshfl [vmem:[#allocation2] sm:$0x11 pattern:$0x75316420] %v7432_v50 }
 0x9dc   :  { %v8879_v4 = vld.sshfl [vmem:[#allocation2] sm:$0x33 pattern:$0x76325410] }
 0x9dd   :  { %v7451_v19 = vcombine.high %v8879_v4, %v8879_v4  ;;  %v7454_v49 = vpack.c.bf16 %v8879_v4, %v8879_v4 }
 0x9df   :  { %v7455_v57 = vpack.c.bf16 %v7451_v19, %v7451_v19 }
 0x9e1   :  { %7894 = vmatprep.mubr.bf16.mxu0 %v7455_v57  ;;  %7935 = vmatprep.mubr.bf16.mxu1 %v7455_v57 }
 0x9e2   :  { %7895 = vmatmul.mubr.bf16.vlgmr.msra.gmra.mrb[60].mxu0 %v7454_v49  ;;  %7936 = vmatmul.mubr.bf16.vlgmr.msra.gmra.mrb[60].mxu1 %v7454_v49 }
 0xab5   :  { %v7896_v40 = vpop.f32.mrb[60].mxu0  ;;  %v7937_v52 = vpop.f32.mrb[60].mxu1 }
 0xab6   :  { %v7897_v37 = vadd.f32 %v7896_v40, %v7525_v33  ;;  %v7898_v59 = vpop.f32.mrb[61].mxu0  ;;  %v7939_v53 = vpop.f32.mrb[61].mxu1  ;;  %v7938_v10 = vadd.f32 %v7937_v52, %v7533_v34 }
 0xab7   :  { %v7899_v61 = vadd.f32 %v7898_v59, %v7529_v0  ;;  %v7900_v15 = vpop.f32.mrb[62].mxu0  ;;  %v7941_v24 = vpop.f32.mrb[62].mxu1  ;;  %v7940_v56 = vadd.f32 %v7939_v53, %v7537_v63 }
 0xab8   :  { %v8944_v21 = vmul.f32 -1.442695, %v7897_v37  ;;  %v7901_v51 = vpop.f32.mrb[63].mxu0  ;;  %v7942_v3 = vpop.f32.mrb[63].mxu1 }
 0xab9   :  { %v8945_v35 = vmul.f32 -1.442695, %v7899_v61  ;;  %v8946_v38 = vmul.f32 -1.442695, %v7940_v56 }
 0xaba   :  { %9899 = vpow2.f32 %v8944_v21 }
 0xabb   :  { %9901 = vpow2.f32 %v8945_v35 }
 0xabc   :  { %9903 = vpow2.f32 %v8946_v38 }
 0xabd   :  { %9905 = vtanh.f32 %v7938_v10 }
 0xac4   :  { %v9900_v62 = vpop.eup %9899 }
 0xac5   :  { %v9902_v1 = vpop.eup %9901  ;;  %v7948_v6 = vadd.f32 1.0, %v9900_v62 }
 0xac6   :  { %v7954_v8 = vadd.f32 1.0, %v9902_v1  ;;  %v9904_v9 = vpop.eup %9903 }
 0xac7   :  { %9907 = vrcp.f32 %v7948_v6  ;;  %v9906_v12 = vpop.eup %9905  ;;  %v7961_v27 = vadd.f32 1.0, %v9904_v9 }
 0xac8   :  { %9909 = vrcp.f32 %v7954_v8 }
 0xac9   :  { %9911 = vrcp.f32 %v7961_v27 }
 0xad1   :  { %v9908_v26 = vpop.eup %9907 }
 0xad2   :  { %v9910_v23 = vpop.eup %9909  ;;  %v7965_v7 = vmul.f32 %v9908_v26, %v9906_v12 }
 0xad3   :  { %v7964_v28 = vmul.f32 %v9910_v23, %v7944_v25  ;;  %v9912_v36 = vpop.eup %9911 }
 0xad5   :  { %v7966_v22 = vadd.f32 %v7965_v7, %v7964_v28 }
 0xad7   :  { %9913 = vtanh.f32 %v7966_v22  ;;  %7969 = vst [vmem:[#allocation4] sm:$0x3] %v7966_v22 }
 0xade   :  { %v8005_v11 = vld [vmem:[#allocation4] sm:$0x3] }
 0xadf   :  { %8007 = vst [vmem:[#allocation7 + $0x2] sm:$0x3] %v8005_v11 }
 0xae0   :  { %9958 = shalt.err (!%p9955_p4)
}
 0xae1   :  { %s9959_s16 = scalar_lea.hbm %s12998_s8, 64 }
 0xae2   :  { %p9960_p5 = scmp.ne.s32.totalorder %s12998_s8, %s9959_s16  ;;  %p9963_p6 = scmp.lt.u32.totalorder %s9959_s16, %s12998_s8 }
 0xae4   :  { %p9965_p7 = pnand %p9963_p6, %p9960_p5 }
 0xae6   :  { %9968 = shalt.err (!%p9965_p7)
}
 0xae7   :  { %s9998_s19 = smov 32   ;;  %s9999_s20 = smov 2   ;;  %v9914_v32 = vpop.eup %9913 }
 0xae8   :  { %8033 = dma.vmem_to_hbm [thread:$0]  %s8028_s12, 64, %s12998_s8, [#allocation8], %s9998_s19, %s9998_s19, %s9999_s20   ;;  %v7968_v18 = vmul.f32 %v9914_v32, %v9912_v36 }
 0xae9   :  { %s10000_s5 = smov [#allocation5]  }
 0xaea   :  { %v7978_v16 = vrot.slane %v7968_v18, %v10543_v2  ;;  %7970 = vst [vmem:[#allocation2 + $0x2] sm:$0x3] %v7968_v18  ;;  %s8015_s24 = sshll.u32 %s10000_s5, 4  ;;  %s8016_s24 = int_to_ptr.vmem [resolvable:$true] %s8015_s24 }
 0xaeb   :  { %s9969_s8 = scalar_lea.vmem %s8016_s24, 64  ;;  %p9974_p9 = scmp.lt.s32.totalorder %s8016_s24, %s8016_s24 }
 0xaec   :  { %v7979_v17 = vcombine.high %v7978_v16, %v7978_v16  ;;  %8947 = vst.sshfl [vmem:[%s12996_s6 + $0x7] sm:$0x1 pattern:$0x73625140] %v7978_v16  ;;  %p9970_p8 = scmp.ne.s32.totalorder %s8016_s24, %s9969_s8  ;;  %p9975_p10 = scmp.lt.s32.totalorder %s9969_s8, %s9969_s8 }
 0xaee   :  { %8948 = vst.sshfl [vmem:[%s12996_s6 + $0xf] sm:$0x1 pattern:$0x73625140] %v7979_v17  ;;  %p9976_p11 = por %p9975_p10, %p9974_p9 }
 0xaf0   :  { %p9977_p12 = pnand %p9976_p11, %p9970_p8 }
 0xaf1   :  { %v7998_v13 = vld [vmem:[#allocation2] sm:$0xf]  }
 0xaf2   :  { %7999 = vst [vmem:[#allocation5] sm:$0xf] %v7998_v13  }
 0xaf3   :  { %9980 = shalt.err (!%p9977_p12)
}
 0xaf4   :  { %s9981_s0 = scalar_lea.hbm %s12997_s7, 64 }
 0xaf5   :  { %p9982_p13 = scmp.ne.s32.totalorder %s12997_s7, %s9981_s0  ;;  %p9985_p0 = scmp.lt.u32.totalorder %s9981_s0, %s12997_s7 }
 0xaf7   :  { %p9987_p1 = pnand %p9985_p0, %p9982_p13 }
 0xaf9   :  { %9990 = shalt.err (!%p9987_p1)
}
 0xafa   :  { %8021 = dma.vmem_to_hbm [thread:$0]  %s8016_s24, 64, %s12997_s7, [#allocation6], %s9998_s19, %s9998_s19, %s9999_s20  }
 0xafb   :  { %9991 = dma.done.wait [#allocation6], 64  }
 0xafc   :  { %9992 = vsyncadd [#allocation6], 4294967232 }
 0xafd   :  { %9993 = dma.done.wait [#allocation8], 64  }
 0xafe   :  { %9994 = vsyncadd [#allocation8], 4294967232 }
 0xaff   :  { %8042 = vsyncpa [#allocation6], 1 }
 0xb00   :  { %8043 = vsyncpa [#allocation8], 1 }

</bundles_post_ra>
